<compile_context>
chip_gen: v7x
topology: tpu7x:2x2x1
jax: 0.10.0
libtpu: 0.0.40
codegen_flags: <defaults>
</compile_context>

<pallas_src>
import math
from functools import partial

import jax
import jax.numpy as jnp
from jax import lax
from jax.experimental import pallas as pl
from jax.experimental.pallas import tpu as pltpu


# ---------------------------------------------------------------------------
# Kernel 1: token-mask * LayerNorm1 -> MultiHeadedPooling (online softmax over
#           token tiles, MXU weighted sum) -> per-head LayerNorm2.
#           Grid = (sentence-tiles, token-tiles); token axis is the reduction.
# ---------------------------------------------------------------------------
def _pooling_kernel(x_ref, mt_ref, g1_ref, b1_ref, wp_ref, bp_ref,
                    g2_ref, b2_ref, diag_ref, hv_ref,
                    m_ref, l_ref, acc_ref, *, heads, d_per_head):
    f32 = jnp.float32
    H, dph = heads, d_per_head
    ts, tt, D = x_ref.shape
    cdt = wp_ref.dtype                                     # matmul compute dtype
    j = pl.program_id(1)

    @pl.when(j == 0)
    def _init():
        m_ref[...] = jnp.full_like(m_ref, -1e30)
        l_ref[...] = jnp.zeros_like(l_ref)
        acc_ref[...] = jnp.zeros_like(acc_ref)

    diag = diag_ref[...]                                   # (H, D) block-structure mask

    # ---- token mask + LayerNorm1 over d_model (f32 math) ---------------------
    mt = mt_ref[...].astype(f32)                           # (ts, tt, 1)  1 = real token
    x = x_ref[...].astype(f32) * mt                        # (ts, tt, D)
    mu = jnp.mean(x, axis=-1, keepdims=True)
    var = jnp.mean((x - mu) ** 2, axis=-1, keepdims=True)
    word = (x - mu) * lax.rsqrt(var + 1e-6)
    word = word * g1_ref[...].astype(f32) + b1_ref[...].astype(f32)

    # ---- fused pooling projection (values | scores) on the MXU ---------------
    word2 = word.reshape(ts * tt, D).astype(cdt)
    kv = jnp.dot(word2, wp_ref[...], preferred_element_type=f32)
    kv = kv + bp_ref[...].astype(f32)                      # (ts*tt, D + H)
    values = kv[:, :D].reshape(ts, tt, D)
    scores = kv[:, D:].reshape(ts, tt, H)
    scores = jnp.where(mt > 0.0, scores, -1e18)            # mask pad tokens

    # ---- online softmax over the token axis -----------------------------------
    m_tile = jnp.max(scores, axis=1)                       # (ts, H)
    m_new = jnp.maximum(m_ref[...], m_tile)
    alpha = jnp.exp(m_ref[...] - m_new)                    # (ts, H)
    p = jnp.exp(scores - m_new[:, None, :])                # (ts, tt, H)
    l_ref[...] = alpha * l_ref[...] + jnp.sum(p, axis=1)
    m_ref[...] = m_new

    # token-weighted value sum on the MXU (batched over sentences), then
    # diagonal-block extraction back to the lane-dense (ts, D) layout.
    contrib = jnp.einsum('sth,std->shd', p.astype(cdt), values.astype(cdt),
                         preferred_element_type=f32)       # (ts, H, D)
    ctx_tile = jnp.sum(contrib * diag[None, :, :], axis=1)             # (ts, D)
    alpha_exp = jnp.dot(alpha, diag, preferred_element_type=f32)       # (ts, D)
    acc_ref[...] = alpha_exp * acc_ref[...] + ctx_tile

    # ---- finalize: normalize + per-head LayerNorm2, one lane-dense store ------
    @pl.when(j == pl.num_programs(1) - 1)
    def _done():
        l_exp = jnp.dot(l_ref[...], diag, preferred_element_type=f32)  # (ts, D)
        ctx = acc_ref[...] * pl.reciprocal(l_exp, approx=True)
        inv_dph = 1.0 / dph
        # per-head mean / var via tiny block-mask matmuls (keeps layout lane-dense)
        bm = lax.dot_general(ctx, diag, (((1,), (1,)), ((), ())),
                             preferred_element_type=f32) * inv_dph      # (ts, H)
        bsq = lax.dot_general(ctx * ctx, diag, (((1,), (1,)), ((), ())),
                              preferred_element_type=f32) * inv_dph     # (ts, H)
        inv = lax.rsqrt(jnp.maximum(bsq - bm * bm, 0.0) + 1e-6)         # (ts, H)
        mu_exp = jnp.dot(bm, diag, preferred_element_type=f32)          # (ts, D)
        inv_exp = jnp.dot(inv, diag, preferred_element_type=f32)        # (ts, D)
        hv = (ctx - mu_exp) * inv_exp * g2_ref[...].astype(f32) + b2_ref[...].astype(f32)
        hv_ref[...] = hv.astype(hv_ref.dtype)


# ---------------------------------------------------------------------------
# Kernel 2: inter-sentence multi-head attention (block-diagonal fused QKV),
#           grid over batch; single lane-dense (S, D) store.
# ---------------------------------------------------------------------------
def _inter_att_kernel(hv_ref, mc_ref, wqkv_ref, bqkv_ref, out_ref,
                      *, heads, d_per_head):
    f32 = jnp.float32
    H, dph = heads, d_per_head
    S, D = hv_ref.shape[1], hv_ref.shape[2]
    cdt = wqkv_ref.dtype

    hv = hv_ref[0].astype(cdt)                                         # (S, D)
    qkv = jnp.dot(hv, wqkv_ref[...], preferred_element_type=f32)
    qkv = qkv + bqkv_ref[...].astype(f32)                              # (S, 3D)
    scale = 1.0 / math.sqrt(dph)
    q = (qkv[:, :D] * scale).reshape(S, H, dph).transpose(1, 0, 2)     # (H, S, dph)
    k = qkv[:, D:2 * D].reshape(S, H, dph).transpose(1, 0, 2)
    v = qkv[:, 2 * D:].reshape(S, H, dph).transpose(1, 0, 2)

    sc = jnp.einsum('hqd,hkd->hqk', q.astype(cdt), k.astype(cdt),
                    preferred_element_type=f32)                        # (H, S, S)
    sc = jnp.where(mc_ref[0].astype(f32) > 0.0, sc, -1e18)             # mask pad sentences
    smax = jnp.max(sc, axis=-1, keepdims=True)
    p = jnp.exp(sc - smax)
    attn = p * pl.reciprocal(jnp.sum(p, axis=-1, keepdims=True), approx=True)
    ctx = jnp.einsum('hqk,hkd->hqd', attn.astype(cdt), v.astype(cdt),
                     preferred_element_type=f32)                       # (H, S, dph)

    # single lane-dense (S, D) store in the layout kernel 3 consumes
    out_ref[0] = ctx.transpose(1, 0, 2).reshape(S, D).astype(out_ref.dtype)


# ---------------------------------------------------------------------------
# Kernel 3: output linear + PositionwiseFeedForward (LN -> w1 -> gelu -> w2
#           -> +residual) + encoder final LayerNorm.  Grid over row tiles.
# ---------------------------------------------------------------------------
def _ffn_kernel(c_ref, wl_ref, bl_ref, gff_ref, bff_ref, w1_ref, b1_ref,
                w2_ref, b2_ref, gfin_ref, bfin_ref, out_ref):
    f32 = jnp.float32
    cdt = wl_ref.dtype
    ctx = c_ref[...].astype(cdt)                                       # (tm, D)
    c = jnp.dot(ctx, wl_ref[...], preferred_element_type=f32) + bl_ref[...].astype(f32)

    # PositionwiseFeedForward: w2(gelu(w1(LN(c)))) + c   (dropout = identity)
    mu = jnp.mean(c, axis=-1, keepdims=True)
    var = jnp.mean((c - mu) ** 2, axis=-1, keepdims=True)
    h = (c - mu) * lax.rsqrt(var + 1e-6)
    h = h * gff_ref[...].astype(f32) + bff_ref[...].astype(f32)
    a = jnp.dot(h.astype(cdt), w1_ref[...], preferred_element_type=f32) + b1_ref[...].astype(f32)
    # PreSumm's gelu: tanh approximation (f32 epilogue, EUP tanh)
    a = 0.5 * a * (1.0 + jnp.tanh(math.sqrt(2.0 / math.pi) *
                                  (a + 0.044715 * a * a * a)))
    f = jnp.dot(a.astype(cdt), w2_ref[...], preferred_element_type=f32) + b2_ref[...].astype(f32)
    o = f + c

    # encoder-level final LayerNorm
    mu2 = jnp.mean(o, axis=-1, keepdims=True)
    var2 = jnp.mean((o - mu2) ** 2, axis=-1, keepdims=True)
    out_ref[...] = ((o - mu2) * lax.rsqrt(var2 + 1e-6) * gfin_ref[...].astype(f32)
                    + bfin_ref[...].astype(f32)).astype(out_ref.dtype)


# ---------------------------------------------------------------------------
# Generation-aware tuning + wrapper
# ---------------------------------------------------------------------------
def _round_up(x, m):
    return (x + m - 1) // m * m


def _tpu_tuning():
    """VMEM budget + FFN row tile per TPU generation.
    v5e/v6e: 128 MiB VMEM -> ~96 MiB limit; v7x: 64 MiB physical -> ~48 MiB limit.
    v5e MXU is 128-wide -> tm=128; v6e/v7x are 256-wide -> tm=256."""
    vmem_cap = 64 * 1024 * 1024                       # conservative fallback
    try:
        vmem_cap = int(pltpu.get_tpu_info().vmem_capacity_bytes)
    except Exception:
        pass
    kind = ""
    try:
        kind = jax.devices()[0].device_kind.lower()
    except Exception:
        pass
    is_v5e = ("v5 lite" in kind) or ("v5e" in kind) or ("v5litepod" in kind)
    vmem_limit = min(vmem_cap * 3 // 4, 100 * 1024 * 1024)
    tm_ffn = 128 if is_v5e else 256
    return vmem_limit, tm_ffn


def transformer_inter_encoder(top_vecs, mask_token, mask_cls, p, *, heads,
                              compute_dtype=jnp.float32, out_dtype=None,
                              single_buffer_weights=True):
    f32 = jnp.float32
    cdt = compute_dtype
    out_dtype = f32 if out_dtype is None else out_dtype
    B, S, T, D = top_vecs.shape
    H = heads
    dph = D // H
    BS = B * S
    d_ff = p["ffn_w1"].shape[1]

    vmem_limit, tm_ffn = _tpu_tuning()
    # constant index maps => re-fetch is skipped; request a single weight buffer too.
    wmode = pl.Buffered(1) if single_buffer_weights else None
    cp_2d = pltpu.CompilerParams(dimension_semantics=("parallel", "arbitrary"),
                                 vmem_limit_bytes=vmem_limit)
    cp_1d = pltpu.CompilerParams(dimension_semantics=("parallel",),
                                 vmem_limit_bytes=vmem_limit)

    # ----------------------- Kernel 1: pooling -------------------------------
    # token tile (reduction axis) + sentence-row tile bounded by the VMEM budget
    tt = T if T <= 256 else 256
    T_p = _round_up(T, tt)
    per_row = tt * max(D, 128) * 4 * 4                 # ~4 f32 copies of a (tt, D) slab
    ts = max(16, min(256, (vmem_limit // 3) // per_row))
    ts = max(16, (ts // 16) * 16)
    ts = min(ts, _round_up(BS, 16))
    BS_p = _round_up(BS, ts)

    x = top_vecs.astype(cdt).reshape(BS, T, D)
    mt = mask_token.astype(f32).reshape(BS, T)[..., None]              # (BS, T, 1)
    if T_p != T:
        x = jnp.pad(x, ((0, 0), (0, T_p - T), (0, 0)))
        mt = jnp.pad(mt, ((0, 0), (0, T_p - T), (0, 0)))
    if BS_p != BS:
        x = jnp.pad(x, ((0, BS_p - BS), (0, 0), (0, 0)))
        mt = jnp.pad(mt, ((0, BS_p - BS), (0, 0), (0, 0)))

    # host-side weight fusion / dtype plumbing (once, outside the kernels)
    w_pool = jnp.concatenate([p["pool_wv"], p["pool_wk"]], axis=1).astype(cdt)   # (D, D+H)
    b_pool = jnp.concatenate([p["pool_bv"], p["pool_bk"]], axis=1).astype(f32)   # (1, D+H)
    g2_full = jnp.tile(p["ln2_g"].astype(f32), (1, H))                            # (1, D)
    b2_full = jnp.tile(p["ln2_b"].astype(f32), (1, H))
    diag = jnp.repeat(jnp.eye(H, dtype=f32), dph, axis=1)                          # (H, D)

    const_2d = lambda r, c: pl.BlockSpec((r, c), lambda i, j: (0, 0), pipeline_mode=wmode)
    hv = pl.pallas_call(
        partial(_pooling_kernel, heads=H, d_per_head=dph),
        out_shape=jax.ShapeDtypeStruct((BS_p, D), cdt),
        grid=(BS_p // ts, T_p // tt),
        in_specs=[
            pl.BlockSpec((ts, tt, D), lambda i, j: (i, j, 0)),
            pl.BlockSpec((ts, tt, 1), lambda i, j: (i, j, 0)),
            const_2d(1, D), const_2d(1, D),                # LN1 gamma/beta
            const_2d(D, D + H), const_2d(1, D + H),        # fused pooling values|keys
            const_2d(1, D), const_2d(1, D),                # LN2 gamma/beta (head-tiled)
            const_2d(H, D),                                # block-diagonal head mask
        ],
        out_specs=pl.BlockSpec((ts, D), lambda i, j: (i, 0)),
        scratch_shapes=[pltpu.VMEM((ts, H), f32),          # running max
                        pltpu.VMEM((ts, H), f32),          # running denom
                        pltpu.VMEM((ts, D), f32)],         # running weighted sum
        compiler_params=cp_2d,
    )(x, mt, p["ln1_g"], p["ln1_b"], w_pool, b_pool, g2_full, b2_full, diag)

    # --------------------- Kernel 2: inter-sentence attention ----------------
    hv3 = hv[:BS].reshape(B, S, D)
    mc = mask_cls.astype(f32)[:, None, :]                              # (B, 1, S)

    # block-diagonal per-head QKV (lane-dense; q/k/v slices fall on D boundaries)
    eyeH = jnp.eye(H, dtype=f32)
    w_qkv = jnp.concatenate([jnp.kron(eyeH, p["att_wq"]),
                             jnp.kron(eyeH, p["att_wk"]),
                             jnp.kron(eyeH, p["att_wv"])], axis=1).astype(cdt)    # (D, 3D)
    b_qkv = jnp.concatenate([jnp.tile(p["att_bq"], (1, H)),
                             jnp.tile(p["att_bk"], (1, H)),
                             jnp.tile(p["att_bv"], (1, H))], axis=1).astype(f32)  # (1, 3D)

    const_1d = lambda r, c: pl.BlockSpec((r, c), lambda i: (0, 0), pipeline_mode=wmode)
    ctx = pl.pallas_call(
        partial(_inter_att_kernel, heads=H, d_per_head=dph),
        out_shape=jax.ShapeDtypeStruct((B, S, D), cdt),
        grid=(B,),
        in_specs=[
            pl.BlockSpec((1, S, D), lambda b: (b, 0, 0)),
            pl.BlockSpec((1, 1, S), lambda b: (b, 0, 0)),
            const_1d(D, 3 * D), const_1d(1, 3 * D),
        ],
        out_specs=pl.BlockSpec((1, S, D), lambda b: (b, 0, 0)),
        compiler_params=cp_1d,
    )(hv3, mc, w_qkv, b_qkv)

    # ------------------ Kernel 3: linear + FFN + final LayerNorm -------------
    ctx2 = ctx.reshape(BS, D)
    tm = min(tm_ffn, _round_up(BS, 16))
    BS_pad = _round_up(BS, tm)
    if BS_pad != BS:
        ctx2 = jnp.pad(ctx2, ((0, BS_pad - BS), (0, 0)))

    sent = pl.pallas_call(
        _ffn_kernel,
        out_shape=jax.ShapeDtypeStruct((BS_pad, D), out_dtype),
        grid=(BS_pad // tm,),
        in_specs=[
            pl.BlockSpec((tm, D), lambda i: (i, 0)),
            const_1d(D, D), const_1d(1, D),                # self.linear
            const_1d(1, D), const_1d(1, D),                # FFN layer_norm
            const_1d(D, d_ff), const_1d(1, d_ff),          # FFN w_1
            const_1d(d_ff, D), const_1d(1, D),             # FFN w_2
            const_1d(1, D), const_1d(1, D),                # encoder final layer_norm
        ],
        out_specs=pl.BlockSpec((tm, D), lambda i: (i, 0)),
        compiler_params=cp_1d,
    )(ctx2, p["lin_w"].astype(cdt), p["lin_b"], p["ffn_ln_g"], p["ffn_ln_b"],
      p["ffn_w1"].astype(cdt), p["ffn_b1"], p["ffn_w2"].astype(cdt), p["ffn_b2"],
      p["final_ln_g"], p["final_ln_b"])

    return sent[:BS].reshape(B, S, D)


# ---------------------------------------------------------------------------
# Deterministic synthetic parameters ((in, out) layout so kernels compute x@W+b).
# ---------------------------------------------------------------------------
def init_params(key, d_model, d_ff, heads):
    dph = d_model // heads
    ks = jax.random.split(key, 16)
    n = lambda k, shape: jax.random.normal(k, shape, jnp.float32) * 0.05
    return dict(
        ln1_g=jnp.ones((1, d_model), jnp.float32),
        ln1_b=jnp.zeros((1, d_model), jnp.float32),
        pool_wk=n(ks[0], (d_model, heads)),   pool_bk=n(ks[1], (1, heads)),
        pool_wv=n(ks[2], (d_model, d_model)), pool_bv=n(ks[3], (1, d_model)),
        ln2_g=jnp.ones((1, dph), jnp.float32),
        ln2_b=jnp.zeros((1, dph), jnp.float32),
        att_wq=n(ks[4], (dph, dph)), att_bq=n(ks[5], (1, dph)),
        att_wk=n(ks[6], (dph, dph)), att_bk=n(ks[7], (1, dph)),
        att_wv=n(ks[8], (dph, dph)), att_bv=n(ks[9], (1, dph)),
        lin_w=n(ks[10], (d_model, d_model)), lin_b=n(ks[11], (1, d_model)),
        ffn_ln_g=jnp.ones((1, d_model), jnp.float32),
        ffn_ln_b=jnp.zeros((1, d_model), jnp.float32),
        ffn_w1=n(ks[12], (d_model, d_ff)), ffn_b1=n(ks[13], (1, d_ff)),
        ffn_w2=n(ks[14], (d_ff, d_model)), ffn_b2=n(ks[15], (1, d_model)),
        final_ln_g=jnp.ones((1, d_model), jnp.float32),
        final_ln_b=jnp.zeros((1, d_model), jnp.float32),
    )


# ---------------------------------------------------------------------------
# Pure-JAX reference (mirrors the PyTorch forward in eval mode) for checking.
# ---------------------------------------------------------------------------
def reference(top_vecs, mask_token, mask_cls, p, heads):
    B, S, T, D = top_vecs.shape
    dph = D // heads

    def ln(v, g, b, eps=1e-6):
        mu = v.mean(-1, keepdims=True)
        var = ((v - mu) ** 2).mean(-1, keepdims=True)
        return (v - mu) / jnp.sqrt(var + eps) * g + b

    x = (top_vecs * mask_token[..., None].astype(jnp.float32)).reshape(B * S, T, D)
    mtok = mask_token.reshape(B * S, T)
    word = ln(x, p["ln1_g"][0], p["ln1_b"][0])
    scores = word @ p["pool_wk"] + p["pool_bk"][0]
    values = word @ p["pool_wv"] + p["pool_bv"][0]
    scores = jnp.where(mtok[:, :, None], scores, -1e18)
    attn = jax.nn.softmax(scores, axis=1)
    values = values.reshape(B * S, T, heads, dph)
    ctx = jnp.einsum("bth,bthd->bhd", attn, values)
    head = ln(ctx.reshape(-1, dph), p["ln2_g"][0], p["ln2_b"][0])
    head = head.reshape(B, S, heads, dph).transpose(0, 2, 1, 3).reshape(B * heads, S, dph)
    q = (head @ p["att_wq"] + p["att_bq"][0]) / math.sqrt(dph)
    k = head @ p["att_wk"] + p["att_bk"][0]
    v = head @ p["att_wv"] + p["att_bv"][0]
    sc = jnp.einsum("bqd,bkd->bqk", q, k)
    mcl = jnp.broadcast_to(mask_cls[:, None, :], (B, heads, S)).reshape(B * heads, 1, S)
    sc = jnp.where(mcl, sc, -1e18)
    a = jax.nn.softmax(sc, axis=-1)
    c = (a @ v).reshape(B, heads, S, dph).transpose(0, 2, 1, 3).reshape(B * S, D)
    c = c @ p["lin_w"] + p["lin_b"][0]
    h = ln(c, p["ffn_ln_g"][0], p["ffn_ln_b"][0])
    a1 = h @ p["ffn_w1"] + p["ffn_b1"][0]
    a1 = 0.5 * a1 * (1.0 + jnp.tanh(math.sqrt(2.0 / math.pi) * (a1 + 0.044715 * a1 ** 3)))
    o = a1 @ p["ffn_w2"] + p["ffn_b2"][0] + c
    o = ln(o, p["final_ln_g"][0], p["final_ln_b"][0])
    return o.reshape(B, S, D)


if __name__ == "__main__":
    B, S, T = 2, 8, 16
    d_model, heads, d_ff = 32, 4, 64

    key = jax.random.PRNGKey(0)
    k_x, k_p = jax.random.split(key)
    top_vecs = jax.random.normal(k_x, (B, S, T, d_model), jnp.float32)

    # deterministic masks: variable token lengths per sentence, some padded sentences
    tok_ids = jnp.arange(T)[None, None, :]
    lengths = (4 + (jnp.arange(B * S) % (T - 4))).reshape(B, S, 1)
    mask_token = tok_ids < lengths                       # True = real token
    sent_ids = jnp.arange(S)[None, :]
    mask_cls = sent_ids < jnp.array([[S], [S - 2]])      # True = real sentence

    params = init_params(k_p, d_model, d_ff, heads)

    def run(compute_dtype, out_dtype, single_buf):
        return jax.block_until_ready(
            transformer_inter_encoder(top_vecs, mask_token, mask_cls, params,
                                      heads=heads, compute_dtype=compute_dtype,
                                      out_dtype=out_dtype,
                                      single_buffer_weights=single_buf))

    # f32 path: correctness check against the pure-JAX reference.
    try:
        out = run(jnp.float32, jnp.float32, True)
        single_buf = True
    except Exception:
        # pl.Buffered(1) weight specs not supported by this jax/libtpu: fall back
        # to default double-buffered weights.
        out = run(jnp.float32, jnp.float32, False)
        single_buf = False

    ref = reference(top_vecs, mask_token, mask_cls, params, heads)
    assert out.shape == (B, S, d_model)
    assert jnp.allclose(out, ref, atol=5e-3, rtol=5e-3), \
        float(jnp.max(jnp.abs(out - ref)))

    # bf16 MXU-operand + bf16-output path (v6e/v7x recommendation): run + sanity check.
    out_bf16 = run(jnp.bfloat16, jnp.bfloat16, single_buf)
    assert out_bf16.shape == (B, S, d_model)
    assert bool(jnp.all(jnp.isfinite(out_bf16.astype(jnp.float32))))

    print("KERNEL_OK")
</pallas_src>

<mosaic_0001>
module attributes {stable_mosaic.version = 11 : i64} {
  func.func @_pooling_kernel(%arg0: i32, %arg1: i32, %arg2: memref<16x16x32xf32, #tpu.memory_space<vmem>>, %arg3: memref<16x16x1xf32, #tpu.memory_space<vmem>>, %arg4: memref<1x32xf32, #tpu.memory_space<vmem>>, %arg5: memref<1x32xf32, #tpu.memory_space<vmem>>, %arg6: memref<32x36xf32, #tpu.memory_space<vmem>>, %arg7: memref<1x36xf32, #tpu.memory_space<vmem>>, %arg8: memref<1x32xf32, #tpu.memory_space<vmem>>, %arg9: memref<1x32xf32, #tpu.memory_space<vmem>>, %arg10: memref<4x32xf32, #tpu.memory_space<vmem>>, %arg11: memref<16x32xf32, #tpu.memory_space<vmem>>, %arg12: memref<16x4xf32, #tpu.memory_space<vmem>>, %arg13: memref<16x4xf32, #tpu.memory_space<vmem>>, %arg14: memref<16x32xf32, #tpu.memory_space<vmem>>) attributes {dimension_semantics = [#tpu.dimension_semantics<parallel>, #tpu.dimension_semantics<arbitrary>], iteration_bounds = array<i64: 1, 1>, scalar_prefetch = 0 : i64, scratch_operands = 3 : i64, tpu.core_type = #tpu.core_type<tc>, window_params = [{transform_indices = @transform_0, window_bounds = array<i64: 16, 16, 32>}, {transform_indices = @transform_1, window_bounds = array<i64: 16, 16, 1>}, {pipeline_mode = #tpu.pipeline_mode<synchronous>, transform_indices = @transform_2, window_bounds = array<i64: 1, 32>}, {pipeline_mode = #tpu.pipeline_mode<synchronous>, transform_indices = @transform_3, window_bounds = array<i64: 1, 32>}, {pipeline_mode = #tpu.pipeline_mode<synchronous>, transform_indices = @transform_4, window_bounds = array<i64: 32, 36>}, {pipeline_mode = #tpu.pipeline_mode<synchronous>, transform_indices = @transform_5, window_bounds = array<i64: 1, 36>}, {pipeline_mode = #tpu.pipeline_mode<synchronous>, transform_indices = @transform_6, window_bounds = array<i64: 1, 32>}, {pipeline_mode = #tpu.pipeline_mode<synchronous>, transform_indices = @transform_7, window_bounds = array<i64: 1, 32>}, {pipeline_mode = #tpu.pipeline_mode<synchronous>, transform_indices = @transform_8, window_bounds = array<i64: 4, 32>}, {transform_indices = @transform_9, window_bounds = array<i64: 16, 32>}]} {
    %c0_i32 = arith.constant 0 : i32
    %0 = arith.cmpi eq, %arg1, %c0_i32 : i32
    %1 = arith.extui %0 : i1 to i32
    %c0_i32_0 = arith.constant 0 : i32
    %2 = arith.cmpi ne, %1, %c0_i32_0 : i32
    scf.if %2 {
      %cst_44 = arith.constant -1.000000e+30 : f32
      %79 = vector.broadcast %cst_44 : f32 to vector<16x4xf32>
      %c0_45 = arith.constant 0 : index
      %c0_46 = arith.constant 0 : index
      %80 = vector.load %arg12[%c0_45, %c0_46] : memref<16x4xf32, #tpu.memory_space<vmem>>, vector<16x4xf32>
      tpu.vector_store %arg12[%c0_45, %c0_46], %79 {strides = array<i32>} : memref<16x4xf32, #tpu.memory_space<vmem>>, vector<16x4xf32>,
      %cst_47 = arith.constant 0.000000e+00 : f32
      %81 = vector.broadcast %cst_47 : f32 to vector<16x4xf32>
      %c0_48 = arith.constant 0 : index
      %c0_49 = arith.constant 0 : index
      %82 = vector.load %arg13[%c0_48, %c0_49] : memref<16x4xf32, #tpu.memory_space<vmem>>, vector<16x4xf32>
      tpu.vector_store %arg13[%c0_48, %c0_49], %81 {strides = array<i32>} : memref<16x4xf32, #tpu.memory_space<vmem>>, vector<16x4xf32>,
      %cst_50 = arith.constant 0.000000e+00 : f32
      %83 = vector.broadcast %cst_50 : f32 to vector<16x32xf32>
      %c0_51 = arith.constant 0 : index
      %c0_52 = arith.constant 0 : index
      %84 = vector.load %arg14[%c0_51, %c0_52] : memref<16x32xf32, #tpu.memory_space<vmem>>, vector<16x32xf32>
      tpu.vector_store %arg14[%c0_51, %c0_52], %83 {strides = array<i32>} : memref<16x32xf32, #tpu.memory_space<vmem>>, vector<16x32xf32>,
    } else {
    }
    %c0 = arith.constant 0 : index
    %c0_1 = arith.constant 0 : index
    %3 = vector.load %arg10[%c0, %c0_1] : memref<4x32xf32, #tpu.memory_space<vmem>>, vector<4x32xf32>
    %c0_2 = arith.constant 0 : index
    %c0_3 = arith.constant 0 : index
    %c0_4 = arith.constant 0 : index
    %4 = vector.load %arg3[%c0_2, %c0_3, %c0_4] : memref<16x16x1xf32, #tpu.memory_space<vmem>>, vector<16x16x1xf32>
    %c0_5 = arith.constant 0 : index
    %c0_6 = arith.constant 0 : index
    %c0_7 = arith.constant 0 : index
    %5 = vector.load %arg2[%c0_5, %c0_6, %c0_7] : memref<16x16x32xf32, #tpu.memory_space<vmem>>, vector<16x16x32xf32>
    %6 = vector.broadcast %4 : vector<16x16x1xf32> to vector<16x16x32xf32>
    %7 = arith.mulf %5, %6 : vector<16x16x32xf32>
    %cst = arith.constant dense<0.000000e+00> : vector<16x16xf32>
    %8 = vector.multi_reduction <add>, %7, %cst [2] : vector<16x16x32xf32> to vector<16x16xf32>
    %9 = vector.shape_cast %8 : vector<16x16xf32> to vector<16x16x1xf32>
    %cst_8 = arith.constant 3.200000e+01 : f32
    %10 = vector.broadcast %cst_8 : f32 to vector<16x16x1xf32>
    %11 = arith.divf %9, %10 : vector<16x16x1xf32>
    %12 = vector.broadcast %11 : vector<16x16x1xf32> to vector<16x16x32xf32>
    %13 = arith.subf %7, %12 : vector<16x16x32xf32>
    %14 = arith.mulf %13, %13 : vector<16x16x32xf32>
    %cst_9 = arith.constant dense<0.000000e+00> : vector<16x16xf32>
    %15 = vector.multi_reduction <add>, %14, %cst_9 [2] : vector<16x16x32xf32> to vector<16x16xf32>
    %16 = vector.shape_cast %15 : vector<16x16xf32> to vector<16x16x1xf32>
    %cst_10 = arith.constant 3.200000e+01 : f32
    %17 = vector.broadcast %cst_10 : f32 to vector<16x16x1xf32>
    %18 = arith.divf %16, %17 : vector<16x16x1xf32>
    %19 = vector.broadcast %11 : vector<16x16x1xf32> to vector<16x16x32xf32>
    %20 = arith.subf %7, %19 : vector<16x16x32xf32>
    %cst_11 = arith.constant 9.99999997E-7 : f32
    %21 = vector.broadcast %cst_11 : f32 to vector<16x16x1xf32>
    %22 = arith.addf %18, %21 : vector<16x16x1xf32>
    %23 = math.rsqrt %22 : vector<16x16x1xf32>
    %24 = vector.broadcast %23 : vector<16x16x1xf32> to vector<16x16x32xf32>
    %25 = arith.mulf %20, %24 : vector<16x16x32xf32>
    %c0_12 = arith.constant 0 : index
    %c0_13 = arith.constant 0 : index
    %26 = vector.load %arg4[%c0_12, %c0_13] : memref<1x32xf32, #tpu.memory_space<vmem>>, vector<1x32xf32>
    %27 = vector.shape_cast %26 : vector<1x32xf32> to vector<1x1x32xf32>
    %28 = vector.broadcast %27 : vector<1x1x32xf32> to vector<16x16x32xf32>
    %29 = arith.mulf %25, %28 : vector<16x16x32xf32>
    %c0_14 = arith.constant 0 : index
    %c0_15 = arith.constant 0 : index
    %30 = vector.load %arg5[%c0_14, %c0_15] : memref<1x32xf32, #tpu.memory_space<vmem>>, vector<1x32xf32>
    %31 = vector.shape_cast %30 : vector<1x32xf32> to vector<1x1x32xf32>
    %32 = vector.broadcast %31 : vector<1x1x32xf32> to vector<16x16x32xf32>
    %33 = arith.addf %29, %32 : vector<16x16x32xf32>
    %34 = vector.shape_cast %33 : vector<16x16x32xf32> to vector<256x32xf32>
    %c0_16 = arith.constant 0 : index
    %c0_17 = arith.constant 0 : index
    %35 = vector.load %arg6[%c0_16, %c0_17] : memref<32x36xf32, #tpu.memory_space<vmem>>, vector<32x36xf32>
    %cst_18 = arith.constant dense<0.000000e+00> : vector<256x36xf32>
    %36 = tpu.matmul %34, %35, %cst_18 {dimension_numbers = #tpu.dot_dimension_numbers<[1], [0], [0], [1], [0, 0, 1, 1], [], []>} : vector<256x32xf32>, vector<32x36xf32>, vector<256x36xf32> -> vector<256x36xf32>
    %c0_19 = arith.constant 0 : index
    %c0_20 = arith.constant 0 : index
    %37 = vector.load %arg7[%c0_19, %c0_20] : memref<1x36xf32, #tpu.memory_space<vmem>>, vector<1x36xf32>
    %38 = vector.broadcast %37 : vector<1x36xf32> to vector<256x36xf32>
    %39 = arith.addf %36, %38 : vector<256x36xf32>
    %40 = vector.extract_strided_slice %39 {offsets = [0, 0], sizes = [256, 32], strides = [1, 1]} : vector<256x36xf32> to vector<256x32xf32>
    %41 = vector.shape_cast %40 : vector<256x32xf32> to vector<16x16x32xf32>
    %42 = vector.extract_strided_slice %39 {offsets = [0, 32], sizes = [256, 4], strides = [1, 1]} : vector<256x36xf32> to vector<256x4xf32>
    %43 = vector.shape_cast %42 : vector<256x4xf32> to vector<16x16x4xf32>
    %cst_21 = arith.constant 0.000000e+00 : f32
    %44 = vector.broadcast %cst_21 : f32 to vector<16x16x1xf32>
    %45 = arith.cmpf ogt, %4, %44 : vector<16x16x1xf32>
    %cst_22 = arith.constant -9.99999984E+17 : f32
    %46 = vector.shape_cast %45 : vector<16x16x1xi1> to vector<16x16x1xi1>
    %47 = vector.broadcast %46 : vector<16x16x1xi1> to vector<16x16x4xi1>
    %48 = vector.broadcast %cst_22 : f32 to vector<16x16x4xf32>
    %49 = arith.select %47, %43, %48 : vector<16x16x4xi1>, vector<16x16x4xf32>
    %cst_23 = arith.constant dense<0xFF800000> : vector<16x4xf32>
    %50 = vector.multi_reduction <maximumf>, %49, %cst_23 [1] : vector<16x16x4xf32> to vector<16x4xf32>
    %c0_24 = arith.constant 0 : index
    %c0_25 = arith.constant 0 : index
    %51 = vector.load %arg12[%c0_24, %c0_25] : memref<16x4xf32, #tpu.memory_space<vmem>>, vector<16x4xf32>
    %52 = arith.maximumf %51, %50 : vector<16x4xf32>
    %c0_26 = arith.constant 0 : index
    %c0_27 = arith.constant 0 : index
    %53 = vector.load %arg12[%c0_26, %c0_27] : memref<16x4xf32, #tpu.memory_space<vmem>>, vector<16x4xf32>
    %54 = arith.subf %53, %52 : vector<16x4xf32>
    %55 = math.exp %54 : vector<16x4xf32>
    %56 = vector.shape_cast %52 : vector<16x4xf32> to vector<16x1x4xf32>
    %57 = vector.broadcast %56 : vector<16x1x4xf32> to vector<16x16x4xf32>
    %58 = arith.subf %49, %57 : vector<16x16x4xf32>
    %59 = math.exp %58 : vector<16x16x4xf32>
    %c0_28 = arith.constant 0 : index
    %c0_29 = arith.constant 0 : index
    %60 = vector.load %arg13[%c0_28, %c0_29] : memref<16x4xf32, #tpu.memory_space<vmem>>, vector<16x4xf32>
    %61 = arith.mulf %55, %60 : vector<16x4xf32>
    %cst_30 = arith.constant dense<0.000000e+00> : vector<16x4xf32>
    %62 = vector.multi_reduction <add>, %59, %cst_30 [1] : vector<16x16x4xf32> to vector<16x4xf32>
    %63 = arith.addf %61, %62 : vector<16x4xf32>
    %c0_31 = arith.constant 0 : index
    %c0_32 = arith.constant 0 : index
    %64 = vector.load %arg13[%c0_31, %c0_32] : memref<16x4xf32, #tpu.memory_space<vmem>>, vector<16x4xf32>
    tpu.vector_store %arg13[%c0_31, %c0_32], %63 {strides = array<i32>} : memref<16x4xf32, #tpu.memory_space<vmem>>, vector<16x4xf32>,
    %c0_33 = arith.constant 0 : index
    %c0_34 = arith.constant 0 : index
    %65 = vector.load %arg12[%c0_33, %c0_34] : memref<16x4xf32, #tpu.memory_space<vmem>>, vector<16x4xf32>
    tpu.vector_store %arg12[%c0_33, %c0_34], %52 {strides = array<i32>} : memref<16x4xf32, #tpu.memory_space<vmem>>, vector<16x4xf32>,
    "tpu.trace_start"() <{level = 10 : i32, message = "sth,std->shd"}> : () -> ()
    %cst_35 = arith.constant dense<0.000000e+00> : vector<16x4x32xf32>
    %66 = tpu.matmul %59, %41, %cst_35 {dimension_numbers = #tpu.dot_dimension_numbers<[1], [1], [2], [2], [0, 0, 0, 2, 1, 2], [0], [0]>} : vector<16x16x4xf32>, vector<16x16x32xf32>, vector<16x4x32xf32> -> vector<16x4x32xf32>
    "tpu.trace_stop"() : () -> ()
    %67 = vector.shape_cast %3 : vector<4x32xf32> to vector<1x4x32xf32>
    %68 = vector.broadcast %67 : vector<1x4x32xf32> to vector<16x4x32xf32>
    %69 = arith.mulf %66, %68 : vector<16x4x32xf32>
    %cst_36 = arith.constant dense<0.000000e+00> : vector<16x32xf32>
    %70 = vector.multi_reduction <add>, %69, %cst_36 [1] : vector<16x4x32xf32> to vector<16x32xf32>
    %cst_37 = arith.constant dense<0.000000e+00> : vector<16x32xf32>
    %71 = tpu.matmul %55, %3, %cst_37 {dimension_numbers = #tpu.dot_dimension_numbers<[1], [0], [0], [1], [0, 0, 1, 1], [], []>} : vector<16x4xf32>, vector<4x32xf32>, vector<16x32xf32> -> vector<16x32xf32>
    %c0_38 = arith.constant 0 : index
    %c0_39 = arith.constant 0 : index
    %72 = vector.load %arg14[%c0_38, %c0_39] : memref<16x32xf32, #tpu.memory_space<vmem>>, vector<16x32xf32>
    %73 = arith.mulf %71, %72 : vector<16x32xf32>
    %74 = arith.addf %73, %70 : vector<16x32xf32>
    %c0_40 = arith.constant 0 : index
    %c0_41 = arith.constant 0 : index
    %75 = vector.load %arg14[%c0_40, %c0_41] : memref<16x32xf32, #tpu.memory_space<vmem>>, vector<16x32xf32>
    tpu.vector_store %arg14[%c0_40, %c0_41], %74 {strides = array<i32>} : memref<16x32xf32, #tpu.memory_space<vmem>>, vector<16x32xf32>,
    %c0_i32_42 = arith.constant 0 : i32
    %76 = arith.cmpi eq, %arg1, %c0_i32_42 : i32
    %77 = arith.extui %76 : i1 to i32
    %c0_i32_43 = arith.constant 0 : i32
    %78 = arith.cmpi ne, %77, %c0_i32_43 : i32
    scf.if %78 {
      %c0_44 = arith.constant 0 : index
      %c0_45 = arith.constant 0 : index
      %79 = vector.load %arg13[%c0_44, %c0_45] : memref<16x4xf32, #tpu.memory_space<vmem>>, vector<16x4xf32>
      %cst_46 = arith.constant dense<0.000000e+00> : vector<16x32xf32>
      %80 = tpu.matmul %79, %3, %cst_46 {dimension_numbers = #tpu.dot_dimension_numbers<[1], [0], [0], [1], [0, 0, 1, 1], [], []>} : vector<16x4xf32>, vector<4x32xf32>, vector<16x32xf32> -> vector<16x32xf32>
      %c0_47 = arith.constant 0 : index
      %c0_48 = arith.constant 0 : index
      %81 = vector.load %arg14[%c0_47, %c0_48] : memref<16x32xf32, #tpu.memory_space<vmem>>, vector<16x32xf32>
      %82 = tpu.reciprocal %80 {approx = true} : vector<16x32xf32> -> vector<16x32xf32>
      %83 = arith.mulf %81, %82 : vector<16x32xf32>
      %cst_49 = arith.constant dense<0.000000e+00> : vector<16x4xf32>
      %84 = tpu.matmul %83, %3, %cst_49 {dimension_numbers = #tpu.dot_dimension_numbers<[1], [1], [0], [0], [0, 0, 1, 0], [], []>} : vector<16x32xf32>, vector<4x32xf32>, vector<16x4xf32> -> vector<16x4xf32>
      %cst_50 = arith.constant 1.250000e-01 : f32
      %85 = vector.broadcast %cst_50 : f32 to vector<16x4xf32>
      %86 = arith.mulf %84, %85 : vector<16x4xf32>
      %87 = arith.mulf %83, %83 : vector<16x32xf32>
      %cst_51 = arith.constant dense<0.000000e+00> : vector<16x4xf32>
      %88 = tpu.matmul %87, %3, %cst_51 {dimension_numbers = #tpu.dot_dimension_numbers<[1], [1], [0], [0], [0, 0, 1, 0], [], []>} : vector<16x32xf32>, vector<4x32xf32>, vector<16x4xf32> -> vector<16x4xf32>
      %cst_52 = arith.constant 1.250000e-01 : f32
      %89 = vector.broadcast %cst_52 : f32 to vector<16x4xf32>
      %90 = arith.mulf %88, %89 : vector<16x4xf32>
      %91 = arith.mulf %86, %86 : vector<16x4xf32>
      %92 = arith.subf %90, %91 : vector<16x4xf32>
      %cst_53 = arith.constant 0.000000e+00 : f32
      %93 = vector.broadcast %cst_53 : f32 to vector<16x4xf32>
      %94 = arith.maximumf %92, %93 : vector<16x4xf32>
      %cst_54 = arith.constant 9.99999997E-7 : f32
      %95 = vector.broadcast %cst_54 : f32 to vector<16x4xf32>
      %96 = arith.addf %94, %95 : vector<16x4xf32>
      %97 = math.rsqrt %96 : vector<16x4xf32>
      %cst_55 = arith.constant dense<0.000000e+00> : vector<16x32xf32>
      %98 = tpu.matmul %86, %3, %cst_55 {dimension_numbers = #tpu.dot_dimension_numbers<[1], [0], [0], [1], [0, 0, 1, 1], [], []>} : vector<16x4xf32>, vector<4x32xf32>, vector<16x32xf32> -> vector<16x32xf32>
      %cst_56 = arith.constant dense<0.000000e+00> : vector<16x32xf32>
      %99 = tpu.matmul %97, %3, %cst_56 {dimension_numbers = #tpu.dot_dimension_numbers<[1], [0], [0], [1], [0, 0, 1, 1], [], []>} : vector<16x4xf32>, vector<4x32xf32>, vector<16x32xf32> -> vector<16x32xf32>
      %100 = arith.subf %83, %98 : vector<16x32xf32>
      %101 = arith.mulf %100, %99 : vector<16x32xf32>
      %c0_57 = arith.constant 0 : index
      %c0_58 = arith.constant 0 : index
      %102 = vector.load %arg8[%c0_57, %c0_58] : memref<1x32xf32, #tpu.memory_space<vmem>>, vector<1x32xf32>
      %103 = vector.broadcast %102 : vector<1x32xf32> to vector<16x32xf32>
      %104 = arith.mulf %101, %103 : vector<16x32xf32>
      %c0_59 = arith.constant 0 : index
      %c0_60 = arith.constant 0 : index
      %105 = vector.load %arg9[%c0_59, %c0_60] : memref<1x32xf32, #tpu.memory_space<vmem>>, vector<1x32xf32>
      %106 = vector.broadcast %105 : vector<1x32xf32> to vector<16x32xf32>
      %107 = arith.addf %104, %106 : vector<16x32xf32>
      %c0_61 = arith.constant 0 : index
      %c0_62 = arith.constant 0 : index
      %108 = vector.load %arg11[%c0_61, %c0_62] : memref<16x32xf32, #tpu.memory_space<vmem>>, vector<16x32xf32>
      tpu.vector_store %arg11[%c0_61, %c0_62], %107 {strides = array<i32>} : memref<16x32xf32, #tpu.memory_space<vmem>>, vector<16x32xf32>,
    } else {
    }
    return
  }
  func.func @transform_0(%arg0: i32, %arg1: i32) -> (i32, i32, i32) {
    %c0_i32 = arith.constant 0 : i32
    %c0_i32_0 = arith.constant 0 : i32
    return %arg0, %arg1, %c0_i32 : i32, i32, i32
  }
  func.func @transform_1(%arg0: i32, %arg1: i32) -> (i32, i32, i32) {
    %c0_i32 = arith.constant 0 : i32
    %c0_i32_0 = arith.constant 0 : i32
    return %arg0, %arg1, %c0_i32 : i32, i32, i32
  }
  func.func @transform_2(%arg0: i32, %arg1: i32) -> (i32, i32) {
    %c0_i32 = arith.constant 0 : i32
    %c0_i32_0 = arith.constant 0 : i32
    %c0_i32_1 = arith.constant 0 : i32
    return %c0_i32, %c0_i32_0 : i32, i32
  }
  func.func @transform_3(%arg0: i32, %arg1: i32) -> (i32, i32) {
    %c0_i32 = arith.constant 0 : i32
    %c0_i32_0 = arith.constant 0 : i32
    %c0_i32_1 = arith.constant 0 : i32
    return %c0_i32, %c0_i32_0 : i32, i32
  }
  func.func @transform_4(%arg0: i32, %arg1: i32) -> (i32, i32) {
    %c0_i32 = arith.constant 0 : i32
    %c0_i32_0 = arith.constant 0 : i32
    %c0_i32_1 = arith.constant 0 : i32
    return %c0_i32, %c0_i32_0 : i32, i32
  }
  func.func @transform_5(%arg0: i32, %arg1: i32) -> (i32, i32) {
    %c0_i32 = arith.constant 0 : i32
    %c0_i32_0 = arith.constant 0 : i32
    %c0_i32_1 = arith.constant 0 : i32
    return %c0_i32, %c0_i32_0 : i32, i32
  }
  func.func @transform_6(%arg0: i32, %arg1: i32) -> (i32, i32) {
    %c0_i32 = arith.constant 0 : i32
    %c0_i32_0 = arith.constant 0 : i32
    %c0_i32_1 = arith.constant 0 : i32
    return %c0_i32, %c0_i32_0 : i32, i32
  }
  func.func @transform_7(%arg0: i32, %arg1: i32) -> (i32, i32) {
    %c0_i32 = arith.constant 0 : i32
    %c0_i32_0 = arith.constant 0 : i32
    %c0_i32_1 = arith.constant 0 : i32
    return %c0_i32, %c0_i32_0 : i32, i32
  }
  func.func @transform_8(%arg0: i32, %arg1: i32) -> (i32, i32) {
    %c0_i32 = arith.constant 0 : i32
    %c0_i32_0 = arith.constant 0 : i32
    %c0_i32_1 = arith.constant 0 : i32
    return %c0_i32, %c0_i32_0 : i32, i32
  }
  func.func @transform_9(%arg0: i32, %arg1: i32) -> (i32, i32) {
    %c0_i32 = arith.constant 0 : i32
    %c0_i32_0 = arith.constant 0 : i32
    return %arg0, %c0_i32 : i32, i32
  }
}

module attributes {stable_mosaic.version = 11 : i64} {
  func.func @_pooling_kernel(%arg0: i32, %arg1: i32, %arg2: memref<16x16x32xf32, #tpu.memory_space<vmem>>, %arg3: memref<16x16x1xf32, #tpu.memory_space<vmem>>, %arg4: memref<1x32xf32, #tpu.memory_space<vmem>>, %arg5: memref<1x32xf32, #tpu.memory_space<vmem>>, %arg6: memref<32x36xf32, #tpu.memory_space<vmem>>, %arg7: memref<1x36xf32, #tpu.memory_space<vmem>>, %arg8: memref<1x32xf32, #tpu.memory_space<vmem>>, %arg9: memref<1x32xf32, #tpu.memory_space<vmem>>, %arg10: memref<4x32xf32, #tpu.memory_space<vmem>>, %arg11: memref<16x32xf32, #tpu.memory_space<vmem>>, %arg12: memref<16x4xf32, #tpu.memory_space<vmem>>, %arg13: memref<16x4xf32, #tpu.memory_space<vmem>>, %arg14: memref<16x32xf32, #tpu.memory_space<vmem>>) attributes {dimension_semantics = [#tpu.dimension_semantics<parallel>, #tpu.dimension_semantics<arbitrary>], iteration_bounds = array<i64: 1, 1>, scalar_prefetch = 0 : i64, scratch_operands = 3 : i64, tpu.core_type = #tpu.core_type<tc>, window_params = [{transform_indices = @transform_0, window_bounds = array<i64: 16, 16, 32>}, {transform_indices = @transform_1, window_bounds = array<i64: 16, 16, 1>}, {pipeline_mode = #tpu.pipeline_mode<synchronous>, transform_indices = @transform_2, window_bounds = array<i64: 1, 32>}, {pipeline_mode = #tpu.pipeline_mode<synchronous>, transform_indices = @transform_3, window_bounds = array<i64: 1, 32>}, {pipeline_mode = #tpu.pipeline_mode<synchronous>, transform_indices = @transform_4, window_bounds = array<i64: 32, 36>}, {pipeline_mode = #tpu.pipeline_mode<synchronous>, transform_indices = @transform_5, window_bounds = array<i64: 1, 36>}, {pipeline_mode = #tpu.pipeline_mode<synchronous>, transform_indices = @transform_6, window_bounds = array<i64: 1, 32>}, {pipeline_mode = #tpu.pipeline_mode<synchronous>, transform_indices = @transform_7, window_bounds = array<i64: 1, 32>}, {pipeline_mode = #tpu.pipeline_mode<synchronous>, transform_indices = @transform_8, window_bounds = array<i64: 4, 32>}, {transform_indices = @transform_9, window_bounds = array<i64: 16, 32>}]} {
    %c0_i32 = arith.constant 0 : i32
    %0 = arith.cmpi eq, %arg1, %c0_i32 : i32
    %1 = arith.extui %0 : i1 to i32
    %c0_i32_0 = arith.constant 0 : i32
    %2 = arith.cmpi ne, %1, %c0_i32_0 : i32
    scf.if %2 {
      %cst_44 = arith.constant -1.000000e+30 : f32
      %79 = vector.broadcast %cst_44 : f32 to vector<16x4xf32>
      %c0_45 = arith.constant 0 : index
      %c0_46 = arith.constant 0 : index
      %80 = vector.load %arg12[%c0_45, %c0_46] : memref<16x4xf32, #tpu.memory_space<vmem>>, vector<16x4xf32>
      tpu.vector_store %arg12[%c0_45, %c0_46], %79 {strides = array<i32>} : memref<16x4xf32, #tpu.memory_space<vmem>>, vector<16x4xf32>,
      %cst_47 = arith.constant 0.000000e+00 : f32
      %81 = vector.broadcast %cst_47 : f32 to vector<16x4xf32>
      %c0_48 = arith.constant 0 : index
      %c0_49 = arith.constant 0 : index
      %82 = vector.load %arg13[%c0_48, %c0_49] : memref<16x4xf32, #tpu.memory_space<vmem>>, vector<16x4xf32>
      tpu.vector_store %arg13[%c0_48, %c0_49], %81 {strides = array<i32>} : memref<16x4xf32, #tpu.memory_space<vmem>>, vector<16x4xf32>,
      %cst_50 = arith.constant 0.000000e+00 : f32
      %83 = vector.broadcast %cst_50 : f32 to vector<16x32xf32>
      %c0_51 = arith.constant 0 : index
      %c0_52 = arith.constant 0 : index
      %84 = vector.load %arg14[%c0_51, %c0_52] : memref<16x32xf32, #tpu.memory_space<vmem>>, vector<16x32xf32>
      tpu.vector_store %arg14[%c0_51, %c0_52], %83 {strides = array<i32>} : memref<16x32xf32, #tpu.memory_space<vmem>>, vector<16x32xf32>,
    } else {
    }
    %c0 = arith.constant 0 : index
    %c0_1 = arith.constant 0 : index
    %3 = vector.load %arg10[%c0, %c0_1] : memref<4x32xf32, #tpu.memory_space<vmem>>, vector<4x32xf32>
    %c0_2 = arith.constant 0 : index
    %c0_3 = arith.constant 0 : index
    %c0_4 = arith.constant 0 : index
    %4 = vector.load %arg3[%c0_2, %c0_3, %c0_4] : memref<16x16x1xf32, #tpu.memory_space<vmem>>, vector<16x16x1xf32>
    %c0_5 = arith.constant 0 : index
    %c0_6 = arith.constant 0 : index
    %c0_7 = arith.constant 0 : index
    %5 = vector.load %arg2[%c0_5, %c0_6, %c0_7] : memref<16x16x32xf32, #tpu.memory_space<vmem>>, vector<16x16x32xf32>
    %6 = vector.broadcast %4 : vector<16x16x1xf32> to vector<16x16x32xf32>
    %7 = arith.mulf %5, %6 : vector<16x16x32xf32>
    %cst = arith.constant dense<0.000000e+00> : vector<16x16xf32>
    %8 = vector.multi_reduction <add>, %7, %cst [2] : vector<16x16x32xf32> to vector<16x16xf32>
    %9 = vector.shape_cast %8 : vector<16x16xf32> to vector<16x16x1xf32>
    %cst_8 = arith.constant 3.200000e+01 : f32
    %10 = vector.broadcast %cst_8 : f32 to vector<16x16x1xf32>
    %11 = arith.divf %9, %10 : vector<16x16x1xf32>
    %12 = vector.broadcast %11 : vector<16x16x1xf32> to vector<16x16x32xf32>
    %13 = arith.subf %7, %12 : vector<16x16x32xf32>
    %14 = arith.mulf %13, %13 : vector<16x16x32xf32>
    %cst_9 = arith.constant dense<0.000000e+00> : vector<16x16xf32>
    %15 = vector.multi_reduction <add>, %14, %cst_9 [2] : vector<16x16x32xf32> to vector<16x16xf32>
    %16 = vector.shape_cast %15 : vector<16x16xf32> to vector<16x16x1xf32>
    %cst_10 = arith.constant 3.200000e+01 : f32
    %17 = vector.broadcast %cst_10 : f32 to vector<16x16x1xf32>
    %18 = arith.divf %16, %17 : vector<16x16x1xf32>
    %19 = vector.broadcast %11 : vector<16x16x1xf32> to vector<16x16x32xf32>
    %20 = arith.subf %7, %19 : vector<16x16x32xf32>
    %cst_11 = arith.constant 9.99999997E-7 : f32
    %21 = vector.broadcast %cst_11 : f32 to vector<16x16x1xf32>
    %22 = arith.addf %18, %21 : vector<16x16x1xf32>
    %23 = math.rsqrt %22 : vector<16x16x1xf32>
    %24 = vector.broadcast %23 : vector<16x16x1xf32> to vector<16x16x32xf32>
    %25 = arith.mulf %20, %24 : vector<16x16x32xf32>
    %c0_12 = arith.constant 0 : index
    %c0_13 = arith.constant 0 : index
    %26 = vector.load %arg4[%c0_12, %c0_13] : memref<1x32xf32, #tpu.memory_space<vmem>>, vector<1x32xf32>
    %27 = vector.shape_cast %26 : vector<1x32xf32> to vector<1x1x32xf32>
    %28 = vector.broadcast %27 : vector<1x1x32xf32> to vector<16x16x32xf32>
    %29 = arith.mulf %25, %28 : vector<16x16x32xf32>
    %c0_14 = arith.constant 0 : index
    %c0_15 = arith.constant 0 : index
    %30 = vector.load %arg5[%c0_14, %c0_15] : memref<1x32xf32, #tpu.memory_space<vmem>>, vector<1x32xf32>
    %31 = vector.shape_cast %30 : vector<1x32xf32> to vector<1x1x32xf32>
    %32 = vector.broadcast %31 : vector<1x1x32xf32> to vector<16x16x32xf32>
    %33 = arith.addf %29, %32 : vector<16x16x32xf32>
    %34 = vector.shape_cast %33 : vector<16x16x32xf32> to vector<256x32xf32>
    %c0_16 = arith.constant 0 : index
    %c0_17 = arith.constant 0 : index
    %35 = vector.load %arg6[%c0_16, %c0_17] : memref<32x36xf32, #tpu.memory_space<vmem>>, vector<32x36xf32>
    %cst_18 = arith.constant dense<0.000000e+00> : vector<256x36xf32>
    %36 = tpu.matmul %34, %35, %cst_18 {dimension_numbers = #tpu.dot_dimension_numbers<[1], [0], [0], [1], [0, 0, 1, 1], [], []>} : vector<256x32xf32>, vector<32x36xf32>, vector<256x36xf32> -> vector<256x36xf32>
    %c0_19 = arith.constant 0 : index
    %c0_20 = arith.constant 0 : index
    %37 = vector.load %arg7[%c0_19, %c0_20] : memref<1x36xf32, #tpu.memory_space<vmem>>, vector<1x36xf32>
    %38 = vector.broadcast %37 : vector<1x36xf32> to vector<256x36xf32>
    %39 = arith.addf %36, %38 : vector<256x36xf32>
    %40 = vector.extract_strided_slice %39 {offsets = [0, 0], sizes = [256, 32], strides = [1, 1]} : vector<256x36xf32> to vector<256x32xf32>
    %41 = vector.shape_cast %40 : vector<256x32xf32> to vector<16x16x32xf32>
    %42 = vector.extract_strided_slice %39 {offsets = [0, 32], sizes = [256, 4], strides = [1, 1]} : vector<256x36xf32> to vector<256x4xf32>
    %43 = vector.shape_cast %42 : vector<256x4xf32> to vector<16x16x4xf32>
    %cst_21 = arith.constant 0.000000e+00 : f32
    %44 = vector.broadcast %cst_21 : f32 to vector<16x16x1xf32>
    %45 = arith.cmpf ogt, %4, %44 : vector<16x16x1xf32>
    %cst_22 = arith.constant -9.99999984E+17 : f32
    %46 = vector.shape_cast %45 : vector<16x16x1xi1> to vector<16x16x1xi1>
    %47 = vector.broadcast %46 : vector<16x16x1xi1> to vector<16x16x4xi1>
    %48 = vector.broadcast %cst_22 : f32 to vector<16x16x4xf32>
    %49 = arith.select %47, %43, %48 : vector<16x16x4xi1>, vector<16x16x4xf32>
    %cst_23 = arith.constant dense<0xFF800000> : vector<16x4xf32>
    %50 = vector.multi_reduction <maximumf>, %49, %cst_23 [1] : vector<16x16x4xf32> to vector<16x4xf32>
    %c0_24 = arith.constant 0 : index
    %c0_25 = arith.constant 0 : index
    %51 = vector.load %arg12[%c0_24, %c0_25] : memref<16x4xf32, #tpu.memory_space<vmem>>, vector<16x4xf32>
    %52 = arith.maximumf %51, %50 : vector<16x4xf32>
    %c0_26 = arith.constant 0 : index
    %c0_27 = arith.constant 0 : index
    %53 = vector.load %arg12[%c0_26, %c0_27] : memref<16x4xf32, #tpu.memory_space<vmem>>, vector<16x4xf32>
    %54 = arith.subf %53, %52 : vector<16x4xf32>
    %55 = math.exp %54 : vector<16x4xf32>
    %56 = vector.shape_cast %52 : vector<16x4xf32> to vector<16x1x4xf32>
    %57 = vector.broadcast %56 : vector<16x1x4xf32> to vector<16x16x4xf32>
    %58 = arith.subf %49, %57 : vector<16x16x4xf32>
    %59 = math.exp %58 : vector<16x16x4xf32>
    %c0_28 = arith.constant 0 : index
    %c0_29 = arith.constant 0 : index
    %60 = vector.load %arg13[%c0_28, %c0_29] : memref<16x4xf32, #tpu.memory_space<vmem>>, vector<16x4xf32>
    %61 = arith.mulf %55, %60 : vector<16x4xf32>
    %cst_30 = arith.constant dense<0.000000e+00> : vector<16x4xf32>
    %62 = vector.multi_reduction <add>, %59, %cst_30 [1] : vector<16x16x4xf32> to vector<16x4xf32>
    %63 = arith.addf %61, %62 : vector<16x4xf32>
    %c0_31 = arith.constant 0 : index
    %c0_32 = arith.constant 0 : index
    %64 = vector.load %arg13[%c0_31, %c0_32] : memref<16x4xf32, #tpu.memory_space<vmem>>, vector<16x4xf32>
    tpu.vector_store %arg13[%c0_31, %c0_32], %63 {strides = array<i32>} : memref<16x4xf32, #tpu.memory_space<vmem>>, vector<16x4xf32>,
    %c0_33 = arith.constant 0 : index
    %c0_34 = arith.constant 0 : index
    %65 = vector.load %arg12[%c0_33, %c0_34] : memref<16x4xf32, #tpu.memory_space<vmem>>, vector<16x4xf32>
    tpu.vector_store %arg12[%c0_33, %c0_34], %52 {strides = array<i32>} : memref<16x4xf32, #tpu.memory_space<vmem>>, vector<16x4xf32>,
    "tpu.trace_start"() <{level = 10 : i32, message = "sth,std->shd"}> : () -> ()
    %cst_35 = arith.constant dense<0.000000e+00> : vector<16x4x32xf32>
    %66 = tpu.matmul %59, %41, %cst_35 {dimension_numbers = #tpu.dot_dimension_numbers<[1], [1], [2], [2], [0, 0, 0, 2, 1, 2], [0], [0]>} : vector<16x16x4xf32>, vector<16x16x32xf32>, vector<16x4x32xf32> -> vector<16x4x32xf32>
    "tpu.trace_stop"() : () -> ()
    %67 = vector.shape_cast %3 : vector<4x32xf32> to vector<1x4x32xf32>
    %68 = vector.broadcast %67 : vector<1x4x32xf32> to vector<16x4x32xf32>
    %69 = arith.mulf %66, %68 : vector<16x4x32xf32>
    %cst_36 = arith.constant dense<0.000000e+00> : vector<16x32xf32>
    %70 = vector.multi_reduction <add>, %69, %cst_36 [1] : vector<16x4x32xf32> to vector<16x32xf32>
    %cst_37 = arith.constant dense<0.000000e+00> : vector<16x32xf32>
    %71 = tpu.matmul %55, %3, %cst_37 {dimension_numbers = #tpu.dot_dimension_numbers<[1], [0], [0], [1], [0, 0, 1, 1], [], []>} : vector<16x4xf32>, vector<4x32xf32>, vector<16x32xf32> -> vector<16x32xf32>
    %c0_38 = arith.constant 0 : index
    %c0_39 = arith.constant 0 : index
    %72 = vector.load %arg14[%c0_38, %c0_39] : memref<16x32xf32, #tpu.memory_space<vmem>>, vector<16x32xf32>
    %73 = arith.mulf %71, %72 : vector<16x32xf32>
    %74 = arith.addf %73, %70 : vector<16x32xf32>
    %c0_40 = arith.constant 0 : index
    %c0_41 = arith.constant 0 : index
    %75 = vector.load %arg14[%c0_40, %c0_41] : memref<16x32xf32, #tpu.memory_space<vmem>>, vector<16x32xf32>
    tpu.vector_store %arg14[%c0_40, %c0_41], %74 {strides = array<i32>} : memref<16x32xf32, #tpu.memory_space<vmem>>, vector<16x32xf32>,
    %c0_i32_42 = arith.constant 0 : i32
    %76 = arith.cmpi eq, %arg1, %c0_i32_42 : i32
    %77 = arith.extui %76 : i1 to i32
    %c0_i32_43 = arith.constant 0 : i32
    %78 = arith.cmpi ne, %77, %c0_i32_43 : i32
    scf.if %78 {
      %c0_44 = arith.constant 0 : index
      %c0_45 = arith.constant 0 : index
      %79 = vector.load %arg13[%c0_44, %c0_45] : memref<16x4xf32, #tpu.memory_space<vmem>>, vector<16x4xf32>
      %cst_46 = arith.constant dense<0.000000e+00> : vector<16x32xf32>
      %80 = tpu.matmul %79, %3, %cst_46 {dimension_numbers = #tpu.dot_dimension_numbers<[1], [0], [0], [1], [0, 0, 1, 1], [], []>} : vector<16x4xf32>, vector<4x32xf32>, vector<16x32xf32> -> vector<16x32xf32>
      %c0_47 = arith.constant 0 : index
      %c0_48 = arith.constant 0 : index
      %81 = vector.load %arg14[%c0_47, %c0_48] : memref<16x32xf32, #tpu.memory_space<vmem>>, vector<16x32xf32>
      %82 = tpu.reciprocal %80 {approx = true} : vector<16x32xf32> -> vector<16x32xf32>
      %83 = arith.mulf %81, %82 : vector<16x32xf32>
      %cst_49 = arith.constant dense<0.000000e+00> : vector<16x4xf32>
      %84 = tpu.matmul %83, %3, %cst_49 {dimension_numbers = #tpu.dot_dimension_numbers<[1], [1], [0], [0], [0, 0, 1, 0], [], []>} : vector<16x32xf32>, vector<4x32xf32>, vector<16x4xf32> -> vector<16x4xf32>
      %cst_50 = arith.constant 1.250000e-01 : f32
      %85 = vector.broadcast %cst_50 : f32 to vector<16x4xf32>
      %86 = arith.mulf %84, %85 : vector<16x4xf32>
      %87 = arith.mulf %83, %83 : vector<16x32xf32>
      %cst_51 = arith.constant dense<0.000000e+00> : vector<16x4xf32>
      %88 = tpu.matmul %87, %3, %cst_51 {dimension_numbers = #tpu.dot_dimension_numbers<[1], [1], [0], [0], [0, 0, 1, 0], [], []>} : vector<16x32xf32>, vector<4x32xf32>, vector<16x4xf32> -> vector<16x4xf32>
      %cst_52 = arith.constant 1.250000e-01 : f32
      %89 = vector.broadcast %cst_52 : f32 to vector<16x4xf32>
      %90 = arith.mulf %88, %89 : vector<16x4xf32>
      %91 = arith.mulf %86, %86 : vector<16x4xf32>
      %92 = arith.subf %90, %91 : vector<16x4xf32>
      %cst_53 = arith.constant 0.000000e+00 : f32
      %93 = vector.broadcast %cst_53 : f32 to vector<16x4xf32>
      %94 = arith.maximumf %92, %93 : vector<16x4xf32>
      %cst_54 = arith.constant 9.99999997E-7 : f32
      %95 = vector.broadcast %cst_54 : f32 to vector<16x4xf32>
      %96 = arith.addf %94, %95 : vector<16x4xf32>
      %97 = math.rsqrt %96 : vector<16x4xf32>
      %cst_55 = arith.constant dense<0.000000e+00> : vector<16x32xf32>
      %98 = tpu.matmul %86, %3, %cst_55 {dimension_numbers = #tpu.dot_dimension_numbers<[1], [0], [0], [1], [0, 0, 1, 1], [], []>} : vector<16x4xf32>, vector<4x32xf32>, vector<16x32xf32> -> vector<16x32xf32>
      %cst_56 = arith.constant dense<0.000000e+00> : vector<16x32xf32>
      %99 = tpu.matmul %97, %3, %cst_56 {dimension_numbers = #tpu.dot_dimension_numbers<[1], [0], [0], [1], [0, 0, 1, 1], [], []>} : vector<16x4xf32>, vector<4x32xf32>, vector<16x32xf32> -> vector<16x32xf32>
      %100 = arith.subf %83, %98 : vector<16x32xf32>
      %101 = arith.mulf %100, %99 : vector<16x32xf32>
      %c0_57 = arith.constant 0 : index
      %c0_58 = arith.constant 0 : index
      %102 = vector.load %arg8[%c0_57, %c0_58] : memref<1x32xf32, #tpu.memory_space<vmem>>, vector<1x32xf32>
      %103 = vector.broadcast %102 : vector<1x32xf32> to vector<16x32xf32>
      %104 = arith.mulf %101, %103 : vector<16x32xf32>
      %c0_59 = arith.constant 0 : index
      %c0_60 = arith.constant 0 : index
      %105 = vector.load %arg9[%c0_59, %c0_60] : memref<1x32xf32, #tpu.memory_space<vmem>>, vector<1x32xf32>
      %106 = vector.broadcast %105 : vector<1x32xf32> to vector<16x32xf32>
      %107 = arith.addf %104, %106 : vector<16x32xf32>
      %c0_61 = arith.constant 0 : index
      %c0_62 = arith.constant 0 : index
      %108 = vector.load %arg11[%c0_61, %c0_62] : memref<16x32xf32, #tpu.memory_space<vmem>>, vector<16x32xf32>
      tpu.vector_store %arg11[%c0_61, %c0_62], %107 {strides = array<i32>} : memref<16x32xf32, #tpu.memory_space<vmem>>, vector<16x32xf32>,
    } else {
    }
    return
  }
  func.func @transform_0(%arg0: i32, %arg1: i32) -> (i32, i32, i32) {
    %c0_i32 = arith.constant 0 : i32
    %c0_i32_0 = arith.constant 0 : i32
    return %arg0, %arg1, %c0_i32 : i32, i32, i32
  }
  func.func @transform_1(%arg0: i32, %arg1: i32) -> (i32, i32, i32) {
    %c0_i32 = arith.constant 0 : i32
    %c0_i32_0 = arith.constant 0 : i32
    return %arg0, %arg1, %c0_i32 : i32, i32, i32
  }
  func.func @transform_2(%arg0: i32, %arg1: i32) -> (i32, i32) {
    %c0_i32 = arith.constant 0 : i32
    %c0_i32_0 = arith.constant 0 : i32
    %c0_i32_1 = arith.constant 0 : i32
    return %c0_i32, %c0_i32_0 : i32, i32
  }
  func.func @transform_3(%arg0: i32, %arg1: i32) -> (i32, i32) {
    %c0_i32 = arith.constant 0 : i32
    %c0_i32_0 = arith.constant 0 : i32
    %c0_i32_1 = arith.constant 0 : i32
    return %c0_i32, %c0_i32_0 : i32, i32
  }
  func.func @transform_4(%arg0: i32, %arg1: i32) -> (i32, i32) {
    %c0_i32 = arith.constant 0 : i32
    %c0_i32_0 = arith.constant 0 : i32
    %c0_i32_1 = arith.constant 0 : i32
    return %c0_i32, %c0_i32_0 : i32, i32
  }
  func.func @transform_5(%arg0: i32, %arg1: i32) -> (i32, i32) {
    %c0_i32 = arith.constant 0 : i32
    %c0_i32_0 = arith.constant 0 : i32
    %c0_i32_1 = arith.constant 0 : i32
    return %c0_i32, %c0_i32_0 : i32, i32
  }
  func.func @transform_6(%arg0: i32, %arg1: i32) -> (i32, i32) {
    %c0_i32 = arith.constant 0 : i32
    %c0_i32_0 = arith.constant 0 : i32
    %c0_i32_1 = arith.constant 0 : i32
    return %c0_i32, %c0_i32_0 : i32, i32
  }
  func.func @transform_7(%arg0: i32, %arg1: i32) -> (i32, i32) {
    %c0_i32 = arith.constant 0 : i32
    %c0_i32_0 = arith.constant 0 : i32
    %c0_i32_1 = arith.constant 0 : i32
    return %c0_i32, %c0_i32_0 : i32, i32
  }
  func.func @transform_8(%arg0: i32, %arg1: i32) -> (i32, i32) {
    %c0_i32 = arith.constant 0 : i32
    %c0_i32_0 = arith.constant 0 : i32
    %c0_i32_1 = arith.constant 0 : i32
    return %c0_i32, %c0_i32_0 : i32, i32
  }
  func.func @transform_9(%arg0: i32, %arg1: i32) -> (i32, i32) {
    %c0_i32 = arith.constant 0 : i32
    %c0_i32_0 = arith.constant 0 : i32
    return %arg0, %c0_i32 : i32, i32
  }
}

</mosaic_0001>

<bundles_post_ra>
// kernel: tpu_custom_call.1
= control target key start
LH: loop header
LB: loop body
LE: loop exit
PB: predicated region body
PF: predicated region fallthrough
CT: control target
= control target key end

     0   :  { %14 = vsyncpa [#allocation6], 0  ;;  %s7009_s0 = inlined_call_operand.vmem [shape: f32[16,16,32], index: 0, kind: input, shape index: {}]   ;;  %s7010_s1 = inlined_call_operand.vmem [shape: f32[16,16,1], index: 1, kind: input, shape index: {}]   ;;  %s7011_s2 = inlined_call_operand.vmem [shape: f32[1,32], index: 2, kind: input, shape index: {}]   ;;  %s7012_s3 = inlined_call_operand.vmem [shape: f32[1,32], index: 3, kind: input, shape index: {}]   ;;  %s7013_s4 = inlined_call_operand.hbm [shape: f32[32,36], index: 4, kind: input, shape index: {}]   ;;  %s7014_s5 = inlined_call_operand.vmem [shape: f32[1,36], index: 5, kind: input, shape index: {}]   ;;  %s7015_s6 = inlined_call_operand.vmem [shape: f32[1,32], index: 6, kind: input, shape index: {}]   ;;  %s7016_s7 = inlined_call_operand.vmem [shape: f32[1,32], index: 7, kind: input, shape index: {}]   ;;  %s7017_s8 = inlined_call_operand.vmem [shape: f32[4,32], index: 8, kind: input, shape index: {}]   ;;  %s7018_s9 = inlined_call_operand.hbm [shape: f32[16,32], index: 9, kind: output, shape index: {}]  }
   0x1   :  { %15 = vsyncpa [#allocation7], 0  ;;  %s5232_s30 = smov [#allocation5]   ;;  %s5184_s13 = scalar_lea.hbm %s7013_s4, 512 }
   0x2   :  { %s29_s10 = sshll.u32 %s5232_s30, 4  ;;  %p5185_p0 = scmp.ne.s32.totalorder %s7013_s4, %s5184_s13  ;;  %s30_s10 = int_to_ptr.vmem [resolvable:$true] %s29_s10 }
   0x3   :  { %p5188_p1 = scmp.lt.u32.totalorder %s5184_s13, %s7013_s4 }
   0x5   :  { %p5190_p2 = pnand %p5188_p1, %p5185_p0 }
   0x7   :  { %5193 = shalt.err (!%p5190_p2)
}
   0x8   :  { %s5194_s18 = scalar_lea.vmem %s30_s10, 512  ;;  %p5199_p4 = scmp.lt.s32.totalorder %s30_s10, %s30_s10 }
   0x9   :  { %p5195_p3 = scmp.ne.s32.totalorder %s30_s10, %s5194_s18  ;;  %p5200_p5 = scmp.lt.s32.totalorder %s5194_s18, %s5194_s18 }
   0xb   :  { %p5201_p6 = por %p5200_p5, %p5199_p4 }
   0xd   :  { %p5202_p7 = pnand %p5201_p6, %p5195_p3 }
   0xf   :  { %5205 = shalt.err (!%p5202_p7)
}
  0x10   :  { %s5233_s19 = smov 128   ;;  %s5234_s20 = smov 8  }
  0x11   :  { %35 = dma.hbm_to_vmem [thread:$0]  %s7013_s4, 512, %s30_s10, [#allocation6], %s5233_s19, %s5233_s19, %s5234_s20  }
  0x12   :  { %5228 = dma.done.wait [#allocation6], 512  }
  0x13   :  { %5229 = vsyncadd [#allocation6], 4294966784  ;;  %v7019_v0 = vmov 0   ;;  %v5314_v1 = vld [vmem:[%s7010_s1 + $0x10] sm:$0xff]  ;;  %v5319_v2 = vld [vmem:[%s7010_s1] sm:$0xff]  ;;  %vm56_vm0 = vcmask 261120  }
  0x14   :  { %5043 = vset.pattern.permute.xlu1 %v7019_v0  ;;  %5042 = vset.pattern.permute.xlu0 %v7019_v0  ;;  %v5326_v3 = vld [vmem:[%s7010_s1 + $0x18] sm:$0xff]  ;;  %v5331_v4 = vld [vmem:[%s7010_s1 + $0x8] sm:$0xff]  ;;  %v5343_v6 = vld [vmem:[%s7010_s1 + $0x20] sm:$0xff]  ;;  %vm1144_vm1 = vcmp.gt.f32.partialorder %v5319_v2, 0.0  ;;  %vm1146_vm2 = vcmp.gt.f32.partialorder %v5314_v1, 0.0  ;;  %s5243_s14 = smov [#allocation8]  }
  0x15   :  { %136 = vperm.xlu1 %5043, %v5314_v1   ;;  %126 = vperm.xlu0 %5042, %v5319_v2   ;;  %v5338_v5 = vld [vmem:[%s7010_s1 + $0x28] sm:$0xff]  ;;  %v5350_v7 = vld [vmem:[%s7010_s1 + $0x38] sm:$0xff]  ;;  %v5355_v8 = vld [vmem:[%s7010_s1 + $0x30] sm:$0xff]  ;;  %vm1147_vm3 = vcmp.gt.f32.partialorder %v5326_v3, 0.0  ;;  %vm1145_vm4 = vcmp.gt.f32.partialorder %v5331_v4, 0.0  ;;  %vm1148_vm6 = vcmp.gt.f32.partialorder %v5343_v6, 0.0 }
  0x16   :  { %v5362_v9 = vld [vmem:[%s7010_s1 + $0x48] sm:$0xff]  ;;  %v5367_v10 = vld [vmem:[%s7010_s1 + $0x40] sm:$0xff]  ;;  %v5374_v11 = vld [vmem:[%s7010_s1 + $0x58] sm:$0xff]  ;;  %vm1149_vm5 = vcmp.gt.f32.partialorder %v5338_v5, 0.0  ;;  %vm1151_vm7 = vcmp.gt.f32.partialorder %v5350_v7, 0.0  ;;  %vm1150_vm8 = vcmp.gt.f32.partialorder %v5355_v8, 0.0 }
  0x17   :  { %v5379_v12 = vld [vmem:[%s7010_s1 + $0x50] sm:$0xff]  ;;  %v5386_v13 = vld [vmem:[%s7010_s1 + $0x68] sm:$0xff]  ;;  %v5391_v14 = vld [vmem:[%s7010_s1 + $0x60] sm:$0xff]  ;;  %vm1153_vm9 = vcmp.gt.f32.partialorder %v5362_v9, 0.0  ;;  %vm1152_vm10 = vcmp.gt.f32.partialorder %v5367_v10, 0.0  ;;  %vm1155_vm11 = vcmp.gt.f32.partialorder %v5374_v11, 0.0 }
  0x18   :  { %v5398_v15 = vld [vmem:[%s7010_s1 + $0x78] sm:$0xff]  ;;  %v5403_v16 = vld [vmem:[%s7010_s1 + $0x70] sm:$0xff]  ;;  %v5410_v17 = vld [vmem:[%s7010_s1 + $0x88] sm:$0xff]  ;;  %vm1154_vm12 = vcmp.gt.f32.partialorder %v5379_v12, 0.0  ;;  %vm1157_vm13 = vcmp.gt.f32.partialorder %v5386_v13, 0.0  ;;  %vm1156_vm14 = vcmp.gt.f32.partialorder %v5391_v14, 0.0 }
  0x19   :  { %141 = vperm.xlu1 %5043, %v5326_v3   ;;  %131 = vperm.xlu0 %5042, %v5331_v4   ;;  %v5415_v18 = vld [vmem:[%s7010_s1 + $0x80] sm:$0xff]  ;;  %v5422_v19 = vld [vmem:[%s7010_s1 + $0x98] sm:$0xff]  ;;  %v5427_v20 = vld [vmem:[%s7010_s1 + $0x90] sm:$0xff]  ;;  %vm1159_vm15 = vcmp.gt.f32.partialorder %v5398_v15, 0.0  ;;  %s4591_s15 = sshll.u32 %s5243_s14, 4  ;;  %s4592_s15 = int_to_ptr.vmem [resolvable:$true] %s4591_s15 }
  0x1a   :  { %v5434_v21 = vld [vmem:[%s7010_s1 + $0xa8] sm:$0xff]  ;;  %v5439_v22 = vld [vmem:[%s7010_s1 + $0xa0] sm:$0xff]  ;;  %v5446_v23 = vld [vmem:[%s7010_s1 + $0xb8] sm:$0xff]  ;;  %s5206_s16 = scalar_lea.vmem %s4592_s15, 256  ;;  %p5211_p9 = scmp.lt.s32.totalorder %s4592_s15, %s4592_s15 }
  0x1b   :  { %7071 = vst [vmem:[#allocation11_spill] sm:$0xff] %v5434_v21  ;;  %7072 = vst [vmem:[#allocation12_spill] sm:$0xff] %v5439_v22  ;;  %v5451_v24 = vld [vmem:[%s7010_s1 + $0xb0] sm:$0xff]  ;;  %v5458_v25 = vld [vmem:[%s7010_s1 + $0xc8] sm:$0xff]  ;;  %p5207_p8 = scmp.ne.s32.totalorder %s4592_s15, %s5206_s16  ;;  %p5212_p10 = scmp.lt.s32.totalorder %s5206_s16, %s5206_s16 }
  0x1c   :  { %7073 = vst [vmem:[#allocation13_spill] sm:$0xff] %v5446_v23  ;;  %7074 = vst [vmem:[#allocation14_spill] sm:$0xff] %v5451_v24  ;;  %v5463_v26 = vld [vmem:[%s7010_s1 + $0xc0] sm:$0xff]  ;;  %v5470_v27 = vld [vmem:[%s7010_s1 + $0xd8] sm:$0xff] }
  0x1d   :  { %151 = vperm.xlu1 %5043, %v5338_v5   ;;  %146 = vperm.xlu0 %5042, %v5343_v6   ;;  %7075 = vst [vmem:[#allocation15_spill] sm:$0xff] %v5458_v25  ;;  %7076 = vst [vmem:[#allocation16_spill] sm:$0xff] %v5463_v26  ;;  %v5475_v28 = vld [vmem:[%s7010_s1 + $0xd0] sm:$0xff]  ;;  %v5482_v29 = vld [vmem:[%s7010_s1 + $0xe8] sm:$0xff]  ;;  %p5213_p11 = por %p5212_p10, %p5211_p9 }
  0x1e   :  { %7077 = vst [vmem:[#allocation17_spill] sm:$0xff] %v5470_v27  ;;  %7078 = vst [vmem:[#allocation18_spill] sm:$0xff] %v5475_v28  ;;  %v5487_v30 = vld [vmem:[%s7010_s1 + $0xe0] sm:$0xff]  ;;  %v5494_v31 = vld [vmem:[%s7010_s1 + $0xf8] sm:$0xff] }
  0x1f   :  { %7079 = vst [vmem:[#allocation19_spill] sm:$0xff] %v5482_v29  ;;  %7080 = vst [vmem:[#allocation20_spill] sm:$0xff] %v5487_v30  ;;  %v5499_v32 = vld [vmem:[%s7010_s1 + $0xf0] sm:$0xff]  ;;  %v92_v34 = vld [vmem:[%s7009_s0] sm:$0xff]  ;;  %s5241_s1 = smov 32   ;;  %p5214_p12 = pnand %p5213_p11, %p5207_p8 }
  0x20   :  { %7081 = vst [vmem:[#allocation21_spill] sm:$0xff] %v5494_v31  ;;  %7082 = vst [vmem:[#allocation22_spill] sm:$0xff] %v5499_v32  ;;  %v94_v33 = vld [vmem:[%s7009_s0 + $0x10] sm:$0xff]  ;;  %v93_v39 = vld [vmem:[%s7009_s0 + $0x8] sm:$0xff] }
  0x21   :  { %161 = vperm.xlu1 %5043, %v5350_v7   ;;  %156 = vperm.xlu0 %5042, %v5355_v8   ;;  %v95_v41 = vld [vmem:[%s7009_s0 + $0x18] sm:$0xff]  ;;  %v96_v46 = vld [vmem:[%s7009_s0 + $0x20] sm:$0xff]  ;;  %v97_v49 = vld [vmem:[%s7009_s0 + $0x28] sm:$0xff] }
  0x22   :  { %v98_v53 = vld [vmem:[%s7009_s0 + $0x30] sm:$0xff]  ;;  %v99_v57 = vld [vmem:[%s7009_s0 + $0x38] sm:$0xff]  ;;  %v100_v61 = vld [vmem:[%s7009_s0 + $0x40] sm:$0xff] }
  0x25   :  { %171 = vperm.xlu1 %5043, %v5362_v9   ;;  %166 = vperm.xlu0 %5042, %v5367_v10  }
  0x29   :  { %181 = vperm.xlu1 %5043, %v5374_v11   ;;  %176 = vperm.xlu0 %5042, %v5379_v12  }
  0x2d   :  { %191 = vperm.xlu1 %5043, %v5386_v13   ;;  %186 = vperm.xlu0 %5042, %v5391_v14  }
  0x31   :  { %201 = vperm.xlu1 %5043, %v5398_v15   ;;  %196 = vperm.xlu0 %5042, %v5403_v16  }
  0x35   :  { %211 = vperm.xlu1 %5043, %v5410_v17   ;;  %206 = vperm.xlu0 %5042, %v5415_v18  }
  0x39   :  { %221 = vperm.xlu1 %5043, %v5422_v19   ;;  %216 = vperm.xlu0 %5042, %v5427_v20  }
  0x3d   :  { %231 = vperm.xlu1 %5043, %v5434_v21   ;;  %226 = vperm.xlu0 %5042, %v5439_v22  }
  0x41   :  { %241 = vperm.xlu1 %5043, %v5446_v23   ;;  %236 = vperm.xlu0 %5042, %v5451_v24  }
  0x45   :  { %251 = vperm.xlu1 %5043, %v5458_v25   ;;  %246 = vperm.xlu0 %5042, %v5463_v26  }
  0x49   :  { %261 = vperm.xlu1 %5043, %v5470_v27   ;;  %256 = vperm.xlu0 %5042, %v5475_v28  }
  0x4d   :  { %271 = vperm.xlu1 %5043, %v5482_v29   ;;  %266 = vperm.xlu0 %5042, %v5487_v30  }
  0x51   :  { %281 = vperm.xlu1 %5043, %v5494_v31   ;;  %276 = vperm.xlu0 %5042, %v5499_v32  }
  0x94   :  { %v137_v35 = vpop.permute.xlu1 %136  ;;  %v127_v36 = vpop.permute.xlu0 %126 }
  0x95   :  { %v5509_v37 = vmul.f32 %v137_v35, %v94_v33  ;;  %v5511_v38 = vmul.f32 %v127_v36, %v92_v34  ;;  %v101_v34 = vld [vmem:[%s7009_s0 + $0x48] sm:$0xff] }
  0x97   :  { %v317_v40 = vsel %vm56_vm0, %v5511_v38, 0.0  ;;  %v323_v45 = vsel %vm56_vm0, %v5509_v37, 0.0 }
  0x98   :  { %v142_v42 = vpop.permute.xlu1 %141  ;;  %318 = vadd.xlane.f32.xlu0 %v317_v40  ;;  %v132_v43 = vpop.permute.xlu0 %131  ;;  %v102_v40 = vld [vmem:[%s7009_s0 + $0x50] sm:$0xff] }
  0x99   :  { %v5521_v44 = vmul.f32 %v132_v43, %v93_v39  ;;  %v5528_v47 = vmul.f32 %v142_v42, %v95_v41 }
  0x9b   :  { %v320_v48 = vsel %vm56_vm0, %v5521_v44, 0.0  ;;  %v326_v55 = vsel %vm56_vm0, %v5528_v47, 0.0 }
  0x9c   :  { %v152_v50 = vpop.permute.xlu1 %151  ;;  %324 = vadd.xlane.f32.xlu0 %v323_v45  ;;  %321 = vadd.xlane.f32.xlu1 %v320_v48  ;;  %v147_v51 = vpop.permute.xlu0 %146  ;;  %v103_v45 = vld [vmem:[%s7009_s0 + $0x58] sm:$0xff] }
  0x9d   :  { %v5535_v52 = vmul.f32 %v147_v51, %v96_v46  ;;  %v5540_v54 = vmul.f32 %v152_v50, %v97_v49  ;;  %v104_v50 = vld [vmem:[%s7009_s0 + $0x60] sm:$0xff] }
  0x9f   :  { %v329_v56 = vsel %vm56_vm0, %v5535_v52, 0.0  ;;  %v332_v63 = vsel %vm56_vm0, %v5540_v54, 0.0 }
  0xa0   :  { %v162_v58 = vpop.permute.xlu1 %161  ;;  %327 = vadd.xlane.f32.xlu0 %v326_v55  ;;  %330 = vadd.xlane.f32.xlu1 %v329_v56  ;;  %v157_v59 = vpop.permute.xlu0 %156  ;;  %v105_v56 = vld [vmem:[%s7009_s0 + $0x68] sm:$0xff] }
  0xa1   :  { %v5549_v60 = vmul.f32 %v157_v59, %v98_v53  ;;  %v5554_v62 = vmul.f32 %v162_v58, %v99_v57 }
  0xa3   :  { %v335_v33 = vsel %vm56_vm0, %v5549_v60, 0.0  ;;  %v338_v42 = vsel %vm56_vm0, %v5554_v62, 0.0 }
  0xa4   :  { %v172_v35 = vpop.permute.xlu1 %171  ;;  %333 = vadd.xlane.f32.xlu0 %v332_v63  ;;  %336 = vadd.xlane.f32.xlu1 %v335_v33  ;;  %v167_v36 = vpop.permute.xlu0 %166 }
  0xa5   :  { %v5563_v39 = vmul.f32 %v167_v36, %v100_v61  ;;  %v5568_v41 = vmul.f32 %v172_v35, %v101_v34  ;;  %v106_v61 = vld [vmem:[%s7009_s0 + $0x70] sm:$0xff]  ;;  %v107_v35 = vld [vmem:[%s7009_s0 + $0x78] sm:$0xff] }
  0xa7   :  { %v341_v43 = vsel %vm56_vm0, %v5563_v39, 0.0  ;;  %v344_v53 = vsel %vm56_vm0, %v5568_v41, 0.0 }
  0xa8   :  { %v182_v46 = vpop.permute.xlu1 %181  ;;  %339 = vadd.xlane.f32.xlu0 %v338_v42  ;;  %342 = vadd.xlane.f32.xlu1 %v341_v43  ;;  %v177_v48 = vpop.permute.xlu0 %176  ;;  %v108_v43 = vld [vmem:[%s7009_s0 + $0x80] sm:$0xff] }
  0xa9   :  { %v5577_v49 = vmul.f32 %v177_v48, %v102_v40  ;;  %v5582_v51 = vmul.f32 %v182_v46, %v103_v45 }
  0xab   :  { %v347_v55 = vsel %vm56_vm0, %v5577_v49, 0.0  ;;  %v350_v33 = vsel %vm56_vm0, %v5582_v51, 0.0 }
  0xac   :  { %v192_v57 = vpop.permute.xlu1 %191  ;;  %345 = vadd.xlane.f32.xlu0 %v344_v53  ;;  %348 = vadd.xlane.f32.xlu1 %v347_v55  ;;  %v187_v58 = vpop.permute.xlu0 %186 }
  0xad   :  { %v5591_v59 = vmul.f32 %v187_v58, %v104_v50  ;;  %v5596_v63 = vmul.f32 %v192_v57, %v105_v56  ;;  %v109_v50 = vld [vmem:[%s7009_s0 + $0x88] sm:$0xff]  ;;  %v110_v57 = vld [vmem:[%s7009_s0 + $0x90] sm:$0xff] }
  0xaf   :  { %v353_v34 = vsel %vm56_vm0, %v5591_v59, 0.0  ;;  %v356_v46 = vsel %vm56_vm0, %v5596_v63, 0.0 }
  0xb0   :  { %v202_v36 = vpop.permute.xlu1 %201  ;;  %351 = vadd.xlane.f32.xlu0 %v350_v33  ;;  %354 = vadd.xlane.f32.xlu1 %v353_v34  ;;  %v197_v40 = vpop.permute.xlu0 %196  ;;  %v111_v34 = vld [vmem:[%s7009_s0 + $0x98] sm:$0xff] }
  0xb1   :  { %v5605_v42 = vmul.f32 %v197_v40, %v106_v61  ;;  %v5610_v45 = vmul.f32 %v202_v36, %v107_v35 }
  0xb3   :  { %v359_v48 = vsel %vm56_vm0, %v5605_v42, 0.0  ;;  %v362_v61 = vsel %vm56_vm0, %v5610_v45, 0.0 }
  0xb4   :  { %v212_v53 = vpop.permute.xlu1 %211  ;;  %357 = vadd.xlane.f32.xlu0 %v356_v46  ;;  %360 = vadd.xlane.f32.xlu1 %v359_v48  ;;  %v207_v55 = vpop.permute.xlu0 %206 }
  0xb5   :  { %v5619_v56 = vmul.f32 %v207_v55, %v108_v43  ;;  %v5624_v58 = vmul.f32 %v212_v53, %v109_v50  ;;  %v112_v43 = vld [vmem:[%s7009_s0 + $0xa0] sm:$0xff]  ;;  %v113_v53 = vld [vmem:[%s7009_s0 + $0xa8] sm:$0xff] }
  0xb7   :  { %v365_v33 = vsel %vm56_vm0, %v5619_v56, 0.0  ;;  %v368_v48 = vsel %vm56_vm0, %v5624_v58, 0.0 }
  0xb8   :  { %v222_v35 = vpop.permute.xlu1 %221  ;;  %363 = vadd.xlane.f32.xlu0 %v362_v61  ;;  %366 = vadd.xlane.f32.xlu1 %v365_v33  ;;  %v217_v36 = vpop.permute.xlu0 %216  ;;  %v114_v33 = vld [vmem:[%s7009_s0 + $0xb0] sm:$0xff] }
  0xb9   :  { %v5633_v40 = vmul.f32 %v217_v36, %v110_v57  ;;  %v5638_v46 = vmul.f32 %v222_v35, %v111_v34 }
  0xbb   :  { %v371_v50 = vsel %vm56_vm0, %v5633_v40, 0.0  ;;  %v374_v35 = vsel %vm56_vm0, %v5638_v46, 0.0 }
  0xbc   :  { %v232_v55 = vpop.permute.xlu1 %231  ;;  %369 = vadd.xlane.f32.xlu0 %v368_v48  ;;  %372 = vadd.xlane.f32.xlu1 %v371_v50  ;;  %v227_v57 = vpop.permute.xlu0 %226  ;;  %v115_v48 = vld [vmem:[%s7009_s0 + $0xb8] sm:$0xff] }
  0xbd   :  { %v5647_v61 = vmul.f32 %v227_v57, %v112_v43  ;;  %v5652_v34 = vmul.f32 %v232_v55, %v113_v53  ;;  %v116_v53 = vld [vmem:[%s7009_s0 + $0xc0] sm:$0xff] }
  0xbf   :  { %v377_v36 = vsel %vm56_vm0, %v5647_v61, 0.0  ;;  %v380_v0 = vsel %vm56_vm0, %v5652_v34, 0.0 }
  0xc0   :  { %v242_v50 = vpop.permute.xlu1 %241  ;;  %375 = vadd.xlane.f32.xlu0 %v374_v35  ;;  %378 = vadd.xlane.f32.xlu1 %v377_v36  ;;  %v237_v43 = vpop.permute.xlu0 %236  ;;  %v117_v35 = vld [vmem:[%s7009_s0 + $0xc8] sm:$0xff] }
  0xc1   :  { %v5661_v57 = vmul.f32 %v237_v43, %v114_v33  ;;  %v5666_v55 = vmul.f32 %v242_v50, %v115_v48  ;;  %v118_v48 = vld [vmem:[%s7009_s0 + $0xd0] sm:$0xff] }
  0xc3   :  { %v383_v32 = vsel %vm56_vm0, %v5661_v57, 0.0  ;;  %v386_v31 = vsel %vm56_vm0, %v5666_v55, 0.0 }
  0xc4   :  { %v252_v36 = vpop.permute.xlu1 %251  ;;  %381 = vadd.xlane.f32.xlu0 %v380_v0  ;;  %384 = vadd.xlane.f32.xlu1 %v383_v32  ;;  %v247_v33 = vpop.permute.xlu0 %246  ;;  %v119_v0 = vld [vmem:[%s7009_s0 + $0xd8] sm:$0xff] }
  0xc5   :  { %v5675_v43 = vmul.f32 %v247_v33, %v116_v53  ;;  %v5680_v50 = vmul.f32 %v252_v36, %v117_v35  ;;  %v120_v35 = vld [vmem:[%s7009_s0 + $0xe0] sm:$0xff] }
  0xc7   :  { %v389_v30 = vsel %vm56_vm0, %v5675_v43, 0.0  ;;  %v392_v29 = vsel %vm56_vm0, %v5680_v50, 0.0 }
  0xc8   :  { %v262_v32 = vpop.permute.xlu1 %261  ;;  %387 = vadd.xlane.f32.xlu0 %v386_v31  ;;  %390 = vadd.xlane.f32.xlu1 %v389_v30  ;;  %v257_v53 = vpop.permute.xlu0 %256  ;;  %v121_v31 = vld [vmem:[%s7009_s0 + $0xe8] sm:$0xff] }
  0xc9   :  { %v5689_v33 = vmul.f32 %v257_v53, %v118_v48  ;;  %v5694_v36 = vmul.f32 %v262_v32, %v119_v0  ;;  %v122_v0 = vld [vmem:[%s7009_s0 + $0xf0] sm:$0xff] }
  0xcb   :  { %v395_v28 = vsel %vm56_vm0, %v5689_v33, 0.0  ;;  %v398_v27 = vsel %vm56_vm0, %v5694_v36, 0.0 }
  0xcc   :  { %v272_v30 = vpop.permute.xlu1 %271  ;;  %393 = vadd.xlane.f32.xlu0 %v392_v29  ;;  %396 = vadd.xlane.f32.xlu1 %v395_v28  ;;  %v267_v48 = vpop.permute.xlu0 %266  ;;  %v123_v29 = vld [vmem:[%s7009_s0 + $0xf8] sm:$0xff] }
  0xcd   :  { %v5703_v53 = vmul.f32 %v267_v48, %v120_v35  ;;  %v5708_v32 = vmul.f32 %v272_v30, %v121_v31 }
  0xcf   :  { %v401_v26 = vsel %vm56_vm0, %v5703_v53, 0.0  ;;  %v404_v31 = vsel %vm56_vm0, %v5708_v32, 0.0 }
  0xd0   :  { %v282_v28 = vpop.permute.xlu1 %281  ;;  %399 = vadd.xlane.f32.xlu0 %v398_v27  ;;  %402 = vadd.xlane.f32.xlu1 %v401_v26  ;;  %v277_v35 = vpop.permute.xlu0 %276 }
  0xd1   :  { %v5717_v48 = vmul.f32 %v277_v35, %v122_v0  ;;  %v5719_v25 = vmul.f32 %v282_v28, %v123_v29 }
  0xd3   :  { %v407_v30 = vsel %vm56_vm0, %v5717_v48, 0.0  ;;  %v410_v24 = vsel %vm56_vm0, %v5719_v25, 0.0 }
  0xd4   :  { %405 = vadd.xlane.f32.xlu0 %v404_v31  ;;  %408 = vadd.xlane.f32.xlu1 %v407_v30 }
  0xd8   :  { %411 = vadd.xlane.f32.xlu0 %v410_v24 }
 0x125   :  { %v319_v23 = vpop.xlane.xlu0 %318 }
 0x126   :  { %v414_v27 = vmul.f32 0.03125, %v319_v23 }
 0x128   :  { %v5728_v26 = vsub.f32 %v5511_v38, %v414_v27 }
 0x129   :  { %v322_v0 = vpop.xlane.xlu1 %321  ;;  %v325_v29 = vpop.xlane.xlu0 %324 }
 0x12a   :  { %7083 = vst [vmem:[#allocation23_spill] sm:$0xff] %v5728_v26  ;;  %v415_v28 = vmul.f32 0.03125, %v322_v0  ;;  %v416_v35 = vmul.f32 0.03125, %v325_v29  ;;  %v478_v22 = vmul.f32 %v5728_v26, %v5728_v26 }
 0x12c   :  { %v5733_v21 = vsub.f32 %v5521_v44, %v415_v28  ;;  %v5736_v31 = vsub.f32 %v5509_v37, %v416_v35  ;;  %v510_v24 = vsel %vm56_vm0, %v478_v22, 0.0 }
 0x12d   :  { %v331_v30 = vpop.xlane.xlu1 %330  ;;  %511 = vadd.xlane.f32.xlu1 %v510_v24  ;;  %v328_v23 = vpop.xlane.xlu0 %327 }
 0x12e   :  { %v418_v38 = vmul.f32 0.03125, %v331_v30  ;;  %v417_v27 = vmul.f32 0.03125, %v328_v23  ;;  %v479_v0 = vmul.f32 %v5733_v21, %v5733_v21  ;;  %v480_v29 = vmul.f32 %v5736_v31, %v5736_v31 }
 0x130   :  { %v5744_v26 = vsub.f32 %v5535_v52, %v418_v38  ;;  %v5747_v44 = vsub.f32 %v5528_v47, %v417_v27  ;;  %v513_v37 = vsel %vm56_vm0, %v479_v0, 0.0  ;;  %v516_v22 = vsel %vm56_vm0, %v480_v29, 0.0 }
 0x131   :  { %514 = vadd.xlane.f32.xlu0 %v513_v37  ;;  %v337_v28 = vpop.xlane.xlu1 %336  ;;  %517 = vadd.xlane.f32.xlu1 %v516_v22  ;;  %v334_v35 = vpop.xlane.xlu0 %333 }
 0x132   :  { %v420_v24 = vmul.f32 0.03125, %v337_v28  ;;  %v419_v30 = vmul.f32 0.03125, %v334_v35  ;;  %v482_v23 = vmul.f32 %v5744_v26, %v5744_v26  ;;  %v481_v52 = vmul.f32 %v5747_v44, %v5747_v44 }
 0x134   :  { %v5756_v38 = vsub.f32 %v5549_v60, %v420_v24  ;;  %v5759_v47 = vsub.f32 %v5540_v54, %v419_v30  ;;  %v522_v27 = vsel %vm56_vm0, %v482_v23, 0.0  ;;  %v519_v0 = vsel %vm56_vm0, %v481_v52, 0.0 }
 0x135   :  { %v343_v29 = vpop.xlane.xlu1 %342  ;;  %523 = vadd.xlane.f32.xlu1 %v522_v27  ;;  %520 = vadd.xlane.f32.xlu0 %v519_v0  ;;  %v340_v37 = vpop.xlane.xlu0 %339 }
 0x136   :  { %v422_v22 = vmul.f32 0.03125, %v343_v29  ;;  %v421_v28 = vmul.f32 0.03125, %v340_v37  ;;  %v484_v35 = vmul.f32 %v5756_v38, %v5756_v38  ;;  %v483_v60 = vmul.f32 %v5759_v47, %v5759_v47 }
 0x138   :  { %v5768_v24 = vsub.f32 %v5563_v39, %v422_v22  ;;  %v5771_v54 = vsub.f32 %v5554_v62, %v421_v28  ;;  %v528_v30 = vsel %vm56_vm0, %v484_v35, 0.0  ;;  %v525_v23 = vsel %vm56_vm0, %v483_v60, 0.0 }
 0x139   :  { %v349_v52 = vpop.xlane.xlu1 %348  ;;  %529 = vadd.xlane.f32.xlu1 %v528_v30  ;;  %526 = vadd.xlane.f32.xlu0 %v525_v23  ;;  %v346_v27 = vpop.xlane.xlu0 %345 }
 0x13a   :  { %v424_v0 = vmul.f32 0.03125, %v349_v52  ;;  %v423_v29 = vmul.f32 0.03125, %v346_v27  ;;  %v486_v37 = vmul.f32 %v5768_v24, %v5768_v24  ;;  %v485_v39 = vmul.f32 %v5771_v54, %v5771_v54 }
 0x13c   :  { %v5780_v22 = vsub.f32 %v5577_v49, %v424_v0  ;;  %v5783_v62 = vsub.f32 %v5568_v41, %v423_v29  ;;  %v534_v28 = vsel %vm56_vm0, %v486_v37, 0.0  ;;  %v531_v35 = vsel %vm56_vm0, %v485_v39, 0.0 }
 0x13d   :  { %v355_v60 = vpop.xlane.xlu1 %354  ;;  %535 = vadd.xlane.f32.xlu1 %v534_v28  ;;  %532 = vadd.xlane.f32.xlu0 %v531_v35  ;;  %v352_v30 = vpop.xlane.xlu0 %351 }
 0x13e   :  { %v426_v23 = vmul.f32 0.03125, %v355_v60  ;;  %v425_v52 = vmul.f32 0.03125, %v352_v30  ;;  %v488_v27 = vmul.f32 %v5780_v22, %v5780_v22  ;;  %v487_v49 = vmul.f32 %v5783_v62, %v5783_v62 }
 0x140   :  { %v5792_v0 = vsub.f32 %v5591_v59, %v426_v23  ;;  %v5795_v41 = vsub.f32 %v5582_v51, %v425_v52  ;;  %v540_v29 = vsel %vm56_vm0, %v488_v27, 0.0  ;;  %v537_v37 = vsel %vm56_vm0, %v487_v49, 0.0 }
 0x141   :  { %v361_v39 = vpop.xlane.xlu1 %360  ;;  %541 = vadd.xlane.f32.xlu1 %v540_v29  ;;  %538 = vadd.xlane.f32.xlu0 %v537_v37  ;;  %v358_v28 = vpop.xlane.xlu0 %357 }
 0x142   :  { %v428_v35 = vmul.f32 0.03125, %v361_v39  ;;  %v427_v60 = vmul.f32 0.03125, %v358_v28  ;;  %v490_v30 = vmul.f32 %v5792_v0, %v5792_v0  ;;  %v489_v59 = vmul.f32 %v5795_v41, %v5795_v41 }
 0x144   :  { %v5804_v23 = vsub.f32 %v5605_v42, %v428_v35  ;;  %v5807_v51 = vsub.f32 %v5596_v63, %v427_v60  ;;  %v546_v52 = vsel %vm56_vm0, %v490_v30, 0.0  ;;  %v543_v27 = vsel %vm56_vm0, %v489_v59, 0.0 }
 0x145   :  { %v367_v49 = vpop.xlane.xlu1 %366  ;;  %547 = vadd.xlane.f32.xlu1 %v546_v52  ;;  %544 = vadd.xlane.f32.xlu0 %v543_v27  ;;  %v364_v29 = vpop.xlane.xlu0 %363 }
 0x146   :  { %7084 = vst [vmem:[#allocation24_spill] sm:$0xff] %v5807_v51  ;;  %v430_v37 = vmul.f32 0.03125, %v367_v49  ;;  %v429_v39 = vmul.f32 0.03125, %v364_v29  ;;  %v492_v28 = vmul.f32 %v5804_v23, %v5804_v23  ;;  %v491_v42 = vmul.f32 %v5807_v51, %v5807_v51  ;;  %v813_v51 = vld [vmem:[#allocation5 + $0x8] sm:$0xff] }
 0x148   :  { %v5816_v35 = vsub.f32 %v5619_v56, %v430_v37  ;;  %v5819_v63 = vsub.f32 %v5610_v45, %v429_v39  ;;  %v552_v60 = vsel %vm56_vm0, %v492_v28, 0.0  ;;  %v549_v30 = vsel %vm56_vm0, %v491_v42, 0.0  ;;  %v812_v37 = vld [vmem:[#allocation5] sm:$0xff] }
 0x149   :  { %v373_v59 = vpop.xlane.xlu1 %372  ;;  %553 = vadd.xlane.f32.xlu1 %v552_v60  ;;  %550 = vadd.xlane.f32.xlu0 %v549_v30  ;;  %v370_v52 = vpop.xlane.xlu0 %369  ;;  %v4974_v45 = vpack.c.bf16 %v813_v51, %v812_v37  ;;  %v814_v51 = vld [vmem:[#allocation5 + $0x10] sm:$0xff] }
 0x14a   :  { %7085 = vst [vmem:[#allocation25_spill] sm:$0xff] %v5816_v35  ;;  %7086 = vst [vmem:[#allocation26_spill] sm:$0xff] %v5819_v63  ;;  %v432_v27 = vmul.f32 0.03125, %v373_v59  ;;  %v431_v49 = vmul.f32 0.03125, %v370_v52  ;;  %v494_v29 = vmul.f32 %v5816_v35, %v5816_v35  ;;  %v493_v56 = vmul.f32 %v5819_v63, %v5819_v63 }
 0x14b   :  { %4975 = vmatprep.subr.bf16.mxu0 %v4974_v45 }
 0x14c   :  { %v5828_v39 = vsub.f32 %v5633_v40, %v432_v27  ;;  %v5831_v28 = vsub.f32 %v5624_v58, %v431_v49  ;;  %v558_v42 = vsel %vm56_vm0, %v494_v29, 0.0  ;;  %v555_v60 = vsel %vm56_vm0, %v493_v56, 0.0  ;;  %v815_v58 = vld [vmem:[#allocation5 + $0x18] sm:$0xff]  ;;  %4977 = vmatpush3.bf16.msra.mxu0 %v4974_v45 }
 0x14d   :  { %v379_v30 = vpop.xlane.xlu1 %378  ;;  %559 = vadd.xlane.f32.xlu1 %v558_v42  ;;  %556 = vadd.xlane.f32.xlu0 %v555_v60  ;;  %v376_v59 = vpop.xlane.xlu0 %375  ;;  %v4978_v27 = vpack.c.bf16 %v815_v58, %v814_v51 }
 0x14e   :  { %v434_v52 = vmul.f32 0.03125, %v379_v30  ;;  %v433_v35 = vmul.f32 0.03125, %v376_v59  ;;  %v496_v63 = vmul.f32 %v5828_v39, %v5828_v39  ;;  %v495_v40 = vmul.f32 %v5831_v28, %v5831_v28 }
 0x14f   :  { %4979 = vmatprep.subr.bf16.mxu0 %v4978_v27 }
 0x150   :  { %v5840_v49 = vsub.f32 %v5647_v61, %v434_v52  ;;  %v5843_v29 = vsub.f32 %v5638_v46, %v433_v35  ;;  %v564_v56 = vsel %vm56_vm0, %v496_v63, 0.0  ;;  %v561_v37 = vsel %vm56_vm0, %v495_v40, 0.0  ;;  %4981 = vmatpush3.bf16.msra.mxu0 %v4978_v27 }
 0x151   :  { %v385_v42 = vpop.xlane.xlu1 %384  ;;  %565 = vadd.xlane.f32.xlu1 %v564_v56  ;;  %562 = vadd.xlane.f32.xlu0 %v561_v37  ;;  %v382_v60 = vpop.xlane.xlu0 %381 }
 0x152   :  { %v436_v30 = vmul.f32 0.03125, %v385_v42  ;;  %v435_v59 = vmul.f32 0.03125, %v382_v60  ;;  %v498_v45 = vmul.f32 %v5840_v49, %v5840_v49  ;;  %v497_v61 = vmul.f32 %v5843_v29, %v5843_v29 }
 0x154   :  { %v5852_v46 = vsub.f32 %v5661_v57, %v436_v30  ;;  %v5855_v35 = vsub.f32 %v5652_v34, %v435_v59  ;;  %v570_v63 = vsel %vm56_vm0, %v498_v45, 0.0  ;;  %v567_v52 = vsel %vm56_vm0, %v497_v61, 0.0 }
 0x155   :  { %v391_v40 = vpop.xlane.xlu1 %390  ;;  %571 = vadd.xlane.f32.xlu1 %v570_v63  ;;  %568 = vadd.xlane.f32.xlu0 %v567_v52  ;;  %v388_v51 = vpop.xlane.xlu0 %387 }
 0x156   :  { %v438_v58 = vmul.f32 0.03125, %v391_v40  ;;  %v437_v56 = vmul.f32 0.03125, %v388_v51  ;;  %v500_v37 = vmul.f32 %v5852_v46, %v5852_v46  ;;  %v499_v57 = vmul.f32 %v5855_v35, %v5855_v35 }
 0x158   :  { %v5864_v27 = vsub.f32 %v5675_v43, %v438_v58  ;;  %v5867_v34 = vsub.f32 %v5666_v55, %v437_v56  ;;  %v576_v42 = vsel %vm56_vm0, %v500_v37, 0.0  ;;  %v573_v60 = vsel %vm56_vm0, %v499_v57, 0.0 }
 0x159   :  { %v397_v30 = vpop.xlane.xlu1 %396  ;;  %577 = vadd.xlane.f32.xlu1 %v576_v42  ;;  %574 = vadd.xlane.f32.xlu0 %v573_v60  ;;  %v394_v59 = vpop.xlane.xlu0 %393 }
 0x15a   :  { %v440_v45 = vmul.f32 0.03125, %v397_v30  ;;  %v439_v61 = vmul.f32 0.03125, %v394_v59  ;;  %v502_v63 = vmul.f32 %v5864_v27, %v5864_v27  ;;  %v501_v43 = vmul.f32 %v5867_v34, %v5867_v34 }
 0x15c   :  { %v5876_v52 = vsub.f32 %v5689_v33, %v440_v45  ;;  %v5879_v55 = vsub.f32 %v5680_v50, %v439_v61  ;;  %v582_v40 = vsel %vm56_vm0, %v502_v63, 0.0  ;;  %v579_v51 = vsel %vm56_vm0, %v501_v43, 0.0 }
 0x15d   :  { %v403_v58 = vpop.xlane.xlu1 %402  ;;  %583 = vadd.xlane.f32.xlu1 %v582_v40  ;;  %580 = vadd.xlane.f32.xlu0 %v579_v51  ;;  %v400_v56 = vpop.xlane.xlu0 %399 }
 0x15e   :  { %v442_v37 = vmul.f32 0.03125, %v403_v58  ;;  %v441_v57 = vmul.f32 0.03125, %v400_v56  ;;  %v504_v42 = vmul.f32 %v5876_v52, %v5876_v52  ;;  %v503_v33 = vmul.f32 %v5879_v55, %v5879_v55 }
 0x160   :  { %v5888_v60 = vsub.f32 %v5703_v53, %v442_v37  ;;  %v5891_v50 = vsub.f32 %v5694_v36, %v441_v57  ;;  %v588_v30 = vsel %vm56_vm0, %v504_v42, 0.0  ;;  %v585_v59 = vsel %vm56_vm0, %v503_v33, 0.0 }
 0x161   :  { %v409_v45 = vpop.xlane.xlu1 %408  ;;  %589 = vadd.xlane.f32.xlu1 %v588_v30  ;;  %586 = vadd.xlane.f32.xlu0 %v585_v59  ;;  %v406_v61 = vpop.xlane.xlu0 %405 }
 0x162   :  { %v444_v63 = vmul.f32 0.03125, %v409_v45  ;;  %v443_v43 = vmul.f32 0.03125, %v406_v61  ;;  %v506_v40 = vmul.f32 %v5888_v60, %v5888_v60  ;;  %v505_v53 = vmul.f32 %v5891_v50, %v5891_v50 }
 0x163   :  { %v7087_v61 = vmov 0  }
 0x164   :  { %v5900_v51 = vsub.f32 %v5717_v48, %v444_v63  ;;  %v5903_v36 = vsub.f32 %v5708_v32, %v443_v43  ;;  %v594_v58 = vsel %vm56_vm0, %v506_v40, 0.0  ;;  %v591_v56 = vsel %vm56_vm0, %v505_v53, 0.0  ;;  %v7089_v53 = vld [vmem:[#allocation12_spill] sm:$0xff] }
 0x165   :  { %595 = vadd.xlane.f32.xlu1 %v594_v58  ;;  %592 = vadd.xlane.f32.xlu0 %v591_v56  ;;  %v412_v37 = vpop.xlane.xlu0 %411  ;;  %v1176_v63 = vsel %vm1144_vm1, 1, %v7087_v61  ;;  %v1179_v43 = vsel %vm1147_vm3, 1, %v7087_v61  ;;  %v1177_v40 = vsel %vm1145_vm4, 1, %v7087_v61  ;;  %v1181_v1 = vsel %vm1149_vm5, 1, %v7087_v61  ;;  %v7090_v58 = vld [vmem:[#allocation13_spill] sm:$0xff]  ;;  %v7091_v56 = vld [vmem:[#allocation14_spill] sm:$0xff] }
 0x166   :  { %v445_v57 = vmul.f32 0.03125, %v412_v37  ;;  %v508_v42 = vmul.f32 %v5900_v51, %v5900_v51  ;;  %v507_v33 = vmul.f32 %v5903_v36, %v5903_v36  ;;  %v1180_v2 = vsel %vm1148_vm6, 1, %v7087_v61  ;;  %v7092_v37 = vld [vmem:[#allocation15_spill] sm:$0xff] }
 0x167   :  { %v1183_v3 = vsel %vm1151_vm7, 1, %v7087_v61  ;;  %v1182_v4 = vsel %vm1150_vm8, 1, %v7087_v61  ;;  %v1185_v5 = vsel %vm1153_vm9, 1, %v7087_v61  ;;  %v1184_v6 = vsel %vm1152_vm10, 1, %v7087_v61 }
 0x168   :  { %v5912_v48 = vsub.f32 %v5719_v25, %v445_v57  ;;  %v600_v32 = vsel %vm56_vm0, %v508_v42, 0.0  ;;  %v597_v30 = vsel %vm56_vm0, %v507_v33, 0.0  ;;  %v1178_v25 = vsel %vm1146_vm2, 1, %v7087_v61  ;;  %v7093_v42 = vld [vmem:[#allocation16_spill] sm:$0xff] }
 0x169   :  { %601 = vadd.xlane.f32.xlu1 %v600_v32  ;;  %598 = vadd.xlane.f32.xlu0 %v597_v30  ;;  %v1187_v7 = vsel %vm1155_vm11, 1, %v7087_v61  ;;  %v1186_v8 = vsel %vm1154_vm12, 1, %v7087_v61  ;;  %v1189_v9 = vsel %vm1157_vm13, 1, %v7087_v61  ;;  %v1188_v10 = vsel %vm1156_vm14, 1, %v7087_v61  ;;  %v7094_v32 = vld [vmem:[#allocation17_spill] sm:$0xff] }
 0x16a   :  { %v509_v59 = vmul.f32 %v5912_v48, %v5912_v48  ;;  %vm1158_vm1 = vcmp.gt.f32.partialorder %v5403_v16, 0.0  ;;  %v1191_v11 = vsel %vm1159_vm15, 1, %v7087_v61  ;;  %vm1161_vm2 = vcmp.gt.f32.partialorder %v5410_v17, 0.0  ;;  %v7088_v16 = vld [vmem:[#allocation11_spill] sm:$0xff] }
 0x16b   :  { %v1190_v12 = vsel %vm1158_vm1, 1, %v7087_v61  ;;  %vm1160_vm3 = vcmp.gt.f32.partialorder %v5415_v18, 0.0  ;;  %v1193_v13 = vsel %vm1161_vm2, 1, %v7087_v61  ;;  %vm1163_vm4 = vcmp.gt.f32.partialorder %v5422_v19, 0.0 }
 0x16c   :  { %v603_v45 = vsel %vm56_vm0, %v509_v59, 0.0  ;;  %v1192_v14 = vsel %vm1160_vm3, 1, %v7087_v61  ;;  %vm1162_vm5 = vcmp.gt.f32.partialorder %v5427_v20, 0.0  ;;  %v1195_v15 = vsel %vm1163_vm4, 1, %v7087_v61  ;;  %v7095_v59 = vld [vmem:[#allocation18_spill] sm:$0xff] }
 0x16d   :  { %604 = vadd.xlane.f32.xlu0 %v603_v45  ;;  %vm1165_vm6 = vcmp.gt.f32.partialorder %v7088_v16, 0.0  ;;  %v1194_v17 = vsel %vm1162_vm5, 1, %v7087_v61  ;;  %vm1164_vm7 = vcmp.gt.f32.partialorder %v7089_v53, 0.0  ;;  %vm1167_vm8 = vcmp.gt.f32.partialorder %v7090_v58, 0.0 }
 0x16e   :  { %v1197_v18 = vsel %vm1165_vm6, 1, %v7087_v61  ;;  %v1196_v19 = vsel %vm1164_vm7, 1, %v7087_v61  ;;  %vm1166_vm9 = vcmp.gt.f32.partialorder %v7091_v56, 0.0  ;;  %v1199_v20 = vsel %vm1167_vm8, 1, %v7087_v61 }
 0x16f   :  { %vm1169_vm10 = vcmp.gt.f32.partialorder %v7092_v37, 0.0  ;;  %v1198_v57 = vsel %vm1166_vm9, 1, %v7087_v61  ;;  %vm1168_vm11 = vcmp.gt.f32.partialorder %v7093_v42, 0.0  ;;  %vm1171_vm12 = vcmp.gt.f32.partialorder %v7094_v32, 0.0 }
 0x170   :  { %v1201_v33 = vsel %vm1169_vm10, 1, %v7087_v61  ;;  %v1200_v30 = vsel %vm1168_vm11, 1, %v7087_v61  ;;  %vm1170_vm13 = vcmp.gt.f32.partialorder %v7095_v59, 0.0  ;;  %v1203_v45 = vsel %vm1171_vm12, 1, %v7087_v61  ;;  %v7100_v59 = vld [vmem:[#allocation23_spill] sm:$0xff] }
 0x171   :  { %vm51_vm3 = vcmask 31744   ;;  %vm1368_vm6 = vcmask 294144  }
 0x17a   :  { %1209 = vperm.xlu1 %5043, %v1176_v63   ;;  %v7096_v63 = vld [vmem:[#allocation19_spill] sm:$0xff] }
 0x17b   :  { %vm1173_vm14 = vcmp.gt.f32.partialorder %v7096_v63, 0.0 }
 0x17e   :  { %1215 = vperm.xlu1 %5043, %v1178_v25   ;;  %v1202_v25 = vsel %vm1170_vm13, 1, %v7087_v61 }
 0x182   :  { %1218 = vperm.xlu1 %5043, %v1179_v43   ;;  %v7097_v43 = vld [vmem:[#allocation20_spill] sm:$0xff] }
 0x183   :  { %1212 = vperm.xlu0 %5042, %v1177_v40   ;;  %vm1172_vm15 = vcmp.gt.f32.partialorder %v7097_v43, 0.0  ;;  %v1205_v40 = vsel %vm1173_vm14, 1, %v7087_v61  ;;  %v5992_v43 = vld [vmem:[%s7012_s3] ss:$0 sm:$0xff] }
 0x186   :  { %1224 = vperm.xlu1 %5043, %v1181_v1   ;;  %v7098_v1 = vld [vmem:[#allocation21_spill] sm:$0xff] }
 0x187   :  { %1221 = vperm.xlu0 %5042, %v1180_v2   ;;  %vm1175_vm1 = vcmp.gt.f32.partialorder %v7098_v1, 0.0  ;;  %v1204_v2 = vsel %vm1172_vm15, 1, %v7087_v61 }
 0x18a   :  { %1230 = vperm.xlu1 %5043, %v1183_v3   ;;  %v7099_v3 = vld [vmem:[#allocation22_spill] sm:$0xff] }
 0x18b   :  { %1227 = vperm.xlu0 %5042, %v1182_v4   ;;  %vm1174_vm2 = vcmp.gt.f32.partialorder %v7099_v3, 0.0  ;;  %v1207_v4 = vsel %vm1175_vm1, 1, %v7087_v61 }
 0x18e   :  { %1236 = vperm.xlu1 %5043, %v1185_v5   ;;  %v1206_v5 = vsel %vm1174_vm2, 1, %v7087_v61 }
 0x18f   :  { %1233 = vperm.xlu0 %5042, %v1184_v6  }
 0x192   :  { %1242 = vperm.xlu1 %5043, %v1187_v7  }
 0x193   :  { %1239 = vperm.xlu0 %5042, %v1186_v8  }
 0x196   :  { %1248 = vperm.xlu1 %5043, %v1189_v9  }
 0x197   :  { %1245 = vperm.xlu0 %5042, %v1188_v10  }
 0x19a   :  { %1254 = vperm.xlu1 %5043, %v1191_v11  }
 0x19b   :  { %1251 = vperm.xlu0 %5042, %v1190_v12  }
 0x19e   :  { %1260 = vperm.xlu1 %5043, %v1193_v13  }
 0x19f   :  { %1257 = vperm.xlu0 %5042, %v1192_v14  }
 0x1a2   :  { %1266 = vperm.xlu1 %5043, %v1195_v15  }
 0x1a3   :  { %1263 = vperm.xlu0 %5042, %v1194_v17  }
 0x1a6   :  { %1272 = vperm.xlu1 %5043, %v1197_v18  }
 0x1a7   :  { %1269 = vperm.xlu0 %5042, %v1196_v19  }
 0x1aa   :  { %1278 = vperm.xlu1 %5043, %v1199_v20  }
 0x1ab   :  { %1275 = vperm.xlu0 %5042, %v1198_v57  }
 0x1ae   :  { %1284 = vperm.xlu1 %5043, %v1201_v33   ;;  %v5986_v33 = vld [vmem:[%s7011_s2] ss:$0 sm:$0xff] }
 0x1af   :  { %1281 = vperm.xlu0 %5042, %v1200_v30  }
 0x1b2   :  { %1290 = vperm.xlu1 %5043, %v1203_v45  }
 0x1b3   :  { %1287 = vperm.xlu0 %5042, %v1202_v25  }
 0x1b6   :  { %1296 = vperm.xlu1 %5043, %v1205_v40  }
 0x1b7   :  { %1293 = vperm.xlu0 %5042, %v1204_v2  }
 0x1ba   :  { %v512_v6 = vpop.xlane.xlu1 %511  ;;  %1302 = vperm.xlu1 %5043, %v1207_v4  }
 0x1bb   :  { %v606_v7 = vmul.f32 0.03125, %v512_v6  ;;  %1299 = vperm.xlu0 %5042, %v1206_v5  }
 0x1bd   :  { %v638_v8 = vadd.f32 1e-06, %v606_v7 }
 0x1be   :  { %v518_v9 = vpop.xlane.xlu1 %517  ;;  %v515_v10 = vpop.xlane.xlu0 %514 }
 0x1bf   :  { %5044 = vrsqrt.f32 %v638_v8  ;;  %v608_v11 = vmul.f32 0.03125, %v518_v9  ;;  %v607_v12 = vmul.f32 0.03125, %v515_v10 }
 0x1c1   :  { %v640_v13 = vadd.f32 1e-06, %v608_v11  ;;  %v639_v14 = vadd.f32 1e-06, %v607_v12 }
 0x1c2   :  { %v524_v15 = vpop.xlane.xlu1 %523  ;;  %v521_v16 = vpop.xlane.xlu0 %520 }
 0x1c3   :  { %5046 = vrsqrt.f32 %v640_v13  ;;  %v610_v17 = vmul.f32 0.03125, %v524_v15  ;;  %v609_v53 = vmul.f32 0.03125, %v521_v16 }
 0x1c4   :  { %5048 = vrsqrt.f32 %v639_v14 }
 0x1c5   :  { %v642_v18 = vadd.f32 1e-06, %v610_v17  ;;  %v641_v61 = vadd.f32 1e-06, %v609_v53 }
 0x1c6   :  { %v530_v58 = vpop.xlane.xlu1 %529  ;;  %v527_v19 = vpop.xlane.xlu0 %526 }
 0x1c7   :  { %5050 = vrsqrt.f32 %v642_v18  ;;  %v612_v56 = vmul.f32 0.03125, %v530_v58  ;;  %v611_v20 = vmul.f32 0.03125, %v527_v19 }
 0x1c8   :  { %5052 = vrsqrt.f32 %v641_v61 }
 0x1c9   :  { %v5045_v37 = vpop.eup %5044  ;;  %v644_v57 = vadd.f32 1e-06, %v612_v56  ;;  %v643_v42 = vadd.f32 1e-06, %v611_v20 }
 0x1ca   :  { %v536_v32 = vpop.xlane.xlu1 %535  ;;  %v533_v30 = vpop.xlane.xlu0 %532  ;;  %v702_v45 = vmul.f32 %v5045_v37, %v7100_v59 }
 0x1cb   :  { %5054 = vrsqrt.f32 %v644_v57  ;;  %v614_v63 = vmul.f32 0.03125, %v536_v32  ;;  %v613_v25 = vmul.f32 0.03125, %v533_v30 }
 0x1cc   :  { %5056 = vrsqrt.f32 %v643_v42  ;;  %v741_v40 = vmul.f32 %v5986_v33, %v702_v45 }
 0x1cd   :  { %v5047_v1 = vpop.eup %5046  ;;  %v646_v2 = vadd.f32 1e-06, %v614_v63  ;;  %v645_v3 = vadd.f32 1e-06, %v613_v25 }
 0x1ce   :  { %v5049_v4 = vpop.eup %5048  ;;  %v542_v5 = vpop.xlane.xlu1 %541  ;;  %v780_v7 = vadd.f32 %v5992_v43, %v741_v40  ;;  %v704_v8 = vmul.f32 %v5047_v1, %v5736_v31 }
 0x1cf   :  { %v539_v6 = vpop.xlane.xlu0 %538  ;;  %5058 = vrsqrt.f32 %v646_v2  ;;  %v616_v9 = vmul.f32 0.03125, %v542_v5  ;;  %v703_v11 = vmul.f32 %v5049_v4, %v5733_v21 }
 0x1d0   :  { %v615_v10 = vmul.f32 0.03125, %v539_v6  ;;  %5060 = vrsqrt.f32 %v645_v3  ;;  %4784 = vmatprep.mubr.msk.f32.mxu0 %vm56_vm0, %v780_v7  ;;  %v743_v12 = vmul.f32 %v5986_v33, %v704_v8 }
 0x1d1   :  { %v5051_v13 = vpop.eup %5050  ;;  %v648_v14 = vadd.f32 1e-06, %v616_v9  ;;  %v742_v16 = vmul.f32 %v5986_v33, %v703_v11 }
 0x1d2   :  { %v647_v15 = vadd.f32 1e-06, %v615_v10  ;;  %v5053_v17 = vpop.eup %5052  ;;  %v548_v53 = vpop.xlane.xlu1 %547  ;;  %v782_v31 = vadd.f32 %v5992_v43, %v743_v12  ;;  %v706_v61 = vmul.f32 %v5051_v13, %v5744_v26 }
 0x1d3   :  { %v545_v18 = vpop.xlane.xlu0 %544  ;;  %5062 = vrsqrt.f32 %v648_v14  ;;  %v618_v58 = vmul.f32 0.03125, %v548_v53  ;;  %v781_v19 = vadd.f32 %v5992_v43, %v742_v16  ;;  %v705_v56 = vmul.f32 %v5053_v17, %v5747_v44 }
 0x1d4   :  { %v617_v21 = vmul.f32 0.03125, %v545_v18  ;;  %5064 = vrsqrt.f32 %v647_v15  ;;  %v745_v20 = vmul.f32 %v5986_v33, %v706_v61 }
 0x1d5   :  { %v5055_v37 = vpop.eup %5054  ;;  %v650_v57 = vadd.f32 1e-06, %v618_v58  ;;  %4785 = vmatmul.mubr.msk.f32.vlgmr.msra.gmra.mrb[0].mxu0 %vm56_vm0, %v781_v19  ;;  %v744_v59 = vmul.f32 %v5986_v33, %v705_v56 }
 0x1d6   :  { %v649_v42 = vadd.f32 1e-06, %v617_v21  ;;  %v5057_v32 = vpop.eup %5056  ;;  %4787 = vmatprep.mubr.msk.f32.mxu0 %vm56_vm0, %v782_v31  ;;  %v554_v30 = vpop.xlane.xlu1 %553  ;;  %v784_v45 = vadd.f32 %v5992_v43, %v745_v20  ;;  %v708_v63 = vmul.f32 %v5055_v37, %v5756_v38 }
 0x1d7   :  { %v551_v26 = vpop.xlane.xlu0 %550  ;;  %5066 = vrsqrt.f32 %v650_v57  ;;  %v620_v44 = vmul.f32 0.03125, %v554_v30  ;;  %v707_v40 = vmul.f32 %v5057_v32, %v5759_v47  ;;  %v783_v1 = vadd.f32 %v5992_v43, %v744_v59 }
 0x1d8   :  { %v619_v25 = vmul.f32 0.03125, %v551_v26  ;;  %5068 = vrsqrt.f32 %v649_v42  ;;  %v747_v2 = vmul.f32 %v5986_v33, %v708_v63 }
 0x1d9   :  { %v5059_v3 = vpop.eup %5058  ;;  %v652_v4 = vadd.f32 1e-06, %v620_v44  ;;  %v746_v6 = vmul.f32 %v5986_v33, %v707_v40  ;;  %4788 = vmatmul.mubr.msk.f32.gmra.mrb[2].mxu0 %vm56_vm0, %v783_v1 }
 0x1da   :  { %v651_v5 = vadd.f32 1e-06, %v619_v25  ;;  %v5061_v7 = vpop.eup %5060  ;;  %v560_v8 = vpop.xlane.xlu1 %559  ;;  %v786_v9 = vadd.f32 %v5992_v43, %v747_v2  ;;  %v710_v10 = vmul.f32 %v5059_v3, %v5768_v24  ;;  %4790 = vmatprep.mubr.msk.f32.mxu0 %vm56_vm0, %v784_v45 }
 0x1db   :  { %v557_v38 = vpop.xlane.xlu0 %556  ;;  %5070 = vrsqrt.f32 %v652_v4  ;;  %v622_v47 = vmul.f32 0.03125, %v560_v8  ;;  %v785_v12 = vadd.f32 %v5992_v43, %v746_v6  ;;  %v709_v13 = vmul.f32 %v5061_v7, %v5771_v54 }
 0x1dc   :  { %v621_v11 = vmul.f32 0.03125, %v557_v38  ;;  %5072 = vrsqrt.f32 %v651_v5  ;;  %v749_v14 = vmul.f32 %v5986_v33, %v710_v10 }
 0x1dd   :  { %v5063_v15 = vpop.eup %5062  ;;  %v654_v16 = vadd.f32 1e-06, %v622_v47  ;;  %4791 = vmatmul.mubr.msk.f32.gmra.mrb[4].mxu0 %vm56_vm0, %v785_v12  ;;  %v748_v31 = vmul.f32 %v5986_v33, %v709_v13 }
 0x1de   :  { %v653_v17 = vadd.f32 1e-06, %v621_v11  ;;  %v5065_v53 = vpop.eup %5064  ;;  %v566_v18 = vpop.xlane.xlu1 %565  ;;  %v788_v61 = vadd.f32 %v5992_v43, %v749_v14  ;;  %v712_v58 = vmul.f32 %v5063_v15, %v5780_v22  ;;  %4793 = vmatprep.mubr.msk.f32.mxu0 %vm56_vm0, %v786_v9  ;;  %v7101_v9 = vld [vmem:[#allocation24_spill] sm:$0xff] }
 0x1df   :  { %v563_v24 = vpop.xlane.xlu0 %562  ;;  %5074 = vrsqrt.f32 %v654_v16  ;;  %v624_v54 = vmul.f32 0.03125, %v566_v18  ;;  %v711_v19 = vmul.f32 %v5065_v53, %v5783_v62  ;;  %v787_v56 = vadd.f32 %v5992_v43, %v748_v31  ;;  %v7102_v18 = vld [vmem:[#allocation25_spill] sm:$0xff] }
 0x1e0   :  { %v623_v21 = vmul.f32 0.03125, %v563_v24  ;;  %5076 = vrsqrt.f32 %v653_v17  ;;  %v751_v20 = vmul.f32 %v5986_v33, %v712_v58 }
 0x1e1   :  { %v5067_v37 = vpop.eup %5066  ;;  %v656_v57 = vadd.f32 1e-06, %v624_v54  ;;  %v750_v32 = vmul.f32 %v5986_v33, %v711_v19  ;;  %4794 = vmatmul.mubr.msk.f32.gmra.mrb[6].mxu0 %vm56_vm0, %v787_v56  ;;  %v7103_v54 = vld [vmem:[#allocation26_spill] sm:$0xff] }
 0x1e2   :  { %v655_v42 = vadd.f32 1e-06, %v623_v21  ;;  %v5069_v30 = vpop.eup %5068  ;;  %v572_v22 = vpop.xlane.xlu1 %571  ;;  %v790_v59 = vadd.f32 %v5992_v43, %v751_v20  ;;  %v714_v45 = vmul.f32 %v5067_v37, %v5792_v0  ;;  %4796 = vmatprep.mubr.msk.f32.mxu0 %vm56_vm0, %v788_v61 }
 0x1e3   :  { %v569_v26 = vpop.xlane.xlu0 %568  ;;  %5078 = vrsqrt.f32 %v656_v57  ;;  %v626_v62 = vmul.f32 0.03125, %v572_v22  ;;  %v789_v44 = vadd.f32 %v5992_v43, %v750_v32  ;;  %v713_v25 = vmul.f32 %v5069_v30, %v5795_v41 }
 0x1e4   :  { %v625_v63 = vmul.f32 0.03125, %v569_v26  ;;  %5080 = vrsqrt.f32 %v655_v42  ;;  %v753_v40 = vmul.f32 %v5986_v33, %v714_v45 }
 0x1e5   :  { %v5071_v1 = vpop.eup %5070  ;;  %v658_v2 = vadd.f32 1e-06, %v626_v62  ;;  %4797 = vmatmul.mubr.msk.f32.gmra.mrb[8].mxu0 %vm56_vm0, %v789_v44  ;;  %v752_v6 = vmul.f32 %v5986_v33, %v713_v25 }
 0x1e6   :  { %v657_v3 = vadd.f32 1e-06, %v625_v63  ;;  %v5073_v4 = vpop.eup %5072  ;;  %v578_v5 = vpop.xlane.xlu1 %577  ;;  %v792_v7 = vadd.f32 %v5992_v43, %v753_v40  ;;  %v716_v8 = vmul.f32 %v5071_v1, %v5804_v23  ;;  %4799 = vmatprep.mubr.msk.f32.mxu0 %vm56_vm0, %v790_v59 }
 0x1e7   :  { %v575_v0 = vpop.xlane.xlu0 %574  ;;  %5082 = vrsqrt.f32 %v658_v2  ;;  %v628_v41 = vmul.f32 0.03125, %v578_v5  ;;  %v715_v10 = vmul.f32 %v5073_v4, %v7101_v9  ;;  %v791_v47 = vadd.f32 %v5992_v43, %v752_v6 }
 0x1e8   :  { %v627_v38 = vmul.f32 0.03125, %v575_v0  ;;  %5084 = vrsqrt.f32 %v657_v3  ;;  %v755_v11 = vmul.f32 %v5986_v33, %v716_v8 }
 0x1e9   :  { %v5075_v12 = vpop.eup %5074  ;;  %v660_v13 = vadd.f32 1e-06, %v628_v41  ;;  %v754_v15 = vmul.f32 %v5986_v33, %v715_v10  ;;  %4800 = vmatmul.mubr.msk.f32.gmra.mrb[10].mxu0 %vm56_vm0, %v791_v47 }
 0x1ea   :  { %v659_v14 = vadd.f32 1e-06, %v627_v38  ;;  %v5077_v16 = vpop.eup %5076  ;;  %v584_v23 = vpop.xlane.xlu1 %583  ;;  %v794_v53 = vadd.f32 %v5992_v43, %v755_v11  ;;  %v718_v24 = vmul.f32 %v5075_v12, %v7102_v18  ;;  %4802 = vmatprep.mubr.msk.f32.mxu0 %vm56_vm0, %v792_v7 }
 0x1eb   :  { %v581_v17 = vpop.xlane.xlu0 %580  ;;  %5086 = vrsqrt.f32 %v660_v13  ;;  %v630_v31 = vmul.f32 0.03125, %v584_v23  ;;  %v793_v58 = vadd.f32 %v5992_v43, %v754_v15  ;;  %v717_v21 = vmul.f32 %v5077_v16, %v7103_v54 }
 0x1ec   :  { %v629_v61 = vmul.f32 0.03125, %v581_v17  ;;  %5088 = vrsqrt.f32 %v659_v14  ;;  %v757_v19 = vmul.f32 %v5986_v33, %v718_v24 }
 0x1ed   :  { %v5079_v56 = vpop.eup %5078  ;;  %v662_v20 = vadd.f32 1e-06, %v630_v31  ;;  %4803 = vmatmul.mubr.msk.f32.gmra.mrb[12].mxu0 %vm56_vm0, %v793_v58  ;;  %v756_v30 = vmul.f32 %v5986_v33, %v717_v21 }
 0x1ee   :  { %v661_v37 = vadd.f32 1e-06, %v629_v61  ;;  %v5081_v57 = vpop.eup %5080  ;;  %v590_v42 = vpop.xlane.xlu1 %589  ;;  %v796_v22 = vadd.f32 %v5992_v43, %v757_v19  ;;  %v720_v26 = vmul.f32 %v5079_v56, %v5828_v39  ;;  %4805 = vmatprep.mubr.msk.f32.mxu0 %vm56_vm0, %v794_v53 }
 0x1ef   :  { %v587_v32 = vpop.xlane.xlu0 %586  ;;  %5090 = vrsqrt.f32 %v662_v20  ;;  %v632_v59 = vmul.f32 0.03125, %v590_v42  ;;  %v719_v62 = vmul.f32 %v5081_v57, %v5831_v28  ;;  %v795_v63 = vadd.f32 %v5992_v43, %v756_v30 }
 0x1f0   :  { %v631_v45 = vmul.f32 0.03125, %v587_v32  ;;  %5092 = vrsqrt.f32 %v661_v37  ;;  %v759_v44 = vmul.f32 %v5986_v33, %v720_v26 }
 0x1f1   :  { %v5083_v25 = vpop.eup %5082  ;;  %v664_v40 = vadd.f32 1e-06, %v632_v59  ;;  %v758_v2 = vmul.f32 %v5986_v33, %v719_v62  ;;  %4806 = vmatmul.mubr.msk.f32.gmra.mrb[14].mxu0 %vm56_vm0, %v795_v63 }
 0x1f2   :  { %v663_v1 = vadd.f32 1e-06, %v631_v45  ;;  %v5085_v3 = vpop.eup %5084  ;;  %v596_v39 = vpop.xlane.xlu1 %595  ;;  %v798_v5 = vadd.f32 %v5992_v43, %v759_v44  ;;  %v722_v0 = vmul.f32 %v5083_v25, %v5840_v49  ;;  %4808 = vmatprep.mubr.msk.f32.mxu0 %vm56_vm0, %v796_v22 }
 0x1f3   :  { %v593_v4 = vpop.xlane.xlu0 %592  ;;  %5094 = vrsqrt.f32 %v664_v40  ;;  %v634_v28 = vmul.f32 0.03125, %v596_v39  ;;  %v797_v7 = vadd.f32 %v5992_v43, %v758_v2  ;;  %v721_v8 = vmul.f32 %v5085_v3, %v5843_v29 }
 0x1f4   :  { %v633_v6 = vmul.f32 0.03125, %v593_v4  ;;  %5096 = vrsqrt.f32 %v663_v1  ;;  %v761_v41 = vmul.f32 %v5986_v33, %v722_v0 }
 0x1f5   :  { %v5087_v38 = vpop.eup %5086  ;;  %v666_v9 = vadd.f32 1e-06, %v634_v28  ;;  %4809 = vmatmul.mubr.msk.f32.gmra.mrb[16].mxu0 %vm56_vm0, %v797_v7  ;;  %v760_v12 = vmul.f32 %v5986_v33, %v721_v8  ;;  %v7037_v7 = vmov 0.0|0.0  }
 0x1f6   :  { %v665_v10 = vadd.f32 1e-06, %v633_v6  ;;  %v5089_v47 = vpop.eup %5088  ;;  %v602_v11 = vpop.xlane.xlu1 %601  ;;  %v800_v13 = vadd.f32 %v5992_v43, %v761_v41  ;;  %v724_v14 = vmul.f32 %v5087_v38, %v5852_v46  ;;  %4811 = vmatprep.mubr.msk.f32.mxu0 %vm56_vm0, %v798_v5  ;;  %4982 = vmatprep.subr.bf16.mxu1 %v7037_v7 }
 0x1f7   :  { %v599_v49 = vpop.xlane.xlu0 %598  ;;  %5098 = vrsqrt.f32 %v666_v9  ;;  %v636_v29 = vmul.f32 0.03125, %v602_v11  ;;  %v723_v16 = vmul.f32 %v5089_v47, %v5855_v35  ;;  %v799_v23 = vadd.f32 %v5992_v43, %v760_v12 }
 0x1f8   :  { %v635_v15 = vmul.f32 0.03125, %v599_v49  ;;  %5100 = vrsqrt.f32 %v665_v10  ;;  %v763_v17 = vmul.f32 %v5986_v33, %v724_v14  ;;  %v6137_v14 = vld [vmem:[%s7014_s5] ss:$0 sm:$0xff]  ;;  %s5238_s5 = smov 96  }
 0x1f9   :  { %v5091_v53 = vpop.eup %5090  ;;  %v668_v18 = vadd.f32 1e-06, %v636_v29  ;;  %v762_v31 = vmul.f32 %v5986_v33, %v723_v16  ;;  %4812 = vmatmul.mubr.msk.f32.gmra.mrb[18].mxu0 %vm56_vm0, %v799_v23 }
 0x1fa   :  { %v667_v24 = vadd.f32 1e-06, %v635_v15  ;;  %v5093_v61 = vpop.eup %5092  ;;  %v726_v58 = vmul.f32 %v5091_v53, %v5864_v27  ;;  %4814 = vmatprep.mubr.msk.f32.mxu0 %vm56_vm0, %v800_v13  ;;  %v802_v21 = vadd.f32 %v5992_v43, %v763_v17  ;;  %v1210_v8 = vpop.permute.xlu1 %1209 }
 0x1fb   :  { %v605_v46 = vpop.xlane.xlu0 %604  ;;  %5102 = vrsqrt.f32 %v668_v18  ;;  %v801_v54 = vadd.f32 %v5992_v43, %v762_v31  ;;  %v725_v19 = vmul.f32 %v5093_v61, %v5867_v34  ;;  %vm1304_vm4 = vcmp.eq.s32.totalorder %v1210_v8, 1 }
 0x1fc   :  { %v637_v35 = vmul.f32 0.03125, %v605_v46  ;;  %5104 = vrsqrt.f32 %v667_v24  ;;  %v765_v56 = vmul.f32 %v5986_v33, %v726_v58 }
 0x1fd   :  { %v5095_v20 = vpop.eup %5094  ;;  %4815 = vmatmul.mubr.msk.f32.gmra.mrb[20].mxu0 %vm56_vm0, %v801_v54  ;;  %v764_v27 = vmul.f32 %v5986_v33, %v725_v19 }
 0x1fe   :  { %v669_v37 = vadd.f32 1e-06, %v637_v35  ;;  %v5097_v57 = vpop.eup %5096  ;;  %v728_v42 = vmul.f32 %v5095_v20, %v5876_v52  ;;  %4817 = vmatprep.mubr.msk.f32.mxu0 %vm56_vm0, %v802_v21  ;;  %v804_v32 = vadd.f32 %v5992_v43, %v765_v56  ;;  %v1216_v41 = vpop.permute.xlu1 %1215 }
 0x1ff   :  { %v727_v30 = vmul.f32 %v5097_v57, %v5879_v55  ;;  %v803_v34 = vadd.f32 %v5992_v43, %v764_v27  ;;  %vm1306_vm8 = vcmp.eq.s32.totalorder %v1216_v41, 1 }
 0x200   :  { %5106 = vrsqrt.f32 %v669_v37  ;;  %v767_v22 = vmul.f32 %v5986_v33, %v728_v42 }
 0x201   :  { %v5099_v26 = vpop.eup %5098  ;;  %v766_v59 = vmul.f32 %v5986_v33, %v727_v30  ;;  %4818 = vmatmul.mubr.msk.f32.gmra.mrb[22].mxu0 %vm56_vm0, %v803_v34 }
 0x202   :  { %v5101_v45 = vpop.eup %5100  ;;  %v730_v62 = vmul.f32 %v5099_v26, %v5888_v60  ;;  %4820 = vmatprep.mubr.msk.f32.mxu0 %vm56_vm0, %v804_v32  ;;  %v806_v63 = vadd.f32 %v5992_v43, %v767_v22  ;;  %v1219_v38 = vpop.permute.xlu1 %1218 }
 0x203   :  { %v805_v52 = vadd.f32 %v5992_v43, %v766_v59  ;;  %v729_v55 = vmul.f32 %v5101_v45, %v5891_v50  ;;  %vm1307_vm7 = vcmp.eq.s32.totalorder %v1219_v38, 1 }
 0x204   :  { %v769_v44 = vmul.f32 %v5986_v33, %v730_v62 }
 0x205   :  { %v5103_v25 = vpop.eup %5102  ;;  %v768_v40 = vmul.f32 %v5986_v33, %v729_v55  ;;  %4821 = vmatmul.mubr.msk.f32.gmra.mrb[24].mxu0 %vm56_vm0, %v805_v52 }
 0x206   :  { %v5105_v1 = vpop.eup %5104  ;;  %v732_v2 = vmul.f32 %v5103_v25, %v5900_v51  ;;  %4823 = vmatprep.mubr.msk.f32.mxu0 %vm56_vm0, %v806_v63  ;;  %v808_v3 = vadd.f32 %v5992_v43, %v769_v44  ;;  %v1225_v10 = vpop.permute.xlu1 %1224 }
 0x207   :  { %v807_v60 = vadd.f32 %v5992_v43, %v768_v40  ;;  %v731_v39 = vmul.f32 %v5105_v1, %v5903_v36  ;;  %vm1309_vm9 = vcmp.eq.s32.totalorder %v1225_v10, 1 }
 0x208   :  { %v771_v50 = vmul.f32 %v5986_v33, %v732_v2 }
 0x209   :  { %v770_v5 = vmul.f32 %v5986_v33, %v731_v39  ;;  %4824 = vmatmul.mubr.msk.f32.gmra.mrb[26].mxu0 %vm56_vm0, %v807_v60 }
 0x20a   :  { %v5107_v4 = vpop.eup %5106  ;;  %4826 = vmatprep.mubr.msk.f32.mxu0 %vm56_vm0, %v808_v3  ;;  %v810_v28 = vadd.f32 %v5992_v43, %v771_v50  ;;  %v1231_v47 = vpop.permute.xlu1 %1230 }
 0x20b   :  { %v733_v0 = vmul.f32 %v5107_v4, %v5912_v48  ;;  %v809_v51 = vadd.f32 %v5992_v43, %v770_v5  ;;  %v5237_v48 = vmov -1e+30   ;;  %vm1311_vm11 = vcmp.eq.s32.totalorder %v1231_v47, 1 }
 0x20c   :  { %52 = vst.msk [vmem:[#allocation2] sm:$0xff] %vm51_vm3, %v5237_v48  ;;  %53 = vst.msk [vmem:[#allocation2 + $0x8] sm:$0xff] %vm51_vm3, %v5237_v48 }
 0x20d   :  { %v772_v6 = vmul.f32 %v5986_v33, %v733_v0  ;;  %4827 = vmatmul.mubr.msk.f32.gmra.mrb[28].mxu0 %vm56_vm0, %v809_v51  ;;  %v1213_v33 = vpop.permute.xlu0 %1212 }
 0x20e   :  { %4829 = vmatprep.mubr.msk.f32.mxu0 %vm56_vm0, %v810_v28  ;;  %v6128_v49 = vpop.permute.xlu1 %1236  ;;  %vm1305_vm5 = vcmp.eq.s32.totalorder %v1213_v33, 1 }
 0x20f   :  { %v811_v36 = vadd.f32 %v5992_v43, %v772_v6  ;;  %vm1313_vm13 = vcmp.eq.s32.totalorder %v6128_v49, 1 }
 0x211   :  { %4830 = vmatmul.mubr.msk.f32.gmra.mrb[30].mxu0 %vm56_vm0, %v811_v36  ;;  %v1222_v9 = vpop.permute.xlu0 %1221 }
 0x212   :  { %v6132_v13 = vpop.permute.xlu1 %1242  ;;  %vm1308_vm10 = vcmp.eq.s32.totalorder %v1222_v9, 1 }
 0x213   :  { %vm1315_vm1 = vcmp.eq.s32.totalorder %v6132_v13, 1 }
 0x215   :  { %v6124_v43 = vpop.permute.xlu0 %1227 }
 0x216   :  { %v6143_v53 = vpop.permute.xlu1 %1248  ;;  %vm1310_vm12 = vcmp.eq.s32.totalorder %v6124_v43, 1 }
 0x219   :  { %v6126_v11 = vpop.permute.xlu0 %1233 }
 0x21a   :  { %v6172_v42 = vpop.permute.xlu1 %1254  ;;  %vm1312_vm14 = vcmp.eq.s32.totalorder %v6126_v11, 1 }
 0x21d   :  { %v6130_v12 = vpop.permute.xlu0 %1239 }
 0x21e   :  { %v6203_v39 = vpop.permute.xlu1 %1260  ;;  %vm1314_vm15 = vcmp.eq.s32.totalorder %v6130_v12, 1 }
 0x221   :  { %v6139_v15 = vpop.permute.xlu0 %1245 }
 0x222   :  { %vm1316_vm2 = vcmp.eq.s32.totalorder %v6139_v15, 1 }
 0x225   :  { %v6152_v35 = vpop.permute.xlu0 %1251 }
 0x229   :  { %v6185_v62 = vpop.permute.xlu0 %1257 }
 0x22d   :  { %v6221_v8 = vpop.permute.xlu0 %1263 }
 0x2a8   :  { %v4786_v29 = vpop.f32.mrb[0].mxu0 }
 0x2a9   :  { %v991_v16 = vadd.f32 %v4786_v29, %v6137_v14  ;;  %v985_v23 = vpop.f32.mrb[1].mxu0 }
 0x2aa   :  { %v986_v17 = vadd.f32 %v6137_v14, %v985_v23 }
 0x2ab   :  { %v6145_v24 = vsel %vm1305_vm5, %v991_v16, -1e+18  ;;  %vm1318_vm5 = vcmp.eq.s32.totalorder %v6152_v35, 1 }
 0x2ac   :  { %v4983_v18 = vpack.c.bf16 %v991_v16, %v986_v17  ;;  %v6147_v31 = vsel %vm1304_vm4, %v986_v17, -1e+18  ;;  %v4789_v61 = vpop.f32.mrb[2].mxu0  ;;  %v1370_v21 = vsel %vm1368_vm6, %v6145_v24, -inf  ;;  %v6235_v16 = vpop.permute.xlu1 %1266  ;;  %vm1317_vm4 = vcmp.eq.s32.totalorder %v6143_v53, 1 }
 0x2ad   :  { %v6150_v46 = vadd.f32 %v4789_v61, %v6137_v14  ;;  %v995_v58 = vpop.f32.mrb[3].mxu0  ;;  %v1369_v19 = vsel %vm1368_vm6, %v6147_v31, -inf }
 0x2ae   :  { %4984 = vmatpush3.bf16.msra.mxu1 %v4983_v18  ;;  %v6155_v54 = vadd.f32 %v6137_v14, %v995_v58  ;;  %v1371_v22 = vmax.f32 %v1369_v19, %v1370_v21 }
 0x2af   :  { %7104 = vst [vmem:[#allocation11_spill] sm:$0xff] %v6150_v46  ;;  %4985 = vmatprep.subr.bf16.mxu1 %v7037_v7  ;;  %v6163_v56 = vsel %vm1307_vm7, %v6150_v46, -1e+18  ;;  %vm1319_vm7 = vcmp.eq.s32.totalorder %v6172_v42, 1 }
 0x2b0   :  { %7105 = vst [vmem:[#allocation12_spill] sm:$0xff] %v6155_v54  ;;  %v1379_v20 = vsel %vm1368_vm6, %v6163_v56, -inf  ;;  %v6168_v37 = vsel %vm1306_vm8, %v6155_v54, -1e+18  ;;  %v4792_v27 = vpop.f32.mrb[4].mxu0  ;;  %v1372_v2 = vrot.slane %v1371_v22, 4 }
 0x2b1   :  { %v1378_v32 = vsel %vm1368_vm6, %v6168_v37, -inf  ;;  %v6177_v30 = vadd.f32 %v4792_v27, %v6137_v14  ;;  %v1005_v34 = vpop.f32.mrb[5].mxu0  ;;  %vm1321_vm8 = vcmp.eq.s32.totalorder %v6203_v39, 1 }
 0x2b2   :  { %v1380_v26 = vmax.f32 %v1378_v32, %v1379_v20  ;;  %v6180_v59 = vadd.f32 %v6137_v14, %v1005_v34  ;;  %v1373_v41 = vmax.f32 %v1371_v22, %v1372_v2  ;;  %v6258_v34 = vpop.permute.xlu0 %1269 }
 0x2b3   :  { %7106 = vst [vmem:[#allocation13_spill] sm:$0xff] %v6177_v30  ;;  %v6183_v45 = vsel %vm1309_vm9, %v6177_v30, -1e+18  ;;  %vm1320_vm9 = vcmp.eq.s32.totalorder %v6185_v62, 1 }
 0x2b4   :  { %7107 = vst [vmem:[#allocation14_spill] sm:$0xff] %v6180_v59  ;;  %v1388_v52 = vsel %vm1368_vm6, %v6183_v45, -inf  ;;  %v6190_v63 = vsel %vm1308_vm10, %v6180_v59, -1e+18  ;;  %v4795_v44 = vpop.f32.mrb[6].mxu0  ;;  %v1381_v60 = vrot.slane %v1380_v26, 4 }
 0x2b5   :  { %v1387_v25 = vsel %vm1368_vm6, %v6190_v63, -inf  ;;  %v6197_v40 = vadd.f32 %v4795_v44, %v6137_v14  ;;  %v1015_v1 = vpop.f32.mrb[7].mxu0  ;;  %v1374_v61 = vrot.slane %v1373_v41, 2  ;;  %vm1323_vm10 = vcmp.eq.s32.totalorder %v6235_v16, 1 }
 0x2b6   :  { %v6200_v3 = vadd.f32 %v6137_v14, %v1015_v1  ;;  %v1389_v50 = vmax.f32 %v1387_v25, %v1388_v52  ;;  %v1382_v33 = vmax.f32 %v1380_v26, %v1381_v60 }
 0x2b7   :  { %7108 = vst [vmem:[#allocation15_spill] sm:$0xff] %v6197_v40  ;;  %v6206_v4 = vsel %vm1311_vm11, %v6197_v40, -1e+18  ;;  %v1375_v60 = vmax.f32 %v1373_v41, %v1374_v61  ;;  %vm1322_vm11 = vcmp.eq.s32.totalorder %v6221_v8, 1 }
 0x2b8   :  { %7109 = vst [vmem:[#allocation16_spill] sm:$0xff] %v6200_v3  ;;  %v1397_v5 = vsel %vm1368_vm6, %v6206_v4, -inf  ;;  %v6211_v0 = vsel %vm1310_vm12, %v6200_v3, -1e+18  ;;  %v4798_v51 = vpop.f32.mrb[8].mxu0  ;;  %v1390_v10 = vrot.slane %v1389_v50, 4 }
 0x2b9   :  { %v1396_v28 = vsel %vm1368_vm6, %v6211_v0, -inf  ;;  %v6219_v36 = vadd.f32 %v4798_v51, %v6137_v14  ;;  %v1025_v48 = vpop.f32.mrb[9].mxu0  ;;  %v1383_v58 = vrot.slane %v1382_v33, 2  ;;  %v1376_v15 = vrot.slane %v1375_v60, 1 }
 0x2ba   :  { %v1398_v38 = vmax.f32 %v1396_v28, %v1397_v5  ;;  %v6224_v9 = vadd.f32 %v6137_v14, %v1025_v48  ;;  %v1391_v19 = vmax.f32 %v1389_v50, %v1390_v10  ;;  %v6277_v28 = vpop.permute.xlu1 %1272 }
 0x2bb   :  { %7110 = vst [vmem:[#allocation17_spill] sm:$0xff] %v6219_v36  ;;  %v6228_v43 = vsel %vm1313_vm13, %v6219_v36, -1e+18  ;;  %v1384_v50 = vmax.f32 %v1382_v33, %v1383_v58  ;;  %vm1325_vm12 = vcmp.eq.s32.totalorder %v6277_v28, 1  ;;  %vm1531_vm13 = vcmask 1041409  }
 0x2bc   :  { %7111 = vst [vmem:[#allocation18_spill] sm:$0xff] %v6224_v9  ;;  %v1399_v47 = vrot.slane %v1398_v38, 4  ;;  %v1406_v49 = vsel %vm1368_vm6, %v6228_v43, -inf  ;;  %v4801_v29 = vpop.f32.mrb[10].mxu0  ;;  %v6238_v23 = vsel %vm1312_vm14, %v6224_v9, -1e+18  ;;  %v1377_v57 = vmax.f32 %v1375_v60, %v1376_v15 }
 0x2bd   :  { %v6243_v17 = vadd.f32 %v4801_v29, %v6137_v14  ;;  %v1035_v18 = vpop.f32.mrb[11].mxu0  ;;  %v1405_v21 = vsel %vm1368_vm6, %v6238_v23, -inf  ;;  %v1392_v12 = vrot.slane %v1391_v19, 2  ;;  %vm1324_vm14 = vcmp.eq.s32.totalorder %v6258_v34, 1 }
 0x2be   :  { %v1407_v20 = vmax.f32 %v1405_v21, %v1406_v49  ;;  %v6254_v32 = vadd.f32 %v6137_v14, %v1035_v18  ;;  %v1400_v22 = vmax.f32 %v1398_v38, %v1399_v47  ;;  %v6300_v21 = vpop.permute.xlu0 %1275 }
 0x2bf   :  { %7112 = vst [vmem:[#allocation19_spill] sm:$0xff] %v6243_v17  ;;  %v6251_v27 = vsel %vm1315_vm1, %v6243_v17, -1e+18  ;;  %vm1535_vm1 = vcmask 1043459  }
 0x2c0   :  { %7113 = vst [vmem:[#allocation20_spill] sm:$0xff] %v6254_v32  ;;  %v1415_v26 = vsel %vm1368_vm6, %v6251_v27, -inf  ;;  %v4804_v52 = vpop.f32.mrb[12].mxu0  ;;  %v1408_v44 = vrot.slane %v1407_v20, 4  ;;  %v6265_v13 = vsel %vm1314_vm15, %v6254_v32, -1e+18 }
 0x2c1   :  { %v6270_v1 = vadd.f32 %v4804_v52, %v6137_v14  ;;  %v1045_v2 = vpop.f32.mrb[13].mxu0  ;;  %v1414_v5 = vsel %vm1368_vm6, %v6265_v13, -inf  ;;  %v1401_v29 = vrot.slane %v1400_v22, 2  ;;  %vm1533_vm15 = vcmask 1042434  }
 0x2c2   :  { %v6275_v51 = vadd.f32 %v6137_v14, %v1045_v2  ;;  %v1409_v48 = vmax.f32 %v1407_v20, %v1408_v44  ;;  %v1416_v38 = vmax.f32 %v1414_v5, %v1415_v26  ;;  %v1385_v20 = vrot.slane %v1384_v50, 1  ;;  %v6333_v7 = vpop.permute.xlu0 %1281 }
 0x2c3   :  { %7114 = vst [vmem:[#allocation21_spill] sm:$0xff] %v6270_v1  ;;  %v6282_v10 = vsel %vm1317_vm4, %v6270_v1, -1e+18  ;;  %v1393_v44 = vmax.f32 %v1391_v19, %v1392_v12  ;;  %v1402_v42 = vmax.f32 %v1400_v22, %v1401_v29 }
 0x2c4   :  { %7115 = vst [vmem:[#allocation22_spill] sm:$0xff] %v6275_v51  ;;  %v1424_v41 = vsel %vm1368_vm6, %v6282_v10, -inf  ;;  %v6290_v33 = vsel %vm1316_vm2, %v6275_v51, -1e+18  ;;  %v4807_v49 = vpop.f32.mrb[14].mxu0  ;;  %v1417_v53 = vrot.slane %v1416_v38, 4  ;;  %v1386_v19 = vmax.f32 %v1384_v50, %v1385_v20 }
 0x2c5   :  { %v1423_v18 = vsel %vm1368_vm6, %v6290_v33, -inf  ;;  %v6298_v61 = vadd.f32 %v4807_v49, %v6137_v14  ;;  %v1055_v58 = vpop.f32.mrb[15].mxu0  ;;  %v1410_v2 = vrot.slane %v1409_v48, 2  ;;  %v1394_v22 = vrot.slane %v1393_v44, 1 }
 0x2c6   :  { %v1425_v26 = vmax.f32 %v1423_v18, %v1424_v41  ;;  %v6303_v52 = vadd.f32 %v6137_v14, %v1055_v58  ;;  %v1418_v5 = vmax.f32 %v1416_v38, %v1417_v53  ;;  %v6321_v38 = vpop.permute.xlu1 %1278  ;;  %v1403_v1 = vrot.slane %v1402_v42, 1  ;;  %v6378_v16 = vpop.permute.xlu0 %1287 }
 0x2c7   :  { %7116 = vst [vmem:[#allocation23_spill] sm:$0xff] %v6298_v61  ;;  %v6309_v47 = vsel %vm1319_vm7, %v6298_v61, -1e+18  ;;  %v1411_v29 = vmax.f32 %v1409_v48, %v1410_v2  ;;  %vm1537_vm2 = vcmask 1044484   ;;  %vm1327_vm4 = vcmp.eq.s32.totalorder %v6321_v38, 1 }
 0x2c8   :  { %7117 = vst [vmem:[#allocation24_spill] sm:$0xff] %v6303_v52  ;;  %v1426_v49 = vrot.slane %v1425_v26, 4  ;;  %v1433_v25 = vsel %vm1368_vm6, %v6309_v47, -inf  ;;  %v6317_v41 = vsel %vm1318_vm5, %v6303_v52, -1e+18  ;;  %v4810_v12 = vpop.f32.mrb[16].mxu0  ;;  %v1395_v2 = vmax.f32 %v1393_v44, %v1394_v22 }
 0x2c9   :  { %v1419_v53 = vrot.slane %v1418_v5, 2  ;;  %v1432_v18 = vsel %vm1368_vm6, %v6317_v41, -inf  ;;  %v6326_v58 = vadd.f32 %v4810_v12, %v6137_v14  ;;  %v1065_v11 = vpop.f32.mrb[17].mxu0  ;;  %vm1539_vm5 = vcmask 1045509  }
 0x2ca   :  { %v1427_v35 = vmax.f32 %v1425_v26, %v1426_v49  ;;  %v1434_v6 = vmax.f32 %v1432_v18, %v1433_v25  ;;  %v6330_v55 = vadd.f32 %v6137_v14, %v1065_v11  ;;  %vm1326_vm7 = vcmp.eq.s32.totalorder %v6300_v21, 1  ;;  %v6355_v26 = vpop.permute.xlu1 %1284 }
 0x2cb   :  { %7118 = vst [vmem:[#allocation25_spill] sm:$0xff] %v6326_v58  ;;  %v1420_v12 = vmax.f32 %v1418_v5, %v1419_v53  ;;  %v6338_v11 = vsel %vm1321_vm8, %v6326_v58, -1e+18  ;;  %v1412_v5 = vrot.slane %v1411_v29, 1  ;;  %vm1541_vm8 = vcmask 1046534  }
 0x2cc   :  { %7119 = vst [vmem:[#allocation26_spill] sm:$0xff] %v6330_v55  ;;  %v1428_v52 = vrot.slane %v1427_v35, 2  ;;  %v1435_v61 = vrot.slane %v1434_v6, 4  ;;  %v4813_v51 = vpop.f32.mrb[18].mxu0  ;;  %v6349_v20 = vsel %vm1320_vm9, %v6330_v55, -1e+18 }
 0x2cd   :  { %v6343_v50 = vadd.f32 %v4813_v51, %v6137_v14  ;;  %v1075_v48 = vpop.f32.mrb[19].mxu0  ;;  %v1532_v51 = vsel %vm1531_vm13, %v1386_v19, %v1377_v57  ;;  %v1442_v62 = vsel %vm1368_vm6, %v6338_v11, -inf  ;;  %vm1543_vm9 = vcmask 1047559  }
 0x2ce   :  { %v1429_v60 = vmax.f32 %v1427_v35, %v1428_v52  ;;  %v1436_v15 = vmax.f32 %v1434_v6, %v1435_v61  ;;  %v6352_v39 = vadd.f32 %v6137_v14, %v1075_v48  ;;  %v1421_v52 = vrot.slane %v1420_v12, 1 }
 0x2cf   :  { %7120 = vst [vmem:[#allocation27_spill] sm:$0xff] %v6343_v50  ;;  %v6363_v61 = vsel %vm1323_vm10, %v6343_v50, -1e+18  ;;  %v1441_v53 = vsel %vm1368_vm6, %v6349_v20, -inf  ;;  %vm1329_vm10 = vcmp.eq.s32.totalorder %v6355_v26, 1  ;;  %v1404_v35 = vmax.f32 %v1402_v42, %v1403_v1 }
 0x2d0   :  { %7121 = vst [vmem:[#allocation28_spill] sm:$0xff] %v6352_v39  ;;  %v1437_v6 = vrot.slane %v1436_v15, 2  ;;  %v4816_v49 = vpop.f32.mrb[20].mxu0  ;;  %v6370_v57 = vsel %vm1322_vm11, %v6352_v39, -1e+18  ;;  %v1430_v22 = vrot.slane %v1429_v60, 1  ;;  %v1413_v8 = vmax.f32 %v1411_v29, %v1412_v5  ;;  %v1291_v5 = vpop.permute.xlu1 %1290 }
 0x2d1   :  { %v6375_v19 = vadd.f32 %v4816_v49, %v6137_v14  ;;  %v1085_v18 = vpop.f32.mrb[21].mxu0  ;;  %v1451_v55 = vsel %vm1368_vm6, %v6363_v61, -inf  ;;  %v1450_v44 = vsel %vm1368_vm6, %v6370_v57, -inf  ;;  %v1443_v39 = vmax.f32 %v1441_v53, %v1442_v62 }
 0x2d2   :  { %v1438_v48 = vmax.f32 %v1436_v15, %v1437_v6  ;;  %v6381_v25 = vadd.f32 %v6137_v14, %v1085_v18  ;;  %v1422_v6 = vmax.f32 %v1420_v12, %v1421_v52  ;;  %v1452_v50 = vmax.f32 %v1450_v44, %v1451_v55 }
 0x2d3   :  { %7122 = vst [vmem:[#allocation29_spill] sm:$0xff] %v6375_v19  ;;  %v6390_v49 = vsel %vm1325_vm12, %v6375_v19, -1e+18  ;;  %v1431_v34 = vmax.f32 %v1429_v60, %v1430_v22  ;;  %v1534_v32 = vsel %vm1533_vm15, %v1395_v2, %v1532_v51  ;;  %vm1328_vm11 = vcmp.eq.s32.totalorder %v6333_v7, 1 }
 0x2d4   :  { %7123 = vst [vmem:[#allocation30_spill] sm:$0xff] %v6381_v25  ;;  %v1460_v1 = vsel %vm1368_vm6, %v6390_v49, -inf  ;;  %v6397_v42 = vsel %vm1324_vm14, %v6381_v25, -1e+18  ;;  %v4819_v15 = vpop.f32.mrb[22].mxu0  ;;  %v1439_v53 = vrot.slane %v1438_v48, 1  ;;  %v1536_v29 = vsel %vm1535_vm1, %v1404_v35, %v1534_v32 }
 0x2d5   :  { %v1459_v28 = vsel %vm1368_vm6, %v6397_v42, -inf  ;;  %v6404_v18 = vadd.f32 %v4819_v15, %v6137_v14  ;;  %v1095_v62 = vpop.f32.mrb[23].mxu0  ;;  %v6416_v15 = vpop.permute.xlu0 %1293  ;;  %v1444_v25 = vrot.slane %v1443_v39, 4  ;;  %v1538_v2 = vsel %vm1537_vm2, %v1413_v8, %v1536_v29 }
 0x2d6   :  { %v6407_v58 = vadd.f32 %v6137_v14, %v1095_v62  ;;  %v1461_v17 = vmax.f32 %v1459_v28, %v1460_v1  ;;  %v1440_v52 = vmax.f32 %v1438_v48, %v1439_v53  ;;  %v1540_v22 = vsel %vm1539_vm5, %v1422_v6, %v1538_v2  ;;  %v1297_v8 = vpop.permute.xlu1 %1296 }
 0x2d7   :  { %7124 = vst [vmem:[#allocation31_spill] sm:$0xff] %v6404_v18  ;;  %v6413_v12 = vsel %vm1327_vm4, %v6404_v18, -1e+18  ;;  %v1453_v48 = vrot.slane %v1452_v50, 4  ;;  %v1542_v28 = vsel %vm1541_vm8, %v1431_v34, %v1540_v22  ;;  %vm1331_vm12 = vcmp.eq.s32.totalorder %v1291_v5, 1 }
 0x2d8   :  { %7125 = vst [vmem:[#allocation32_spill] sm:$0xff] %v6407_v58  ;;  %v1469_v55 = vsel %vm1368_vm6, %v6413_v12, -inf  ;;  %v6423_v60 = vsel %vm1326_vm7, %v6407_v58, -1e+18  ;;  %v4822_v51 = vpop.f32.mrb[24].mxu0  ;;  %v1462_v29 = vrot.slane %v1461_v17, 4  ;;  %v1544_v53 = vsel %vm1543_vm9, %v1440_v52, %v1542_v28 }
 0x2d9   :  { %v1468_v38 = vsel %vm1368_vm6, %v6423_v60, -inf  ;;  %v6431_v44 = vadd.f32 %v4822_v51, %v6137_v14  ;;  %v1105_v35 = vpop.f32.mrb[25].mxu0  ;;  %1552 = vrot.lane.b32.xlu0 %v1544_v53, %s5238_s5  ;;  %v1454_v22 = vmax.f32 %v1452_v50, %v1453_v48  ;;  %vm1330_vm14 = vcmp.eq.s32.totalorder %v6378_v16, 1 }
 0x2da   :  { %v1470_v1 = vmax.f32 %v1468_v38, %v1469_v55  ;;  %v6435_v21 = vadd.f32 %v6137_v14, %v1105_v35  ;;  %v1300_v38 = vpop.permute.xlu0 %1299  ;;  %v1445_v35 = vmax.f32 %v1443_v39, %v1444_v25  ;;  %vm1332_vm4 = vcmp.eq.s32.totalorder %v6416_v15, 1  ;;  %v1303_v50 = vpop.permute.xlu1 %1302 }
 0x2db   :  { %7126 = vst [vmem:[#allocation33_spill] sm:$0xff] %v6431_v44  ;;  %v6442_v62 = vsel %vm1329_vm10, %v6431_v44, -1e+18  ;;  %v1463_v5 = vmax.f32 %v1461_v17, %v1462_v29  ;;  %vm1333_vm7 = vcmp.eq.s32.totalorder %v1297_v8, 1  ;;  %vm1334_vm10 = vcmp.eq.s32.totalorder %v1300_v38, 1 }
 0x2dc   :  { %7127 = vst [vmem:[#allocation34_spill] sm:$0xff] %v6435_v21  ;;  %v1471_v51 = vrot.slane %v1470_v1, 4  ;;  %v1478_v6 = vsel %vm1368_vm6, %v6442_v62, -inf  ;;  %v6448_v55 = vsel %vm1328_vm11, %v6435_v21, -1e+18  ;;  %v4825_v7 = vpop.f32.mrb[26].mxu0 }
 0x2dd   :  { %v1477_v34 = vsel %vm1368_vm6, %v6448_v55, -inf  ;;  %v6456_v52 = vadd.f32 %v4825_v7, %v6137_v14  ;;  %v1115_v2 = vpop.f32.mrb[27].mxu0  ;;  %v1446_v29 = vrot.slane %v1445_v35, 2  ;;  %vm1335_vm11 = vcmp.eq.s32.totalorder %v1303_v50, 1 }
 0x2de   :  { %v1479_v28 = vmax.f32 %v1477_v34, %v1478_v6  ;;  %v6459_v32 = vadd.f32 %v6137_v14, %v1115_v2  ;;  %v1472_v26 = vmax.f32 %v1470_v1, %v1471_v51  ;;  %v1455_v6 = vrot.slane %v1454_v22, 2 }
 0x2df   :  { %7128 = vst [vmem:[#allocation35_spill] sm:$0xff] %v6456_v52  ;;  %v6464_v53 = vsel %vm1331_vm12, %v6456_v52, -1e+18  ;;  %v1464_v34 = vrot.slane %v1463_v5, 2  ;;  %v7068_v38 = vmov 0.0   ;;  %vm4009_vm12 = vcmask 1043456  }
 0x2e0   :  { %7129 = vst [vmem:[#allocation36_spill] sm:$0xff] %v6459_v32  ;;  %v1480_v7 = vrot.slane %v1479_v28, 4  ;;  %v1487_v21 = vsel %vm1368_vm6, %v6464_v53, -inf  ;;  %v4828_v25 = vpop.f32.mrb[28].mxu0  ;;  %v6469_v39 = vsel %vm1330_vm14, %v6459_v32, -1e+18  ;;  %v1456_v18 = vmax.f32 %v1454_v22, %v1455_v6 }
 0x2e1   :  { %v6474_v17 = vadd.f32 %v4828_v25, %v6137_v14  ;;  %v1125_v48 = vpop.f32.mrb[29].mxu0  ;;  %v1486_v51 = vsel %vm1368_vm6, %v6469_v39, -inf  ;;  %v1473_v16 = vrot.slane %v1472_v26, 2  ;;  %v1465_v36 = vmax.f32 %v1463_v5, %v1464_v34  ;;  %54 = vst.msk [vmem:[#allocation3] sm:$0xff] %vm51_vm3, %v7068_v38  ;;  %55 = vst.msk [vmem:[#allocation3 + $0x8] sm:$0xff] %vm51_vm3, %v7068_v38 }
 0x2e2   :  { %v1481_v1 = vmax.f32 %v1479_v28, %v1480_v7  ;;  %v1488_v2 = vmax.f32 %v1486_v51, %v1487_v21  ;;  %v6483_v58 = vadd.f32 %v6137_v14, %v1125_v48  ;;  %v1447_v51 = vmax.f32 %v1445_v35, %v1446_v29  ;;  %57 = vst.msk [vmem:[#allocation4] sm:$0xff] %vm56_vm0, %v7068_v38 }
 0x2e3   :  { %7130 = vst [vmem:[#allocation37_spill] sm:$0xff] %v6474_v17  ;;  %v6480_v44 = vsel %vm1333_vm7, %v6474_v17, -1e+18  ;;  %v1474_v21 = vmax.f32 %v1472_v26, %v1473_v16  ;;  %v1466_v6 = vrot.slane %v1465_v36, 1  ;;  %58 = vst.msk [vmem:[#allocation4 + $0x8] sm:$0xff] %vm56_vm0, %v7068_v38  ;;  %vm2105_vm14 = vcmask 130048  }
 0x2e4   :  { %7131 = vst [vmem:[#allocation38_spill] sm:$0xff] %v6483_v58  ;;  %v1482_v25 = vrot.slane %v1481_v1, 2  ;;  %v1496_v32 = vsel %vm1368_vm6, %v6480_v44, -inf  ;;  %v4831_v52 = vpop.f32.mrb[30].mxu0  ;;  %v1489_v28 = vrot.slane %v1488_v2, 4  ;;  %v1448_v34 = vrot.slane %v1447_v51, 1 }
 0x2e5   :  { %v6490_v7 = vsel %vm1332_vm4, %v6483_v58, -1e+18  ;;  %v6495_v8 = vadd.f32 %v4831_v52, %v6137_v14  ;;  %v1135_v48 = vpop.f32.mrb[31].mxu0  ;;  %vm3890_vm4 = vcmask 257024  }
 0x2e6   :  { %v1495_v19 = vsel %vm1368_vm6, %v6490_v7, -inf  ;;  %v6500_v9 = vadd.f32 %v6137_v14, %v1135_v48  ;;  %v1490_v3 = vmax.f32 %v1488_v2, %v1489_v28  ;;  %v1483_v14 = vmax.f32 %v1481_v1, %v1482_v25 }
 0x2e7   :  { %7132 = vst [vmem:[#allocation39_spill] sm:$0xff] %v6495_v8  ;;  %v1497_v15 = vmax.f32 %v1495_v19, %v1496_v32  ;;  %v6504_v40 = vsel %vm1335_vm11, %v6495_v8, -1e+18  ;;  %v1457_v32 = vrot.slane %v1456_v18, 1  ;;  %v1475_v2 = vrot.slane %v1474_v21, 1 }
 0x2e8   :  { %7133 = vst [vmem:[#allocation40_spill] sm:$0xff] %v6500_v9  ;;  %v1505_v52 = vsel %vm1368_vm6, %v6504_v40, -inf  ;;  %v6510_v35 = vsel %vm1334_vm10, %v6500_v9, -1e+18  ;;  %v1491_v29 = vrot.slane %v1490_v3, 2  ;;  %v1484_v1 = vrot.slane %v1483_v14, 1 }
 0x2e9   :  { %v1498_v5 = vrot.slane %v1497_v15, 4  ;;  %v1504_v19 = vsel %vm1368_vm6, %v6510_v35, -inf }
 0x2ea   :  { %v1506_v50 = vmax.f32 %v1504_v19, %v1505_v52  ;;  %v1492_v26 = vmax.f32 %v1490_v3, %v1491_v29  ;;  %v1458_v3 = vmax.f32 %v1456_v18, %v1457_v32  ;;  %v1467_v52 = vmax.f32 %v1465_v36, %v1466_v6 }
 0x2eb   :  { %v1499_v16 = vmax.f32 %v1497_v15, %v1498_v5  ;;  %v1449_v5 = vmax.f32 %v1447_v51, %v1448_v34  ;;  %v1476_v19 = vmax.f32 %v1474_v21, %v1475_v2  ;;  %v1485_v9 = vmax.f32 %v1483_v14, %v1484_v1 }
 0x2ec   :  { %v1507_v28 = vrot.slane %v1506_v50, 4  ;;  %v1493_v48 = vrot.slane %v1492_v26, 1  ;;  %v5240_v14 = vmov 1966171168  }
 0x2ed   :  { %v1500_v25 = vrot.slane %v1499_v16, 2  ;;  %v1545_v58 = vsel %vm1531_vm13, %v1458_v3, %v1449_v5 }
 0x2ee   :  { %v1508_v15 = vmax.f32 %v1506_v50, %v1507_v28  ;;  %v1494_v17 = vmax.f32 %v1492_v26, %v1493_v48  ;;  %v1546_v54 = vsel %vm1533_vm15, %v1467_v52, %v1545_v58  ;;  %v1570_v50 = vunpack.c.l.s4 %v5240_v14  ;;  %v6532_v58 = vld [vmem:[#allocation2] sm:$0xff]  ;;  %v6562_v14 = vld [vmem:[#allocation2 + $0x8] sm:$0xff] }
 0x2ef   :  { %v1501_v29 = vmax.f32 %v1499_v16, %v1500_v25  ;;  %v1547_v46 = vsel %vm1535_vm1, %v1476_v19, %v1546_v54 }
 0x2f0   :  { %v1509_v22 = vrot.slane %v1508_v15, 2  ;;  %v1548_v18 = vsel %vm1537_vm2, %v1485_v9, %v1547_v46 }
 0x2f1   :  { %v1502_v8 = vrot.slane %v1501_v29, 1  ;;  %v1549_v36 = vsel %vm1539_vm5, %v1494_v17, %v1548_v18 }
 0x2f2   :  { %v1510_v59 = vmax.f32 %v1508_v15, %v1509_v22  ;;  %v1572_v22 = vlaneseq }
 0x2f3   :  { %v1503_v30 = vmax.f32 %v1501_v29, %v1502_v8  ;;  %v1571_v8 = vunpack.c.0.s8 %v1570_v50 }
 0x2f4   :  { %v1511_v38 = vrot.slane %v1510_v59, 1  ;;  %v1573_v6 = vshrl.u32 %v1572_v22, 7 }
 0x2f5   :  { %v1550_v21 = vsel %vm1541_vm8, %v1503_v30, %v1549_v36 }
 0x2f6   :  { %v1512_v32 = vmax.f32 %v1510_v59, %v1511_v38  ;;  %v1574_v26 = vsub.s32 %v1571_v8, %v1573_v6  ;;  %v6537_v59 = vsub.s32 0, %v1573_v6 }
 0x2f8   :  { %v1551_v51 = vsel %vm1543_vm9, %v1512_v32, %v1550_v21 }
 0x2f9   :  { %1554 = vrot.lane.b32.xlu1 %v1551_v51, %s5238_s5 }
 0x34b   :  { %v1553_v54 = vpop.permute.xlu0 %1552 }
 0x34c   :  { %v6535_v46 = vmax.f32 %v6532_v58, %v1553_v54 }
 0x34e   :  { %v1560_v30 = vsub.f32 %v6532_v58, %v6535_v46  ;;  %v1568_v9 = vcombine.high %v6535_v46, %v6535_v46  ;;  %v1575_v17 = vrot.slane %v6535_v46, %v1574_v26  ;;  %2063 = vst.msk [vmem:[#allocation2] sm:$0xff] %vm51_vm3, %v6535_v46 }
 0x350   :  { %v1582_v16 = vrot.slane %v1568_v9, %v1574_v26  ;;  %v1583_v34 = vcombine.high %v1575_v17, %v1575_v17  ;;  %v1591_v2 = vrot.slane %v1575_v17, %v1574_v26 }
 0x352   :  { %v1669_v28 = vrot.slane %v1591_v2, %v6537_v59  ;;  %v1605_v38 = vrot.slane %v1583_v34, %v1574_v26  ;;  %v1613_v1 = vcombine.high %v1591_v2, %v1591_v2  ;;  %v1584_v48 = vcombine.high %v1582_v16, %v1582_v16 }
 0x353   :  { %v1598_v52 = vrot.slane %v1582_v16, %v1574_v26 }
 0x354   :  { %1730 = vrot.lane.b32.xlu0 %v1669_v28, %s5241_s1  ;;  %v1673_v25 = vrot.slane %v1605_v38, %v6537_v59  ;;  %v1615_v3 = vcombine.high %v1605_v38, %v1605_v38  ;;  %v1677_v15 = vrot.slane %v1613_v1, %v6537_v59  ;;  %v1612_v5 = vrot.slane %v1584_v48, %v1574_v26 }
 0x355   :  { %v1685_v19 = vrot.slane %v1598_v52, %v6537_v59  ;;  %v1614_v18 = vcombine.high %v1598_v52, %v1598_v52 }
 0x356   :  { %1732 = vrot.lane.b32.xlu1 %v1673_v25, %s5241_s1  ;;  %v1681_v29 = vrot.slane %v1615_v3, %v6537_v59  ;;  %v1689_v32 = vrot.slane %v1612_v5, %v6537_v59  ;;  %v1616_v36 = vcombine.high %v1612_v5, %v1612_v5 }
 0x357   :  { %v1693_v21 = vrot.slane %v1614_v18, %v6537_v59 }
 0x358   :  { %1734 = vrot.lane.b32.xlu0 %v1677_v15, %s5241_s1  ;;  %v1697_v51 = vrot.slane %v1616_v36, %v6537_v59 }
 0x35a   :  { %1736 = vrot.lane.b32.xlu1 %v1681_v29, %s5241_s1 }
 0x35c   :  { %1738 = vrot.lane.b32.xlu0 %v1685_v19, %s5241_s1 }
 0x35e   :  { %1740 = vrot.lane.b32.xlu1 %v1689_v32, %s5241_s1 }
 0x360   :  { %1742 = vrot.lane.b32.xlu0 %v1693_v21, %s5241_s1 }
 0x362   :  { %1744 = vrot.lane.b32.xlu1 %v1697_v51, %s5241_s1 }
 0x36b   :  { %v1555_v50 = vpop.permute.xlu1 %1554 }
 0x36c   :  { %v6565_v22 = vmax.f32 %v6562_v14, %v1555_v50 }
 0x36e   :  { %v1561_v8 = vsub.f32 %v6562_v14, %v6565_v22  ;;  %v1617_v6 = vcombine.high %v6565_v22, %v6565_v22  ;;  %v1624_v54 = vrot.slane %v6565_v22, %v1574_v26  ;;  %2064 = vst.msk [vmem:[#allocation2 + $0x8] sm:$0xff] %vm51_vm3, %v6565_v22  ;;  %v7145_v22 = vld [vmem:[#allocation17_spill] sm:$0xff] }
 0x370   :  { %v1631_v9 = vrot.slane %v1617_v6, %v1574_v26  ;;  %v1632_v17 = vcombine.high %v1624_v54, %v1624_v54  ;;  %v1640_v16 = vrot.slane %v1624_v54, %v1574_v26 }
 0x372   :  { %v1701_v34 = vrot.slane %v1640_v16, %v6537_v59  ;;  %v1654_v2 = vrot.slane %v1632_v17, %v1574_v26  ;;  %v1662_v28 = vcombine.high %v1640_v16, %v1640_v16  ;;  %v1633_v25 = vcombine.high %v1631_v9, %v1631_v9 }
 0x373   :  { %v1647_v48 = vrot.slane %v1631_v9, %v1574_v26 }
 0x374   :  { %1746 = vrot.lane.b32.xlu0 %v1701_v34, %s5241_s1  ;;  %v1705_v38 = vrot.slane %v1654_v2, %v6537_v59  ;;  %v1664_v1 = vcombine.high %v1654_v2, %v1654_v2  ;;  %v1709_v3 = vrot.slane %v1662_v28, %v6537_v59  ;;  %v1661_v52 = vrot.slane %v1633_v25, %v1574_v26 }
 0x375   :  { %v1717_v29 = vrot.slane %v1647_v48, %v6537_v59  ;;  %v1663_v5 = vcombine.high %v1647_v48, %v1647_v48 }
 0x376   :  { %1748 = vrot.lane.b32.xlu1 %v1705_v38, %s5241_s1  ;;  %v1713_v15 = vrot.slane %v1664_v1, %v6537_v59  ;;  %v1721_v19 = vrot.slane %v1661_v52, %v6537_v59  ;;  %v1665_v18 = vcombine.high %v1661_v52, %v1661_v52 }
 0x377   :  { %v1725_v32 = vrot.slane %v1663_v5, %v6537_v59 }
 0x378   :  { %1750 = vrot.lane.b32.xlu0 %v1709_v3, %s5241_s1  ;;  %v1729_v36 = vrot.slane %v1665_v18, %v6537_v59 }
 0x37a   :  { %1752 = vrot.lane.b32.xlu1 %v1713_v15, %s5241_s1 }
 0x37c   :  { %1754 = vrot.lane.b32.xlu0 %v1717_v29, %s5241_s1 }
 0x37e   :  { %1756 = vrot.lane.b32.xlu1 %v1721_v19, %s5241_s1 }
 0x380   :  { %1758 = vrot.lane.b32.xlu0 %v1725_v32, %s5241_s1 }
 0x382   :  { %1760 = vrot.lane.b32.xlu1 %v1729_v36, %s5241_s1 }
 0x3c6   :  { %v1731_v26 = vpop.permute.xlu0 %1730 }
 0x3c7   :  { %v1778_v21 = vsub.f32 %v6147_v31, %v1731_v26  ;;  %v1779_v51 = vsub.f32 %v6145_v24, %v1731_v26 }
 0x3c8   :  { %v1733_v50 = vpop.permute.xlu1 %1732 }
 0x3c9   :  { %v1810_v6 = vmul.f32 1.442695, %v1778_v21  ;;  %v1812_v54 = vmul.f32 1.442695, %v1779_v51  ;;  %v1780_v9 = vsub.f32 %v6168_v37, %v1733_v50  ;;  %v1781_v17 = vsub.f32 %v6163_v56, %v1733_v50 }
 0x3ca   :  { %v1735_v16 = vpop.permute.xlu0 %1734 }
 0x3cb   :  { %5108 = vpow2.f32 %v1810_v6  ;;  %v1814_v34 = vmul.f32 1.442695, %v1780_v9  ;;  %v1816_v2 = vmul.f32 1.442695, %v1781_v17  ;;  %v1782_v59 = vsub.f32 %v6190_v63, %v1735_v16 }
 0x3cc   :  { %5110 = vpow2.f32 %v1812_v54  ;;  %v1783_v28 = vsub.f32 %v6183_v45, %v1735_v16  ;;  %v1737_v38 = vpop.permute.xlu1 %1736 }
 0x3cd   :  { %5112 = vpow2.f32 %v1814_v34  ;;  %v1818_v31 = vmul.f32 1.442695, %v1782_v59  ;;  %v1784_v24 = vsub.f32 %v6211_v0, %v1737_v38  ;;  %v1785_v1 = vsub.f32 %v6206_v4, %v1737_v38 }
 0x3ce   :  { %5114 = vpow2.f32 %v1816_v2  ;;  %v1820_v37 = vmul.f32 1.442695, %v1783_v28  ;;  %v1739_v25 = vpop.permute.xlu0 %1738 }
 0x3cf   :  { %5116 = vpow2.f32 %v1818_v31  ;;  %v1822_v56 = vmul.f32 1.442695, %v1784_v24  ;;  %v1824_v3 = vmul.f32 1.442695, %v1785_v1  ;;  %v1786_v48 = vsub.f32 %v6238_v23, %v1739_v25 }
 0x3d0   :  { %5118 = vpow2.f32 %v1820_v37  ;;  %v1787_v63 = vsub.f32 %v6228_v43, %v1739_v25  ;;  %v1741_v15 = vpop.permute.xlu1 %1740 }
 0x3d1   :  { %5120 = vpow2.f32 %v1822_v56  ;;  %v1826_v45 = vmul.f32 1.442695, %v1786_v48  ;;  %v1788_v52 = vsub.f32 %v6265_v13, %v1741_v15  ;;  %v1789_v0 = vsub.f32 %v6251_v27, %v1741_v15 }
 0x3d2   :  { %5122 = vpow2.f32 %v1824_v3  ;;  %v1828_v4 = vmul.f32 1.442695, %v1787_v63  ;;  %v1743_v29 = vpop.permute.xlu0 %1742 }
 0x3d3   :  { %5124 = vpow2.f32 %v1826_v45  ;;  %v1830_v5 = vmul.f32 1.442695, %v1788_v52  ;;  %v1832_v19 = vmul.f32 1.442695, %v1789_v0  ;;  %v1790_v18 = vsub.f32 %v6290_v33, %v1743_v29 }
 0x3d4   :  { %5126 = vpow2.f32 %v1828_v4  ;;  %v1791_v23 = vsub.f32 %v6282_v10, %v1743_v29  ;;  %v1745_v32 = vpop.permute.xlu1 %1744 }
 0x3d5   :  { %v5109_v43 = vpop.eup %5108  ;;  %5128 = vpow2.f32 %v1830_v5  ;;  %v1834_v36 = vmul.f32 1.442695, %v1790_v18  ;;  %v1792_v26 = vsub.f32 %v6317_v41, %v1745_v32  ;;  %v1793_v13 = vsub.f32 %v6309_v47, %v1745_v32 }
 0x3d6   :  { %v5111_v27 = vpop.eup %5110  ;;  %v1878_v21 = vsel %vm1368_vm6, %v5109_v43, 0.0  ;;  %5130 = vpow2.f32 %v1832_v19  ;;  %v1836_v51 = vmul.f32 1.442695, %v1791_v23  ;;  %2067 = vrot.lane.b32.xlu0 %v5109_v43, %s5238_s5 }
 0x3d7   :  { %v5113_v50 = vpop.eup %5112  ;;  %v1879_v33 = vsel %vm1368_vm6, %v5111_v27, 0.0  ;;  %5132 = vpow2.f32 %v1834_v36  ;;  %v1838_v10 = vmul.f32 1.442695, %v1792_v26  ;;  %v1840_v6 = vmul.f32 1.442695, %v1793_v13  ;;  %2069 = vrot.lane.b32.xlu1 %v5111_v27, %s5238_s5 }
 0x3d8   :  { %v5115_v54 = vpop.eup %5114  ;;  %v1880_v9 = vadd.f32 %v1879_v33, %v1878_v21  ;;  %v1887_v41 = vsel %vm1368_vm6, %v5113_v50, 0.0  ;;  %5134 = vpow2.f32 %v1836_v51 }
 0x3d9   :  { %v5117_v47 = vpop.eup %5116  ;;  %v1888_v17 = vsel %vm1368_vm6, %v5115_v54, 0.0  ;;  %5136 = vpow2.f32 %v1838_v10 }
 0x3da   :  { %v5119_v16 = vpop.eup %5118  ;;  %v1881_v34 = vrot.slane %v1880_v9, 4  ;;  %v1889_v2 = vadd.f32 %v1888_v17, %v1887_v41  ;;  %v1896_v59 = vsel %vm1368_vm6, %v5117_v47, 0.0  ;;  %5138 = vpow2.f32 %v1840_v6  ;;  %2181 = vrot.lane.b32.xlu0 %v5113_v50, %s5238_s5 }
 0x3db   :  { %v5121_v28 = vpop.eup %5120  ;;  %v1897_v38 = vsel %vm1368_vm6, %v5119_v16, 0.0  ;;  %2183 = vrot.lane.b32.xlu1 %v5115_v54, %s5238_s5 }
 0x3dc   :  { %v5123_v31 = vpop.eup %5122  ;;  %v1882_v24 = vadd.f32 %v1881_v34, %v1880_v9  ;;  %v1890_v1 = vrot.slane %v1889_v2, 4  ;;  %v1898_v37 = vadd.f32 %v1897_v38, %v1896_v59  ;;  %v1905_v25 = vsel %vm1368_vm6, %v5121_v28, 0.0 }
 0x3dd   :  { %v5125_v56 = vpop.eup %5124  ;;  %v1906_v3 = vsel %vm1368_vm6, %v5123_v31, 0.0 }
 0x3de   :  { %v5127_v48 = vpop.eup %5126  ;;  %v1883_v63 = vrot.slane %v1882_v24, 2  ;;  %v1891_v15 = vadd.f32 %v1890_v1, %v1889_v2  ;;  %v1899_v45 = vrot.slane %v1898_v37, 4  ;;  %v1907_v52 = vadd.f32 %v1906_v3, %v1905_v25  ;;  %2294 = vrot.lane.b32.xlu0 %v5117_v47, %s5238_s5 }
 0x3df   :  { %v5129_v0 = vpop.eup %5128  ;;  %v1914_v4 = vsel %vm1368_vm6, %v5125_v56, 0.0  ;;  %v1915_v29 = vsel %vm1368_vm6, %v5127_v48, 0.0  ;;  %2296 = vrot.lane.b32.xlu1 %v5119_v16, %s5238_s5 }
 0x3e0   :  { %v5131_v5 = vpop.eup %5130  ;;  %v1884_v19 = vadd.f32 %v1883_v63, %v1882_v24  ;;  %v1892_v18 = vrot.slane %v1891_v15, 2  ;;  %v1900_v23 = vadd.f32 %v1899_v45, %v1898_v37  ;;  %v1908_v32 = vrot.slane %v1907_v52, 4 }
 0x3e1   :  { %v6622_v43 = vpop.eup %5132  ;;  %v1916_v36 = vadd.f32 %v1915_v29, %v1914_v4  ;;  %v1923_v26 = vsel %vm1368_vm6, %v5129_v0, 0.0  ;;  %v1924_v13 = vsel %vm1368_vm6, %v5131_v5, 0.0 }
 0x3e2   :  { %v6626_v27 = vpop.eup %5134  ;;  %v1885_v21 = vrot.slane %v1884_v19, 1  ;;  %v1893_v51 = vadd.f32 %v1892_v18, %v1891_v15  ;;  %v1901_v50 = vrot.slane %v1900_v23, 2  ;;  %v1909_v33 = vadd.f32 %v1908_v32, %v1907_v52  ;;  %2520 = vrot.lane.b32.xlu0 %v5125_v56, %s5238_s5 }
 0x3e3   :  { %v6629_v10 = vpop.eup %5136  ;;  %v1917_v6 = vrot.slane %v1916_v36, 4  ;;  %v1925_v54 = vadd.f32 %v1924_v13, %v1923_v26  ;;  %v1932_v9 = vsel %vm1368_vm6, %v6622_v43, 0.0  ;;  %v1933_v41 = vsel %vm1368_vm6, %v6626_v27, 0.0  ;;  %2522 = vrot.lane.b32.xlu1 %v5127_v48, %s5238_s5 }
 0x3e4   :  { %v6636_v17 = vpop.eup %5138  ;;  %v6638_v16 = vadd.f32 %v1885_v21, %v1884_v19  ;;  %v1894_v34 = vrot.slane %v1893_v51, 1  ;;  %v1902_v2 = vadd.f32 %v1901_v50, %v1900_v23  ;;  %v1910_v59 = vrot.slane %v1909_v33, 2 }
 0x3e5   :  { %v1918_v38 = vadd.f32 %v1917_v6, %v1916_v36  ;;  %v1926_v24 = vrot.slane %v1925_v54, 4  ;;  %v6640_v1 = vadd.f32 %v1933_v41, %v1932_v9  ;;  %v6644_v37 = vsel %vm1368_vm6, %v6629_v10, 0.0 }
 0x3e6   :  { %v1747_v47 = vpop.permute.xlu0 %1746  ;;  %v6646_v56 = vadd.f32 %v1894_v34, %v1893_v51  ;;  %v1903_v3 = vrot.slane %v1902_v2, 1  ;;  %v1911_v48 = vadd.f32 %v1910_v59, %v1909_v33  ;;  %v6650_v63 = vsel %vm1368_vm6, %v6636_v17, 0.0  ;;  %2407 = vrot.lane.b32.xlu0 %v5121_v28, %s5238_s5 }
 0x3e7   :  { %v1794_v15 = vsub.f32 %v6349_v20, %v1747_v47  ;;  %v1795_v45 = vsub.f32 %v6338_v11, %v1747_v47  ;;  %2409 = vrot.lane.b32.xlu1 %v5123_v31, %s5238_s5  ;;  %v1927_v13 = vadd.f32 %v1926_v24, %v1925_v54  ;;  %v1919_v51 = vrot.slane %v1918_v38, 2 }
 0x3e8   :  { %v1749_v25 = vpop.permute.xlu1 %1748  ;;  %v6660_v23 = vadd.f32 %v1903_v3, %v1902_v2  ;;  %v1912_v32 = vrot.slane %v1911_v48, 1 }
 0x3e9   :  { %v1796_v52 = vsub.f32 %v6370_v57, %v1749_v25  ;;  %v1797_v4 = vsub.f32 %v6363_v61, %v1749_v25  ;;  %v1842_v36 = vmul.f32 1.442695, %v1794_v15  ;;  %v1844_v28 = vmul.f32 1.442695, %v1795_v45 }
 0x3ea   :  { %v1751_v29 = vpop.permute.xlu0 %1750  ;;  %2633 = vrot.lane.b32.xlu0 %v5129_v0, %s5238_s5  ;;  %v1920_v0 = vadd.f32 %v1919_v51, %v1918_v38  ;;  %v1928_v41 = vrot.slane %v1927_v13, 2  ;;  %v1943_v45 = vadd.f32 %v6650_v63, %v6644_v37 }
 0x3eb   :  { %v1798_v19 = vsub.f32 %v6397_v42, %v1751_v29  ;;  %v1799_v18 = vsub.f32 %v6390_v49, %v1751_v29  ;;  %v1846_v26 = vmul.f32 1.442695, %v1796_v52  ;;  %v1848_v11 = vmul.f32 1.442695, %v1797_v4  ;;  %2635 = vrot.lane.b32.xlu1 %v5131_v5, %s5238_s5 }
 0x3ec   :  { %v1753_v20 = vpop.permute.xlu1 %1752  ;;  %5140 = vpow2.f32 %v1842_v36  ;;  %v1913_v42 = vadd.f32 %v1912_v32, %v1911_v48  ;;  %v1921_v5 = vrot.slane %v1920_v0, 1  ;;  %v1929_v34 = vadd.f32 %v1928_v41, %v1927_v13 }
 0x3ed   :  { %v1850_v21 = vmul.f32 1.442695, %v1798_v19  ;;  %v1852_v31 = vmul.f32 1.442695, %v1799_v18  ;;  %v1800_v61 = vsub.f32 %v6423_v60, %v1753_v20  ;;  %v1801_v57 = vsub.f32 %v6413_v12, %v1753_v20 }
 0x3ee   :  { %v1755_v49 = vpop.permute.xlu0 %1754  ;;  %5142 = vpow2.f32 %v1844_v28  ;;  %2746 = vrot.lane.b32.xlu0 %v6622_v43, %s5238_s5  ;;  %v1922_v25 = vadd.f32 %v1921_v5, %v1920_v0  ;;  %v1944_v19 = vrot.slane %v1943_v45, 4 }
 0x3ef   :  { %v1854_v50 = vmul.f32 1.442695, %v1800_v61  ;;  %v1802_v33 = vsub.f32 %v6448_v55, %v1755_v49  ;;  %v1803_v6 = vsub.f32 %v6442_v62, %v1755_v49  ;;  %5144 = vpow2.f32 %v1846_v26  ;;  %2748 = vrot.lane.b32.xlu1 %v6626_v27, %s5238_s5 }
 0x3f0   :  { %v1856_v54 = vmul.f32 1.442695, %v1801_v57  ;;  %v1757_v9 = vpop.permute.xlu1 %1756  ;;  %5146 = vpow2.f32 %v1848_v11  ;;  %v1935_v27 = vrot.slane %v6640_v1, 4  ;;  %v1945_v36 = vadd.f32 %v1944_v19, %v1943_v45 }
 0x3f1   :  { %v1858_v60 = vmul.f32 1.442695, %v1802_v33  ;;  %v1860_v47 = vmul.f32 1.442695, %v1803_v6  ;;  %v1804_v12 = vsub.f32 %v6469_v39, %v1757_v9  ;;  %5148 = vpow2.f32 %v1850_v21 }
 0x3f2   :  { %v1805_v55 = vsub.f32 %v6464_v53, %v1757_v9  ;;  %v1759_v62 = vpop.permute.xlu0 %1758  ;;  %5150 = vpow2.f32 %v1852_v31  ;;  %v1930_v39 = vrot.slane %v1929_v34, 1  ;;  %2859 = vrot.lane.b32.xlu0 %v6629_v10, %s5238_s5  ;;  %v2038_v10 = vsel %vm1531_vm13, %v6646_v56, %v6638_v16 }
 0x3f3   :  { %v1862_v2 = vmul.f32 1.442695, %v1804_v12  ;;  %v1806_v59 = vsub.f32 %v6490_v7, %v1759_v62  ;;  %v1807_v38 = vsub.f32 %v6480_v44, %v1759_v62  ;;  %5152 = vpow2.f32 %v1854_v50  ;;  %2861 = vrot.lane.b32.xlu1 %v6636_v17, %s5238_s5 }
 0x3f4   :  { %v1864_v24 = vmul.f32 1.442695, %v1805_v55  ;;  %v1761_v43 = vpop.permute.xlu1 %1760  ;;  %5154 = vpow2.f32 %v1856_v54  ;;  %v1931_v44 = vadd.f32 %v1930_v39, %v1929_v34  ;;  %v1936_v17 = vadd.f32 %v1935_v27, %v6640_v1 }
 0x3f5   :  { %v1866_v3 = vmul.f32 1.442695, %v1806_v59  ;;  %v1868_v48 = vmul.f32 1.442695, %v1807_v38  ;;  %v1808_v53 = vsub.f32 %v6510_v35, %v1761_v43  ;;  %5156 = vpow2.f32 %v1858_v60 }
 0x3f6   :  { %v1809_v7 = vsub.f32 %v6504_v40, %v1761_v43  ;;  %5158 = vpow2.f32 %v1860_v47  ;;  %v6688_v52 = vpop.eup %5140  ;;  %v2039_v40 = vsel %vm1533_vm15, %v6660_v23, %v2038_v10  ;;  %v1937_v56 = vrot.slane %v1936_v17, 2 }
 0x3f7   :  { %v1870_v15 = vmul.f32 1.442695, %v1808_v53  ;;  %5160 = vpow2.f32 %v1862_v2  ;;  %v1950_v29 = vsel %vm1368_vm6, %v6688_v52, 0.0  ;;  %v2040_v37 = vsel %vm1535_vm1, %v1913_v42, %v2039_v40 }
 0x3f8   :  { %v1872_v35 = vmul.f32 1.442695, %v1809_v7  ;;  %v5143_v4 = vpop.eup %5142  ;;  %5162 = vpow2.f32 %v1864_v24  ;;  %v2041_v1 = vsel %vm1537_vm2, %v1922_v25, %v2040_v37  ;;  %v1938_v20 = vadd.f32 %v1937_v56, %v1936_v17 }
 0x3f9   :  { %v6696_v63 = vpop.eup %5144  ;;  %v1951_v16 = vsel %vm1368_vm6, %v5143_v4, 0.0  ;;  %5164 = vpow2.f32 %v1866_v3  ;;  %2974 = vrot.lane.b32.xlu1 %v5143_v4, %s5238_s5  ;;  %v1946_v42 = vrot.slane %v1945_v36, 2  ;;  %v2042_v51 = vsel %vm1539_vm5, %v1931_v44, %v2041_v1 }
 0x3fa   :  { %v5147_v18 = vpop.eup %5146  ;;  %v1952_v23 = vadd.f32 %v1951_v16, %v1950_v29  ;;  %v1959_v32 = vsel %vm1368_vm6, %v6696_v63, 0.0  ;;  %5166 = vpow2.f32 %v1868_v48  ;;  %v1939_v49 = vrot.slane %v1938_v20, 1 }
 0x3fb   :  { %v6703_v28 = vpop.eup %5148  ;;  %v1960_v26 = vsel %vm1368_vm6, %v5147_v18, 0.0  ;;  %5168 = vpow2.f32 %v1870_v15  ;;  %v1947_v47 = vadd.f32 %v1946_v42, %v1945_v36 }
 0x3fc   :  { %v5151_v13 = vpop.eup %5150  ;;  %v1953_v11 = vrot.slane %v1952_v23, 4  ;;  %v1961_v21 = vadd.f32 %v1960_v26, %v1959_v32  ;;  %v1968_v31 = vsel %vm1368_vm6, %v6703_v28, 0.0  ;;  %5170 = vpow2.f32 %v1872_v35 }
 0x3fd   :  { %v6708_v61 = vpop.eup %5152  ;;  %v1969_v57 = vsel %vm1368_vm6, %v5151_v13, 0.0  ;;  %3087 = vrot.lane.b32.xlu1 %v5147_v18, %s5238_s5  ;;  %v1940_v60 = vadd.f32 %v1939_v49, %v1938_v20  ;;  %v1948_v24 = vrot.slane %v1947_v47, 1 }
 0x3fe   :  { %v5155_v50 = vpop.eup %5154  ;;  %v1954_v33 = vadd.f32 %v1953_v11, %v1952_v23  ;;  %v1962_v6 = vrot.slane %v1961_v21, 4  ;;  %v1970_v54 = vadd.f32 %v1969_v57, %v1968_v31  ;;  %v1977_v9 = vsel %vm1368_vm6, %v6708_v61, 0.0 }
 0x3ff   :  { %v6715_v0 = vpop.eup %5156  ;;  %v1978_v41 = vsel %vm1368_vm6, %v5155_v50, 0.0  ;;  %v2043_v43 = vsel %vm1541_vm8, %v1940_v60, %v2042_v51  ;;  %v1949_v45 = vadd.f32 %v1948_v24, %v1947_v47 }
 0x400   :  { %v5159_v12 = vpop.eup %5158  ;;  %v1955_v55 = vrot.slane %v1954_v33, 2  ;;  %v1963_v62 = vadd.f32 %v1962_v6, %v1961_v21  ;;  %v1971_v5 = vrot.slane %v1970_v54, 4  ;;  %v1979_v34 = vadd.f32 %v1978_v41, %v1977_v9 }
 0x401   :  { %v6718_v2 = vpop.eup %5160  ;;  %v1986_v59 = vsel %vm1368_vm6, %v6715_v0, 0.0  ;;  %v1987_v38 = vsel %vm1368_vm6, %v5159_v12, 0.0  ;;  %3200 = vrot.lane.b32.xlu1 %v5151_v13, %s5238_s5  ;;  %v2044_v42 = vsel %vm1543_vm9, %v1949_v45, %v2043_v43 }
 0x402   :  { %v5163_v25 = vpop.eup %5162  ;;  %v1956_v39 = vadd.f32 %v1955_v55, %v1954_v33  ;;  %v1964_v3 = vrot.slane %v1963_v62, 2  ;;  %v1972_v48 = vadd.f32 %v1971_v5, %v1970_v54  ;;  %v1980_v53 = vrot.slane %v1979_v34, 4  ;;  %2052 = vrot.lane.b32.xlu0 %v2044_v42, %s5238_s5 }
 0x403   :  { %v6725_v7 = vpop.eup %5164  ;;  %v1988_v44 = vadd.f32 %v1987_v38, %v1986_v59  ;;  %v1995_v27 = vsel %vm1368_vm6, %v6718_v2, 0.0  ;;  %v1996_v15 = vsel %vm1368_vm6, %v5163_v25, 0.0 }
 0x404   :  { %v5167_v10 = vpop.eup %5166  ;;  %v1957_v35 = vrot.slane %v1956_v39, 1  ;;  %v1965_v17 = vadd.f32 %v1964_v3, %v1963_v62  ;;  %v1973_v40 = vrot.slane %v1972_v48, 2  ;;  %v1981_v4 = vadd.f32 %v1980_v53, %v1979_v34 }
 0x405   :  { %v5169_v29 = vpop.eup %5168  ;;  %v1989_v19 = vrot.slane %v1988_v44, 4  ;;  %v1997_v37 = vadd.f32 %v1996_v15, %v1995_v27  ;;  %v2004_v16 = vsel %vm1368_vm6, %v6725_v7, 0.0  ;;  %v2005_v56 = vsel %vm1368_vm6, %v5167_v10, 0.0  ;;  %3426 = vrot.lane.b32.xlu1 %v5159_v12, %s5238_s5 }
 0x406   :  { %v5171_v1 = vpop.eup %5170  ;;  %v1958_v18 = vadd.f32 %v1957_v35, %v1956_v39  ;;  %v1966_v23 = vrot.slane %v1965_v17, 1  ;;  %v1974_v32 = vadd.f32 %v1973_v40, %v1972_v48  ;;  %v1982_v36 = vrot.slane %v1981_v4, 2  ;;  %2972 = vrot.lane.b32.xlu0 %v6688_v52, %s5238_s5 }
 0x407   :  { %v1990_v26 = vadd.f32 %v1989_v19, %v1988_v44  ;;  %v1998_v20 = vrot.slane %v1997_v37, 4  ;;  %v2006_v13 = vadd.f32 %v2005_v56, %v2004_v16  ;;  %v2013_v11 = vsel %vm1368_vm6, %v5169_v29, 0.0 }
 0x408   :  { %v1967_v21 = vadd.f32 %v1966_v23, %v1965_v17  ;;  %v1975_v31 = vrot.slane %v1974_v32, 1  ;;  %v1983_v57 = vadd.f32 %v1982_v36, %v1981_v4  ;;  %v2014_v49 = vsel %vm1368_vm6, %v5171_v1, 0.0 }
 0x409   :  { %3313 = vrot.lane.b32.xlu1 %v5155_v50, %s5238_s5  ;;  %v1991_v51 = vrot.slane %v1990_v26, 2  ;;  %v1999_v33 = vadd.f32 %v1998_v20, %v1997_v37  ;;  %v2007_v6 = vrot.slane %v2006_v13, 4  ;;  %v2015_v41 = vadd.f32 %v2014_v49, %v2013_v11  ;;  %v1874_v11 = vld [vmem:[#allocation3] sm:$0xff] }
 0x40a   :  { %v1976_v54 = vadd.f32 %v1975_v31, %v1974_v32  ;;  %v1984_v9 = vrot.slane %v1983_v57, 1  ;;  %v2045_v60 = vsel %vm1531_vm13, %v1967_v21, %v1958_v18  ;;  %3085 = vrot.lane.b32.xlu0 %v6696_v63, %s5238_s5  ;;  %vm5242_vm6 = vmmov 0  }
 0x40b   :  { %v1992_v47 = vadd.f32 %v1991_v51, %v1990_v26  ;;  %v2000_v12 = vrot.slane %v1999_v33, 2  ;;  %v2008_v55 = vadd.f32 %v2007_v6, %v2006_v13  ;;  %v2016_v5 = vrot.slane %v2015_v41, 4 }
 0x40c   :  { %v1985_v62 = vadd.f32 %v1984_v9, %v1983_v57  ;;  %v2046_v34 = vsel %vm1533_vm15, %v1976_v54, %v2045_v60  ;;  %v7134_v63 = vmov 0.0   ;;  %v1562_v23 = vmul.f32 1.442695, %v1560_v30 }
 0x40d   :  { %3539 = vrot.lane.b32.xlu1 %v5163_v25, %s5238_s5  ;;  %v1993_v50 = vrot.slane %v1992_v47, 1  ;;  %v2001_v59 = vadd.f32 %v2000_v12, %v1999_v33  ;;  %v2009_v38 = vrot.slane %v2008_v55, 2  ;;  %v2017_v24 = vadd.f32 %v2016_v5, %v2015_v41  ;;  %4836 = vmatprep.mubr.msk.f32.mxu1 %vm5242_vm6, %v7134_v63 }
 0x40e   :  { %v2047_v43 = vsel %vm1535_vm1, %v1985_v62, %v2046_v34  ;;  %3198 = vrot.lane.b32.xlu0 %v6703_v28, %s5238_s5  ;;  %5172 = vpow2.f32 %v1562_v23 }
 0x40f   :  { %v1994_v39 = vadd.f32 %v1993_v50, %v1992_v47  ;;  %v2002_v3 = vrot.slane %v2001_v59, 1  ;;  %v2010_v48 = vadd.f32 %v2009_v38, %v2008_v55  ;;  %v2018_v53 = vrot.slane %v2017_v24, 2  ;;  %v7135_v50 = vld [vmem:[#allocation11_spill] sm:$0xff] }
 0x411   :  { %3652 = vrot.lane.b32.xlu1 %v5167_v10, %s5238_s5  ;;  %v2003_v44 = vadd.f32 %v2002_v3, %v2001_v59  ;;  %v2011_v27 = vrot.slane %v2010_v48, 1  ;;  %v2048_v15 = vsel %vm1537_vm2, %v1994_v39, %v2047_v43  ;;  %v2019_v25 = vadd.f32 %v2018_v53, %v2017_v24  ;;  %v7136_v59 = vld [vmem:[#allocation12_spill] sm:$0xff]  ;;  %v7139_v3 = vld [vmem:[#allocation13_spill] sm:$0xff] }
 0x412   :  { %3424 = vrot.lane.b32.xlu0 %v6715_v0, %s5238_s5  ;;  %v7137_v38 = vpack.c.bf16 %v7135_v50, %v7136_v59  ;;  %v7138_v24 = vmov 0.0|0.0   ;;  %v1564_v39 = vmul.f32 1.442695, %v1561_v8  ;;  %v7146_v8 = vld [vmem:[#allocation18_spill] sm:$0xff] }
 0x413   :  { %v2012_v45 = vadd.f32 %v2011_v27, %v2010_v48  ;;  %v2049_v52 = vsel %vm1539_vm5, %v2003_v44, %v2048_v15  ;;  %v2020_v35 = vrot.slane %v2019_v25, 1  ;;  %v7140_v48 = vld [vmem:[#allocation14_spill] sm:$0xff]  ;;  %v7142_v27 = vld [vmem:[#allocation15_spill] sm:$0xff]  ;;  %v7143_v15 = vld [vmem:[#allocation16_spill] sm:$0xff] }
 0x414   :  { %v7141_v53 = vpack.c.bf16 %v7139_v3, %v7140_v48  ;;  %5174 = vpow2.f32 %v1564_v39  ;;  %v7176_v50 = vld [vmem:[#allocation38_spill] sm:$0xff]  ;;  %v7179_v39 = vld [vmem:[#allocation40_spill] sm:$0xff] }
 0x415   :  { %3763 = vrot.lane.b32.xlu1 %v5169_v29, %s5238_s5  ;;  %v2050_v17 = vsel %vm1541_vm8, %v2012_v45, %v2049_v52  ;;  %v2021_v10 = vadd.f32 %v2020_v35, %v2019_v25  ;;  %v7144_v25 = vpack.c.bf16 %v7142_v27, %v7143_v15  ;;  %v7147_v45 = vpack.c.bf16 %v7145_v22, %v7146_v8  ;;  %v1875_v35 = vld [vmem:[#allocation3 + $0x8] sm:$0xff] }
 0x416   :  { %3311 = vrot.lane.b32.xlu0 %v6708_v61, %s5238_s5 }
 0x417   :  { %v2051_v40 = vsel %vm1543_vm9, %v2021_v10, %v2050_v17 }
 0x418   :  { %v6781_v13 = vpop.eup %5172 }
 0x419   :  { %3765 = vrot.lane.b32.xlu1 %v5171_v1, %s5238_s5  ;;  %v6769_v1 = vld [vmem:[%s7017_s8] sm:$0xf]  ;;  %v1876_v21 = vmul.f32 %v6781_v13, %v1874_v11 }
 0x41a   :  { %3537 = vrot.lane.b32.xlu0 %v6718_v2, %s5238_s5  ;;  %4949 = vmatprep.subr.msk.mxu0 %vm4009_vm12, %v6769_v1 }
 0x41b   :  { %4950 = vmatpush3.msk.msra.mxu0 %vm4009_vm12, %v6769_v1 }
 0x41c   :  { %4959 = vmatprep.subr.msk.mxu0 %vm56_vm0, %v6769_v1 }
 0x41e   :  { %3650 = vrot.lane.b32.xlu0 %v6725_v7, %s5238_s5  ;;  %v6817_v52 = vpop.eup %5174 }
 0x41f   :  { %v1877_v17 = vmul.f32 %v6817_v52, %v1875_v35 }
 0x448   :  { %v2068_v28 = vpop.permute.xlu0 %2067 }
 0x449   :  { %v2070_v4 = vpop.permute.xlu1 %2069  ;;  %2073 = vxpose.xlu0.b32.start [1/2] (short) (narrow) %v2068_v28, 8 }
 0x44c   :  { %v2182_v29 = vpop.permute.xlu0 %2181 }
 0x44d   :  { %v2184_v19 = vpop.permute.xlu1 %2183  ;;  %2187 = vxpose.xlu1.b32.start [1/2] (short) (narrow) %v2182_v29, 8  ;;  %2074 = vxpose.xlu0.b32.end [2/2] (short) (narrow) %v2070_v4, 8  ;;  %v7148_v4 = vld [vmem:[#allocation19_spill] sm:$0xff]  ;;  %v7149_v29 = vld [vmem:[#allocation20_spill] sm:$0xff] }
 0x450   :  { %v2295_v0 = vpop.permute.xlu0 %2294 }
 0x451   :  { %v2297_v37 = vpop.permute.xlu1 %2296  ;;  %2300 = vxpose.xlu0.b32.start [1/2] (short) (narrow) %v2295_v0, 8  ;;  %2188 = vxpose.xlu1.b32.end [2/2] (short) (narrow) %v2184_v19, 8  ;;  %v7150_v19 = vpack.c.bf16 %v7148_v4, %v7149_v29 }
 0x454   :  { %v2521_v61 = vpop.permute.xlu0 %2520 }
 0x455   :  { %2301 = vxpose.xlu0.b32.end [2/2] (short) (narrow) %v2297_v37, 8  ;;  %v2523_v2 = vpop.permute.xlu1 %2522 }
 0x458   :  { %v2408_v16 = vpop.permute.xlu0 %2407 }
 0x459   :  { %2413 = vxpose.xlu0.b32.start [1/2] (short) (narrow) %v2408_v16, 8  ;;  %v2410_v7 = vpop.permute.xlu1 %2409 }
 0x45c   :  { %v2634_v56 = vpop.permute.xlu0 %2633 }
 0x45d   :  { %2414 = vxpose.xlu0.b32.end [2/2] (short) (narrow) %v2410_v7, 8  ;;  %v2636_v18 = vpop.permute.xlu1 %2635 }
 0x460   :  { %v2747_v32 = vpop.permute.xlu0 %2746 }
 0x461   :  { %2526 = vxpose.xlu0.b32.start [1/2] (short) (narrow) %v2521_v61, 8  ;;  %v2749_v36 = vpop.permute.xlu1 %2748  ;;  %v7151_v61 = vld [vmem:[#allocation21_spill] sm:$0xff] }
 0x464   :  { %v2860_v26 = vpop.permute.xlu0 %2859 }
 0x465   :  { %2527 = vxpose.xlu0.b32.end [2/2] (short) (narrow) %v2523_v2, 8  ;;  %v2862_v20 = vpop.permute.xlu1 %2861  ;;  %v7152_v2 = vld [vmem:[#allocation22_spill] sm:$0xff] }
 0x466   :  { %v7153_v16 = vpack.c.bf16 %v7151_v61, %v7152_v2 }
 0x469   :  { %2752 = vxpose.xlu0.b32.start [1/2] (short) (narrow) %v2747_v32, 8 }
 0x46b   :  { %v2975_v57 = vpop.permute.xlu1 %2974 }
 0x46d   :  { %2753 = vxpose.xlu0.b32.end [2/2] (short) (narrow) %v2749_v36, 8  ;;  %v7157_v36 = vld [vmem:[#allocation25_spill] sm:$0xff] }
 0x46f   :  { %2054 = vrot.lane.b32.xlu1 %v2051_v40, %s5238_s5  ;;  %v3088_v46 = vpop.permute.xlu1 %3087 }
 0x473   :  { %v3201_v51 = vpop.permute.xlu1 %3200 }
 0x474   :  { %v2053_v31 = vpop.permute.xlu0 %2052 }
 0x475   :  { %v2058_v49 = vadd.f32 %v2053_v31, %v1876_v21  ;;  %v7160_v21 = vld [vmem:[#allocation27_spill] sm:$0xff]  ;;  %v7161_v31 = vld [vmem:[#allocation28_spill] sm:$0xff] }
 0x477   :  { %2061 = vst.msk [vmem:[#allocation3] sm:$0xff] %vm51_vm3, %v2058_v49  ;;  %v3427_v54 = vpop.permute.xlu1 %3426 }
 0x478   :  { %v2973_v58 = vpop.permute.xlu0 %2972 }
 0x479   :  { %2978 = vxpose.xlu0.b32.start [1/2] (short) (narrow) %v2973_v58, 8  ;;  %v7163_v58 = vld [vmem:[#allocation29_spill] sm:$0xff] }
 0x47b   :  { %v3314_v41 = vpop.permute.xlu1 %3313 }
 0x47c   :  { %v3086_v30 = vpop.permute.xlu0 %3085 }
 0x47d   :  { %2979 = vxpose.xlu0.b32.end [2/2] (short) (narrow) %v2975_v57, 8  ;;  %v7162_v57 = vpack.c.bf16 %v7160_v21, %v7161_v31 }
 0x47e   :  { %v4131_v42 = vld [vmem:[#allocation3] sm:$0xff] }
 0x47f   :  { %4951 = vmatprep.mubr.msk.f32.mxu0 %vm51_vm3, %v4131_v42  ;;  %v3540_v47 = vpop.permute.xlu1 %3539 }
 0x480   :  { %v3199_v33 = vpop.permute.xlu0 %3198 }
 0x483   :  { %v3653_v55 = vpop.permute.xlu1 %3652 }
 0x484   :  { %v3425_v6 = vpop.permute.xlu0 %3424 }
 0x487   :  { %v3764_v62 = vpop.permute.xlu1 %3763 }
 0x488   :  { %v3312_v9 = vpop.permute.xlu0 %3311 }
 0x489   :  { %3317 = vxpose.xlu0.b32.start [1/2] (short) (narrow) %v3312_v9, 8  ;;  %v7169_v9 = vld [vmem:[#allocation33_spill] sm:$0xff] }
 0x48b   :  { %v3766_v5 = vpop.permute.xlu1 %3765 }
 0x48c   :  { %v3538_v60 = vpop.permute.xlu0 %3537 }
 0x48d   :  { %3318 = vxpose.xlu0.b32.end [2/2] (short) (narrow) %v3314_v41, 8  ;;  %v7170_v41 = vld [vmem:[#allocation34_spill] sm:$0xff] }
 0x490   :  { %v3651_v12 = vpop.permute.xlu0 %3650 }
 0x491   :  { %3430 = vxpose.xlu0.b32.start [1/2] (short) (narrow) %v3425_v6, 8  ;;  %v7167_v6 = vld [vmem:[#allocation32_spill] sm:$0xff] }
 0x495   :  { %3431 = vxpose.xlu0.b32.end [2/2] (short) (narrow) %v3427_v54, 8 }
 0x498   :  { %2639 = vxpose.xlu1.b32.start [1/2] (short) (narrow) %v2634_v56, 8  ;;  %v7154_v56 = vld [vmem:[#allocation23_spill] sm:$0xff] }
 0x499   :  { %3656 = vxpose.xlu0.b32.start [1/2] (short) (narrow) %v3651_v12, 8  ;;  %v7172_v12 = vld [vmem:[#allocation35_spill] sm:$0xff] }
 0x49c   :  { %2640 = vxpose.xlu1.b32.end [2/2] (short) (narrow) %v2636_v18, 8  ;;  %v7155_v18 = vld [vmem:[#allocation24_spill] sm:$0xff] }
 0x49d   :  { %3657 = vxpose.xlu0.b32.end [2/2] (short) (narrow) %v3653_v55, 8  ;;  %v7156_v23 = vpack.c.bf16 %v7154_v56, %v7155_v18  ;;  %v7173_v55 = vld [vmem:[#allocation36_spill] sm:$0xff] }
 0x4a0   :  { %2865 = vxpose.xlu1.b32.start [1/2] (short) (narrow) %v2860_v26, 8  ;;  %v7158_v26 = vld [vmem:[#allocation26_spill] sm:$0xff] }
 0x4a4   :  { %2866 = vxpose.xlu1.b32.end [2/2] (short) (narrow) %v2862_v20, 8  ;;  %v7159_v20 = vpack.c.bf16 %v7157_v36, %v7158_v26 }
 0x4a8   :  { %3091 = vxpose.xlu1.b32.start [1/2] (short) (narrow) %v3086_v30, 8 }
 0x4ac   :  { %3092 = vxpose.xlu1.b32.end [2/2] (short) (narrow) %v3088_v46, 8  ;;  %v7164_v46 = vld [vmem:[#allocation30_spill] sm:$0xff] }
 0x4ad   :  { %v7165_v30 = vpack.c.bf16 %v7163_v58, %v7164_v46 }
 0x4b0   :  { %3204 = vxpose.xlu1.b32.start [1/2] (short) (narrow) %v3199_v33, 8  ;;  %v7166_v33 = vld [vmem:[#allocation31_spill] sm:$0xff] }
 0x4b1   :  { %v7168_v54 = vpack.c.bf16 %v7166_v33, %v7167_v6 }
 0x4b4   :  { %3205 = vxpose.xlu1.b32.end [2/2] (short) (narrow) %v3201_v51, 8 }
 0x4b8   :  { %3543 = vxpose.xlu1.b32.start [1/2] (short) (narrow) %v3538_v60, 8  ;;  %v7171_v60 = vpack.c.bf16 %v7169_v9, %v7170_v41 }
 0x4bc   :  { %3544 = vxpose.xlu1.b32.end [2/2] (short) (narrow) %v3540_v47, 8 }
 0x4c0   :  { %3769 = vxpose.xlu1.b32.start [1/2] (short) (narrow) %v3764_v62, 8  ;;  %v7174_v62 = vpack.c.bf16 %v7172_v12, %v7173_v55 }
 0x4c4   :  { %3770 = vxpose.xlu1.b32.end [2/2] (short) (narrow) %v3766_v5, 8 }
 0x4c9   :  { %v2089_v34 = vpop.trf.xlu0 }
 0x4ca   :  { %4837 = vmatmul.mubr.msk.f32.vlgmr.msra.gmra.mrb[0].mxu1 %vm2105_vm14, %v2089_v34  ;;  %v7175_v34 = vld [vmem:[#allocation37_spill] sm:$0xff] }
 0x4cb   :  { %4987 = vmatpush3.bf16.msra.mxu1 %v7137_v38  ;;  %4843 = vmatprep.mubr.msk.f32.mxu1 %vm5242_vm6, %v7134_v63  ;;  %v7177_v59 = vpack.c.bf16 %v7175_v34, %v7176_v50 }
 0x4cc   :  { %4988 = vmatprep.subr.bf16.mxu1 %v7138_v24 }
 0x4cd   :  { %v2203_v43 = vpop.trf.xlu1 }
 0x4ce   :  { %4844 = vmatmul.mubr.msk.f32.vlgmr.msra.gmra.mrb[2].mxu1 %vm2105_vm14, %v2203_v43  ;;  %v7178_v43 = vld [vmem:[#allocation39_spill] sm:$0xff] }
 0x4cf   :  { %4990 = vmatpush3.bf16.msra.mxu1 %v7141_v53  ;;  %4850 = vmatprep.mubr.msk.f32.mxu1 %vm5242_vm6, %v7134_v63  ;;  %v7180_v3 = vpack.c.bf16 %v7178_v43, %v7179_v39 }
 0x4d0   :  { %4991 = vmatprep.subr.bf16.mxu1 %v7138_v24 }
 0x4d1   :  { %v2316_v44 = vpop.trf.xlu0 }
 0x4d2   :  { %4851 = vmatmul.mubr.msk.f32.vlgmr.msra.gmra.mrb[4].mxu1 %vm2105_vm14, %v2316_v44 }
 0x4d3   :  { %4993 = vmatpush3.bf16.msra.mxu1 %v7144_v25  ;;  %4857 = vmatprep.mubr.msk.f32.mxu1 %vm5242_vm6, %v7134_v63 }
 0x4d4   :  { %4994 = vmatprep.subr.bf16.mxu1 %v7138_v24 }
 0x4d9   :  { %v2429_v14 = vpop.trf.xlu0 }
 0x4da   :  { %4858 = vmatmul.mubr.msk.f32.vlgmr.msra.gmra.mrb[6].mxu1 %vm2105_vm14, %v2429_v14 }
 0x4db   :  { %4996 = vmatpush3.bf16.msra.mxu1 %v7147_v45  ;;  %4864 = vmatprep.mubr.msk.f32.mxu1 %vm5242_vm6, %v7134_v63 }
 0x4dc   :  { %4997 = vmatprep.subr.bf16.mxu1 %v7138_v24 }
 0x4e1   :  { %v2542_v10 = vpop.trf.xlu0  ;;  %v2055_v40 = vpop.permute.xlu1 %2054 }
 0x4e2   :  { %v2059_v28 = vadd.f32 %v2055_v40, %v1877_v17  ;;  %4865 = vmatmul.mubr.msk.f32.vlgmr.msra.gmra.mrb[8].mxu1 %vm2105_vm14, %v2542_v10 }
 0x4e3   :  { %4999 = vmatpush3.bf16.msra.mxu1 %v7150_v19  ;;  %4871 = vmatprep.mubr.msk.f32.mxu1 %vm5242_vm6, %v7134_v63 }
 0x4e4   :  { %2062 = vst.msk [vmem:[#allocation3 + $0x8] sm:$0xff] %vm51_vm3, %v2059_v28  ;;  %5000 = vmatprep.subr.bf16.mxu1 %v7138_v24 }
 0x4e9   :  { %v2768_v7 = vpop.trf.xlu0 }
 0x4eb   :  { %v4132_v0 = vld [vmem:[#allocation3 + $0x8] sm:$0xff] }
 0x4ec   :  { %4952 = vmatmul.mubr.msk.f32.vlgmr.msra.gmra.mrb[32].mxu0 %vm51_vm3, %v4132_v0 }
 0x4ed   :  { %4960 = vmatpush3.xpose.msk.msra.mxu0 %vm56_vm0, %v6769_v1 }
 0x4ee   :  { %4969 = vmatprep.subr.msk.mxu0 %vm4009_vm12, %v6769_v1 }
 0x4f9   :  { %v2994_v11 = vpop.trf.xlu0 }
 0x509   :  { %v3333_v51 = vpop.trf.xlu0 }
 0x511   :  { %v3446_v47 = vpop.trf.xlu0 }
 0x518   :  { %v2655_v37 = vpop.trf.xlu1 }
 0x519   :  { %4872 = vmatmul.mubr.msk.f32.vlgmr.msra.gmra.mrb[10].mxu1 %vm2105_vm14, %v2655_v37  ;;  %v3672_v38 = vpop.trf.xlu0 }
 0x51a   :  { %5002 = vmatpush3.bf16.msra.mxu1 %v7153_v16  ;;  %4878 = vmatprep.mubr.msk.f32.mxu1 %vm5242_vm6, %v7134_v63 }
 0x51b   :  { %5003 = vmatprep.subr.bf16.mxu1 %v7138_v24 }
 0x51d   :  { %4879 = vmatmul.mubr.msk.f32.vlgmr.msra.gmra.mrb[12].mxu1 %vm2105_vm14, %v2768_v7 }
 0x51e   :  { %5005 = vmatpush3.bf16.msra.mxu1 %v7156_v23  ;;  %4885 = vmatprep.mubr.msk.f32.mxu1 %vm5242_vm6, %v7134_v63 }
 0x51f   :  { %5006 = vmatprep.subr.bf16.mxu1 %v7138_v24 }
 0x520   :  { %v2881_v32 = vpop.trf.xlu1 }
 0x521   :  { %4886 = vmatmul.mubr.msk.f32.vlgmr.msra.gmra.mrb[14].mxu1 %vm2105_vm14, %v2881_v32 }
 0x522   :  { %5008 = vmatpush3.bf16.msra.mxu1 %v7159_v20  ;;  %4892 = vmatprep.mubr.msk.f32.mxu1 %vm5242_vm6, %v7134_v63 }
 0x523   :  { %5009 = vmatprep.subr.bf16.mxu1 %v7138_v24 }
 0x525   :  { %4893 = vmatmul.mubr.msk.f32.vlgmr.msra.gmra.mrb[16].mxu1 %vm2105_vm14, %v2994_v11 }
 0x526   :  { %5011 = vmatpush3.bf16.msra.mxu1 %v7162_v57  ;;  %4899 = vmatprep.mubr.msk.f32.mxu1 %vm5242_vm6, %v7134_v63 }
 0x527   :  { %5012 = vmatprep.subr.bf16.mxu1 %v7138_v24 }
 0x528   :  { %v3107_v49 = vpop.trf.xlu1 }
 0x529   :  { %4900 = vmatmul.mubr.msk.f32.vlgmr.msra.gmra.mrb[18].mxu1 %vm2105_vm14, %v3107_v49 }
 0x52a   :  { %5014 = vmatpush3.bf16.msra.mxu1 %v7165_v30  ;;  %4906 = vmatprep.mubr.msk.f32.mxu1 %vm5242_vm6, %v7134_v63 }
 0x52b   :  { %5015 = vmatprep.subr.bf16.mxu1 %v7138_v24 }
 0x530   :  { %v3220_v42 = vpop.trf.xlu1 }
 0x531   :  { %4907 = vmatmul.mubr.msk.f32.vlgmr.msra.gmra.mrb[20].mxu1 %vm2105_vm14, %v3220_v42 }
 0x532   :  { %5017 = vmatpush3.bf16.msra.mxu1 %v7168_v54  ;;  %4913 = vmatprep.mubr.msk.f32.mxu1 %vm5242_vm6, %v7134_v63 }
 0x533   :  { %5018 = vmatprep.subr.bf16.mxu1 %v7138_v24 }
 0x535   :  { %4914 = vmatmul.mubr.msk.f32.vlgmr.msra.gmra.mrb[22].mxu1 %vm2105_vm14, %v3333_v51 }
 0x536   :  { %5020 = vmatpush3.bf16.msra.mxu1 %v7171_v60  ;;  %4920 = vmatprep.mubr.msk.f32.mxu1 %vm5242_vm6, %v7134_v63 }
 0x537   :  { %5021 = vmatprep.subr.bf16.mxu1 %v7138_v24 }
 0x538   :  { %v3559_v5 = vpop.trf.xlu1 }
 0x539   :  { %4921 = vmatmul.mubr.msk.f32.vlgmr.msra.gmra.mrb[24].mxu1 %vm2105_vm14, %v3446_v47 }
 0x53a   :  { %5023 = vmatpush3.bf16.msra.mxu1 %v7174_v62  ;;  %4927 = vmatprep.mubr.msk.f32.mxu1 %vm5242_vm6, %v7134_v63 }
 0x53b   :  { %5024 = vmatprep.subr.bf16.mxu1 %v7138_v24 }
 0x53d   :  { %4928 = vmatmul.mubr.msk.f32.vlgmr.msra.gmra.mrb[26].mxu1 %vm2105_vm14, %v3559_v5 }
 0x53e   :  { %5026 = vmatpush3.bf16.msra.mxu1 %v7177_v59  ;;  %4934 = vmatprep.mubr.msk.f32.mxu1 %vm5242_vm6, %v7134_v63 }
 0x53f   :  { %5027 = vmatprep.subr.bf16.mxu1 %v7138_v24 }
 0x540   :  { %v3785_v48 = vpop.trf.xlu1 }
 0x541   :  { %4935 = vmatmul.mubr.msk.f32.vlgmr.msra.gmra.mrb[28].mxu1 %vm2105_vm14, %v3672_v38 }
 0x542   :  { %5029 = vmatpush3.bf16.msra.mxu1 %v7180_v3  ;;  %4941 = vmatprep.mubr.msk.f32.mxu1 %vm5242_vm6, %v7134_v63 }
 0x543   :  { %4944 = vmatprep.subr.msk.mxu1 %vm4009_vm12, %v6769_v1 }
 0x545   :  { %4942 = vmatmul.mubr.msk.f32.vlgmr.msra.gmra.mrb[30].mxu1 %vm2105_vm14, %v3785_v48 }
 0x546   :  { %4946 = vmatprep.mubr.msk.f32.mxu1 %vm51_vm3, %v6781_v13  ;;  %4945 = vmatpush3.msk.msra.mxu1 %vm4009_vm12, %v6769_v1 }
 0x547   :  { %4954 = vmatprep.subr.msk.mxu1 %vm56_vm0, %v6769_v1 }
 0x549   :  { %4947 = vmatmul.mubr.msk.f32.vlgmr.msra.gmra.mrb[32].mxu1 %vm51_vm3, %v6817_v52 }
 0x54d   :  { %4955 = vmatpush3.xpose.msk.msra.mxu1 %vm56_vm0, %v6769_v1 }
 0x54e   :  { %4964 = vmatprep.subr.msk.mxu1 %vm4009_vm12, %v6769_v1 }
 0x59d   :  { %v2175_v63 = vpop.f32.mrb[0].mxu1 }
 0x59e   :  { %v3874_v24 = vmul.f32 %v2175_v63, %v6769_v1  ;;  %v4838_v13 = vpop.f32.mrb[1].mxu1 }
 0x5a0   :  { %v3891_v53 = vsel %vm3890_vm4, %v3874_v24, 0.0 }
 0x5a1   :  { %v3892_v44 = vrot.slane %v3891_v53, 4  ;;  %v2288_v27 = vpop.f32.mrb[2].mxu1 }
 0x5a2   :  { %v3875_v15 = vmul.f32 %v2288_v27, %v6769_v1  ;;  %v4845_v25 = vpop.f32.mrb[3].mxu1 }
 0x5a3   :  { %v3893_v14 = vadd.f32 %v3892_v44, %v3891_v53 }
 0x5a4   :  { %v3898_v22 = vsel %vm3890_vm4, %v3875_v15, 0.0 }
 0x5a5   :  { %v3894_v8 = vrot.slane %v3893_v14, 2  ;;  %v3899_v45 = vrot.slane %v3898_v22, 4  ;;  %v2401_v52 = vpop.f32.mrb[4].mxu1 }
 0x5a6   :  { %v3876_v35 = vmul.f32 %v2401_v52, %v6769_v1  ;;  %v4852_v17 = vpop.f32.mrb[5].mxu1 }
 0x5a7   :  { %v3895_v10 = vadd.f32 %v3894_v8, %v3893_v14  ;;  %v3900_v40 = vadd.f32 %v3899_v45, %v3898_v22 }
 0x5a8   :  { %v3905_v28 = vsel %vm3890_vm4, %v3876_v35, 0.0 }
 0x5a9   :  { %v3896_v4 = vrot.slane %v3895_v10, 1  ;;  %v3901_v29 = vrot.slane %v3900_v40, 2  ;;  %v3906_v19 = vrot.slane %v3905_v28, 4 }
 0x5ab   :  { %v3902_v0 = vadd.f32 %v3901_v29, %v3900_v40  ;;  %v3907_v37 = vadd.f32 %v3906_v19, %v3905_v28  ;;  %v3897_v61 = vadd.f32 %v3896_v4, %v3895_v10 }
 0x5ad   :  { %v3903_v2 = vrot.slane %v3902_v0, 1  ;;  %v3908_v16 = vrot.slane %v3907_v37, 2  ;;  %v2514_v7 = vpop.f32.mrb[6].mxu1 }
 0x5ae   :  { %v3877_v56 = vmul.f32 %v2514_v7, %v6769_v1  ;;  %v4859_v18 = vpop.f32.mrb[7].mxu1 }
 0x5af   :  { %v3904_v23 = vadd.f32 %v3903_v2, %v3902_v0  ;;  %v3909_v32 = vadd.f32 %v3908_v16, %v3907_v37 }
 0x5b0   :  { %v3912_v36 = vsel %vm3890_vm4, %v3877_v56, 0.0 }
 0x5b1   :  { %v4108_v26 = vsel %vm1531_vm13, %v3904_v23, %v3897_v61  ;;  %v3910_v20 = vrot.slane %v3909_v32, 1  ;;  %v3913_v11 = vrot.slane %v3912_v36, 4 }
 0x5b3   :  { %v3911_v21 = vadd.f32 %v3910_v20, %v3909_v32  ;;  %v3914_v31 = vadd.f32 %v3913_v11, %v3912_v36 }
 0x5b5   :  { %v4109_v57 = vsel %vm1533_vm15, %v3911_v21, %v4108_v26  ;;  %v3915_v49 = vrot.slane %v3914_v31, 2  ;;  %v2627_v58 = vpop.f32.mrb[8].mxu1 }
 0x5b6   :  { %v3878_v46 = vmul.f32 %v2627_v58, %v6769_v1  ;;  %v4866_v30 = vpop.f32.mrb[9].mxu1 }
 0x5b7   :  { %v3916_v42 = vadd.f32 %v3915_v49, %v3914_v31 }
 0x5b8   :  { %v3919_v51 = vsel %vm3890_vm4, %v3878_v46, 0.0 }
 0x5b9   :  { %v3917_v33 = vrot.slane %v3916_v42, 1  ;;  %v3920_v6 = vrot.slane %v3919_v51, 4 }
 0x5bb   :  { %v3918_v54 = vadd.f32 %v3917_v33, %v3916_v42  ;;  %v3921_v9 = vadd.f32 %v3920_v6, %v3919_v51 }
 0x5bd   :  { %v4110_v41 = vsel %vm1535_vm1, %v3918_v54, %v4109_v57  ;;  %v3922_v60 = vrot.slane %v3921_v9, 2 }
 0x5bf   :  { %v6930_v47 = vpop.f32.mrb[32].mxu0  ;;  %v3923_v12 = vadd.f32 %v3922_v60, %v3921_v9 }
 0x5c0   :  { %v6932_v55 = vpop.f32.mrb[33].mxu0 }
 0x5c1   :  { %v3924_v62 = vrot.slane %v3923_v12, 1  ;;  %5176 = vrcp.f32 %v6932_v55 }
 0x5c2   :  { %5178 = vrcp.f32 %v6930_v47 }
 0x5c3   :  { %v3925_v5 = vadd.f32 %v3924_v62, %v3923_v12 }
 0x5c5   :  { %v4111_v34 = vsel %vm1537_vm2, %v3925_v5, %v4110_v41 }
 0x5ec   :  { %v2740_v50 = vpop.f32.mrb[10].mxu1 }
 0x5ed   :  { %v3879_v59 = vmul.f32 %v2740_v50, %v6769_v1  ;;  %v4873_v38 = vpop.f32.mrb[11].mxu1 }
 0x5ef   :  { %v3926_v43 = vsel %vm3890_vm4, %v3879_v59, 0.0 }
 0x5f0   :  { %v3927_v39 = vrot.slane %v3926_v43, 4  ;;  %v2853_v3 = vpop.f32.mrb[12].mxu1 }
 0x5f1   :  { %v3880_v48 = vmul.f32 %v2853_v3, %v6769_v1  ;;  %v4880_v63 = vpop.f32.mrb[13].mxu1 }
 0x5f2   :  { %v3928_v24 = vadd.f32 %v3927_v39, %v3926_v43 }
 0x5f3   :  { %v3933_v13 = vsel %vm3890_vm4, %v3880_v48, 0.0 }
 0x5f4   :  { %v3929_v53 = vrot.slane %v3928_v24, 2  ;;  %v3934_v44 = vrot.slane %v3933_v13, 4  ;;  %v2966_v27 = vpop.f32.mrb[14].mxu1 }
 0x5f5   :  { %v3881_v15 = vmul.f32 %v2966_v27, %v6769_v1  ;;  %v4887_v25 = vpop.f32.mrb[15].mxu1 }
 0x5f6   :  { %v3930_v14 = vadd.f32 %v3929_v53, %v3928_v24  ;;  %v3935_v22 = vadd.f32 %v3934_v44, %v3933_v13 }
 0x5f7   :  { %v3940_v8 = vsel %vm3890_vm4, %v3881_v15, 0.0 }
 0x5f8   :  { %v3931_v45 = vrot.slane %v3930_v14, 1  ;;  %v3936_v52 = vrot.slane %v3935_v22, 2  ;;  %v3941_v35 = vrot.slane %v3940_v8, 4  ;;  %v3079_v17 = vpop.f32.mrb[16].mxu1 }
 0x5f9   :  { %v3882_v10 = vmul.f32 %v3079_v17, %v6769_v1  ;;  %v4894_v40 = vpop.f32.mrb[17].mxu1 }
 0x5fa   :  { %v3932_v28 = vadd.f32 %v3931_v45, %v3930_v14  ;;  %v3937_v4 = vadd.f32 %v3936_v52, %v3935_v22  ;;  %v3942_v29 = vadd.f32 %v3941_v35, %v3940_v8 }
 0x5fb   :  { %v3947_v19 = vsel %vm3890_vm4, %v3882_v10, 0.0 }
 0x5fc   :  { %v3938_v0 = vrot.slane %v3937_v4, 1  ;;  %v3943_v37 = vrot.slane %v3942_v29, 2  ;;  %v3948_v61 = vrot.slane %v3947_v19, 4  ;;  %v3192_v2 = vpop.f32.mrb[18].mxu1  ;;  %v4112_v16 = vsel %vm1539_vm5, %v3932_v28, %v4111_v34 }
 0x5fd   :  { %v3883_v7 = vmul.f32 %v3192_v2, %v6769_v1  ;;  %v4901_v56 = vpop.f32.mrb[19].mxu1 }
 0x5fe   :  { %v3939_v18 = vadd.f32 %v3938_v0, %v3937_v4  ;;  %v3944_v23 = vadd.f32 %v3943_v37, %v3942_v29  ;;  %v3949_v32 = vadd.f32 %v3948_v61, %v3947_v19 }
 0x5ff   :  { %v3954_v36 = vsel %vm3890_vm4, %v3883_v7, 0.0 }
 0x600   :  { %v3945_v26 = vrot.slane %v3944_v23, 1  ;;  %v3950_v20 = vrot.slane %v3949_v32, 2  ;;  %v3955_v11 = vrot.slane %v3954_v36, 4  ;;  %v4113_v21 = vsel %vm1541_vm8, %v3939_v18, %v4112_v16 }
 0x602   :  { %v3946_v31 = vadd.f32 %v3945_v26, %v3944_v23  ;;  %v3951_v57 = vadd.f32 %v3950_v20, %v3949_v32  ;;  %v3956_v49 = vadd.f32 %v3955_v11, %v3954_v36 }
 0x604   :  { %v3957_v58 = vrot.slane %v3956_v49, 2  ;;  %v3305_v46 = vpop.f32.mrb[20].mxu1  ;;  %v6948_v30 = vsel %vm1543_vm9, %v3946_v31, %v4113_v21  ;;  %v3952_v33 = vrot.slane %v3951_v57, 1  ;;  %v4088_v31 = vld [vmem:[#allocation4] sm:$0xff] }
 0x605   :  { %v3884_v42 = vmul.f32 %v3305_v46, %v6769_v1  ;;  %v4908_v51 = vpop.f32.mrb[21].mxu1 }
 0x606   :  { %v3958_v6 = vadd.f32 %v3957_v58, %v3956_v49  ;;  %v3953_v5 = vadd.f32 %v3952_v33, %v3951_v57 }
 0x607   :  { %v3961_v54 = vsel %vm3890_vm4, %v3884_v42, 0.0 }
 0x608   :  { %v3959_v9 = vrot.slane %v3958_v6, 1  ;;  %v3962_v41 = vrot.slane %v3961_v54, 4  ;;  %v3418_v60 = vpop.f32.mrb[22].mxu1 }
 0x609   :  { %v3885_v12 = vmul.f32 %v3418_v60, %v6769_v1  ;;  %v4915_v62 = vpop.f32.mrb[23].mxu1 }
 0x60a   :  { %v3960_v34 = vadd.f32 %v3959_v9, %v3958_v6  ;;  %v3963_v50 = vadd.f32 %v3962_v41, %v3961_v54 }
 0x60b   :  { %v3968_v59 = vsel %vm3890_vm4, %v3885_v12, 0.0 }
 0x60c   :  { %v4115_v38 = vsel %vm1531_vm13, %v3960_v34, %v3953_v5  ;;  %v3964_v43 = vrot.slane %v3963_v50, 2  ;;  %v3969_v39 = vrot.slane %v3968_v59, 4  ;;  %v3531_v3 = vpop.f32.mrb[24].mxu1 }
 0x60d   :  { %v3886_v48 = vmul.f32 %v3531_v3, %v6769_v1  ;;  %v4922_v63 = vpop.f32.mrb[25].mxu1  ;;  %v5177_v3 = vpop.eup %5176 }
 0x60e   :  { %v3965_v24 = vadd.f32 %v3964_v43, %v3963_v50  ;;  %v3970_v13 = vadd.f32 %v3969_v39, %v3968_v59  ;;  %v4089_v59 = vld [vmem:[#allocation4 + $0x8] sm:$0xff] }
 0x60f   :  { %v3975_v53 = vsel %vm3890_vm4, %v3886_v48, 0.0 }
 0x610   :  { %v3966_v44 = vrot.slane %v3965_v24, 1  ;;  %v3971_v27 = vrot.slane %v3970_v13, 2  ;;  %v3976_v15 = vrot.slane %v3975_v53, 4  ;;  %v3644_v25 = vpop.f32.mrb[26].mxu1 }
 0x611   :  { %v3887_v14 = vmul.f32 %v3644_v25, %v6769_v1  ;;  %v4929_v22 = vpop.f32.mrb[27].mxu1 }
 0x612   :  { %v3967_v8 = vadd.f32 %v3966_v44, %v3965_v24  ;;  %v3972_v45 = vadd.f32 %v3971_v27, %v3970_v13  ;;  %v3977_v52 = vadd.f32 %v3976_v15, %v3975_v53  ;;  %v5179_v13 = vpop.eup %5178 }
 0x613   :  { %v3982_v35 = vsel %vm3890_vm4, %v3887_v14, 0.0 }
 0x614   :  { %v4116_v17 = vsel %vm1533_vm15, %v3967_v8, %v4115_v38  ;;  %v3973_v10 = vrot.slane %v3972_v45, 1  ;;  %v3978_v40 = vrot.slane %v3977_v52, 2  ;;  %v3983_v28 = vrot.slane %v3982_v35, 4  ;;  %v3757_v4 = vpop.f32.mrb[28].mxu1 }
 0x615   :  { %v3888_v29 = vmul.f32 %v3757_v4, %v6769_v1  ;;  %v4936_v19 = vpop.f32.mrb[29].mxu1 }
 0x616   :  { %v3974_v0 = vadd.f32 %v3973_v10, %v3972_v45  ;;  %v3979_v37 = vadd.f32 %v3978_v40, %v3977_v52  ;;  %v3984_v61 = vadd.f32 %v3983_v28, %v3982_v35 }
 0x617   :  { %v3989_v2 = vsel %vm3890_vm4, %v3888_v29, 0.0 }
 0x618   :  { %v4117_v16 = vsel %vm1535_vm1, %v3974_v0, %v4116_v17  ;;  %v3980_v7 = vrot.slane %v3979_v37, 1  ;;  %v3985_v56 = vrot.slane %v3984_v61, 2  ;;  %v3990_v18 = vrot.slane %v3989_v2, 4  ;;  %v3870_v23 = vpop.f32.mrb[30].mxu1 }
 0x619   :  { %v3889_v32 = vmul.f32 %v3870_v23, %v6769_v1  ;;  %v4943_v36 = vpop.f32.mrb[31].mxu1 }
 0x61a   :  { %v3981_v26 = vadd.f32 %v3980_v7, %v3979_v37  ;;  %v3986_v20 = vadd.f32 %v3985_v56, %v3984_v61  ;;  %v3991_v11 = vadd.f32 %v3990_v18, %v3989_v2  ;;  %v4672_v56 = vld [vmem:[%s7015_s6] ss:$0 sm:$0xff] }
 0x61b   :  { %v3996_v21 = vsel %vm3890_vm4, %v3889_v32, 0.0  ;;  %v4673_v32 = vld [vmem:[%s7016_s7] ss:$0 sm:$0xff] }
 0x61c   :  { %v3987_v57 = vrot.slane %v3986_v20, 1  ;;  %v3992_v49 = vrot.slane %v3991_v11, 2  ;;  %v3997_v58 = vrot.slane %v3996_v21, 4  ;;  %v4948_v46 = vpop.f32.mrb[32].mxu1  ;;  %v4118_v42 = vsel %vm1537_vm2, %v3981_v26, %v4117_v16 }
 0x61d   :  { %v4079_v51 = vpop.f32.mrb[33].mxu1  ;;  %v4091_v39 = vmul.f32 %v4948_v46, %v4089_v59 }
 0x61e   :  { %v3988_v33 = vadd.f32 %v3987_v57, %v3986_v20  ;;  %v3993_v6 = vadd.f32 %v3992_v49, %v3991_v11  ;;  %v3998_v54 = vadd.f32 %v3997_v58, %v3996_v21  ;;  %v4090_v9 = vmul.f32 %v4088_v31, %v4079_v51 }
 0x620   :  { %v3994_v41 = vrot.slane %v3993_v6, 1  ;;  %v3999_v60 = vrot.slane %v3998_v54, 2  ;;  %v4119_v12 = vsel %vm1539_vm5, %v3988_v33, %v4118_v42  ;;  %v4124_v62 = vadd.f32 %v6948_v30, %v4090_v9 }
 0x622   :  { %v3995_v5 = vadd.f32 %v3994_v41, %v3993_v6  ;;  %v4000_v34 = vadd.f32 %v3999_v60, %v3998_v54  ;;  %4126 = vst.msk [vmem:[#allocation4] sm:$0xff] %vm56_vm0, %v4124_v62 }
 0x624   :  { %v4001_v50 = vrot.slane %v4000_v34, 1  ;;  %v4120_v38 = vsel %vm1541_vm8, %v3995_v5, %v4119_v12 }
 0x626   :  { %v4002_v43 = vadd.f32 %v4001_v50, %v4000_v34 }
 0x628   :  { %v4121_v55 = vsel %vm1543_vm9, %v4002_v43, %v4120_v38 }
 0x629   :  { %v4125_v48 = vadd.f32 %v4121_v55, %v4091_v39  ;;  %v4214_v63 = vld [vmem:[#allocation4] sm:$0xff] }
 0x62a   :  { %v4218_v24 = vmul.f32 %v5177_v3, %v4214_v63 }
 0x62b   :  { %4127 = vst.msk [vmem:[#allocation4 + $0x8] sm:$0xff] %vm56_vm0, %v4125_v48 }
 0x62c   :  { %4956 = vmatprep.mubr.msk.f32.mxu1 %vm56_vm0, %v4218_v24  ;;  %v4305_v30 = vmul.f32 %v4218_v24, %v4218_v24 }
 0x62e   :  { %4961 = vmatprep.mubr.msk.f32.mxu0 %vm56_vm0, %v4305_v30 }
 0x632   :  { %v4215_v53 = vld [vmem:[#allocation4 + $0x8] sm:$0xff] }
 0x633   :  { %v4219_v44 = vmul.f32 %v5179_v13, %v4215_v53 }
 0x635   :  { %4957 = vmatmul.mubr.msk.f32.vlgmr.msra.gmra.mrb[34].mxu1 %vm56_vm0, %v4219_v44  ;;  %v4306_v27 = vmul.f32 %v4219_v44, %v4219_v44 }
 0x636   :  { %4965 = vmatpush3.msk.msra.mxu1 %vm4009_vm12, %v6769_v1 }
 0x637   :  { %4962 = vmatmul.mubr.msk.f32.vlgmr.msra.gmra.mrb[34].mxu0 %vm56_vm0, %v4306_v27 }
 0x638   :  { %4970 = vmatpush3.msk.msra.mxu0 %vm4009_vm12, %v6769_v1 }
 0x708   :  { %v4958_v47 = vpop.f32.mrb[34].mxu1 }
 0x709   :  { %v4304_v15 = vmul.f32 0.125, %v4958_v47  ;;  %v4294_v25 = vpop.f32.mrb[35].mxu1 }
 0x70a   :  { %v4303_v14 = vmul.f32 0.125, %v4294_v25  ;;  %v4963_v22 = vpop.f32.mrb[34].mxu0 }
 0x70b   :  { %v4391_v8 = vmul.f32 %v4304_v15, %v4304_v15  ;;  %v4389_v45 = vmul.f32 0.125, %v4963_v22  ;;  %v4379_v52 = vpop.f32.mrb[35].mxu0 }
 0x70c   :  { %v4390_v35 = vmul.f32 %v4303_v14, %v4303_v14  ;;  %v4388_v17 = vmul.f32 0.125, %v4379_v52  ;;  %4966 = vmatprep.mubr.msk.f32.mxu1 %vm51_vm3, %v4303_v14 }
 0x70d   :  { %v4393_v10 = vsub.f32 %v4389_v45, %v4391_v8  ;;  %4967 = vmatmul.mubr.msk.f32.vlgmr.msra.gmra.mrb[36].mxu1 %vm51_vm3, %v4304_v15 }
 0x70e   :  { %v4392_v40 = vsub.f32 %v4388_v17, %v4390_v35 }
 0x70f   :  { %v4395_v28 = vmax.f32 %v4393_v10, 0.0 }
 0x710   :  { %v4394_v4 = vmax.f32 %v4392_v40, 0.0 }
 0x711   :  { %v4397_v29 = vadd.f32 1e-06, %v4395_v28 }
 0x712   :  { %v4396_v1 = vadd.f32 1e-06, %v4394_v4 }
 0x714   :  { %5180 = vrsqrt.f32 %v4396_v1 }
 0x715   :  { %5182 = vrsqrt.f32 %v4397_v29 }
 0x71e   :  { %v5181_v19 = vpop.eup %5180 }
 0x71f   :  { %v5183_v0 = vpop.eup %5182  ;;  %4971 = vmatprep.mubr.msk.f32.mxu0 %vm51_vm3, %v5181_v19 }
 0x720   :  { %4972 = vmatmul.mubr.msk.f32.vlgmr.msra.gmra.mrb[36].mxu0 %vm51_vm3, %v5183_v0 }
 0x7e0   :  { %v4968_v37 = vpop.f32.mrb[36].mxu1 }
 0x7e1   :  { %v4472_v61 = vpop.f32.mrb[37].mxu1  ;;  %v4563_v2 = vsub.f32 %v4219_v44, %v4968_v37 }
 0x7e2   :  { %v4562_v16 = vsub.f32 %v4218_v24, %v4472_v61 }
 0x7f3   :  { %v4973_v7 = vpop.f32.mrb[36].mxu0 }
 0x7f4   :  { %v4565_v18 = vmul.f32 %v4973_v7, %v4563_v2  ;;  %v4553_v23 = vpop.f32.mrb[37].mxu0 }
 0x7f5   :  { %v4564_v36 = vmul.f32 %v4562_v16, %v4553_v23 }
 0x7f6   :  { %v4574_v26 = vmul.f32 %v4672_v56, %v4565_v18 }
 0x7f7   :  { %v4573_v20 = vmul.f32 %v4672_v56, %v4564_v36 }
 0x7f8   :  { %v4583_v11 = vadd.f32 %v4673_v32, %v4574_v26 }
 0x7f9   :  { %v4582_v21 = vadd.f32 %v4673_v32, %v4573_v20 }
 0x7fa   :  { %4585 = vst.msk [vmem:[#allocation8 + $0x8] sm:$0xff] %vm56_vm0, %v4583_v11 }
 0x7fb   :  { %4584 = vst.msk [vmem:[#allocation8] sm:$0xff] %vm56_vm0, %v4582_v21 }
 0x7fc   :  { %5217 = shalt.err (!%p5214_p12)
}
 0x7fd   :  { %s5218_s17 = scalar_lea.hbm %s7018_s9, 256 }
 0x7fe   :  { %p5219_p13 = scmp.ne.s32.totalorder %s7018_s9, %s5218_s17  ;;  %p5222_p0 = scmp.lt.u32.totalorder %s5218_s17, %s7018_s9 }
 0x800   :  { %p5224_p1 = pnand %p5222_p0, %p5219_p13 }
 0x802   :  { %5227 = shalt.err (!%p5224_p1)
}
 0x803   :  { %4597 = dma.vmem_to_hbm [thread:$0]  %s4592_s15, 256, %s7018_s9, [#allocation7], %s5233_s19, %s5233_s19, %s5234_s20  }
 0x804   :  { %5230 = dma.done.wait [#allocation7], 256  }
 0x805   :  { %5231 = vsyncadd [#allocation7], 4294967040 }
 0x806   :  { %4601 = vsyncpa [#allocation6], 1 }
 0x807   :  { %4602 = vsyncpa [#allocation7], 1 }

// kernel: tpu_custom_call.1
= control target key start
LH: loop header
LB: loop body
LE: loop exit
PB: predicated region body
PF: predicated region fallthrough
CT: control target
= control target key end

     0   :  { %14 = vsyncpa [#allocation6], 0  ;;  %s7009_s0 = inlined_call_operand.vmem [shape: f32[16,16,32], index: 0, kind: input, shape index: {}]   ;;  %s7010_s1 = inlined_call_operand.vmem [shape: f32[16,16,1], index: 1, kind: input, shape index: {}]   ;;  %s7011_s2 = inlined_call_operand.vmem [shape: f32[1,32], index: 2, kind: input, shape index: {}]   ;;  %s7012_s3 = inlined_call_operand.vmem [shape: f32[1,32], index: 3, kind: input, shape index: {}]   ;;  %s7013_s4 = inlined_call_operand.hbm [shape: f32[32,36], index: 4, kind: input, shape index: {}]   ;;  %s7014_s5 = inlined_call_operand.vmem [shape: f32[1,36], index: 5, kind: input, shape index: {}]   ;;  %s7015_s6 = inlined_call_operand.vmem [shape: f32[1,32], index: 6, kind: input, shape index: {}]   ;;  %s7016_s7 = inlined_call_operand.vmem [shape: f32[1,32], index: 7, kind: input, shape index: {}]   ;;  %s7017_s8 = inlined_call_operand.vmem [shape: f32[4,32], index: 8, kind: input, shape index: {}]   ;;  %s7018_s9 = inlined_call_operand.hbm [shape: f32[16,32], index: 9, kind: output, shape index: {}]  }
   0x1   :  { %15 = vsyncpa [#allocation7], 0  ;;  %s5232_s30 = smov [#allocation5]   ;;  %s5184_s13 = scalar_lea.hbm %s7013_s4, 512 }
   0x2   :  { %s29_s10 = sshll.u32 %s5232_s30, 4  ;;  %p5185_p0 = scmp.ne.s32.totalorder %s7013_s4, %s5184_s13  ;;  %s30_s10 = int_to_ptr.vmem [resolvable:$true] %s29_s10 }
   0x3   :  { %p5188_p1 = scmp.lt.u32.totalorder %s5184_s13, %s7013_s4 }
   0x5   :  { %p5190_p2 = pnand %p5188_p1, %p5185_p0 }
   0x7   :  { %5193 = shalt.err (!%p5190_p2)
}
   0x8   :  { %s5194_s18 = scalar_lea.vmem %s30_s10, 512  ;;  %p5199_p4 = scmp.lt.s32.totalorder %s30_s10, %s30_s10 }
   0x9   :  { %p5195_p3 = scmp.ne.s32.totalorder %s30_s10, %s5194_s18  ;;  %p5200_p5 = scmp.lt.s32.totalorder %s5194_s18, %s5194_s18 }
   0xb   :  { %p5201_p6 = por %p5200_p5, %p5199_p4 }
   0xd   :  { %p5202_p7 = pnand %p5201_p6, %p5195_p3 }
   0xf   :  { %5205 = shalt.err (!%p5202_p7)
}
  0x10   :  { %s5233_s19 = smov 128   ;;  %s5234_s20 = smov 8  }
  0x11   :  { %35 = dma.hbm_to_vmem [thread:$0]  %s7013_s4, 512, %s30_s10, [#allocation6], %s5233_s19, %s5233_s19, %s5234_s20  }
  0x12   :  { %5228 = dma.done.wait [#allocation6], 512  }
  0x13   :  { %5229 = vsyncadd [#allocation6], 4294966784  ;;  %v7019_v0 = vmov 0   ;;  %v5314_v1 = vld [vmem:[%s7010_s1 + $0x10] sm:$0xff]  ;;  %v5319_v2 = vld [vmem:[%s7010_s1] sm:$0xff]  ;;  %vm56_vm0 = vcmask 261120  }
  0x14   :  { %5043 = vset.pattern.permute.xlu1 %v7019_v0  ;;  %5042 = vset.pattern.permute.xlu0 %v7019_v0  ;;  %v5326_v3 = vld [vmem:[%s7010_s1 + $0x18] sm:$0xff]  ;;  %v5331_v4 = vld [vmem:[%s7010_s1 + $0x8] sm:$0xff]  ;;  %v5343_v6 = vld [vmem:[%s7010_s1 + $0x20] sm:$0xff]  ;;  %vm1144_vm1 = vcmp.gt.f32.partialorder %v5319_v2, 0.0  ;;  %vm1146_vm2 = vcmp.gt.f32.partialorder %v5314_v1, 0.0  ;;  %s5243_s14 = smov [#allocation8]  }
  0x15   :  { %136 = vperm.xlu1 %5043, %v5314_v1   ;;  %126 = vperm.xlu0 %5042, %v5319_v2   ;;  %v5338_v5 = vld [vmem:[%s7010_s1 + $0x28] sm:$0xff]  ;;  %v5350_v7 = vld [vmem:[%s7010_s1 + $0x38] sm:$0xff]  ;;  %v5355_v8 = vld [vmem:[%s7010_s1 + $0x30] sm:$0xff]  ;;  %vm1147_vm3 = vcmp.gt.f32.partialorder %v5326_v3, 0.0  ;;  %vm1145_vm4 = vcmp.gt.f32.partialorder %v5331_v4, 0.0  ;;  %vm1148_vm6 = vcmp.gt.f32.partialorder %v5343_v6, 0.0 }
  0x16   :  { %v5362_v9 = vld [vmem:[%s7010_s1 + $0x48] sm:$0xff]  ;;  %v5367_v10 = vld [vmem:[%s7010_s1 + $0x40] sm:$0xff]  ;;  %v5374_v11 = vld [vmem:[%s7010_s1 + $0x58] sm:$0xff]  ;;  %vm1149_vm5 = vcmp.gt.f32.partialorder %v5338_v5, 0.0  ;;  %vm1151_vm7 = vcmp.gt.f32.partialorder %v5350_v7, 0.0  ;;  %vm1150_vm8 = vcmp.gt.f32.partialorder %v5355_v8, 0.0 }
  0x17   :  { %v5379_v12 = vld [vmem:[%s7010_s1 + $0x50] sm:$0xff]  ;;  %v5386_v13 = vld [vmem:[%s7010_s1 + $0x68] sm:$0xff]  ;;  %v5391_v14 = vld [vmem:[%s7010_s1 + $0x60] sm:$0xff]  ;;  %vm1153_vm9 = vcmp.gt.f32.partialorder %v5362_v9, 0.0  ;;  %vm1152_vm10 = vcmp.gt.f32.partialorder %v5367_v10, 0.0  ;;  %vm1155_vm11 = vcmp.gt.f32.partialorder %v5374_v11, 0.0 }
  0x18   :  { %v5398_v15 = vld [vmem:[%s7010_s1 + $0x78] sm:$0xff]  ;;  %v5403_v16 = vld [vmem:[%s7010_s1 + $0x70] sm:$0xff]  ;;  %v5410_v17 = vld [vmem:[%s7010_s1 + $0x88] sm:$0xff]  ;;  %vm1154_vm12 = vcmp.gt.f32.partialorder %v5379_v12, 0.0  ;;  %vm1157_vm13 = vcmp.gt.f32.partialorder %v5386_v13, 0.0  ;;  %vm1156_vm14 = vcmp.gt.f32.partialorder %v5391_v14, 0.0 }
  0x19   :  { %141 = vperm.xlu1 %5043, %v5326_v3   ;;  %131 = vperm.xlu0 %5042, %v5331_v4   ;;  %v5415_v18 = vld [vmem:[%s7010_s1 + $0x80] sm:$0xff]  ;;  %v5422_v19 = vld [vmem:[%s7010_s1 + $0x98] sm:$0xff]  ;;  %v5427_v20 = vld [vmem:[%s7010_s1 + $0x90] sm:$0xff]  ;;  %vm1159_vm15 = vcmp.gt.f32.partialorder %v5398_v15, 0.0  ;;  %s4591_s15 = sshll.u32 %s5243_s14, 4  ;;  %s4592_s15 = int_to_ptr.vmem [resolvable:$true] %s4591_s15 }
  0x1a   :  { %v5434_v21 = vld [vmem:[%s7010_s1 + $0xa8] sm:$0xff]  ;;  %v5439_v22 = vld [vmem:[%s7010_s1 + $0xa0] sm:$0xff]  ;;  %v5446_v23 = vld [vmem:[%s7010_s1 + $0xb8] sm:$0xff]  ;;  %s5206_s16 = scalar_lea.vmem %s4592_s15, 256  ;;  %p5211_p9 = scmp.lt.s32.totalorder %s4592_s15, %s4592_s15 }
  0x1b   :  { %7071 = vst [vmem:[#allocation11_spill] sm:$0xff] %v5434_v21  ;;  %7072 = vst [vmem:[#allocation12_spill] sm:$0xff] %v5439_v22  ;;  %v5451_v24 = vld [vmem:[%s7010_s1 + $0xb0] sm:$0xff]  ;;  %v5458_v25 = vld [vmem:[%s7010_s1 + $0xc8] sm:$0xff]  ;;  %p5207_p8 = scmp.ne.s32.totalorder %s4592_s15, %s5206_s16  ;;  %p5212_p10 = scmp.lt.s32.totalorder %s5206_s16, %s5206_s16 }
  0x1c   :  { %7073 = vst [vmem:[#allocation13_spill] sm:$0xff] %v5446_v23  ;;  %7074 = vst [vmem:[#allocation14_spill] sm:$0xff] %v5451_v24  ;;  %v5463_v26 = vld [vmem:[%s7010_s1 + $0xc0] sm:$0xff]  ;;  %v5470_v27 = vld [vmem:[%s7010_s1 + $0xd8] sm:$0xff] }
  0x1d   :  { %151 = vperm.xlu1 %5043, %v5338_v5   ;;  %146 = vperm.xlu0 %5042, %v5343_v6   ;;  %7075 = vst [vmem:[#allocation15_spill] sm:$0xff] %v5458_v25  ;;  %7076 = vst [vmem:[#allocation16_spill] sm:$0xff] %v5463_v26  ;;  %v5475_v28 = vld [vmem:[%s7010_s1 + $0xd0] sm:$0xff]  ;;  %v5482_v29 = vld [vmem:[%s7010_s1 + $0xe8] sm:$0xff]  ;;  %p5213_p11 = por %p5212_p10, %p5211_p9 }
  0x1e   :  { %7077 = vst [vmem:[#allocation17_spill] sm:$0xff] %v5470_v27  ;;  %7078 = vst [vmem:[#allocation18_spill] sm:$0xff] %v5475_v28  ;;  %v5487_v30 = vld [vmem:[%s7010_s1 + $0xe0] sm:$0xff]  ;;  %v5494_v31 = vld [vmem:[%s7010_s1 + $0xf8] sm:$0xff] }
  0x1f   :  { %7079 = vst [vmem:[#allocation19_spill] sm:$0xff] %v5482_v29  ;;  %7080 = vst [vmem:[#allocation20_spill] sm:$0xff] %v5487_v30  ;;  %v5499_v32 = vld [vmem:[%s7010_s1 + $0xf0] sm:$0xff]  ;;  %v92_v34 = vld [vmem:[%s7009_s0] sm:$0xff]  ;;  %s5241_s1 = smov 32   ;;  %p5214_p12 = pnand %p5213_p11, %p5207_p8 }
  0x20   :  { %7081 = vst [vmem:[#allocation21_spill] sm:$0xff] %v5494_v31  ;;  %7082 = vst [vmem:[#allocation22_spill] sm:$0xff] %v5499_v32  ;;  %v94_v33 = vld [vmem:[%s7009_s0 + $0x10] sm:$0xff]  ;;  %v93_v39 = vld [vmem:[%s7009_s0 + $0x8] sm:$0xff] }
  0x21   :  { %161 = vperm.xlu1 %5043, %v5350_v7   ;;  %156 = vperm.xlu0 %5042, %v5355_v8   ;;  %v95_v41 = vld [vmem:[%s7009_s0 + $0x18] sm:$0xff]  ;;  %v96_v46 = vld [vmem:[%s7009_s0 + $0x20] sm:$0xff]  ;;  %v97_v49 = vld [vmem:[%s7009_s0 + $0x28] sm:$0xff] }
  0x22   :  { %v98_v53 = vld [vmem:[%s7009_s0 + $0x30] sm:$0xff]  ;;  %v99_v57 = vld [vmem:[%s7009_s0 + $0x38] sm:$0xff]  ;;  %v100_v61 = vld [vmem:[%s7009_s0 + $0x40] sm:$0xff] }
  0x25   :  { %171 = vperm.xlu1 %5043, %v5362_v9   ;;  %166 = vperm.xlu0 %5042, %v5367_v10  }
  0x29   :  { %181 = vperm.xlu1 %5043, %v5374_v11   ;;  %176 = vperm.xlu0 %5042, %v5379_v12  }
  0x2d   :  { %191 = vperm.xlu1 %5043, %v5386_v13   ;;  %186 = vperm.xlu0 %5042, %v5391_v14  }
  0x31   :  { %201 = vperm.xlu1 %5043, %v5398_v15   ;;  %196 = vperm.xlu0 %5042, %v5403_v16  }
  0x35   :  { %211 = vperm.xlu1 %5043, %v5410_v17   ;;  %206 = vperm.xlu0 %5042, %v5415_v18  }
  0x39   :  { %221 = vperm.xlu1 %5043, %v5422_v19   ;;  %216 = vperm.xlu0 %5042, %v5427_v20  }
  0x3d   :  { %231 = vperm.xlu1 %5043, %v5434_v21   ;;  %226 = vperm.xlu0 %5042, %v5439_v22  }
  0x41   :  { %241 = vperm.xlu1 %5043, %v5446_v23   ;;  %236 = vperm.xlu0 %5042, %v5451_v24  }
  0x45   :  { %251 = vperm.xlu1 %5043, %v5458_v25   ;;  %246 = vperm.xlu0 %5042, %v5463_v26  }
  0x49   :  { %261 = vperm.xlu1 %5043, %v5470_v27   ;;  %256 = vperm.xlu0 %5042, %v5475_v28  }
  0x4d   :  { %271 = vperm.xlu1 %5043, %v5482_v29   ;;  %266 = vperm.xlu0 %5042, %v5487_v30  }
  0x51   :  { %281 = vperm.xlu1 %5043, %v5494_v31   ;;  %276 = vperm.xlu0 %5042, %v5499_v32  }
  0x94   :  { %v137_v35 = vpop.permute.xlu1 %136  ;;  %v127_v36 = vpop.permute.xlu0 %126 }
  0x95   :  { %v5509_v37 = vmul.f32 %v137_v35, %v94_v33  ;;  %v5511_v38 = vmul.f32 %v127_v36, %v92_v34  ;;  %v101_v34 = vld [vmem:[%s7009_s0 + $0x48] sm:$0xff] }
  0x97   :  { %v317_v40 = vsel %vm56_vm0, %v5511_v38, 0.0  ;;  %v323_v45 = vsel %vm56_vm0, %v5509_v37, 0.0 }
  0x98   :  { %v142_v42 = vpop.permute.xlu1 %141  ;;  %318 = vadd.xlane.f32.xlu0 %v317_v40  ;;  %v132_v43 = vpop.permute.xlu0 %131  ;;  %v102_v40 = vld [vmem:[%s7009_s0 + $0x50] sm:$0xff] }
  0x99   :  { %v5521_v44 = vmul.f32 %v132_v43, %v93_v39  ;;  %v5528_v47 = vmul.f32 %v142_v42, %v95_v41 }
  0x9b   :  { %v320_v48 = vsel %vm56_vm0, %v5521_v44, 0.0  ;;  %v326_v55 = vsel %vm56_vm0, %v5528_v47, 0.0 }
  0x9c   :  { %v152_v50 = vpop.permute.xlu1 %151  ;;  %324 = vadd.xlane.f32.xlu0 %v323_v45  ;;  %321 = vadd.xlane.f32.xlu1 %v320_v48  ;;  %v147_v51 = vpop.permute.xlu0 %146  ;;  %v103_v45 = vld [vmem:[%s7009_s0 + $0x58] sm:$0xff] }
  0x9d   :  { %v5535_v52 = vmul.f32 %v147_v51, %v96_v46  ;;  %v5540_v54 = vmul.f32 %v152_v50, %v97_v49  ;;  %v104_v50 = vld [vmem:[%s7009_s0 + $0x60] sm:$0xff] }
  0x9f   :  { %v329_v56 = vsel %vm56_vm0, %v5535_v52, 0.0  ;;  %v332_v63 = vsel %vm56_vm0, %v5540_v54, 0.0 }
  0xa0   :  { %v162_v58 = vpop.permute.xlu1 %161  ;;  %327 = vadd.xlane.f32.xlu0 %v326_v55  ;;  %330 = vadd.xlane.f32.xlu1 %v329_v56  ;;  %v157_v59 = vpop.permute.xlu0 %156  ;;  %v105_v56 = vld [vmem:[%s7009_s0 + $0x68] sm:$0xff] }
  0xa1   :  { %v5549_v60 = vmul.f32 %v157_v59, %v98_v53  ;;  %v5554_v62 = vmul.f32 %v162_v58, %v99_v57 }
  0xa3   :  { %v335_v33 = vsel %vm56_vm0, %v5549_v60, 0.0  ;;  %v338_v42 = vsel %vm56_vm0, %v5554_v62, 0.0 }
  0xa4   :  { %v172_v35 = vpop.permute.xlu1 %171  ;;  %333 = vadd.xlane.f32.xlu0 %v332_v63  ;;  %336 = vadd.xlane.f32.xlu1 %v335_v33  ;;  %v167_v36 = vpop.permute.xlu0 %166 }
  0xa5   :  { %v5563_v39 = vmul.f32 %v167_v36, %v100_v61  ;;  %v5568_v41 = vmul.f32 %v172_v35, %v101_v34  ;;  %v106_v61 = vld [vmem:[%s7009_s0 + $0x70] sm:$0xff]  ;;  %v107_v35 = vld [vmem:[%s7009_s0 + $0x78] sm:$0xff] }
  0xa7   :  { %v341_v43 = vsel %vm56_vm0, %v5563_v39, 0.0  ;;  %v344_v53 = vsel %vm56_vm0, %v5568_v41, 0.0 }
  0xa8   :  { %v182_v46 = vpop.permute.xlu1 %181  ;;  %339 = vadd.xlane.f32.xlu0 %v338_v42  ;;  %342 = vadd.xlane.f32.xlu1 %v341_v43  ;;  %v177_v48 = vpop.permute.xlu0 %176  ;;  %v108_v43 = vld [vmem:[%s7009_s0 + $0x80] sm:$0xff] }
  0xa9   :  { %v5577_v49 = vmul.f32 %v177_v48, %v102_v40  ;;  %v5582_v51 = vmul.f32 %v182_v46, %v103_v45 }
  0xab   :  { %v347_v55 = vsel %vm56_vm0, %v5577_v49, 0.0  ;;  %v350_v33 = vsel %vm56_vm0, %v5582_v51, 0.0 }
  0xac   :  { %v192_v57 = vpop.permute.xlu1 %191  ;;  %345 = vadd.xlane.f32.xlu0 %v344_v53  ;;  %348 = vadd.xlane.f32.xlu1 %v347_v55  ;;  %v187_v58 = vpop.permute.xlu0 %186 }
  0xad   :  { %v5591_v59 = vmul.f32 %v187_v58, %v104_v50  ;;  %v5596_v63 = vmul.f32 %v192_v57, %v105_v56  ;;  %v109_v50 = vld [vmem:[%s7009_s0 + $0x88] sm:$0xff]  ;;  %v110_v57 = vld [vmem:[%s7009_s0 + $0x90] sm:$0xff] }
  0xaf   :  { %v353_v34 = vsel %vm56_vm0, %v5591_v59, 0.0  ;;  %v356_v46 = vsel %vm56_vm0, %v5596_v63, 0.0 }
  0xb0   :  { %v202_v36 = vpop.permute.xlu1 %201  ;;  %351 = vadd.xlane.f32.xlu0 %v350_v33  ;;  %354 = vadd.xlane.f32.xlu1 %v353_v34  ;;  %v197_v40 = vpop.permute.xlu0 %196  ;;  %v111_v34 = vld [vmem:[%s7009_s0 + $0x98] sm:$0xff] }
  0xb1   :  { %v5605_v42 = vmul.f32 %v197_v40, %v106_v61  ;;  %v5610_v45 = vmul.f32 %v202_v36, %v107_v35 }
  0xb3   :  { %v359_v48 = vsel %vm56_vm0, %v5605_v42, 0.0  ;;  %v362_v61 = vsel %vm56_vm0, %v5610_v45, 0.0 }
  0xb4   :  { %v212_v53 = vpop.permute.xlu1 %211  ;;  %357 = vadd.xlane.f32.xlu0 %v356_v46  ;;  %360 = vadd.xlane.f32.xlu1 %v359_v48  ;;  %v207_v55 = vpop.permute.xlu0 %206 }
  0xb5   :  { %v5619_v56 = vmul.f32 %v207_v55, %v108_v43  ;;  %v5624_v58 = vmul.f32 %v212_v53, %v109_v50  ;;  %v112_v43 = vld [vmem:[%s7009_s0 + $0xa0] sm:$0xff]  ;;  %v113_v53 = vld [vmem:[%s7009_s0 + $0xa8] sm:$0xff] }
  0xb7   :  { %v365_v33 = vsel %vm56_vm0, %v5619_v56, 0.0  ;;  %v368_v48 = vsel %vm56_vm0, %v5624_v58, 0.0 }
  0xb8   :  { %v222_v35 = vpop.permute.xlu1 %221  ;;  %363 = vadd.xlane.f32.xlu0 %v362_v61  ;;  %366 = vadd.xlane.f32.xlu1 %v365_v33  ;;  %v217_v36 = vpop.permute.xlu0 %216  ;;  %v114_v33 = vld [vmem:[%s7009_s0 + $0xb0] sm:$0xff] }
  0xb9   :  { %v5633_v40 = vmul.f32 %v217_v36, %v110_v57  ;;  %v5638_v46 = vmul.f32 %v222_v35, %v111_v34 }
  0xbb   :  { %v371_v50 = vsel %vm56_vm0, %v5633_v40, 0.0  ;;  %v374_v35 = vsel %vm56_vm0, %v5638_v46, 0.0 }
  0xbc   :  { %v232_v55 = vpop.permute.xlu1 %231  ;;  %369 = vadd.xlane.f32.xlu0 %v368_v48  ;;  %372 = vadd.xlane.f32.xlu1 %v371_v50  ;;  %v227_v57 = vpop.permute.xlu0 %226  ;;  %v115_v48 = vld [vmem:[%s7009_s0 + $0xb8] sm:$0xff] }
  0xbd   :  { %v5647_v61 = vmul.f32 %v227_v57, %v112_v43  ;;  %v5652_v34 = vmul.f32 %v232_v55, %v113_v53  ;;  %v116_v53 = vld [vmem:[%s7009_s0 + $0xc0] sm:$0xff] }
  0xbf   :  { %v377_v36 = vsel %vm56_vm0, %v5647_v61, 0.0  ;;  %v380_v0 = vsel %vm56_vm0, %v5652_v34, 0.0 }
  0xc0   :  { %v242_v50 = vpop.permute.xlu1 %241  ;;  %375 = vadd.xlane.f32.xlu0 %v374_v35  ;;  %378 = vadd.xlane.f32.xlu1 %v377_v36  ;;  %v237_v43 = vpop.permute.xlu0 %236  ;;  %v117_v35 = vld [vmem:[%s7009_s0 + $0xc8] sm:$0xff] }
  0xc1   :  { %v5661_v57 = vmul.f32 %v237_v43, %v114_v33  ;;  %v5666_v55 = vmul.f32 %v242_v50, %v115_v48  ;;  %v118_v48 = vld [vmem:[%s7009_s0 + $0xd0] sm:$0xff] }
  0xc3   :  { %v383_v32 = vsel %vm56_vm0, %v5661_v57, 0.0  ;;  %v386_v31 = vsel %vm56_vm0, %v5666_v55, 0.0 }
  0xc4   :  { %v252_v36 = vpop.permute.xlu1 %251  ;;  %381 = vadd.xlane.f32.xlu0 %v380_v0  ;;  %384 = vadd.xlane.f32.xlu1 %v383_v32  ;;  %v247_v33 = vpop.permute.xlu0 %246  ;;  %v119_v0 = vld [vmem:[%s7009_s0 + $0xd8] sm:$0xff] }
  0xc5   :  { %v5675_v43 = vmul.f32 %v247_v33, %v116_v53  ;;  %v5680_v50 = vmul.f32 %v252_v36, %v117_v35  ;;  %v120_v35 = vld [vmem:[%s7009_s0 + $0xe0] sm:$0xff] }
  0xc7   :  { %v389_v30 = vsel %vm56_vm0, %v5675_v43, 0.0  ;;  %v392_v29 = vsel %vm56_vm0, %v5680_v50, 0.0 }
  0xc8   :  { %v262_v32 = vpop.permute.xlu1 %261  ;;  %387 = vadd.xlane.f32.xlu0 %v386_v31  ;;  %390 = vadd.xlane.f32.xlu1 %v389_v30  ;;  %v257_v53 = vpop.permute.xlu0 %256  ;;  %v121_v31 = vld [vmem:[%s7009_s0 + $0xe8] sm:$0xff] }
  0xc9   :  { %v5689_v33 = vmul.f32 %v257_v53, %v118_v48  ;;  %v5694_v36 = vmul.f32 %v262_v32, %v119_v0  ;;  %v122_v0 = vld [vmem:[%s7009_s0 + $0xf0] sm:$0xff] }
  0xcb   :  { %v395_v28 = vsel %vm56_vm0, %v5689_v33, 0.0  ;;  %v398_v27 = vsel %vm56_vm0, %v5694_v36, 0.0 }
  0xcc   :  { %v272_v30 = vpop.permute.xlu1 %271  ;;  %393 = vadd.xlane.f32.xlu0 %v392_v29  ;;  %396 = vadd.xlane.f32.xlu1 %v395_v28  ;;  %v267_v48 = vpop.permute.xlu0 %266  ;;  %v123_v29 = vld [vmem:[%s7009_s0 + $0xf8] sm:$0xff] }
  0xcd   :  { %v5703_v53 = vmul.f32 %v267_v48, %v120_v35  ;;  %v5708_v32 = vmul.f32 %v272_v30, %v121_v31 }
  0xcf   :  { %v401_v26 = vsel %vm56_vm0, %v5703_v53, 0.0  ;;  %v404_v31 = vsel %vm56_vm0, %v5708_v32, 0.0 }
  0xd0   :  { %v282_v28 = vpop.permute.xlu1 %281  ;;  %399 = vadd.xlane.f32.xlu0 %v398_v27  ;;  %402 = vadd.xlane.f32.xlu1 %v401_v26  ;;  %v277_v35 = vpop.permute.xlu0 %276 }
  0xd1   :  { %v5717_v48 = vmul.f32 %v277_v35, %v122_v0  ;;  %v5719_v25 = vmul.f32 %v282_v28, %v123_v29 }
  0xd3   :  { %v407_v30 = vsel %vm56_vm0, %v5717_v48, 0.0  ;;  %v410_v24 = vsel %vm56_vm0, %v5719_v25, 0.0 }
  0xd4   :  { %405 = vadd.xlane.f32.xlu0 %v404_v31  ;;  %408 = vadd.xlane.f32.xlu1 %v407_v30 }
  0xd8   :  { %411 = vadd.xlane.f32.xlu0 %v410_v24 }
 0x125   :  { %v319_v23 = vpop.xlane.xlu0 %318 }
 0x126   :  { %v414_v27 = vmul.f32 0.03125, %v319_v23 }
 0x128   :  { %v5728_v26 = vsub.f32 %v5511_v38, %v414_v27 }
 0x129   :  { %v322_v0 = vpop.xlane.xlu1 %321  ;;  %v325_v29 = vpop.xlane.xlu0 %324 }
 0x12a   :  { %7083 = vst [vmem:[#allocation23_spill] sm:$0xff] %v5728_v26  ;;  %v415_v28 = vmul.f32 0.03125, %v322_v0  ;;  %v416_v35 = vmul.f32 0.03125, %v325_v29  ;;  %v478_v22 = vmul.f32 %v5728_v26, %v5728_v26 }
 0x12c   :  { %v5733_v21 = vsub.f32 %v5521_v44, %v415_v28  ;;  %v5736_v31 = vsub.f32 %v5509_v37, %v416_v35  ;;  %v510_v24 = vsel %vm56_vm0, %v478_v22, 0.0 }
 0x12d   :  { %v331_v30 = vpop.xlane.xlu1 %330  ;;  %511 = vadd.xlane.f32.xlu1 %v510_v24  ;;  %v328_v23 = vpop.xlane.xlu0 %327 }
 0x12e   :  { %v418_v38 = vmul.f32 0.03125, %v331_v30  ;;  %v417_v27 = vmul.f32 0.03125, %v328_v23  ;;  %v479_v0 = vmul.f32 %v5733_v21, %v5733_v21  ;;  %v480_v29 = vmul.f32 %v5736_v31, %v5736_v31 }
 0x130   :  { %v5744_v26 = vsub.f32 %v5535_v52, %v418_v38  ;;  %v5747_v44 = vsub.f32 %v5528_v47, %v417_v27  ;;  %v513_v37 = vsel %vm56_vm0, %v479_v0, 0.0  ;;  %v516_v22 = vsel %vm56_vm0, %v480_v29, 0.0 }
 0x131   :  { %514 = vadd.xlane.f32.xlu0 %v513_v37  ;;  %v337_v28 = vpop.xlane.xlu1 %336  ;;  %517 = vadd.xlane.f32.xlu1 %v516_v22  ;;  %v334_v35 = vpop.xlane.xlu0 %333 }
 0x132   :  { %v420_v24 = vmul.f32 0.03125, %v337_v28  ;;  %v419_v30 = vmul.f32 0.03125, %v334_v35  ;;  %v482_v23 = vmul.f32 %v5744_v26, %v5744_v26  ;;  %v481_v52 = vmul.f32 %v5747_v44, %v5747_v44 }
 0x134   :  { %v5756_v38 = vsub.f32 %v5549_v60, %v420_v24  ;;  %v5759_v47 = vsub.f32 %v5540_v54, %v419_v30  ;;  %v522_v27 = vsel %vm56_vm0, %v482_v23, 0.0  ;;  %v519_v0 = vsel %vm56_vm0, %v481_v52, 0.0 }
 0x135   :  { %v343_v29 = vpop.xlane.xlu1 %342  ;;  %523 = vadd.xlane.f32.xlu1 %v522_v27  ;;  %520 = vadd.xlane.f32.xlu0 %v519_v0  ;;  %v340_v37 = vpop.xlane.xlu0 %339 }
 0x136   :  { %v422_v22 = vmul.f32 0.03125, %v343_v29  ;;  %v421_v28 = vmul.f32 0.03125, %v340_v37  ;;  %v484_v35 = vmul.f32 %v5756_v38, %v5756_v38  ;;  %v483_v60 = vmul.f32 %v5759_v47, %v5759_v47 }
 0x138   :  { %v5768_v24 = vsub.f32 %v5563_v39, %v422_v22  ;;  %v5771_v54 = vsub.f32 %v5554_v62, %v421_v28  ;;  %v528_v30 = vsel %vm56_vm0, %v484_v35, 0.0  ;;  %v525_v23 = vsel %vm56_vm0, %v483_v60, 0.0 }
 0x139   :  { %v349_v52 = vpop.xlane.xlu1 %348  ;;  %529 = vadd.xlane.f32.xlu1 %v528_v30  ;;  %526 = vadd.xlane.f32.xlu0 %v525_v23  ;;  %v346_v27 = vpop.xlane.xlu0 %345 }
 0x13a   :  { %v424_v0 = vmul.f32 0.03125, %v349_v52  ;;  %v423_v29 = vmul.f32 0.03125, %v346_v27  ;;  %v486_v37 = vmul.f32 %v5768_v24, %v5768_v24  ;;  %v485_v39 = vmul.f32 %v5771_v54, %v5771_v54 }
 0x13c   :  { %v5780_v22 = vsub.f32 %v5577_v49, %v424_v0  ;;  %v5783_v62 = vsub.f32 %v5568_v41, %v423_v29  ;;  %v534_v28 = vsel %vm56_vm0, %v486_v37, 0.0  ;;  %v531_v35 = vsel %vm56_vm0, %v485_v39, 0.0 }
 0x13d   :  { %v355_v60 = vpop.xlane.xlu1 %354  ;;  %535 = vadd.xlane.f32.xlu1 %v534_v28  ;;  %532 = vadd.xlane.f32.xlu0 %v531_v35  ;;  %v352_v30 = vpop.xlane.xlu0 %351 }
 0x13e   :  { %v426_v23 = vmul.f32 0.03125, %v355_v60  ;;  %v425_v52 = vmul.f32 0.03125, %v352_v30  ;;  %v488_v27 = vmul.f32 %v5780_v22, %v5780_v22  ;;  %v487_v49 = vmul.f32 %v5783_v62, %v5783_v62 }
 0x140   :  { %v5792_v0 = vsub.f32 %v5591_v59, %v426_v23  ;;  %v5795_v41 = vsub.f32 %v5582_v51, %v425_v52  ;;  %v540_v29 = vsel %vm56_vm0, %v488_v27, 0.0  ;;  %v537_v37 = vsel %vm56_vm0, %v487_v49, 0.0 }
 0x141   :  { %v361_v39 = vpop.xlane.xlu1 %360  ;;  %541 = vadd.xlane.f32.xlu1 %v540_v29  ;;  %538 = vadd.xlane.f32.xlu0 %v537_v37  ;;  %v358_v28 = vpop.xlane.xlu0 %357 }
 0x142   :  { %v428_v35 = vmul.f32 0.03125, %v361_v39  ;;  %v427_v60 = vmul.f32 0.03125, %v358_v28  ;;  %v490_v30 = vmul.f32 %v5792_v0, %v5792_v0  ;;  %v489_v59 = vmul.f32 %v5795_v41, %v5795_v41 }
 0x144   :  { %v5804_v23 = vsub.f32 %v5605_v42, %v428_v35  ;;  %v5807_v51 = vsub.f32 %v5596_v63, %v427_v60  ;;  %v546_v52 = vsel %vm56_vm0, %v490_v30, 0.0  ;;  %v543_v27 = vsel %vm56_vm0, %v489_v59, 0.0 }
 0x145   :  { %v367_v49 = vpop.xlane.xlu1 %366  ;;  %547 = vadd.xlane.f32.xlu1 %v546_v52  ;;  %544 = vadd.xlane.f32.xlu0 %v543_v27  ;;  %v364_v29 = vpop.xlane.xlu0 %363 }
 0x146   :  { %7084 = vst [vmem:[#allocation24_spill] sm:$0xff] %v5807_v51  ;;  %v430_v37 = vmul.f32 0.03125, %v367_v49  ;;  %v429_v39 = vmul.f32 0.03125, %v364_v29  ;;  %v492_v28 = vmul.f32 %v5804_v23, %v5804_v23  ;;  %v491_v42 = vmul.f32 %v5807_v51, %v5807_v51  ;;  %v813_v51 = vld [vmem:[#allocation5 + $0x8] sm:$0xff] }
 0x148   :  { %v5816_v35 = vsub.f32 %v5619_v56, %v430_v37  ;;  %v5819_v63 = vsub.f32 %v5610_v45, %v429_v39  ;;  %v552_v60 = vsel %vm56_vm0, %v492_v28, 0.0  ;;  %v549_v30 = vsel %vm56_vm0, %v491_v42, 0.0  ;;  %v812_v37 = vld [vmem:[#allocation5] sm:$0xff] }
 0x149   :  { %v373_v59 = vpop.xlane.xlu1 %372  ;;  %553 = vadd.xlane.f32.xlu1 %v552_v60  ;;  %550 = vadd.xlane.f32.xlu0 %v549_v30  ;;  %v370_v52 = vpop.xlane.xlu0 %369  ;;  %v4974_v45 = vpack.c.bf16 %v813_v51, %v812_v37  ;;  %v814_v51 = vld [vmem:[#allocation5 + $0x10] sm:$0xff] }
 0x14a   :  { %7085 = vst [vmem:[#allocation25_spill] sm:$0xff] %v5816_v35  ;;  %7086 = vst [vmem:[#allocation26_spill] sm:$0xff] %v5819_v63  ;;  %v432_v27 = vmul.f32 0.03125, %v373_v59  ;;  %v431_v49 = vmul.f32 0.03125, %v370_v52  ;;  %v494_v29 = vmul.f32 %v5816_v35, %v5816_v35  ;;  %v493_v56 = vmul.f32 %v5819_v63, %v5819_v63 }
 0x14b   :  { %4975 = vmatprep.subr.bf16.mxu0 %v4974_v45 }
 0x14c   :  { %v5828_v39 = vsub.f32 %v5633_v40, %v432_v27  ;;  %v5831_v28 = vsub.f32 %v5624_v58, %v431_v49  ;;  %v558_v42 = vsel %vm56_vm0, %v494_v29, 0.0  ;;  %v555_v60 = vsel %vm56_vm0, %v493_v56, 0.0  ;;  %v815_v58 = vld [vmem:[#allocation5 + $0x18] sm:$0xff]  ;;  %4977 = vmatpush3.bf16.msra.mxu0 %v4974_v45 }
 0x14d   :  { %v379_v30 = vpop.xlane.xlu1 %378  ;;  %559 = vadd.xlane.f32.xlu1 %v558_v42  ;;  %556 = vadd.xlane.f32.xlu0 %v555_v60  ;;  %v376_v59 = vpop.xlane.xlu0 %375  ;;  %v4978_v27 = vpack.c.bf16 %v815_v58, %v814_v51 }
 0x14e   :  { %v434_v52 = vmul.f32 0.03125, %v379_v30  ;;  %v433_v35 = vmul.f32 0.03125, %v376_v59  ;;  %v496_v63 = vmul.f32 %v5828_v39, %v5828_v39  ;;  %v495_v40 = vmul.f32 %v5831_v28, %v5831_v28 }
 0x14f   :  { %4979 = vmatprep.subr.bf16.mxu0 %v4978_v27 }
 0x150   :  { %v5840_v49 = vsub.f32 %v5647_v61, %v434_v52  ;;  %v5843_v29 = vsub.f32 %v5638_v46, %v433_v35  ;;  %v564_v56 = vsel %vm56_vm0, %v496_v63, 0.0  ;;  %v561_v37 = vsel %vm56_vm0, %v495_v40, 0.0  ;;  %4981 = vmatpush3.bf16.msra.mxu0 %v4978_v27 }
 0x151   :  { %v385_v42 = vpop.xlane.xlu1 %384  ;;  %565 = vadd.xlane.f32.xlu1 %v564_v56  ;;  %562 = vadd.xlane.f32.xlu0 %v561_v37  ;;  %v382_v60 = vpop.xlane.xlu0 %381 }
 0x152   :  { %v436_v30 = vmul.f32 0.03125, %v385_v42  ;;  %v435_v59 = vmul.f32 0.03125, %v382_v60  ;;  %v498_v45 = vmul.f32 %v5840_v49, %v5840_v49  ;;  %v497_v61 = vmul.f32 %v5843_v29, %v5843_v29 }
 0x154   :  { %v5852_v46 = vsub.f32 %v5661_v57, %v436_v30  ;;  %v5855_v35 = vsub.f32 %v5652_v34, %v435_v59  ;;  %v570_v63 = vsel %vm56_vm0, %v498_v45, 0.0  ;;  %v567_v52 = vsel %vm56_vm0, %v497_v61, 0.0 }
 0x155   :  { %v391_v40 = vpop.xlane.xlu1 %390  ;;  %571 = vadd.xlane.f32.xlu1 %v570_v63  ;;  %568 = vadd.xlane.f32.xlu0 %v567_v52  ;;  %v388_v51 = vpop.xlane.xlu0 %387 }
 0x156   :  { %v438_v58 = vmul.f32 0.03125, %v391_v40  ;;  %v437_v56 = vmul.f32 0.03125, %v388_v51  ;;  %v500_v37 = vmul.f32 %v5852_v46, %v5852_v46  ;;  %v499_v57 = vmul.f32 %v5855_v35, %v5855_v35 }
 0x158   :  { %v5864_v27 = vsub.f32 %v5675_v43, %v438_v58  ;;  %v5867_v34 = vsub.f32 %v5666_v55, %v437_v56  ;;  %v576_v42 = vsel %vm56_vm0, %v500_v37, 0.0  ;;  %v573_v60 = vsel %vm56_vm0, %v499_v57, 0.0 }
 0x159   :  { %v397_v30 = vpop.xlane.xlu1 %396  ;;  %577 = vadd.xlane.f32.xlu1 %v576_v42  ;;  %574 = vadd.xlane.f32.xlu0 %v573_v60  ;;  %v394_v59 = vpop.xlane.xlu0 %393 }
 0x15a   :  { %v440_v45 = vmul.f32 0.03125, %v397_v30  ;;  %v439_v61 = vmul.f32 0.03125, %v394_v59  ;;  %v502_v63 = vmul.f32 %v5864_v27, %v5864_v27  ;;  %v501_v43 = vmul.f32 %v5867_v34, %v5867_v34 }
 0x15c   :  { %v5876_v52 = vsub.f32 %v5689_v33, %v440_v45  ;;  %v5879_v55 = vsub.f32 %v5680_v50, %v439_v61  ;;  %v582_v40 = vsel %vm56_vm0, %v502_v63, 0.0  ;;  %v579_v51 = vsel %vm56_vm0, %v501_v43, 0.0 }
 0x15d   :  { %v403_v58 = vpop.xlane.xlu1 %402  ;;  %583 = vadd.xlane.f32.xlu1 %v582_v40  ;;  %580 = vadd.xlane.f32.xlu0 %v579_v51  ;;  %v400_v56 = vpop.xlane.xlu0 %399 }
 0x15e   :  { %v442_v37 = vmul.f32 0.03125, %v403_v58  ;;  %v441_v57 = vmul.f32 0.03125, %v400_v56  ;;  %v504_v42 = vmul.f32 %v5876_v52, %v5876_v52  ;;  %v503_v33 = vmul.f32 %v5879_v55, %v5879_v55 }
 0x160   :  { %v5888_v60 = vsub.f32 %v5703_v53, %v442_v37  ;;  %v5891_v50 = vsub.f32 %v5694_v36, %v441_v57  ;;  %v588_v30 = vsel %vm56_vm0, %v504_v42, 0.0  ;;  %v585_v59 = vsel %vm56_vm0, %v503_v33, 0.0 }
 0x161   :  { %v409_v45 = vpop.xlane.xlu1 %408  ;;  %589 = vadd.xlane.f32.xlu1 %v588_v30  ;;  %586 = vadd.xlane.f32.xlu0 %v585_v59  ;;  %v406_v61 = vpop.xlane.xlu0 %405 }
 0x162   :  { %v444_v63 = vmul.f32 0.03125, %v409_v45  ;;  %v443_v43 = vmul.f32 0.03125, %v406_v61  ;;  %v506_v40 = vmul.f32 %v5888_v60, %v5888_v60  ;;  %v505_v53 = vmul.f32 %v5891_v50, %v5891_v50 }
 0x163   :  { %v7087_v61 = vmov 0  }
 0x164   :  { %v5900_v51 = vsub.f32 %v5717_v48, %v444_v63  ;;  %v5903_v36 = vsub.f32 %v5708_v32, %v443_v43  ;;  %v594_v58 = vsel %vm56_vm0, %v506_v40, 0.0  ;;  %v591_v56 = vsel %vm56_vm0, %v505_v53, 0.0  ;;  %v7089_v53 = vld [vmem:[#allocation12_spill] sm:$0xff] }
 0x165   :  { %595 = vadd.xlane.f32.xlu1 %v594_v58  ;;  %592 = vadd.xlane.f32.xlu0 %v591_v56  ;;  %v412_v37 = vpop.xlane.xlu0 %411  ;;  %v1176_v63 = vsel %vm1144_vm1, 1, %v7087_v61  ;;  %v1179_v43 = vsel %vm1147_vm3, 1, %v7087_v61  ;;  %v1177_v40 = vsel %vm1145_vm4, 1, %v7087_v61  ;;  %v1181_v1 = vsel %vm1149_vm5, 1, %v7087_v61  ;;  %v7090_v58 = vld [vmem:[#allocation13_spill] sm:$0xff]  ;;  %v7091_v56 = vld [vmem:[#allocation14_spill] sm:$0xff] }
 0x166   :  { %v445_v57 = vmul.f32 0.03125, %v412_v37  ;;  %v508_v42 = vmul.f32 %v5900_v51, %v5900_v51  ;;  %v507_v33 = vmul.f32 %v5903_v36, %v5903_v36  ;;  %v1180_v2 = vsel %vm1148_vm6, 1, %v7087_v61  ;;  %v7092_v37 = vld [vmem:[#allocation15_spill] sm:$0xff] }
 0x167   :  { %v1183_v3 = vsel %vm1151_vm7, 1, %v7087_v61  ;;  %v1182_v4 = vsel %vm1150_vm8, 1, %v7087_v61  ;;  %v1185_v5 = vsel %vm1153_vm9, 1, %v7087_v61  ;;  %v1184_v6 = vsel %vm1152_vm10, 1, %v7087_v61 }
 0x168   :  { %v5912_v48 = vsub.f32 %v5719_v25, %v445_v57  ;;  %v600_v32 = vsel %vm56_vm0, %v508_v42, 0.0  ;;  %v597_v30 = vsel %vm56_vm0, %v507_v33, 0.0  ;;  %v1178_v25 = vsel %vm1146_vm2, 1, %v7087_v61  ;;  %v7093_v42 = vld [vmem:[#allocation16_spill] sm:$0xff] }
 0x169   :  { %601 = vadd.xlane.f32.xlu1 %v600_v32  ;;  %598 = vadd.xlane.f32.xlu0 %v597_v30  ;;  %v1187_v7 = vsel %vm1155_vm11, 1, %v7087_v61  ;;  %v1186_v8 = vsel %vm1154_vm12, 1, %v7087_v61  ;;  %v1189_v9 = vsel %vm1157_vm13, 1, %v7087_v61  ;;  %v1188_v10 = vsel %vm1156_vm14, 1, %v7087_v61  ;;  %v7094_v32 = vld [vmem:[#allocation17_spill] sm:$0xff] }
 0x16a   :  { %v509_v59 = vmul.f32 %v5912_v48, %v5912_v48  ;;  %vm1158_vm1 = vcmp.gt.f32.partialorder %v5403_v16, 0.0  ;;  %v1191_v11 = vsel %vm1159_vm15, 1, %v7087_v61  ;;  %vm1161_vm2 = vcmp.gt.f32.partialorder %v5410_v17, 0.0  ;;  %v7088_v16 = vld [vmem:[#allocation11_spill] sm:$0xff] }
 0x16b   :  { %v1190_v12 = vsel %vm1158_vm1, 1, %v7087_v61  ;;  %vm1160_vm3 = vcmp.gt.f32.partialorder %v5415_v18, 0.0  ;;  %v1193_v13 = vsel %vm1161_vm2, 1, %v7087_v61  ;;  %vm1163_vm4 = vcmp.gt.f32.partialorder %v5422_v19, 0.0 }
 0x16c   :  { %v603_v45 = vsel %vm56_vm0, %v509_v59, 0.0  ;;  %v1192_v14 = vsel %vm1160_vm3, 1, %v7087_v61  ;;  %vm1162_vm5 = vcmp.gt.f32.partialorder %v5427_v20, 0.0  ;;  %v1195_v15 = vsel %vm1163_vm4, 1, %v7087_v61  ;;  %v7095_v59 = vld [vmem:[#allocation18_spill] sm:$0xff] }
 0x16d   :  { %604 = vadd.xlane.f32.xlu0 %v603_v45  ;;  %vm1165_vm6 = vcmp.gt.f32.partialorder %v7088_v16, 0.0  ;;  %v1194_v17 = vsel %vm1162_vm5, 1, %v7087_v61  ;;  %vm1164_vm7 = vcmp.gt.f32.partialorder %v7089_v53, 0.0  ;;  %vm1167_vm8 = vcmp.gt.f32.partialorder %v7090_v58, 0.0 }
 0x16e   :  { %v1197_v18 = vsel %vm1165_vm6, 1, %v7087_v61  ;;  %v1196_v19 = vsel %vm1164_vm7, 1, %v7087_v61  ;;  %vm1166_vm9 = vcmp.gt.f32.partialorder %v7091_v56, 0.0  ;;  %v1199_v20 = vsel %vm1167_vm8, 1, %v7087_v61 }
 0x16f   :  { %vm1169_vm10 = vcmp.gt.f32.partialorder %v7092_v37, 0.0  ;;  %v1198_v57 = vsel %vm1166_vm9, 1, %v7087_v61  ;;  %vm1168_vm11 = vcmp.gt.f32.partialorder %v7093_v42, 0.0  ;;  %vm1171_vm12 = vcmp.gt.f32.partialorder %v7094_v32, 0.0 }
 0x170   :  { %v1201_v33 = vsel %vm1169_vm10, 1, %v7087_v61  ;;  %v1200_v30 = vsel %vm1168_vm11, 1, %v7087_v61  ;;  %vm1170_vm13 = vcmp.gt.f32.partialorder %v7095_v59, 0.0  ;;  %v1203_v45 = vsel %vm1171_vm12, 1, %v7087_v61  ;;  %v7100_v59 = vld [vmem:[#allocation23_spill] sm:$0xff] }
 0x171   :  { %vm51_vm3 = vcmask 31744   ;;  %vm1368_vm6 = vcmask 294144  }
 0x17a   :  { %1209 = vperm.xlu1 %5043, %v1176_v63   ;;  %v7096_v63 = vld [vmem:[#allocation19_spill] sm:$0xff] }
 0x17b   :  { %vm1173_vm14 = vcmp.gt.f32.partialorder %v7096_v63, 0.0 }
 0x17e   :  { %1215 = vperm.xlu1 %5043, %v1178_v25   ;;  %v1202_v25 = vsel %vm1170_vm13, 1, %v7087_v61 }
 0x182   :  { %1218 = vperm.xlu1 %5043, %v1179_v43   ;;  %v7097_v43 = vld [vmem:[#allocation20_spill] sm:$0xff] }
 0x183   :  { %1212 = vperm.xlu0 %5042, %v1177_v40   ;;  %vm1172_vm15 = vcmp.gt.f32.partialorder %v7097_v43, 0.0  ;;  %v1205_v40 = vsel %vm1173_vm14, 1, %v7087_v61  ;;  %v5992_v43 = vld [vmem:[%s7012_s3] ss:$0 sm:$0xff] }
 0x186   :  { %1224 = vperm.xlu1 %5043, %v1181_v1   ;;  %v7098_v1 = vld [vmem:[#allocation21_spill] sm:$0xff] }
 0x187   :  { %1221 = vperm.xlu0 %5042, %v1180_v2   ;;  %vm1175_vm1 = vcmp.gt.f32.partialorder %v7098_v1, 0.0  ;;  %v1204_v2 = vsel %vm1172_vm15, 1, %v7087_v61 }
 0x18a   :  { %1230 = vperm.xlu1 %5043, %v1183_v3   ;;  %v7099_v3 = vld [vmem:[#allocation22_spill] sm:$0xff] }
 0x18b   :  { %1227 = vperm.xlu0 %5042, %v1182_v4   ;;  %vm1174_vm2 = vcmp.gt.f32.partialorder %v7099_v3, 0.0  ;;  %v1207_v4 = vsel %vm1175_vm1, 1, %v7087_v61 }
 0x18e   :  { %1236 = vperm.xlu1 %5043, %v1185_v5   ;;  %v1206_v5 = vsel %vm1174_vm2, 1, %v7087_v61 }
 0x18f   :  { %1233 = vperm.xlu0 %5042, %v1184_v6  }
 0x192   :  { %1242 = vperm.xlu1 %5043, %v1187_v7  }
 0x193   :  { %1239 = vperm.xlu0 %5042, %v1186_v8  }
 0x196   :  { %1248 = vperm.xlu1 %5043, %v1189_v9  }
 0x197   :  { %1245 = vperm.xlu0 %5042, %v1188_v10  }
 0x19a   :  { %1254 = vperm.xlu1 %5043, %v1191_v11  }
 0x19b   :  { %1251 = vperm.xlu0 %5042, %v1190_v12  }
 0x19e   :  { %1260 = vperm.xlu1 %5043, %v1193_v13  }
 0x19f   :  { %1257 = vperm.xlu0 %5042, %v1192_v14  }
 0x1a2   :  { %1266 = vperm.xlu1 %5043, %v1195_v15  }
 0x1a3   :  { %1263 = vperm.xlu0 %5042, %v1194_v17  }
 0x1a6   :  { %1272 = vperm.xlu1 %5043, %v1197_v18  }
 0x1a7   :  { %1269 = vperm.xlu0 %5042, %v1196_v19  }
 0x1aa   :  { %1278 = vperm.xlu1 %5043, %v1199_v20  }
 0x1ab   :  { %1275 = vperm.xlu0 %5042, %v1198_v57  }
 0x1ae   :  { %1284 = vperm.xlu1 %5043, %v1201_v33   ;;  %v5986_v33 = vld [vmem:[%s7011_s2] ss:$0 sm:$0xff] }
 0x1af   :  { %1281 = vperm.xlu0 %5042, %v1200_v30  }
 0x1b2   :  { %1290 = vperm.xlu1 %5043, %v1203_v45  }
 0x1b3   :  { %1287 = vperm.xlu0 %5042, %v1202_v25  }
 0x1b6   :  { %1296 = vperm.xlu1 %5043, %v1205_v40  }
 0x1b7   :  { %1293 = vperm.xlu0 %5042, %v1204_v2  }
 0x1ba   :  { %v512_v6 = vpop.xlane.xlu1 %511  ;;  %1302 = vperm.xlu1 %5043, %v1207_v4  }
 0x1bb   :  { %v606_v7 = vmul.f32 0.03125, %v512_v6  ;;  %1299 = vperm.xlu0 %5042, %v1206_v5  }
 0x1bd   :  { %v638_v8 = vadd.f32 1e-06, %v606_v7 }
 0x1be   :  { %v518_v9 = vpop.xlane.xlu1 %517  ;;  %v515_v10 = vpop.xlane.xlu0 %514 }
 0x1bf   :  { %5044 = vrsqrt.f32 %v638_v8  ;;  %v608_v11 = vmul.f32 0.03125, %v518_v9  ;;  %v607_v12 = vmul.f32 0.03125, %v515_v10 }
 0x1c1   :  { %v640_v13 = vadd.f32 1e-06, %v608_v11  ;;  %v639_v14 = vadd.f32 1e-06, %v607_v12 }
 0x1c2   :  { %v524_v15 = vpop.xlane.xlu1 %523  ;;  %v521_v16 = vpop.xlane.xlu0 %520 }
 0x1c3   :  { %5046 = vrsqrt.f32 %v640_v13  ;;  %v610_v17 = vmul.f32 0.03125, %v524_v15  ;;  %v609_v53 = vmul.f32 0.03125, %v521_v16 }
 0x1c4   :  { %5048 = vrsqrt.f32 %v639_v14 }
 0x1c5   :  { %v642_v18 = vadd.f32 1e-06, %v610_v17  ;;  %v641_v61 = vadd.f32 1e-06, %v609_v53 }
 0x1c6   :  { %v530_v58 = vpop.xlane.xlu1 %529  ;;  %v527_v19 = vpop.xlane.xlu0 %526 }
 0x1c7   :  { %5050 = vrsqrt.f32 %v642_v18  ;;  %v612_v56 = vmul.f32 0.03125, %v530_v58  ;;  %v611_v20 = vmul.f32 0.03125, %v527_v19 }
 0x1c8   :  { %5052 = vrsqrt.f32 %v641_v61 }
 0x1c9   :  { %v5045_v37 = vpop.eup %5044  ;;  %v644_v57 = vadd.f32 1e-06, %v612_v56  ;;  %v643_v42 = vadd.f32 1e-06, %v611_v20 }
 0x1ca   :  { %v536_v32 = vpop.xlane.xlu1 %535  ;;  %v533_v30 = vpop.xlane.xlu0 %532  ;;  %v702_v45 = vmul.f32 %v5045_v37, %v7100_v59 }
 0x1cb   :  { %5054 = vrsqrt.f32 %v644_v57  ;;  %v614_v63 = vmul.f32 0.03125, %v536_v32  ;;  %v613_v25 = vmul.f32 0.03125, %v533_v30 }
 0x1cc   :  { %5056 = vrsqrt.f32 %v643_v42  ;;  %v741_v40 = vmul.f32 %v5986_v33, %v702_v45 }
 0x1cd   :  { %v5047_v1 = vpop.eup %5046  ;;  %v646_v2 = vadd.f32 1e-06, %v614_v63  ;;  %v645_v3 = vadd.f32 1e-06, %v613_v25 }
 0x1ce   :  { %v5049_v4 = vpop.eup %5048  ;;  %v542_v5 = vpop.xlane.xlu1 %541  ;;  %v780_v7 = vadd.f32 %v5992_v43, %v741_v40  ;;  %v704_v8 = vmul.f32 %v5047_v1, %v5736_v31 }
 0x1cf   :  { %v539_v6 = vpop.xlane.xlu0 %538  ;;  %5058 = vrsqrt.f32 %v646_v2  ;;  %v616_v9 = vmul.f32 0.03125, %v542_v5  ;;  %v703_v11 = vmul.f32 %v5049_v4, %v5733_v21 }
 0x1d0   :  { %v615_v10 = vmul.f32 0.03125, %v539_v6  ;;  %5060 = vrsqrt.f32 %v645_v3  ;;  %4784 = vmatprep.mubr.msk.f32.mxu0 %vm56_vm0, %v780_v7  ;;  %v743_v12 = vmul.f32 %v5986_v33, %v704_v8 }
 0x1d1   :  { %v5051_v13 = vpop.eup %5050  ;;  %v648_v14 = vadd.f32 1e-06, %v616_v9  ;;  %v742_v16 = vmul.f32 %v5986_v33, %v703_v11 }
 0x1d2   :  { %v647_v15 = vadd.f32 1e-06, %v615_v10  ;;  %v5053_v17 = vpop.eup %5052  ;;  %v548_v53 = vpop.xlane.xlu1 %547  ;;  %v782_v31 = vadd.f32 %v5992_v43, %v743_v12  ;;  %v706_v61 = vmul.f32 %v5051_v13, %v5744_v26 }
 0x1d3   :  { %v545_v18 = vpop.xlane.xlu0 %544  ;;  %5062 = vrsqrt.f32 %v648_v14  ;;  %v618_v58 = vmul.f32 0.03125, %v548_v53  ;;  %v781_v19 = vadd.f32 %v5992_v43, %v742_v16  ;;  %v705_v56 = vmul.f32 %v5053_v17, %v5747_v44 }
 0x1d4   :  { %v617_v21 = vmul.f32 0.03125, %v545_v18  ;;  %5064 = vrsqrt.f32 %v647_v15  ;;  %v745_v20 = vmul.f32 %v5986_v33, %v706_v61 }
 0x1d5   :  { %v5055_v37 = vpop.eup %5054  ;;  %v650_v57 = vadd.f32 1e-06, %v618_v58  ;;  %4785 = vmatmul.mubr.msk.f32.vlgmr.msra.gmra.mrb[0].mxu0 %vm56_vm0, %v781_v19  ;;  %v744_v59 = vmul.f32 %v5986_v33, %v705_v56 }
 0x1d6   :  { %v649_v42 = vadd.f32 1e-06, %v617_v21  ;;  %v5057_v32 = vpop.eup %5056  ;;  %4787 = vmatprep.mubr.msk.f32.mxu0 %vm56_vm0, %v782_v31  ;;  %v554_v30 = vpop.xlane.xlu1 %553  ;;  %v784_v45 = vadd.f32 %v5992_v43, %v745_v20  ;;  %v708_v63 = vmul.f32 %v5055_v37, %v5756_v38 }
 0x1d7   :  { %v551_v26 = vpop.xlane.xlu0 %550  ;;  %5066 = vrsqrt.f32 %v650_v57  ;;  %v620_v44 = vmul.f32 0.03125, %v554_v30  ;;  %v707_v40 = vmul.f32 %v5057_v32, %v5759_v47  ;;  %v783_v1 = vadd.f32 %v5992_v43, %v744_v59 }
 0x1d8   :  { %v619_v25 = vmul.f32 0.03125, %v551_v26  ;;  %5068 = vrsqrt.f32 %v649_v42  ;;  %v747_v2 = vmul.f32 %v5986_v33, %v708_v63 }
 0x1d9   :  { %v5059_v3 = vpop.eup %5058  ;;  %v652_v4 = vadd.f32 1e-06, %v620_v44  ;;  %v746_v6 = vmul.f32 %v5986_v33, %v707_v40  ;;  %4788 = vmatmul.mubr.msk.f32.gmra.mrb[2].mxu0 %vm56_vm0, %v783_v1 }
 0x1da   :  { %v651_v5 = vadd.f32 1e-06, %v619_v25  ;;  %v5061_v7 = vpop.eup %5060  ;;  %v560_v8 = vpop.xlane.xlu1 %559  ;;  %v786_v9 = vadd.f32 %v5992_v43, %v747_v2  ;;  %v710_v10 = vmul.f32 %v5059_v3, %v5768_v24  ;;  %4790 = vmatprep.mubr.msk.f32.mxu0 %vm56_vm0, %v784_v45 }
 0x1db   :  { %v557_v38 = vpop.xlane.xlu0 %556  ;;  %5070 = vrsqrt.f32 %v652_v4  ;;  %v622_v47 = vmul.f32 0.03125, %v560_v8  ;;  %v785_v12 = vadd.f32 %v5992_v43, %v746_v6  ;;  %v709_v13 = vmul.f32 %v5061_v7, %v5771_v54 }
 0x1dc   :  { %v621_v11 = vmul.f32 0.03125, %v557_v38  ;;  %5072 = vrsqrt.f32 %v651_v5  ;;  %v749_v14 = vmul.f32 %v5986_v33, %v710_v10 }
 0x1dd   :  { %v5063_v15 = vpop.eup %5062  ;;  %v654_v16 = vadd.f32 1e-06, %v622_v47  ;;  %4791 = vmatmul.mubr.msk.f32.gmra.mrb[4].mxu0 %vm56_vm0, %v785_v12  ;;  %v748_v31 = vmul.f32 %v5986_v33, %v709_v13 }
 0x1de   :  { %v653_v17 = vadd.f32 1e-06, %v621_v11  ;;  %v5065_v53 = vpop.eup %5064  ;;  %v566_v18 = vpop.xlane.xlu1 %565  ;;  %v788_v61 = vadd.f32 %v5992_v43, %v749_v14  ;;  %v712_v58 = vmul.f32 %v5063_v15, %v5780_v22  ;;  %4793 = vmatprep.mubr.msk.f32.mxu0 %vm56_vm0, %v786_v9  ;;  %v7101_v9 = vld [vmem:[#allocation24_spill] sm:$0xff] }
 0x1df   :  { %v563_v24 = vpop.xlane.xlu0 %562  ;;  %5074 = vrsqrt.f32 %v654_v16  ;;  %v624_v54 = vmul.f32 0.03125, %v566_v18  ;;  %v711_v19 = vmul.f32 %v5065_v53, %v5783_v62  ;;  %v787_v56 = vadd.f32 %v5992_v43, %v748_v31  ;;  %v7102_v18 = vld [vmem:[#allocation25_spill] sm:$0xff] }
 0x1e0   :  { %v623_v21 = vmul.f32 0.03125, %v563_v24  ;;  %5076 = vrsqrt.f32 %v653_v17  ;;  %v751_v20 = vmul.f32 %v5986_v33, %v712_v58 }
 0x1e1   :  { %v5067_v37 = vpop.eup %5066  ;;  %v656_v57 = vadd.f32 1e-06, %v624_v54  ;;  %v750_v32 = vmul.f32 %v5986_v33, %v711_v19  ;;  %4794 = vmatmul.mubr.msk.f32.gmra.mrb[6].mxu0 %vm56_vm0, %v787_v56  ;;  %v7103_v54 = vld [vmem:[#allocation26_spill] sm:$0xff] }
 0x1e2   :  { %v655_v42 = vadd.f32 1e-06, %v623_v21  ;;  %v5069_v30 = vpop.eup %5068  ;;  %v572_v22 = vpop.xlane.xlu1 %571  ;;  %v790_v59 = vadd.f32 %v5992_v43, %v751_v20  ;;  %v714_v45 = vmul.f32 %v5067_v37, %v5792_v0  ;;  %4796 = vmatprep.mubr.msk.f32.mxu0 %vm56_vm0, %v788_v61 }
 0x1e3   :  { %v569_v26 = vpop.xlane.xlu0 %568  ;;  %5078 = vrsqrt.f32 %v656_v57  ;;  %v626_v62 = vmul.f32 0.03125, %v572_v22  ;;  %v789_v44 = vadd.f32 %v5992_v43, %v750_v32  ;;  %v713_v25 = vmul.f32 %v5069_v30, %v5795_v41 }
 0x1e4   :  { %v625_v63 = vmul.f32 0.03125, %v569_v26  ;;  %5080 = vrsqrt.f32 %v655_v42  ;;  %v753_v40 = vmul.f32 %v5986_v33, %v714_v45 }
 0x1e5   :  { %v5071_v1 = vpop.eup %5070  ;;  %v658_v2 = vadd.f32 1e-06, %v626_v62  ;;  %4797 = vmatmul.mubr.msk.f32.gmra.mrb[8].mxu0 %vm56_vm0, %v789_v44  ;;  %v752_v6 = vmul.f32 %v5986_v33, %v713_v25 }
 0x1e6   :  { %v657_v3 = vadd.f32 1e-06, %v625_v63  ;;  %v5073_v4 = vpop.eup %5072  ;;  %v578_v5 = vpop.xlane.xlu1 %577  ;;  %v792_v7 = vadd.f32 %v5992_v43, %v753_v40  ;;  %v716_v8 = vmul.f32 %v5071_v1, %v5804_v23  ;;  %4799 = vmatprep.mubr.msk.f32.mxu0 %vm56_vm0, %v790_v59 }
 0x1e7   :  { %v575_v0 = vpop.xlane.xlu0 %574  ;;  %5082 = vrsqrt.f32 %v658_v2  ;;  %v628_v41 = vmul.f32 0.03125, %v578_v5  ;;  %v715_v10 = vmul.f32 %v5073_v4, %v7101_v9  ;;  %v791_v47 = vadd.f32 %v5992_v43, %v752_v6 }
 0x1e8   :  { %v627_v38 = vmul.f32 0.03125, %v575_v0  ;;  %5084 = vrsqrt.f32 %v657_v3  ;;  %v755_v11 = vmul.f32 %v5986_v33, %v716_v8 }
 0x1e9   :  { %v5075_v12 = vpop.eup %5074  ;;  %v660_v13 = vadd.f32 1e-06, %v628_v41  ;;  %v754_v15 = vmul.f32 %v5986_v33, %v715_v10  ;;  %4800 = vmatmul.mubr.msk.f32.gmra.mrb[10].mxu0 %vm56_vm0, %v791_v47 }
 0x1ea   :  { %v659_v14 = vadd.f32 1e-06, %v627_v38  ;;  %v5077_v16 = vpop.eup %5076  ;;  %v584_v23 = vpop.xlane.xlu1 %583  ;;  %v794_v53 = vadd.f32 %v5992_v43, %v755_v11  ;;  %v718_v24 = vmul.f32 %v5075_v12, %v7102_v18  ;;  %4802 = vmatprep.mubr.msk.f32.mxu0 %vm56_vm0, %v792_v7 }
 0x1eb   :  { %v581_v17 = vpop.xlane.xlu0 %580  ;;  %5086 = vrsqrt.f32 %v660_v13  ;;  %v630_v31 = vmul.f32 0.03125, %v584_v23  ;;  %v793_v58 = vadd.f32 %v5992_v43, %v754_v15  ;;  %v717_v21 = vmul.f32 %v5077_v16, %v7103_v54 }
 0x1ec   :  { %v629_v61 = vmul.f32 0.03125, %v581_v17  ;;  %5088 = vrsqrt.f32 %v659_v14  ;;  %v757_v19 = vmul.f32 %v5986_v33, %v718_v24 }
 0x1ed   :  { %v5079_v56 = vpop.eup %5078  ;;  %v662_v20 = vadd.f32 1e-06, %v630_v31  ;;  %4803 = vmatmul.mubr.msk.f32.gmra.mrb[12].mxu0 %vm56_vm0, %v793_v58  ;;  %v756_v30 = vmul.f32 %v5986_v33, %v717_v21 }
 0x1ee   :  { %v661_v37 = vadd.f32 1e-06, %v629_v61  ;;  %v5081_v57 = vpop.eup %5080  ;;  %v590_v42 = vpop.xlane.xlu1 %589  ;;  %v796_v22 = vadd.f32 %v5992_v43, %v757_v19  ;;  %v720_v26 = vmul.f32 %v5079_v56, %v5828_v39  ;;  %4805 = vmatprep.mubr.msk.f32.mxu0 %vm56_vm0, %v794_v53 }
 0x1ef   :  { %v587_v32 = vpop.xlane.xlu0 %586  ;;  %5090 = vrsqrt.f32 %v662_v20  ;;  %v632_v59 = vmul.f32 0.03125, %v590_v42  ;;  %v719_v62 = vmul.f32 %v5081_v57, %v5831_v28  ;;  %v795_v63 = vadd.f32 %v5992_v43, %v756_v30 }
 0x1f0   :  { %v631_v45 = vmul.f32 0.03125, %v587_v32  ;;  %5092 = vrsqrt.f32 %v661_v37  ;;  %v759_v44 = vmul.f32 %v5986_v33, %v720_v26 }
 0x1f1   :  { %v5083_v25 = vpop.eup %5082  ;;  %v664_v40 = vadd.f32 1e-06, %v632_v59  ;;  %v758_v2 = vmul.f32 %v5986_v33, %v719_v62  ;;  %4806 = vmatmul.mubr.msk.f32.gmra.mrb[14].mxu0 %vm56_vm0, %v795_v63 }
 0x1f2   :  { %v663_v1 = vadd.f32 1e-06, %v631_v45  ;;  %v5085_v3 = vpop.eup %5084  ;;  %v596_v39 = vpop.xlane.xlu1 %595  ;;  %v798_v5 = vadd.f32 %v5992_v43, %v759_v44  ;;  %v722_v0 = vmul.f32 %v5083_v25, %v5840_v49  ;;  %4808 = vmatprep.mubr.msk.f32.mxu0 %vm56_vm0, %v796_v22 }
 0x1f3   :  { %v593_v4 = vpop.xlane.xlu0 %592  ;;  %5094 = vrsqrt.f32 %v664_v40  ;;  %v634_v28 = vmul.f32 0.03125, %v596_v39  ;;  %v797_v7 = vadd.f32 %v5992_v43, %v758_v2  ;;  %v721_v8 = vmul.f32 %v5085_v3, %v5843_v29 }
 0x1f4   :  { %v633_v6 = vmul.f32 0.03125, %v593_v4  ;;  %5096 = vrsqrt.f32 %v663_v1  ;;  %v761_v41 = vmul.f32 %v5986_v33, %v722_v0 }
 0x1f5   :  { %v5087_v38 = vpop.eup %5086  ;;  %v666_v9 = vadd.f32 1e-06, %v634_v28  ;;  %4809 = vmatmul.mubr.msk.f32.gmra.mrb[16].mxu0 %vm56_vm0, %v797_v7  ;;  %v760_v12 = vmul.f32 %v5986_v33, %v721_v8  ;;  %v7037_v7 = vmov 0.0|0.0  }
 0x1f6   :  { %v665_v10 = vadd.f32 1e-06, %v633_v6  ;;  %v5089_v47 = vpop.eup %5088  ;;  %v602_v11 = vpop.xlane.xlu1 %601  ;;  %v800_v13 = vadd.f32 %v5992_v43, %v761_v41  ;;  %v724_v14 = vmul.f32 %v5087_v38, %v5852_v46  ;;  %4811 = vmatprep.mubr.msk.f32.mxu0 %vm56_vm0, %v798_v5  ;;  %4982 = vmatprep.subr.bf16.mxu1 %v7037_v7 }
 0x1f7   :  { %v599_v49 = vpop.xlane.xlu0 %598  ;;  %5098 = vrsqrt.f32 %v666_v9  ;;  %v636_v29 = vmul.f32 0.03125, %v602_v11  ;;  %v723_v16 = vmul.f32 %v5089_v47, %v5855_v35  ;;  %v799_v23 = vadd.f32 %v5992_v43, %v760_v12 }
 0x1f8   :  { %v635_v15 = vmul.f32 0.03125, %v599_v49  ;;  %5100 = vrsqrt.f32 %v665_v10  ;;  %v763_v17 = vmul.f32 %v5986_v33, %v724_v14  ;;  %v6137_v14 = vld [vmem:[%s7014_s5] ss:$0 sm:$0xff]  ;;  %s5238_s5 = smov 96  }
 0x1f9   :  { %v5091_v53 = vpop.eup %5090  ;;  %v668_v18 = vadd.f32 1e-06, %v636_v29  ;;  %v762_v31 = vmul.f32 %v5986_v33, %v723_v16  ;;  %4812 = vmatmul.mubr.msk.f32.gmra.mrb[18].mxu0 %vm56_vm0, %v799_v23 }
 0x1fa   :  { %v667_v24 = vadd.f32 1e-06, %v635_v15  ;;  %v5093_v61 = vpop.eup %5092  ;;  %v726_v58 = vmul.f32 %v5091_v53, %v5864_v27  ;;  %4814 = vmatprep.mubr.msk.f32.mxu0 %vm56_vm0, %v800_v13  ;;  %v802_v21 = vadd.f32 %v5992_v43, %v763_v17  ;;  %v1210_v8 = vpop.permute.xlu1 %1209 }
 0x1fb   :  { %v605_v46 = vpop.xlane.xlu0 %604  ;;  %5102 = vrsqrt.f32 %v668_v18  ;;  %v801_v54 = vadd.f32 %v5992_v43, %v762_v31  ;;  %v725_v19 = vmul.f32 %v5093_v61, %v5867_v34  ;;  %vm1304_vm4 = vcmp.eq.s32.totalorder %v1210_v8, 1 }
 0x1fc   :  { %v637_v35 = vmul.f32 0.03125, %v605_v46  ;;  %5104 = vrsqrt.f32 %v667_v24  ;;  %v765_v56 = vmul.f32 %v5986_v33, %v726_v58 }
 0x1fd   :  { %v5095_v20 = vpop.eup %5094  ;;  %4815 = vmatmul.mubr.msk.f32.gmra.mrb[20].mxu0 %vm56_vm0, %v801_v54  ;;  %v764_v27 = vmul.f32 %v5986_v33, %v725_v19 }
 0x1fe   :  { %v669_v37 = vadd.f32 1e-06, %v637_v35  ;;  %v5097_v57 = vpop.eup %5096  ;;  %v728_v42 = vmul.f32 %v5095_v20, %v5876_v52  ;;  %4817 = vmatprep.mubr.msk.f32.mxu0 %vm56_vm0, %v802_v21  ;;  %v804_v32 = vadd.f32 %v5992_v43, %v765_v56  ;;  %v1216_v41 = vpop.permute.xlu1 %1215 }
 0x1ff   :  { %v727_v30 = vmul.f32 %v5097_v57, %v5879_v55  ;;  %v803_v34 = vadd.f32 %v5992_v43, %v764_v27  ;;  %vm1306_vm8 = vcmp.eq.s32.totalorder %v1216_v41, 1 }
 0x200   :  { %5106 = vrsqrt.f32 %v669_v37  ;;  %v767_v22 = vmul.f32 %v5986_v33, %v728_v42 }
 0x201   :  { %v5099_v26 = vpop.eup %5098  ;;  %v766_v59 = vmul.f32 %v5986_v33, %v727_v30  ;;  %4818 = vmatmul.mubr.msk.f32.gmra.mrb[22].mxu0 %vm56_vm0, %v803_v34 }
 0x202   :  { %v5101_v45 = vpop.eup %5100  ;;  %v730_v62 = vmul.f32 %v5099_v26, %v5888_v60  ;;  %4820 = vmatprep.mubr.msk.f32.mxu0 %vm56_vm0, %v804_v32  ;;  %v806_v63 = vadd.f32 %v5992_v43, %v767_v22  ;;  %v1219_v38 = vpop.permute.xlu1 %1218 }
 0x203   :  { %v805_v52 = vadd.f32 %v5992_v43, %v766_v59  ;;  %v729_v55 = vmul.f32 %v5101_v45, %v5891_v50  ;;  %vm1307_vm7 = vcmp.eq.s32.totalorder %v1219_v38, 1 }
 0x204   :  { %v769_v44 = vmul.f32 %v5986_v33, %v730_v62 }
 0x205   :  { %v5103_v25 = vpop.eup %5102  ;;  %v768_v40 = vmul.f32 %v5986_v33, %v729_v55  ;;  %4821 = vmatmul.mubr.msk.f32.gmra.mrb[24].mxu0 %vm56_vm0, %v805_v52 }
 0x206   :  { %v5105_v1 = vpop.eup %5104  ;;  %v732_v2 = vmul.f32 %v5103_v25, %v5900_v51  ;;  %4823 = vmatprep.mubr.msk.f32.mxu0 %vm56_vm0, %v806_v63  ;;  %v808_v3 = vadd.f32 %v5992_v43, %v769_v44  ;;  %v1225_v10 = vpop.permute.xlu1 %1224 }
 0x207   :  { %v807_v60 = vadd.f32 %v5992_v43, %v768_v40  ;;  %v731_v39 = vmul.f32 %v5105_v1, %v5903_v36  ;;  %vm1309_vm9 = vcmp.eq.s32.totalorder %v1225_v10, 1 }
 0x208   :  { %v771_v50 = vmul.f32 %v5986_v33, %v732_v2 }
 0x209   :  { %v770_v5 = vmul.f32 %v5986_v33, %v731_v39  ;;  %4824 = vmatmul.mubr.msk.f32.gmra.mrb[26].mxu0 %vm56_vm0, %v807_v60 }
 0x20a   :  { %v5107_v4 = vpop.eup %5106  ;;  %4826 = vmatprep.mubr.msk.f32.mxu0 %vm56_vm0, %v808_v3  ;;  %v810_v28 = vadd.f32 %v5992_v43, %v771_v50  ;;  %v1231_v47 = vpop.permute.xlu1 %1230 }
 0x20b   :  { %v733_v0 = vmul.f32 %v5107_v4, %v5912_v48  ;;  %v809_v51 = vadd.f32 %v5992_v43, %v770_v5  ;;  %v5237_v48 = vmov -1e+30   ;;  %vm1311_vm11 = vcmp.eq.s32.totalorder %v1231_v47, 1 }
 0x20c   :  { %52 = vst.msk [vmem:[#allocation2] sm:$0xff] %vm51_vm3, %v5237_v48  ;;  %53 = vst.msk [vmem:[#allocation2 + $0x8] sm:$0xff] %vm51_vm3, %v5237_v48 }
 0x20d   :  { %v772_v6 = vmul.f32 %v5986_v33, %v733_v0  ;;  %4827 = vmatmul.mubr.msk.f32.gmra.mrb[28].mxu0 %vm56_vm0, %v809_v51  ;;  %v1213_v33 = vpop.permute.xlu0 %1212 }
 0x20e   :  { %4829 = vmatprep.mubr.msk.f32.mxu0 %vm56_vm0, %v810_v28  ;;  %v6128_v49 = vpop.permute.xlu1 %1236  ;;  %vm1305_vm5 = vcmp.eq.s32.totalorder %v1213_v33, 1 }
 0x20f   :  { %v811_v36 = vadd.f32 %v5992_v43, %v772_v6  ;;  %vm1313_vm13 = vcmp.eq.s32.totalorder %v6128_v49, 1 }
 0x211   :  { %4830 = vmatmul.mubr.msk.f32.gmra.mrb[30].mxu0 %vm56_vm0, %v811_v36  ;;  %v1222_v9 = vpop.permute.xlu0 %1221 }
 0x212   :  { %v6132_v13 = vpop.permute.xlu1 %1242  ;;  %vm1308_vm10 = vcmp.eq.s32.totalorder %v1222_v9, 1 }
 0x213   :  { %vm1315_vm1 = vcmp.eq.s32.totalorder %v6132_v13, 1 }
 0x215   :  { %v6124_v43 = vpop.permute.xlu0 %1227 }
 0x216   :  { %v6143_v53 = vpop.permute.xlu1 %1248  ;;  %vm1310_vm12 = vcmp.eq.s32.totalorder %v6124_v43, 1 }
 0x219   :  { %v6126_v11 = vpop.permute.xlu0 %1233 }
 0x21a   :  { %v6172_v42 = vpop.permute.xlu1 %1254  ;;  %vm1312_vm14 = vcmp.eq.s32.totalorder %v6126_v11, 1 }
 0x21d   :  { %v6130_v12 = vpop.permute.xlu0 %1239 }
 0x21e   :  { %v6203_v39 = vpop.permute.xlu1 %1260  ;;  %vm1314_vm15 = vcmp.eq.s32.totalorder %v6130_v12, 1 }
 0x221   :  { %v6139_v15 = vpop.permute.xlu0 %1245 }
 0x222   :  { %vm1316_vm2 = vcmp.eq.s32.totalorder %v6139_v15, 1 }
 0x225   :  { %v6152_v35 = vpop.permute.xlu0 %1251 }
 0x229   :  { %v6185_v62 = vpop.permute.xlu0 %1257 }
 0x22d   :  { %v6221_v8 = vpop.permute.xlu0 %1263 }
 0x2a8   :  { %v4786_v29 = vpop.f32.mrb[0].mxu0 }
 0x2a9   :  { %v991_v16 = vadd.f32 %v4786_v29, %v6137_v14  ;;  %v985_v23 = vpop.f32.mrb[1].mxu0 }
 0x2aa   :  { %v986_v17 = vadd.f32 %v6137_v14, %v985_v23 }
 0x2ab   :  { %v6145_v24 = vsel %vm1305_vm5, %v991_v16, -1e+18  ;;  %vm1318_vm5 = vcmp.eq.s32.totalorder %v6152_v35, 1 }
 0x2ac   :  { %v4983_v18 = vpack.c.bf16 %v991_v16, %v986_v17  ;;  %v6147_v31 = vsel %vm1304_vm4, %v986_v17, -1e+18  ;;  %v4789_v61 = vpop.f32.mrb[2].mxu0  ;;  %v1370_v21 = vsel %vm1368_vm6, %v6145_v24, -inf  ;;  %v6235_v16 = vpop.permute.xlu1 %1266  ;;  %vm1317_vm4 = vcmp.eq.s32.totalorder %v6143_v53, 1 }
 0x2ad   :  { %v6150_v46 = vadd.f32 %v4789_v61, %v6137_v14  ;;  %v995_v58 = vpop.f32.mrb[3].mxu0  ;;  %v1369_v19 = vsel %vm1368_vm6, %v6147_v31, -inf }
 0x2ae   :  { %4984 = vmatpush3.bf16.msra.mxu1 %v4983_v18  ;;  %v6155_v54 = vadd.f32 %v6137_v14, %v995_v58  ;;  %v1371_v22 = vmax.f32 %v1369_v19, %v1370_v21 }
 0x2af   :  { %7104 = vst [vmem:[#allocation11_spill] sm:$0xff] %v6150_v46  ;;  %4985 = vmatprep.subr.bf16.mxu1 %v7037_v7  ;;  %v6163_v56 = vsel %vm1307_vm7, %v6150_v46, -1e+18  ;;  %vm1319_vm7 = vcmp.eq.s32.totalorder %v6172_v42, 1 }
 0x2b0   :  { %7105 = vst [vmem:[#allocation12_spill] sm:$0xff] %v6155_v54  ;;  %v1379_v20 = vsel %vm1368_vm6, %v6163_v56, -inf  ;;  %v6168_v37 = vsel %vm1306_vm8, %v6155_v54, -1e+18  ;;  %v4792_v27 = vpop.f32.mrb[4].mxu0  ;;  %v1372_v2 = vrot.slane %v1371_v22, 4 }
 0x2b1   :  { %v1378_v32 = vsel %vm1368_vm6, %v6168_v37, -inf  ;;  %v6177_v30 = vadd.f32 %v4792_v27, %v6137_v14  ;;  %v1005_v34 = vpop.f32.mrb[5].mxu0  ;;  %vm1321_vm8 = vcmp.eq.s32.totalorder %v6203_v39, 1 }
 0x2b2   :  { %v1380_v26 = vmax.f32 %v1378_v32, %v1379_v20  ;;  %v6180_v59 = vadd.f32 %v6137_v14, %v1005_v34  ;;  %v1373_v41 = vmax.f32 %v1371_v22, %v1372_v2  ;;  %v6258_v34 = vpop.permute.xlu0 %1269 }
 0x2b3   :  { %7106 = vst [vmem:[#allocation13_spill] sm:$0xff] %v6177_v30  ;;  %v6183_v45 = vsel %vm1309_vm9, %v6177_v30, -1e+18  ;;  %vm1320_vm9 = vcmp.eq.s32.totalorder %v6185_v62, 1 }
 0x2b4   :  { %7107 = vst [vmem:[#allocation14_spill] sm:$0xff] %v6180_v59  ;;  %v1388_v52 = vsel %vm1368_vm6, %v6183_v45, -inf  ;;  %v6190_v63 = vsel %vm1308_vm10, %v6180_v59, -1e+18  ;;  %v4795_v44 = vpop.f32.mrb[6].mxu0  ;;  %v1381_v60 = vrot.slane %v1380_v26, 4 }
 0x2b5   :  { %v1387_v25 = vsel %vm1368_vm6, %v6190_v63, -inf  ;;  %v6197_v40 = vadd.f32 %v4795_v44, %v6137_v14  ;;  %v1015_v1 = vpop.f32.mrb[7].mxu0  ;;  %v1374_v61 = vrot.slane %v1373_v41, 2  ;;  %vm1323_vm10 = vcmp.eq.s32.totalorder %v6235_v16, 1 }
 0x2b6   :  { %v6200_v3 = vadd.f32 %v6137_v14, %v1015_v1  ;;  %v1389_v50 = vmax.f32 %v1387_v25, %v1388_v52  ;;  %v1382_v33 = vmax.f32 %v1380_v26, %v1381_v60 }
 0x2b7   :  { %7108 = vst [vmem:[#allocation15_spill] sm:$0xff] %v6197_v40  ;;  %v6206_v4 = vsel %vm1311_vm11, %v6197_v40, -1e+18  ;;  %v1375_v60 = vmax.f32 %v1373_v41, %v1374_v61  ;;  %vm1322_vm11 = vcmp.eq.s32.totalorder %v6221_v8, 1 }
 0x2b8   :  { %7109 = vst [vmem:[#allocation16_spill] sm:$0xff] %v6200_v3  ;;  %v1397_v5 = vsel %vm1368_vm6, %v6206_v4, -inf  ;;  %v6211_v0 = vsel %vm1310_vm12, %v6200_v3, -1e+18  ;;  %v4798_v51 = vpop.f32.mrb[8].mxu0  ;;  %v1390_v10 = vrot.slane %v1389_v50, 4 }
 0x2b9   :  { %v1396_v28 = vsel %vm1368_vm6, %v6211_v0, -inf  ;;  %v6219_v36 = vadd.f32 %v4798_v51, %v6137_v14  ;;  %v1025_v48 = vpop.f32.mrb[9].mxu0  ;;  %v1383_v58 = vrot.slane %v1382_v33, 2  ;;  %v1376_v15 = vrot.slane %v1375_v60, 1 }
 0x2ba   :  { %v1398_v38 = vmax.f32 %v1396_v28, %v1397_v5  ;;  %v6224_v9 = vadd.f32 %v6137_v14, %v1025_v48  ;;  %v1391_v19 = vmax.f32 %v1389_v50, %v1390_v10  ;;  %v6277_v28 = vpop.permute.xlu1 %1272 }
 0x2bb   :  { %7110 = vst [vmem:[#allocation17_spill] sm:$0xff] %v6219_v36  ;;  %v6228_v43 = vsel %vm1313_vm13, %v6219_v36, -1e+18  ;;  %v1384_v50 = vmax.f32 %v1382_v33, %v1383_v58  ;;  %vm1325_vm12 = vcmp.eq.s32.totalorder %v6277_v28, 1  ;;  %vm1531_vm13 = vcmask 1041409  }
 0x2bc   :  { %7111 = vst [vmem:[#allocation18_spill] sm:$0xff] %v6224_v9  ;;  %v1399_v47 = vrot.slane %v1398_v38, 4  ;;  %v1406_v49 = vsel %vm1368_vm6, %v6228_v43, -inf  ;;  %v4801_v29 = vpop.f32.mrb[10].mxu0  ;;  %v6238_v23 = vsel %vm1312_vm14, %v6224_v9, -1e+18  ;;  %v1377_v57 = vmax.f32 %v1375_v60, %v1376_v15 }
 0x2bd   :  { %v6243_v17 = vadd.f32 %v4801_v29, %v6137_v14  ;;  %v1035_v18 = vpop.f32.mrb[11].mxu0  ;;  %v1405_v21 = vsel %vm1368_vm6, %v6238_v23, -inf  ;;  %v1392_v12 = vrot.slane %v1391_v19, 2  ;;  %vm1324_vm14 = vcmp.eq.s32.totalorder %v6258_v34, 1 }
 0x2be   :  { %v1407_v20 = vmax.f32 %v1405_v21, %v1406_v49  ;;  %v6254_v32 = vadd.f32 %v6137_v14, %v1035_v18  ;;  %v1400_v22 = vmax.f32 %v1398_v38, %v1399_v47  ;;  %v6300_v21 = vpop.permute.xlu0 %1275 }
 0x2bf   :  { %7112 = vst [vmem:[#allocation19_spill] sm:$0xff] %v6243_v17  ;;  %v6251_v27 = vsel %vm1315_vm1, %v6243_v17, -1e+18  ;;  %vm1535_vm1 = vcmask 1043459  }
 0x2c0   :  { %7113 = vst [vmem:[#allocation20_spill] sm:$0xff] %v6254_v32  ;;  %v1415_v26 = vsel %vm1368_vm6, %v6251_v27, -inf  ;;  %v4804_v52 = vpop.f32.mrb[12].mxu0  ;;  %v1408_v44 = vrot.slane %v1407_v20, 4  ;;  %v6265_v13 = vsel %vm1314_vm15, %v6254_v32, -1e+18 }
 0x2c1   :  { %v6270_v1 = vadd.f32 %v4804_v52, %v6137_v14  ;;  %v1045_v2 = vpop.f32.mrb[13].mxu0  ;;  %v1414_v5 = vsel %vm1368_vm6, %v6265_v13, -inf  ;;  %v1401_v29 = vrot.slane %v1400_v22, 2  ;;  %vm1533_vm15 = vcmask 1042434  }
 0x2c2   :  { %v6275_v51 = vadd.f32 %v6137_v14, %v1045_v2  ;;  %v1409_v48 = vmax.f32 %v1407_v20, %v1408_v44  ;;  %v1416_v38 = vmax.f32 %v1414_v5, %v1415_v26  ;;  %v1385_v20 = vrot.slane %v1384_v50, 1  ;;  %v6333_v7 = vpop.permute.xlu0 %1281 }
 0x2c3   :  { %7114 = vst [vmem:[#allocation21_spill] sm:$0xff] %v6270_v1  ;;  %v6282_v10 = vsel %vm1317_vm4, %v6270_v1, -1e+18  ;;  %v1393_v44 = vmax.f32 %v1391_v19, %v1392_v12  ;;  %v1402_v42 = vmax.f32 %v1400_v22, %v1401_v29 }
 0x2c4   :  { %7115 = vst [vmem:[#allocation22_spill] sm:$0xff] %v6275_v51  ;;  %v1424_v41 = vsel %vm1368_vm6, %v6282_v10, -inf  ;;  %v6290_v33 = vsel %vm1316_vm2, %v6275_v51, -1e+18  ;;  %v4807_v49 = vpop.f32.mrb[14].mxu0  ;;  %v1417_v53 = vrot.slane %v1416_v38, 4  ;;  %v1386_v19 = vmax.f32 %v1384_v50, %v1385_v20 }
 0x2c5   :  { %v1423_v18 = vsel %vm1368_vm6, %v6290_v33, -inf  ;;  %v6298_v61 = vadd.f32 %v4807_v49, %v6137_v14  ;;  %v1055_v58 = vpop.f32.mrb[15].mxu0  ;;  %v1410_v2 = vrot.slane %v1409_v48, 2  ;;  %v1394_v22 = vrot.slane %v1393_v44, 1 }
 0x2c6   :  { %v1425_v26 = vmax.f32 %v1423_v18, %v1424_v41  ;;  %v6303_v52 = vadd.f32 %v6137_v14, %v1055_v58  ;;  %v1418_v5 = vmax.f32 %v1416_v38, %v1417_v53  ;;  %v6321_v38 = vpop.permute.xlu1 %1278  ;;  %v1403_v1 = vrot.slane %v1402_v42, 1  ;;  %v6378_v16 = vpop.permute.xlu0 %1287 }
 0x2c7   :  { %7116 = vst [vmem:[#allocation23_spill] sm:$0xff] %v6298_v61  ;;  %v6309_v47 = vsel %vm1319_vm7, %v6298_v61, -1e+18  ;;  %v1411_v29 = vmax.f32 %v1409_v48, %v1410_v2  ;;  %vm1537_vm2 = vcmask 1044484   ;;  %vm1327_vm4 = vcmp.eq.s32.totalorder %v6321_v38, 1 }
 0x2c8   :  { %7117 = vst [vmem:[#allocation24_spill] sm:$0xff] %v6303_v52  ;;  %v1426_v49 = vrot.slane %v1425_v26, 4  ;;  %v1433_v25 = vsel %vm1368_vm6, %v6309_v47, -inf  ;;  %v6317_v41 = vsel %vm1318_vm5, %v6303_v52, -1e+18  ;;  %v4810_v12 = vpop.f32.mrb[16].mxu0  ;;  %v1395_v2 = vmax.f32 %v1393_v44, %v1394_v22 }
 0x2c9   :  { %v1419_v53 = vrot.slane %v1418_v5, 2  ;;  %v1432_v18 = vsel %vm1368_vm6, %v6317_v41, -inf  ;;  %v6326_v58 = vadd.f32 %v4810_v12, %v6137_v14  ;;  %v1065_v11 = vpop.f32.mrb[17].mxu0  ;;  %vm1539_vm5 = vcmask 1045509  }
 0x2ca   :  { %v1427_v35 = vmax.f32 %v1425_v26, %v1426_v49  ;;  %v1434_v6 = vmax.f32 %v1432_v18, %v1433_v25  ;;  %v6330_v55 = vadd.f32 %v6137_v14, %v1065_v11  ;;  %vm1326_vm7 = vcmp.eq.s32.totalorder %v6300_v21, 1  ;;  %v6355_v26 = vpop.permute.xlu1 %1284 }
 0x2cb   :  { %7118 = vst [vmem:[#allocation25_spill] sm:$0xff] %v6326_v58  ;;  %v1420_v12 = vmax.f32 %v1418_v5, %v1419_v53  ;;  %v6338_v11 = vsel %vm1321_vm8, %v6326_v58, -1e+18  ;;  %v1412_v5 = vrot.slane %v1411_v29, 1  ;;  %vm1541_vm8 = vcmask 1046534  }
 0x2cc   :  { %7119 = vst [vmem:[#allocation26_spill] sm:$0xff] %v6330_v55  ;;  %v1428_v52 = vrot.slane %v1427_v35, 2  ;;  %v1435_v61 = vrot.slane %v1434_v6, 4  ;;  %v4813_v51 = vpop.f32.mrb[18].mxu0  ;;  %v6349_v20 = vsel %vm1320_vm9, %v6330_v55, -1e+18 }
 0x2cd   :  { %v6343_v50 = vadd.f32 %v4813_v51, %v6137_v14  ;;  %v1075_v48 = vpop.f32.mrb[19].mxu0  ;;  %v1532_v51 = vsel %vm1531_vm13, %v1386_v19, %v1377_v57  ;;  %v1442_v62 = vsel %vm1368_vm6, %v6338_v11, -inf  ;;  %vm1543_vm9 = vcmask 1047559  }
 0x2ce   :  { %v1429_v60 = vmax.f32 %v1427_v35, %v1428_v52  ;;  %v1436_v15 = vmax.f32 %v1434_v6, %v1435_v61  ;;  %v6352_v39 = vadd.f32 %v6137_v14, %v1075_v48  ;;  %v1421_v52 = vrot.slane %v1420_v12, 1 }
 0x2cf   :  { %7120 = vst [vmem:[#allocation27_spill] sm:$0xff] %v6343_v50  ;;  %v6363_v61 = vsel %vm1323_vm10, %v6343_v50, -1e+18  ;;  %v1441_v53 = vsel %vm1368_vm6, %v6349_v20, -inf  ;;  %vm1329_vm10 = vcmp.eq.s32.totalorder %v6355_v26, 1  ;;  %v1404_v35 = vmax.f32 %v1402_v42, %v1403_v1 }
 0x2d0   :  { %7121 = vst [vmem:[#allocation28_spill] sm:$0xff] %v6352_v39  ;;  %v1437_v6 = vrot.slane %v1436_v15, 2  ;;  %v4816_v49 = vpop.f32.mrb[20].mxu0  ;;  %v6370_v57 = vsel %vm1322_vm11, %v6352_v39, -1e+18  ;;  %v1430_v22 = vrot.slane %v1429_v60, 1  ;;  %v1413_v8 = vmax.f32 %v1411_v29, %v1412_v5  ;;  %v1291_v5 = vpop.permute.xlu1 %1290 }
 0x2d1   :  { %v6375_v19 = vadd.f32 %v4816_v49, %v6137_v14  ;;  %v1085_v18 = vpop.f32.mrb[21].mxu0  ;;  %v1451_v55 = vsel %vm1368_vm6, %v6363_v61, -inf  ;;  %v1450_v44 = vsel %vm1368_vm6, %v6370_v57, -inf  ;;  %v1443_v39 = vmax.f32 %v1441_v53, %v1442_v62 }
 0x2d2   :  { %v1438_v48 = vmax.f32 %v1436_v15, %v1437_v6  ;;  %v6381_v25 = vadd.f32 %v6137_v14, %v1085_v18  ;;  %v1422_v6 = vmax.f32 %v1420_v12, %v1421_v52  ;;  %v1452_v50 = vmax.f32 %v1450_v44, %v1451_v55 }
 0x2d3   :  { %7122 = vst [vmem:[#allocation29_spill] sm:$0xff] %v6375_v19  ;;  %v6390_v49 = vsel %vm1325_vm12, %v6375_v19, -1e+18  ;;  %v1431_v34 = vmax.f32 %v1429_v60, %v1430_v22  ;;  %v1534_v32 = vsel %vm1533_vm15, %v1395_v2, %v1532_v51  ;;  %vm1328_vm11 = vcmp.eq.s32.totalorder %v6333_v7, 1 }
 0x2d4   :  { %7123 = vst [vmem:[#allocation30_spill] sm:$0xff] %v6381_v25  ;;  %v1460_v1 = vsel %vm1368_vm6, %v6390_v49, -inf  ;;  %v6397_v42 = vsel %vm1324_vm14, %v6381_v25, -1e+18  ;;  %v4819_v15 = vpop.f32.mrb[22].mxu0  ;;  %v1439_v53 = vrot.slane %v1438_v48, 1  ;;  %v1536_v29 = vsel %vm1535_vm1, %v1404_v35, %v1534_v32 }
 0x2d5   :  { %v1459_v28 = vsel %vm1368_vm6, %v6397_v42, -inf  ;;  %v6404_v18 = vadd.f32 %v4819_v15, %v6137_v14  ;;  %v1095_v62 = vpop.f32.mrb[23].mxu0  ;;  %v6416_v15 = vpop.permute.xlu0 %1293  ;;  %v1444_v25 = vrot.slane %v1443_v39, 4  ;;  %v1538_v2 = vsel %vm1537_vm2, %v1413_v8, %v1536_v29 }
 0x2d6   :  { %v6407_v58 = vadd.f32 %v6137_v14, %v1095_v62  ;;  %v1461_v17 = vmax.f32 %v1459_v28, %v1460_v1  ;;  %v1440_v52 = vmax.f32 %v1438_v48, %v1439_v53  ;;  %v1540_v22 = vsel %vm1539_vm5, %v1422_v6, %v1538_v2  ;;  %v1297_v8 = vpop.permute.xlu1 %1296 }
 0x2d7   :  { %7124 = vst [vmem:[#allocation31_spill] sm:$0xff] %v6404_v18  ;;  %v6413_v12 = vsel %vm1327_vm4, %v6404_v18, -1e+18  ;;  %v1453_v48 = vrot.slane %v1452_v50, 4  ;;  %v1542_v28 = vsel %vm1541_vm8, %v1431_v34, %v1540_v22  ;;  %vm1331_vm12 = vcmp.eq.s32.totalorder %v1291_v5, 1 }
 0x2d8   :  { %7125 = vst [vmem:[#allocation32_spill] sm:$0xff] %v6407_v58  ;;  %v1469_v55 = vsel %vm1368_vm6, %v6413_v12, -inf  ;;  %v6423_v60 = vsel %vm1326_vm7, %v6407_v58, -1e+18  ;;  %v4822_v51 = vpop.f32.mrb[24].mxu0  ;;  %v1462_v29 = vrot.slane %v1461_v17, 4  ;;  %v1544_v53 = vsel %vm1543_vm9, %v1440_v52, %v1542_v28 }
 0x2d9   :  { %v1468_v38 = vsel %vm1368_vm6, %v6423_v60, -inf  ;;  %v6431_v44 = vadd.f32 %v4822_v51, %v6137_v14  ;;  %v1105_v35 = vpop.f32.mrb[25].mxu0  ;;  %1552 = vrot.lane.b32.xlu0 %v1544_v53, %s5238_s5  ;;  %v1454_v22 = vmax.f32 %v1452_v50, %v1453_v48  ;;  %vm1330_vm14 = vcmp.eq.s32.totalorder %v6378_v16, 1 }
 0x2da   :  { %v1470_v1 = vmax.f32 %v1468_v38, %v1469_v55  ;;  %v6435_v21 = vadd.f32 %v6137_v14, %v1105_v35  ;;  %v1300_v38 = vpop.permute.xlu0 %1299  ;;  %v1445_v35 = vmax.f32 %v1443_v39, %v1444_v25  ;;  %vm1332_vm4 = vcmp.eq.s32.totalorder %v6416_v15, 1  ;;  %v1303_v50 = vpop.permute.xlu1 %1302 }
 0x2db   :  { %7126 = vst [vmem:[#allocation33_spill] sm:$0xff] %v6431_v44  ;;  %v6442_v62 = vsel %vm1329_vm10, %v6431_v44, -1e+18  ;;  %v1463_v5 = vmax.f32 %v1461_v17, %v1462_v29  ;;  %vm1333_vm7 = vcmp.eq.s32.totalorder %v1297_v8, 1  ;;  %vm1334_vm10 = vcmp.eq.s32.totalorder %v1300_v38, 1 }
 0x2dc   :  { %7127 = vst [vmem:[#allocation34_spill] sm:$0xff] %v6435_v21  ;;  %v1471_v51 = vrot.slane %v1470_v1, 4  ;;  %v1478_v6 = vsel %vm1368_vm6, %v6442_v62, -inf  ;;  %v6448_v55 = vsel %vm1328_vm11, %v6435_v21, -1e+18  ;;  %v4825_v7 = vpop.f32.mrb[26].mxu0 }
 0x2dd   :  { %v1477_v34 = vsel %vm1368_vm6, %v6448_v55, -inf  ;;  %v6456_v52 = vadd.f32 %v4825_v7, %v6137_v14  ;;  %v1115_v2 = vpop.f32.mrb[27].mxu0  ;;  %v1446_v29 = vrot.slane %v1445_v35, 2  ;;  %vm1335_vm11 = vcmp.eq.s32.totalorder %v1303_v50, 1 }
 0x2de   :  { %v1479_v28 = vmax.f32 %v1477_v34, %v1478_v6  ;;  %v6459_v32 = vadd.f32 %v6137_v14, %v1115_v2  ;;  %v1472_v26 = vmax.f32 %v1470_v1, %v1471_v51  ;;  %v1455_v6 = vrot.slane %v1454_v22, 2 }
 0x2df   :  { %7128 = vst [vmem:[#allocation35_spill] sm:$0xff] %v6456_v52  ;;  %v6464_v53 = vsel %vm1331_vm12, %v6456_v52, -1e+18  ;;  %v1464_v34 = vrot.slane %v1463_v5, 2  ;;  %v7068_v38 = vmov 0.0   ;;  %vm4009_vm12 = vcmask 1043456  }
 0x2e0   :  { %7129 = vst [vmem:[#allocation36_spill] sm:$0xff] %v6459_v32  ;;  %v1480_v7 = vrot.slane %v1479_v28, 4  ;;  %v1487_v21 = vsel %vm1368_vm6, %v6464_v53, -inf  ;;  %v4828_v25 = vpop.f32.mrb[28].mxu0  ;;  %v6469_v39 = vsel %vm1330_vm14, %v6459_v32, -1e+18  ;;  %v1456_v18 = vmax.f32 %v1454_v22, %v1455_v6 }
 0x2e1   :  { %v6474_v17 = vadd.f32 %v4828_v25, %v6137_v14  ;;  %v1125_v48 = vpop.f32.mrb[29].mxu0  ;;  %v1486_v51 = vsel %vm1368_vm6, %v6469_v39, -inf  ;;  %v1473_v16 = vrot.slane %v1472_v26, 2  ;;  %v1465_v36 = vmax.f32 %v1463_v5, %v1464_v34  ;;  %54 = vst.msk [vmem:[#allocation3] sm:$0xff] %vm51_vm3, %v7068_v38  ;;  %55 = vst.msk [vmem:[#allocation3 + $0x8] sm:$0xff] %vm51_vm3, %v7068_v38 }
 0x2e2   :  { %v1481_v1 = vmax.f32 %v1479_v28, %v1480_v7  ;;  %v1488_v2 = vmax.f32 %v1486_v51, %v1487_v21  ;;  %v6483_v58 = vadd.f32 %v6137_v14, %v1125_v48  ;;  %v1447_v51 = vmax.f32 %v1445_v35, %v1446_v29  ;;  %57 = vst.msk [vmem:[#allocation4] sm:$0xff] %vm56_vm0, %v7068_v38 }
 0x2e3   :  { %7130 = vst [vmem:[#allocation37_spill] sm:$0xff] %v6474_v17  ;;  %v6480_v44 = vsel %vm1333_vm7, %v6474_v17, -1e+18  ;;  %v1474_v21 = vmax.f32 %v1472_v26, %v1473_v16  ;;  %v1466_v6 = vrot.slane %v1465_v36, 1  ;;  %58 = vst.msk [vmem:[#allocation4 + $0x8] sm:$0xff] %vm56_vm0, %v7068_v38  ;;  %vm2105_vm14 = vcmask 130048  }
 0x2e4   :  { %7131 = vst [vmem:[#allocation38_spill] sm:$0xff] %v6483_v58  ;;  %v1482_v25 = vrot.slane %v1481_v1, 2  ;;  %v1496_v32 = vsel %vm1368_vm6, %v6480_v44, -inf  ;;  %v4831_v52 = vpop.f32.mrb[30].mxu0  ;;  %v1489_v28 = vrot.slane %v1488_v2, 4  ;;  %v1448_v34 = vrot.slane %v1447_v51, 1 }
 0x2e5   :  { %v6490_v7 = vsel %vm1332_vm4, %v6483_v58, -1e+18  ;;  %v6495_v8 = vadd.f32 %v4831_v52, %v6137_v14  ;;  %v1135_v48 = vpop.f32.mrb[31].mxu0  ;;  %vm3890_vm4 = vcmask 257024  }
 0x2e6   :  { %v1495_v19 = vsel %vm1368_vm6, %v6490_v7, -inf  ;;  %v6500_v9 = vadd.f32 %v6137_v14, %v1135_v48  ;;  %v1490_v3 = vmax.f32 %v1488_v2, %v1489_v28  ;;  %v1483_v14 = vmax.f32 %v1481_v1, %v1482_v25 }
 0x2e7   :  { %7132 = vst [vmem:[#allocation39_spill] sm:$0xff] %v6495_v8  ;;  %v1497_v15 = vmax.f32 %v1495_v19, %v1496_v32  ;;  %v6504_v40 = vsel %vm1335_vm11, %v6495_v8, -1e+18  ;;  %v1457_v32 = vrot.slane %v1456_v18, 1  ;;  %v1475_v2 = vrot.slane %v1474_v21, 1 }
 0x2e8   :  { %7133 = vst [vmem:[#allocation40_spill] sm:$0xff] %v6500_v9  ;;  %v1505_v52 = vsel %vm1368_vm6, %v6504_v40, -inf  ;;  %v6510_v35 = vsel %vm1334_vm10, %v6500_v9, -1e+18  ;;  %v1491_v29 = vrot.slane %v1490_v3, 2  ;;  %v1484_v1 = vrot.slane %v1483_v14, 1 }
 0x2e9   :  { %v1498_v5 = vrot.slane %v1497_v15, 4  ;;  %v1504_v19 = vsel %vm1368_vm6, %v6510_v35, -inf }
 0x2ea   :  { %v1506_v50 = vmax.f32 %v1504_v19, %v1505_v52  ;;  %v1492_v26 = vmax.f32 %v1490_v3, %v1491_v29  ;;  %v1458_v3 = vmax.f32 %v1456_v18, %v1457_v32  ;;  %v1467_v52 = vmax.f32 %v1465_v36, %v1466_v6 }
 0x2eb   :  { %v1499_v16 = vmax.f32 %v1497_v15, %v1498_v5  ;;  %v1449_v5 = vmax.f32 %v1447_v51, %v1448_v34  ;;  %v1476_v19 = vmax.f32 %v1474_v21, %v1475_v2  ;;  %v1485_v9 = vmax.f32 %v1483_v14, %v1484_v1 }
 0x2ec   :  { %v1507_v28 = vrot.slane %v1506_v50, 4  ;;  %v1493_v48 = vrot.slane %v1492_v26, 1  ;;  %v5240_v14 = vmov 1966171168  }
 0x2ed   :  { %v1500_v25 = vrot.slane %v1499_v16, 2  ;;  %v1545_v58 = vsel %vm1531_vm13, %v1458_v3, %v1449_v5 }
 0x2ee   :  { %v1508_v15 = vmax.f32 %v1506_v50, %v1507_v28  ;;  %v1494_v17 = vmax.f32 %v1492_v26, %v1493_v48  ;;  %v1546_v54 = vsel %vm1533_vm15, %v1467_v52, %v1545_v58  ;;  %v1570_v50 = vunpack.c.l.s4 %v5240_v14  ;;  %v6532_v58 = vld [vmem:[#allocation2] sm:$0xff]  ;;  %v6562_v14 = vld [vmem:[#allocation2 + $0x8] sm:$0xff] }
 0x2ef   :  { %v1501_v29 = vmax.f32 %v1499_v16, %v1500_v25  ;;  %v1547_v46 = vsel %vm1535_vm1, %v1476_v19, %v1546_v54 }
 0x2f0   :  { %v1509_v22 = vrot.slane %v1508_v15, 2  ;;  %v1548_v18 = vsel %vm1537_vm2, %v1485_v9, %v1547_v46 }
 0x2f1   :  { %v1502_v8 = vrot.slane %v1501_v29, 1  ;;  %v1549_v36 = vsel %vm1539_vm5, %v1494_v17, %v1548_v18 }
 0x2f2   :  { %v1510_v59 = vmax.f32 %v1508_v15, %v1509_v22  ;;  %v1572_v22 = vlaneseq }
 0x2f3   :  { %v1503_v30 = vmax.f32 %v1501_v29, %v1502_v8  ;;  %v1571_v8 = vunpack.c.0.s8 %v1570_v50 }
 0x2f4   :  { %v1511_v38 = vrot.slane %v1510_v59, 1  ;;  %v1573_v6 = vshrl.u32 %v1572_v22, 7 }
 0x2f5   :  { %v1550_v21 = vsel %vm1541_vm8, %v1503_v30, %v1549_v36 }
 0x2f6   :  { %v1512_v32 = vmax.f32 %v1510_v59, %v1511_v38  ;;  %v1574_v26 = vsub.s32 %v1571_v8, %v1573_v6  ;;  %v6537_v59 = vsub.s32 0, %v1573_v6 }
 0x2f8   :  { %v1551_v51 = vsel %vm1543_vm9, %v1512_v32, %v1550_v21 }
 0x2f9   :  { %1554 = vrot.lane.b32.xlu1 %v1551_v51, %s5238_s5 }
 0x34b   :  { %v1553_v54 = vpop.permute.xlu0 %1552 }
 0x34c   :  { %v6535_v46 = vmax.f32 %v6532_v58, %v1553_v54 }
 0x34e   :  { %v1560_v30 = vsub.f32 %v6532_v58, %v6535_v46  ;;  %v1568_v9 = vcombine.high %v6535_v46, %v6535_v46  ;;  %v1575_v17 = vrot.slane %v6535_v46, %v1574_v26  ;;  %2063 = vst.msk [vmem:[#allocation2] sm:$0xff] %vm51_vm3, %v6535_v46 }
 0x350   :  { %v1582_v16 = vrot.slane %v1568_v9, %v1574_v26  ;;  %v1583_v34 = vcombine.high %v1575_v17, %v1575_v17  ;;  %v1591_v2 = vrot.slane %v1575_v17, %v1574_v26 }
 0x352   :  { %v1669_v28 = vrot.slane %v1591_v2, %v6537_v59  ;;  %v1605_v38 = vrot.slane %v1583_v34, %v1574_v26  ;;  %v1613_v1 = vcombine.high %v1591_v2, %v1591_v2  ;;  %v1584_v48 = vcombine.high %v1582_v16, %v1582_v16 }
 0x353   :  { %v1598_v52 = vrot.slane %v1582_v16, %v1574_v26 }
 0x354   :  { %1730 = vrot.lane.b32.xlu0 %v1669_v28, %s5241_s1  ;;  %v1673_v25 = vrot.slane %v1605_v38, %v6537_v59  ;;  %v1615_v3 = vcombine.high %v1605_v38, %v1605_v38  ;;  %v1677_v15 = vrot.slane %v1613_v1, %v6537_v59  ;;  %v1612_v5 = vrot.slane %v1584_v48, %v1574_v26 }
 0x355   :  { %v1685_v19 = vrot.slane %v1598_v52, %v6537_v59  ;;  %v1614_v18 = vcombine.high %v1598_v52, %v1598_v52 }
 0x356   :  { %1732 = vrot.lane.b32.xlu1 %v1673_v25, %s5241_s1  ;;  %v1681_v29 = vrot.slane %v1615_v3, %v6537_v59  ;;  %v1689_v32 = vrot.slane %v1612_v5, %v6537_v59  ;;  %v1616_v36 = vcombine.high %v1612_v5, %v1612_v5 }
 0x357   :  { %v1693_v21 = vrot.slane %v1614_v18, %v6537_v59 }
 0x358   :  { %1734 = vrot.lane.b32.xlu0 %v1677_v15, %s5241_s1  ;;  %v1697_v51 = vrot.slane %v1616_v36, %v6537_v59 }
 0x35a   :  { %1736 = vrot.lane.b32.xlu1 %v1681_v29, %s5241_s1 }
 0x35c   :  { %1738 = vrot.lane.b32.xlu0 %v1685_v19, %s5241_s1 }
 0x35e   :  { %1740 = vrot.lane.b32.xlu1 %v1689_v32, %s5241_s1 }
 0x360   :  { %1742 = vrot.lane.b32.xlu0 %v1693_v21, %s5241_s1 }
 0x362   :  { %1744 = vrot.lane.b32.xlu1 %v1697_v51, %s5241_s1 }
 0x36b   :  { %v1555_v50 = vpop.permute.xlu1 %1554 }
 0x36c   :  { %v6565_v22 = vmax.f32 %v6562_v14, %v1555_v50 }
 0x36e   :  { %v1561_v8 = vsub.f32 %v6562_v14, %v6565_v22  ;;  %v1617_v6 = vcombine.high %v6565_v22, %v6565_v22  ;;  %v1624_v54 = vrot.slane %v6565_v22, %v1574_v26  ;;  %2064 = vst.msk [vmem:[#allocation2 + $0x8] sm:$0xff] %vm51_vm3, %v6565_v22  ;;  %v7145_v22 = vld [vmem:[#allocation17_spill] sm:$0xff] }
 0x370   :  { %v1631_v9 = vrot.slane %v1617_v6, %v1574_v26  ;;  %v1632_v17 = vcombine.high %v1624_v54, %v1624_v54  ;;  %v1640_v16 = vrot.slane %v1624_v54, %v1574_v26 }
 0x372   :  { %v1701_v34 = vrot.slane %v1640_v16, %v6537_v59  ;;  %v1654_v2 = vrot.slane %v1632_v17, %v1574_v26  ;;  %v1662_v28 = vcombine.high %v1640_v16, %v1640_v16  ;;  %v1633_v25 = vcombine.high %v1631_v9, %v1631_v9 }
 0x373   :  { %v1647_v48 = vrot.slane %v1631_v9, %v1574_v26 }
 0x374   :  { %1746 = vrot.lane.b32.xlu0 %v1701_v34, %s5241_s1  ;;  %v1705_v38 = vrot.slane %v1654_v2, %v6537_v59  ;;  %v1664_v1 = vcombine.high %v1654_v2, %v1654_v2  ;;  %v1709_v3 = vrot.slane %v1662_v28, %v6537_v59  ;;  %v1661_v52 = vrot.slane %v1633_v25, %v1574_v26 }
 0x375   :  { %v1717_v29 = vrot.slane %v1647_v48, %v6537_v59  ;;  %v1663_v5 = vcombine.high %v1647_v48, %v1647_v48 }
 0x376   :  { %1748 = vrot.lane.b32.xlu1 %v1705_v38, %s5241_s1  ;;  %v1713_v15 = vrot.slane %v1664_v1, %v6537_v59  ;;  %v1721_v19 = vrot.slane %v1661_v52, %v6537_v59  ;;  %v1665_v18 = vcombine.high %v1661_v52, %v1661_v52 }
 0x377   :  { %v1725_v32 = vrot.slane %v1663_v5, %v6537_v59 }
 0x378   :  { %1750 = vrot.lane.b32.xlu0 %v1709_v3, %s5241_s1  ;;  %v1729_v36 = vrot.slane %v1665_v18, %v6537_v59 }
 0x37a   :  { %1752 = vrot.lane.b32.xlu1 %v1713_v15, %s5241_s1 }
 0x37c   :  { %1754 = vrot.lane.b32.xlu0 %v1717_v29, %s5241_s1 }
 0x37e   :  { %1756 = vrot.lane.b32.xlu1 %v1721_v19, %s5241_s1 }
 0x380   :  { %1758 = vrot.lane.b32.xlu0 %v1725_v32, %s5241_s1 }
 0x382   :  { %1760 = vrot.lane.b32.xlu1 %v1729_v36, %s5241_s1 }
 0x3c6   :  { %v1731_v26 = vpop.permute.xlu0 %1730 }
 0x3c7   :  { %v1778_v21 = vsub.f32 %v6147_v31, %v1731_v26  ;;  %v1779_v51 = vsub.f32 %v6145_v24, %v1731_v26 }
 0x3c8   :  { %v1733_v50 = vpop.permute.xlu1 %1732 }
 0x3c9   :  { %v1810_v6 = vmul.f32 1.442695, %v1778_v21  ;;  %v1812_v54 = vmul.f32 1.442695, %v1779_v51  ;;  %v1780_v9 = vsub.f32 %v6168_v37, %v1733_v50  ;;  %v1781_v17 = vsub.f32 %v6163_v56, %v1733_v50 }
 0x3ca   :  { %v1735_v16 = vpop.permute.xlu0 %1734 }
 0x3cb   :  { %5108 = vpow2.f32 %v1810_v6  ;;  %v1814_v34 = vmul.f32 1.442695, %v1780_v9  ;;  %v1816_v2 = vmul.f32 1.442695, %v1781_v17  ;;  %v1782_v59 = vsub.f32 %v6190_v63, %v1735_v16 }
 0x3cc   :  { %5110 = vpow2.f32 %v1812_v54  ;;  %v1783_v28 = vsub.f32 %v6183_v45, %v1735_v16  ;;  %v1737_v38 = vpop.permute.xlu1 %1736 }
 0x3cd   :  { %5112 = vpow2.f32 %v1814_v34  ;;  %v1818_v31 = vmul.f32 1.442695, %v1782_v59  ;;  %v1784_v24 = vsub.f32 %v6211_v0, %v1737_v38  ;;  %v1785_v1 = vsub.f32 %v6206_v4, %v1737_v38 }
 0x3ce   :  { %5114 = vpow2.f32 %v1816_v2  ;;  %v1820_v37 = vmul.f32 1.442695, %v1783_v28  ;;  %v1739_v25 = vpop.permute.xlu0 %1738 }
 0x3cf   :  { %5116 = vpow2.f32 %v1818_v31  ;;  %v1822_v56 = vmul.f32 1.442695, %v1784_v24  ;;  %v1824_v3 = vmul.f32 1.442695, %v1785_v1  ;;  %v1786_v48 = vsub.f32 %v6238_v23, %v1739_v25 }
 0x3d0   :  { %5118 = vpow2.f32 %v1820_v37  ;;  %v1787_v63 = vsub.f32 %v6228_v43, %v1739_v25  ;;  %v1741_v15 = vpop.permute.xlu1 %1740 }
 0x3d1   :  { %5120 = vpow2.f32 %v1822_v56  ;;  %v1826_v45 = vmul.f32 1.442695, %v1786_v48  ;;  %v1788_v52 = vsub.f32 %v6265_v13, %v1741_v15  ;;  %v1789_v0 = vsub.f32 %v6251_v27, %v1741_v15 }
 0x3d2   :  { %5122 = vpow2.f32 %v1824_v3  ;;  %v1828_v4 = vmul.f32 1.442695, %v1787_v63  ;;  %v1743_v29 = vpop.permute.xlu0 %1742 }
 0x3d3   :  { %5124 = vpow2.f32 %v1826_v45  ;;  %v1830_v5 = vmul.f32 1.442695, %v1788_v52  ;;  %v1832_v19 = vmul.f32 1.442695, %v1789_v0  ;;  %v1790_v18 = vsub.f32 %v6290_v33, %v1743_v29 }
 0x3d4   :  { %5126 = vpow2.f32 %v1828_v4  ;;  %v1791_v23 = vsub.f32 %v6282_v10, %v1743_v29  ;;  %v1745_v32 = vpop.permute.xlu1 %1744 }
 0x3d5   :  { %v5109_v43 = vpop.eup %5108  ;;  %5128 = vpow2.f32 %v1830_v5  ;;  %v1834_v36 = vmul.f32 1.442695, %v1790_v18  ;;  %v1792_v26 = vsub.f32 %v6317_v41, %v1745_v32  ;;  %v1793_v13 = vsub.f32 %v6309_v47, %v1745_v32 }
 0x3d6   :  { %v5111_v27 = vpop.eup %5110  ;;  %v1878_v21 = vsel %vm1368_vm6, %v5109_v43, 0.0  ;;  %5130 = vpow2.f32 %v1832_v19  ;;  %v1836_v51 = vmul.f32 1.442695, %v1791_v23  ;;  %2067 = vrot.lane.b32.xlu0 %v5109_v43, %s5238_s5 }
 0x3d7   :  { %v5113_v50 = vpop.eup %5112  ;;  %v1879_v33 = vsel %vm1368_vm6, %v5111_v27, 0.0  ;;  %5132 = vpow2.f32 %v1834_v36  ;;  %v1838_v10 = vmul.f32 1.442695, %v1792_v26  ;;  %v1840_v6 = vmul.f32 1.442695, %v1793_v13  ;;  %2069 = vrot.lane.b32.xlu1 %v5111_v27, %s5238_s5 }
 0x3d8   :  { %v5115_v54 = vpop.eup %5114  ;;  %v1880_v9 = vadd.f32 %v1879_v33, %v1878_v21  ;;  %v1887_v41 = vsel %vm1368_vm6, %v5113_v50, 0.0  ;;  %5134 = vpow2.f32 %v1836_v51 }
 0x3d9   :  { %v5117_v47 = vpop.eup %5116  ;;  %v1888_v17 = vsel %vm1368_vm6, %v5115_v54, 0.0  ;;  %5136 = vpow2.f32 %v1838_v10 }
 0x3da   :  { %v5119_v16 = vpop.eup %5118  ;;  %v1881_v34 = vrot.slane %v1880_v9, 4  ;;  %v1889_v2 = vadd.f32 %v1888_v17, %v1887_v41  ;;  %v1896_v59 = vsel %vm1368_vm6, %v5117_v47, 0.0  ;;  %5138 = vpow2.f32 %v1840_v6  ;;  %2181 = vrot.lane.b32.xlu0 %v5113_v50, %s5238_s5 }
 0x3db   :  { %v5121_v28 = vpop.eup %5120  ;;  %v1897_v38 = vsel %vm1368_vm6, %v5119_v16, 0.0  ;;  %2183 = vrot.lane.b32.xlu1 %v5115_v54, %s5238_s5 }
 0x3dc   :  { %v5123_v31 = vpop.eup %5122  ;;  %v1882_v24 = vadd.f32 %v1881_v34, %v1880_v9  ;;  %v1890_v1 = vrot.slane %v1889_v2, 4  ;;  %v1898_v37 = vadd.f32 %v1897_v38, %v1896_v59  ;;  %v1905_v25 = vsel %vm1368_vm6, %v5121_v28, 0.0 }
 0x3dd   :  { %v5125_v56 = vpop.eup %5124  ;;  %v1906_v3 = vsel %vm1368_vm6, %v5123_v31, 0.0 }
 0x3de   :  { %v5127_v48 = vpop.eup %5126  ;;  %v1883_v63 = vrot.slane %v1882_v24, 2  ;;  %v1891_v15 = vadd.f32 %v1890_v1, %v1889_v2  ;;  %v1899_v45 = vrot.slane %v1898_v37, 4  ;;  %v1907_v52 = vadd.f32 %v1906_v3, %v1905_v25  ;;  %2294 = vrot.lane.b32.xlu0 %v5117_v47, %s5238_s5 }
 0x3df   :  { %v5129_v0 = vpop.eup %5128  ;;  %v1914_v4 = vsel %vm1368_vm6, %v5125_v56, 0.0  ;;  %v1915_v29 = vsel %vm1368_vm6, %v5127_v48, 0.0  ;;  %2296 = vrot.lane.b32.xlu1 %v5119_v16, %s5238_s5 }
 0x3e0   :  { %v5131_v5 = vpop.eup %5130  ;;  %v1884_v19 = vadd.f32 %v1883_v63, %v1882_v24  ;;  %v1892_v18 = vrot.slane %v1891_v15, 2  ;;  %v1900_v23 = vadd.f32 %v1899_v45, %v1898_v37  ;;  %v1908_v32 = vrot.slane %v1907_v52, 4 }
 0x3e1   :  { %v6622_v43 = vpop.eup %5132  ;;  %v1916_v36 = vadd.f32 %v1915_v29, %v1914_v4  ;;  %v1923_v26 = vsel %vm1368_vm6, %v5129_v0, 0.0  ;;  %v1924_v13 = vsel %vm1368_vm6, %v5131_v5, 0.0 }
 0x3e2   :  { %v6626_v27 = vpop.eup %5134  ;;  %v1885_v21 = vrot.slane %v1884_v19, 1  ;;  %v1893_v51 = vadd.f32 %v1892_v18, %v1891_v15  ;;  %v1901_v50 = vrot.slane %v1900_v23, 2  ;;  %v1909_v33 = vadd.f32 %v1908_v32, %v1907_v52  ;;  %2520 = vrot.lane.b32.xlu0 %v5125_v56, %s5238_s5 }
 0x3e3   :  { %v6629_v10 = vpop.eup %5136  ;;  %v1917_v6 = vrot.slane %v1916_v36, 4  ;;  %v1925_v54 = vadd.f32 %v1924_v13, %v1923_v26  ;;  %v1932_v9 = vsel %vm1368_vm6, %v6622_v43, 0.0  ;;  %v1933_v41 = vsel %vm1368_vm6, %v6626_v27, 0.0  ;;  %2522 = vrot.lane.b32.xlu1 %v5127_v48, %s5238_s5 }
 0x3e4   :  { %v6636_v17 = vpop.eup %5138  ;;  %v6638_v16 = vadd.f32 %v1885_v21, %v1884_v19  ;;  %v1894_v34 = vrot.slane %v1893_v51, 1  ;;  %v1902_v2 = vadd.f32 %v1901_v50, %v1900_v23  ;;  %v1910_v59 = vrot.slane %v1909_v33, 2 }
 0x3e5   :  { %v1918_v38 = vadd.f32 %v1917_v6, %v1916_v36  ;;  %v1926_v24 = vrot.slane %v1925_v54, 4  ;;  %v6640_v1 = vadd.f32 %v1933_v41, %v1932_v9  ;;  %v6644_v37 = vsel %vm1368_vm6, %v6629_v10, 0.0 }
 0x3e6   :  { %v1747_v47 = vpop.permute.xlu0 %1746  ;;  %v6646_v56 = vadd.f32 %v1894_v34, %v1893_v51  ;;  %v1903_v3 = vrot.slane %v1902_v2, 1  ;;  %v1911_v48 = vadd.f32 %v1910_v59, %v1909_v33  ;;  %v6650_v63 = vsel %vm1368_vm6, %v6636_v17, 0.0  ;;  %2407 = vrot.lane.b32.xlu0 %v5121_v28, %s5238_s5 }
 0x3e7   :  { %v1794_v15 = vsub.f32 %v6349_v20, %v1747_v47  ;;  %v1795_v45 = vsub.f32 %v6338_v11, %v1747_v47  ;;  %2409 = vrot.lane.b32.xlu1 %v5123_v31, %s5238_s5  ;;  %v1927_v13 = vadd.f32 %v1926_v24, %v1925_v54  ;;  %v1919_v51 = vrot.slane %v1918_v38, 2 }
 0x3e8   :  { %v1749_v25 = vpop.permute.xlu1 %1748  ;;  %v6660_v23 = vadd.f32 %v1903_v3, %v1902_v2  ;;  %v1912_v32 = vrot.slane %v1911_v48, 1 }
 0x3e9   :  { %v1796_v52 = vsub.f32 %v6370_v57, %v1749_v25  ;;  %v1797_v4 = vsub.f32 %v6363_v61, %v1749_v25  ;;  %v1842_v36 = vmul.f32 1.442695, %v1794_v15  ;;  %v1844_v28 = vmul.f32 1.442695, %v1795_v45 }
 0x3ea   :  { %v1751_v29 = vpop.permute.xlu0 %1750  ;;  %2633 = vrot.lane.b32.xlu0 %v5129_v0, %s5238_s5  ;;  %v1920_v0 = vadd.f32 %v1919_v51, %v1918_v38  ;;  %v1928_v41 = vrot.slane %v1927_v13, 2  ;;  %v1943_v45 = vadd.f32 %v6650_v63, %v6644_v37 }
 0x3eb   :  { %v1798_v19 = vsub.f32 %v6397_v42, %v1751_v29  ;;  %v1799_v18 = vsub.f32 %v6390_v49, %v1751_v29  ;;  %v1846_v26 = vmul.f32 1.442695, %v1796_v52  ;;  %v1848_v11 = vmul.f32 1.442695, %v1797_v4  ;;  %2635 = vrot.lane.b32.xlu1 %v5131_v5, %s5238_s5 }
 0x3ec   :  { %v1753_v20 = vpop.permute.xlu1 %1752  ;;  %5140 = vpow2.f32 %v1842_v36  ;;  %v1913_v42 = vadd.f32 %v1912_v32, %v1911_v48  ;;  %v1921_v5 = vrot.slane %v1920_v0, 1  ;;  %v1929_v34 = vadd.f32 %v1928_v41, %v1927_v13 }
 0x3ed   :  { %v1850_v21 = vmul.f32 1.442695, %v1798_v19  ;;  %v1852_v31 = vmul.f32 1.442695, %v1799_v18  ;;  %v1800_v61 = vsub.f32 %v6423_v60, %v1753_v20  ;;  %v1801_v57 = vsub.f32 %v6413_v12, %v1753_v20 }
 0x3ee   :  { %v1755_v49 = vpop.permute.xlu0 %1754  ;;  %5142 = vpow2.f32 %v1844_v28  ;;  %2746 = vrot.lane.b32.xlu0 %v6622_v43, %s5238_s5  ;;  %v1922_v25 = vadd.f32 %v1921_v5, %v1920_v0  ;;  %v1944_v19 = vrot.slane %v1943_v45, 4 }
 0x3ef   :  { %v1854_v50 = vmul.f32 1.442695, %v1800_v61  ;;  %v1802_v33 = vsub.f32 %v6448_v55, %v1755_v49  ;;  %v1803_v6 = vsub.f32 %v6442_v62, %v1755_v49  ;;  %5144 = vpow2.f32 %v1846_v26  ;;  %2748 = vrot.lane.b32.xlu1 %v6626_v27, %s5238_s5 }
 0x3f0   :  { %v1856_v54 = vmul.f32 1.442695, %v1801_v57  ;;  %v1757_v9 = vpop.permute.xlu1 %1756  ;;  %5146 = vpow2.f32 %v1848_v11  ;;  %v1935_v27 = vrot.slane %v6640_v1, 4  ;;  %v1945_v36 = vadd.f32 %v1944_v19, %v1943_v45 }
 0x3f1   :  { %v1858_v60 = vmul.f32 1.442695, %v1802_v33  ;;  %v1860_v47 = vmul.f32 1.442695, %v1803_v6  ;;  %v1804_v12 = vsub.f32 %v6469_v39, %v1757_v9  ;;  %5148 = vpow2.f32 %v1850_v21 }
 0x3f2   :  { %v1805_v55 = vsub.f32 %v6464_v53, %v1757_v9  ;;  %v1759_v62 = vpop.permute.xlu0 %1758  ;;  %5150 = vpow2.f32 %v1852_v31  ;;  %v1930_v39 = vrot.slane %v1929_v34, 1  ;;  %2859 = vrot.lane.b32.xlu0 %v6629_v10, %s5238_s5  ;;  %v2038_v10 = vsel %vm1531_vm13, %v6646_v56, %v6638_v16 }
 0x3f3   :  { %v1862_v2 = vmul.f32 1.442695, %v1804_v12  ;;  %v1806_v59 = vsub.f32 %v6490_v7, %v1759_v62  ;;  %v1807_v38 = vsub.f32 %v6480_v44, %v1759_v62  ;;  %5152 = vpow2.f32 %v1854_v50  ;;  %2861 = vrot.lane.b32.xlu1 %v6636_v17, %s5238_s5 }
 0x3f4   :  { %v1864_v24 = vmul.f32 1.442695, %v1805_v55  ;;  %v1761_v43 = vpop.permute.xlu1 %1760  ;;  %5154 = vpow2.f32 %v1856_v54  ;;  %v1931_v44 = vadd.f32 %v1930_v39, %v1929_v34  ;;  %v1936_v17 = vadd.f32 %v1935_v27, %v6640_v1 }
 0x3f5   :  { %v1866_v3 = vmul.f32 1.442695, %v1806_v59  ;;  %v1868_v48 = vmul.f32 1.442695, %v1807_v38  ;;  %v1808_v53 = vsub.f32 %v6510_v35, %v1761_v43  ;;  %5156 = vpow2.f32 %v1858_v60 }
 0x3f6   :  { %v1809_v7 = vsub.f32 %v6504_v40, %v1761_v43  ;;  %5158 = vpow2.f32 %v1860_v47  ;;  %v6688_v52 = vpop.eup %5140  ;;  %v2039_v40 = vsel %vm1533_vm15, %v6660_v23, %v2038_v10  ;;  %v1937_v56 = vrot.slane %v1936_v17, 2 }
 0x3f7   :  { %v1870_v15 = vmul.f32 1.442695, %v1808_v53  ;;  %5160 = vpow2.f32 %v1862_v2  ;;  %v1950_v29 = vsel %vm1368_vm6, %v6688_v52, 0.0  ;;  %v2040_v37 = vsel %vm1535_vm1, %v1913_v42, %v2039_v40 }
 0x3f8   :  { %v1872_v35 = vmul.f32 1.442695, %v1809_v7  ;;  %v5143_v4 = vpop.eup %5142  ;;  %5162 = vpow2.f32 %v1864_v24  ;;  %v2041_v1 = vsel %vm1537_vm2, %v1922_v25, %v2040_v37  ;;  %v1938_v20 = vadd.f32 %v1937_v56, %v1936_v17 }
 0x3f9   :  { %v6696_v63 = vpop.eup %5144  ;;  %v1951_v16 = vsel %vm1368_vm6, %v5143_v4, 0.0  ;;  %5164 = vpow2.f32 %v1866_v3  ;;  %2974 = vrot.lane.b32.xlu1 %v5143_v4, %s5238_s5  ;;  %v1946_v42 = vrot.slane %v1945_v36, 2  ;;  %v2042_v51 = vsel %vm1539_vm5, %v1931_v44, %v2041_v1 }
 0x3fa   :  { %v5147_v18 = vpop.eup %5146  ;;  %v1952_v23 = vadd.f32 %v1951_v16, %v1950_v29  ;;  %v1959_v32 = vsel %vm1368_vm6, %v6696_v63, 0.0  ;;  %5166 = vpow2.f32 %v1868_v48  ;;  %v1939_v49 = vrot.slane %v1938_v20, 1 }
 0x3fb   :  { %v6703_v28 = vpop.eup %5148  ;;  %v1960_v26 = vsel %vm1368_vm6, %v5147_v18, 0.0  ;;  %5168 = vpow2.f32 %v1870_v15  ;;  %v1947_v47 = vadd.f32 %v1946_v42, %v1945_v36 }
 0x3fc   :  { %v5151_v13 = vpop.eup %5150  ;;  %v1953_v11 = vrot.slane %v1952_v23, 4  ;;  %v1961_v21 = vadd.f32 %v1960_v26, %v1959_v32  ;;  %v1968_v31 = vsel %vm1368_vm6, %v6703_v28, 0.0  ;;  %5170 = vpow2.f32 %v1872_v35 }
 0x3fd   :  { %v6708_v61 = vpop.eup %5152  ;;  %v1969_v57 = vsel %vm1368_vm6, %v5151_v13, 0.0  ;;  %3087 = vrot.lane.b32.xlu1 %v5147_v18, %s5238_s5  ;;  %v1940_v60 = vadd.f32 %v1939_v49, %v1938_v20  ;;  %v1948_v24 = vrot.slane %v1947_v47, 1 }
 0x3fe   :  { %v5155_v50 = vpop.eup %5154  ;;  %v1954_v33 = vadd.f32 %v1953_v11, %v1952_v23  ;;  %v1962_v6 = vrot.slane %v1961_v21, 4  ;;  %v1970_v54 = vadd.f32 %v1969_v57, %v1968_v31  ;;  %v1977_v9 = vsel %vm1368_vm6, %v6708_v61, 0.0 }
 0x3ff   :  { %v6715_v0 = vpop.eup %5156  ;;  %v1978_v41 = vsel %vm1368_vm6, %v5155_v50, 0.0  ;;  %v2043_v43 = vsel %vm1541_vm8, %v1940_v60, %v2042_v51  ;;  %v1949_v45 = vadd.f32 %v1948_v24, %v1947_v47 }
 0x400   :  { %v5159_v12 = vpop.eup %5158  ;;  %v1955_v55 = vrot.slane %v1954_v33, 2  ;;  %v1963_v62 = vadd.f32 %v1962_v6, %v1961_v21  ;;  %v1971_v5 = vrot.slane %v1970_v54, 4  ;;  %v1979_v34 = vadd.f32 %v1978_v41, %v1977_v9 }
 0x401   :  { %v6718_v2 = vpop.eup %5160  ;;  %v1986_v59 = vsel %vm1368_vm6, %v6715_v0, 0.0  ;;  %v1987_v38 = vsel %vm1368_vm6, %v5159_v12, 0.0  ;;  %3200 = vrot.lane.b32.xlu1 %v5151_v13, %s5238_s5  ;;  %v2044_v42 = vsel %vm1543_vm9, %v1949_v45, %v2043_v43 }
 0x402   :  { %v5163_v25 = vpop.eup %5162  ;;  %v1956_v39 = vadd.f32 %v1955_v55, %v1954_v33  ;;  %v1964_v3 = vrot.slane %v1963_v62, 2  ;;  %v1972_v48 = vadd.f32 %v1971_v5, %v1970_v54  ;;  %v1980_v53 = vrot.slane %v1979_v34, 4  ;;  %2052 = vrot.lane.b32.xlu0 %v2044_v42, %s5238_s5 }
 0x403   :  { %v6725_v7 = vpop.eup %5164  ;;  %v1988_v44 = vadd.f32 %v1987_v38, %v1986_v59  ;;  %v1995_v27 = vsel %vm1368_vm6, %v6718_v2, 0.0  ;;  %v1996_v15 = vsel %vm1368_vm6, %v5163_v25, 0.0 }
 0x404   :  { %v5167_v10 = vpop.eup %5166  ;;  %v1957_v35 = vrot.slane %v1956_v39, 1  ;;  %v1965_v17 = vadd.f32 %v1964_v3, %v1963_v62  ;;  %v1973_v40 = vrot.slane %v1972_v48, 2  ;;  %v1981_v4 = vadd.f32 %v1980_v53, %v1979_v34 }
 0x405   :  { %v5169_v29 = vpop.eup %5168  ;;  %v1989_v19 = vrot.slane %v1988_v44, 4  ;;  %v1997_v37 = vadd.f32 %v1996_v15, %v1995_v27  ;;  %v2004_v16 = vsel %vm1368_vm6, %v6725_v7, 0.0  ;;  %v2005_v56 = vsel %vm1368_vm6, %v5167_v10, 0.0  ;;  %3426 = vrot.lane.b32.xlu1 %v5159_v12, %s5238_s5 }
 0x406   :  { %v5171_v1 = vpop.eup %5170  ;;  %v1958_v18 = vadd.f32 %v1957_v35, %v1956_v39  ;;  %v1966_v23 = vrot.slane %v1965_v17, 1  ;;  %v1974_v32 = vadd.f32 %v1973_v40, %v1972_v48  ;;  %v1982_v36 = vrot.slane %v1981_v4, 2  ;;  %2972 = vrot.lane.b32.xlu0 %v6688_v52, %s5238_s5 }
 0x407   :  { %v1990_v26 = vadd.f32 %v1989_v19, %v1988_v44  ;;  %v1998_v20 = vrot.slane %v1997_v37, 4  ;;  %v2006_v13 = vadd.f32 %v2005_v56, %v2004_v16  ;;  %v2013_v11 = vsel %vm1368_vm6, %v5169_v29, 0.0 }
 0x408   :  { %v1967_v21 = vadd.f32 %v1966_v23, %v1965_v17  ;;  %v1975_v31 = vrot.slane %v1974_v32, 1  ;;  %v1983_v57 = vadd.f32 %v1982_v36, %v1981_v4  ;;  %v2014_v49 = vsel %vm1368_vm6, %v5171_v1, 0.0 }
 0x409   :  { %3313 = vrot.lane.b32.xlu1 %v5155_v50, %s5238_s5  ;;  %v1991_v51 = vrot.slane %v1990_v26, 2  ;;  %v1999_v33 = vadd.f32 %v1998_v20, %v1997_v37  ;;  %v2007_v6 = vrot.slane %v2006_v13, 4  ;;  %v2015_v41 = vadd.f32 %v2014_v49, %v2013_v11  ;;  %v1874_v11 = vld [vmem:[#allocation3] sm:$0xff] }
 0x40a   :  { %v1976_v54 = vadd.f32 %v1975_v31, %v1974_v32  ;;  %v1984_v9 = vrot.slane %v1983_v57, 1  ;;  %v2045_v60 = vsel %vm1531_vm13, %v1967_v21, %v1958_v18  ;;  %3085 = vrot.lane.b32.xlu0 %v6696_v63, %s5238_s5  ;;  %vm5242_vm6 = vmmov 0  }
 0x40b   :  { %v1992_v47 = vadd.f32 %v1991_v51, %v1990_v26  ;;  %v2000_v12 = vrot.slane %v1999_v33, 2  ;;  %v2008_v55 = vadd.f32 %v2007_v6, %v2006_v13  ;;  %v2016_v5 = vrot.slane %v2015_v41, 4 }
 0x40c   :  { %v1985_v62 = vadd.f32 %v1984_v9, %v1983_v57  ;;  %v2046_v34 = vsel %vm1533_vm15, %v1976_v54, %v2045_v60  ;;  %v7134_v63 = vmov 0.0   ;;  %v1562_v23 = vmul.f32 1.442695, %v1560_v30 }
 0x40d   :  { %3539 = vrot.lane.b32.xlu1 %v5163_v25, %s5238_s5  ;;  %v1993_v50 = vrot.slane %v1992_v47, 1  ;;  %v2001_v59 = vadd.f32 %v2000_v12, %v1999_v33  ;;  %v2009_v38 = vrot.slane %v2008_v55, 2  ;;  %v2017_v24 = vadd.f32 %v2016_v5, %v2015_v41  ;;  %4836 = vmatprep.mubr.msk.f32.mxu1 %vm5242_vm6, %v7134_v63 }
 0x40e   :  { %v2047_v43 = vsel %vm1535_vm1, %v1985_v62, %v2046_v34  ;;  %3198 = vrot.lane.b32.xlu0 %v6703_v28, %s5238_s5  ;;  %5172 = vpow2.f32 %v1562_v23 }
 0x40f   :  { %v1994_v39 = vadd.f32 %v1993_v50, %v1992_v47  ;;  %v2002_v3 = vrot.slane %v2001_v59, 1  ;;  %v2010_v48 = vadd.f32 %v2009_v38, %v2008_v55  ;;  %v2018_v53 = vrot.slane %v2017_v24, 2  ;;  %v7135_v50 = vld [vmem:[#allocation11_spill] sm:$0xff] }
 0x411   :  { %3652 = vrot.lane.b32.xlu1 %v5167_v10, %s5238_s5  ;;  %v2003_v44 = vadd.f32 %v2002_v3, %v2001_v59  ;;  %v2011_v27 = vrot.slane %v2010_v48, 1  ;;  %v2048_v15 = vsel %vm1537_vm2, %v1994_v39, %v2047_v43  ;;  %v2019_v25 = vadd.f32 %v2018_v53, %v2017_v24  ;;  %v7136_v59 = vld [vmem:[#allocation12_spill] sm:$0xff]  ;;  %v7139_v3 = vld [vmem:[#allocation13_spill] sm:$0xff] }
 0x412   :  { %3424 = vrot.lane.b32.xlu0 %v6715_v0, %s5238_s5  ;;  %v7137_v38 = vpack.c.bf16 %v7135_v50, %v7136_v59  ;;  %v7138_v24 = vmov 0.0|0.0   ;;  %v1564_v39 = vmul.f32 1.442695, %v1561_v8  ;;  %v7146_v8 = vld [vmem:[#allocation18_spill] sm:$0xff] }
 0x413   :  { %v2012_v45 = vadd.f32 %v2011_v27, %v2010_v48  ;;  %v2049_v52 = vsel %vm1539_vm5, %v2003_v44, %v2048_v15  ;;  %v2020_v35 = vrot.slane %v2019_v25, 1  ;;  %v7140_v48 = vld [vmem:[#allocation14_spill] sm:$0xff]  ;;  %v7142_v27 = vld [vmem:[#allocation15_spill] sm:$0xff]  ;;  %v7143_v15 = vld [vmem:[#allocation16_spill] sm:$0xff] }
 0x414   :  { %v7141_v53 = vpack.c.bf16 %v7139_v3, %v7140_v48  ;;  %5174 = vpow2.f32 %v1564_v39  ;;  %v7176_v50 = vld [vmem:[#allocation38_spill] sm:$0xff]  ;;  %v7179_v39 = vld [vmem:[#allocation40_spill] sm:$0xff] }
 0x415   :  { %3763 = vrot.lane.b32.xlu1 %v5169_v29, %s5238_s5  ;;  %v2050_v17 = vsel %vm1541_vm8, %v2012_v45, %v2049_v52  ;;  %v2021_v10 = vadd.f32 %v2020_v35, %v2019_v25  ;;  %v7144_v25 = vpack.c.bf16 %v7142_v27, %v7143_v15  ;;  %v7147_v45 = vpack.c.bf16 %v7145_v22, %v7146_v8  ;;  %v1875_v35 = vld [vmem:[#allocation3 + $0x8] sm:$0xff] }
 0x416   :  { %3311 = vrot.lane.b32.xlu0 %v6708_v61, %s5238_s5 }
 0x417   :  { %v2051_v40 = vsel %vm1543_vm9, %v2021_v10, %v2050_v17 }
 0x418   :  { %v6781_v13 = vpop.eup %5172 }
 0x419   :  { %3765 = vrot.lane.b32.xlu1 %v5171_v1, %s5238_s5  ;;  %v6769_v1 = vld [vmem:[%s7017_s8] sm:$0xf]  ;;  %v1876_v21 = vmul.f32 %v6781_v13, %v1874_v11 }
 0x41a   :  { %3537 = vrot.lane.b32.xlu0 %v6718_v2, %s5238_s5  ;;  %4949 = vmatprep.subr.msk.mxu0 %vm4009_vm12, %v6769_v1 }
 0x41b   :  { %4950 = vmatpush3.msk.msra.mxu0 %vm4009_vm12, %v6769_v1 }
 0x41c   :  { %4959 = vmatprep.subr.msk.mxu0 %vm56_vm0, %v6769_v1 }
 0x41e   :  { %3650 = vrot.lane.b32.xlu0 %v6725_v7, %s5238_s5  ;;  %v6817_v52 = vpop.eup %5174 }
 0x41f   :  { %v1877_v17 = vmul.f32 %v6817_v52, %v1875_v35 }
 0x448   :  { %v2068_v28 = vpop.permute.xlu0 %2067 }
 0x449   :  { %v2070_v4 = vpop.permute.xlu1 %2069  ;;  %2073 = vxpose.xlu0.b32.start [1/2] (short) (narrow) %v2068_v28, 8 }
 0x44c   :  { %v2182_v29 = vpop.permute.xlu0 %2181 }
 0x44d   :  { %v2184_v19 = vpop.permute.xlu1 %2183  ;;  %2187 = vxpose.xlu1.b32.start [1/2] (short) (narrow) %v2182_v29, 8  ;;  %2074 = vxpose.xlu0.b32.end [2/2] (short) (narrow) %v2070_v4, 8  ;;  %v7148_v4 = vld [vmem:[#allocation19_spill] sm:$0xff]  ;;  %v7149_v29 = vld [vmem:[#allocation20_spill] sm:$0xff] }
 0x450   :  { %v2295_v0 = vpop.permute.xlu0 %2294 }
 0x451   :  { %v2297_v37 = vpop.permute.xlu1 %2296  ;;  %2300 = vxpose.xlu0.b32.start [1/2] (short) (narrow) %v2295_v0, 8  ;;  %2188 = vxpose.xlu1.b32.end [2/2] (short) (narrow) %v2184_v19, 8  ;;  %v7150_v19 = vpack.c.bf16 %v7148_v4, %v7149_v29 }
 0x454   :  { %v2521_v61 = vpop.permute.xlu0 %2520 }
 0x455   :  { %2301 = vxpose.xlu0.b32.end [2/2] (short) (narrow) %v2297_v37, 8  ;;  %v2523_v2 = vpop.permute.xlu1 %2522 }
 0x458   :  { %v2408_v16 = vpop.permute.xlu0 %2407 }
 0x459   :  { %2413 = vxpose.xlu0.b32.start [1/2] (short) (narrow) %v2408_v16, 8  ;;  %v2410_v7 = vpop.permute.xlu1 %2409 }
 0x45c   :  { %v2634_v56 = vpop.permute.xlu0 %2633 }
 0x45d   :  { %2414 = vxpose.xlu0.b32.end [2/2] (short) (narrow) %v2410_v7, 8  ;;  %v2636_v18 = vpop.permute.xlu1 %2635 }
 0x460   :  { %v2747_v32 = vpop.permute.xlu0 %2746 }
 0x461   :  { %2526 = vxpose.xlu0.b32.start [1/2] (short) (narrow) %v2521_v61, 8  ;;  %v2749_v36 = vpop.permute.xlu1 %2748  ;;  %v7151_v61 = vld [vmem:[#allocation21_spill] sm:$0xff] }
 0x464   :  { %v2860_v26 = vpop.permute.xlu0 %2859 }
 0x465   :  { %2527 = vxpose.xlu0.b32.end [2/2] (short) (narrow) %v2523_v2, 8  ;;  %v2862_v20 = vpop.permute.xlu1 %2861  ;;  %v7152_v2 = vld [vmem:[#allocation22_spill] sm:$0xff] }
 0x466   :  { %v7153_v16 = vpack.c.bf16 %v7151_v61, %v7152_v2 }
 0x469   :  { %2752 = vxpose.xlu0.b32.start [1/2] (short) (narrow) %v2747_v32, 8 }
 0x46b   :  { %v2975_v57 = vpop.permute.xlu1 %2974 }
 0x46d   :  { %2753 = vxpose.xlu0.b32.end [2/2] (short) (narrow) %v2749_v36, 8  ;;  %v7157_v36 = vld [vmem:[#allocation25_spill] sm:$0xff] }
 0x46f   :  { %2054 = vrot.lane.b32.xlu1 %v2051_v40, %s5238_s5  ;;  %v3088_v46 = vpop.permute.xlu1 %3087 }
 0x473   :  { %v3201_v51 = vpop.permute.xlu1 %3200 }
 0x474   :  { %v2053_v31 = vpop.permute.xlu0 %2052 }
 0x475   :  { %v2058_v49 = vadd.f32 %v2053_v31, %v1876_v21  ;;  %v7160_v21 = vld [vmem:[#allocation27_spill] sm:$0xff]  ;;  %v7161_v31 = vld [vmem:[#allocation28_spill] sm:$0xff] }
 0x477   :  { %2061 = vst.msk [vmem:[#allocation3] sm:$0xff] %vm51_vm3, %v2058_v49  ;;  %v3427_v54 = vpop.permute.xlu1 %3426 }
 0x478   :  { %v2973_v58 = vpop.permute.xlu0 %2972 }
 0x479   :  { %2978 = vxpose.xlu0.b32.start [1/2] (short) (narrow) %v2973_v58, 8  ;;  %v7163_v58 = vld [vmem:[#allocation29_spill] sm:$0xff] }
 0x47b   :  { %v3314_v41 = vpop.permute.xlu1 %3313 }
 0x47c   :  { %v3086_v30 = vpop.permute.xlu0 %3085 }
 0x47d   :  { %2979 = vxpose.xlu0.b32.end [2/2] (short) (narrow) %v2975_v57, 8  ;;  %v7162_v57 = vpack.c.bf16 %v7160_v21, %v7161_v31 }
 0x47e   :  { %v4131_v42 = vld [vmem:[#allocation3] sm:$0xff] }
 0x47f   :  { %4951 = vmatprep.mubr.msk.f32.mxu0 %vm51_vm3, %v4131_v42  ;;  %v3540_v47 = vpop.permute.xlu1 %3539 }
 0x480   :  { %v3199_v33 = vpop.permute.xlu0 %3198 }
 0x483   :  { %v3653_v55 = vpop.permute.xlu1 %3652 }
 0x484   :  { %v3425_v6 = vpop.permute.xlu0 %3424 }
 0x487   :  { %v3764_v62 = vpop.permute.xlu1 %3763 }
 0x488   :  { %v3312_v9 = vpop.permute.xlu0 %3311 }
 0x489   :  { %3317 = vxpose.xlu0.b32.start [1/2] (short) (narrow) %v3312_v9, 8  ;;  %v7169_v9 = vld [vmem:[#allocation33_spill] sm:$0xff] }
 0x48b   :  { %v3766_v5 = vpop.permute.xlu1 %3765 }
 0x48c   :  { %v3538_v60 = vpop.permute.xlu0 %3537 }
 0x48d   :  { %3318 = vxpose.xlu0.b32.end [2/2] (short) (narrow) %v3314_v41, 8  ;;  %v7170_v41 = vld [vmem:[#allocation34_spill] sm:$0xff] }
 0x490   :  { %v3651_v12 = vpop.permute.xlu0 %3650 }
 0x491   :  { %3430 = vxpose.xlu0.b32.start [1/2] (short) (narrow) %v3425_v6, 8  ;;  %v7167_v6 = vld [vmem:[#allocation32_spill] sm:$0xff] }
 0x495   :  { %3431 = vxpose.xlu0.b32.end [2/2] (short) (narrow) %v3427_v54, 8 }
 0x498   :  { %2639 = vxpose.xlu1.b32.start [1/2] (short) (narrow) %v2634_v56, 8  ;;  %v7154_v56 = vld [vmem:[#allocation23_spill] sm:$0xff] }
 0x499   :  { %3656 = vxpose.xlu0.b32.start [1/2] (short) (narrow) %v3651_v12, 8  ;;  %v7172_v12 = vld [vmem:[#allocation35_spill] sm:$0xff] }
 0x49c   :  { %2640 = vxpose.xlu1.b32.end [2/2] (short) (narrow) %v2636_v18, 8  ;;  %v7155_v18 = vld [vmem:[#allocation24_spill] sm:$0xff] }
 0x49d   :  { %3657 = vxpose.xlu0.b32.end [2/2] (short) (narrow) %v3653_v55, 8  ;;  %v7156_v23 = vpack.c.bf16 %v7154_v56, %v7155_v18  ;;  %v7173_v55 = vld [vmem:[#allocation36_spill] sm:$0xff] }
 0x4a0   :  { %2865 = vxpose.xlu1.b32.start [1/2] (short) (narrow) %v2860_v26, 8  ;;  %v7158_v26 = vld [vmem:[#allocation26_spill] sm:$0xff] }
 0x4a4   :  { %2866 = vxpose.xlu1.b32.end [2/2] (short) (narrow) %v2862_v20, 8  ;;  %v7159_v20 = vpack.c.bf16 %v7157_v36, %v7158_v26 }
 0x4a8   :  { %3091 = vxpose.xlu1.b32.start [1/2] (short) (narrow) %v3086_v30, 8 }
 0x4ac   :  { %3092 = vxpose.xlu1.b32.end [2/2] (short) (narrow) %v3088_v46, 8  ;;  %v7164_v46 = vld [vmem:[#allocation30_spill] sm:$0xff] }
 0x4ad   :  { %v7165_v30 = vpack.c.bf16 %v7163_v58, %v7164_v46 }
 0x4b0   :  { %3204 = vxpose.xlu1.b32.start [1/2] (short) (narrow) %v3199_v33, 8  ;;  %v7166_v33 = vld [vmem:[#allocation31_spill] sm:$0xff] }
 0x4b1   :  { %v7168_v54 = vpack.c.bf16 %v7166_v33, %v7167_v6 }
 0x4b4   :  { %3205 = vxpose.xlu1.b32.end [2/2] (short) (narrow) %v3201_v51, 8 }
 0x4b8   :  { %3543 = vxpose.xlu1.b32.start [1/2] (short) (narrow) %v3538_v60, 8  ;;  %v7171_v60 = vpack.c.bf16 %v7169_v9, %v7170_v41 }
 0x4bc   :  { %3544 = vxpose.xlu1.b32.end [2/2] (short) (narrow) %v3540_v47, 8 }
 0x4c0   :  { %3769 = vxpose.xlu1.b32.start [1/2] (short) (narrow) %v3764_v62, 8  ;;  %v7174_v62 = vpack.c.bf16 %v7172_v12, %v7173_v55 }
 0x4c4   :  { %3770 = vxpose.xlu1.b32.end [2/2] (short) (narrow) %v3766_v5, 8 }
 0x4c9   :  { %v2089_v34 = vpop.trf.xlu0 }
 0x4ca   :  { %4837 = vmatmul.mubr.msk.f32.vlgmr.msra.gmra.mrb[0].mxu1 %vm2105_vm14, %v2089_v34  ;;  %v7175_v34 = vld [vmem:[#allocation37_spill] sm:$0xff] }
 0x4cb   :  { %4987 = vmatpush3.bf16.msra.mxu1 %v7137_v38  ;;  %4843 = vmatprep.mubr.msk.f32.mxu1 %vm5242_vm6, %v7134_v63  ;;  %v7177_v59 = vpack.c.bf16 %v7175_v34, %v7176_v50 }
 0x4cc   :  { %4988 = vmatprep.subr.bf16.mxu1 %v7138_v24 }
 0x4cd   :  { %v2203_v43 = vpop.trf.xlu1 }
 0x4ce   :  { %4844 = vmatmul.mubr.msk.f32.vlgmr.msra.gmra.mrb[2].mxu1 %vm2105_vm14, %v2203_v43  ;;  %v7178_v43 = vld [vmem:[#allocation39_spill] sm:$0xff] }
 0x4cf   :  { %4990 = vmatpush3.bf16.msra.mxu1 %v7141_v53  ;;  %4850 = vmatprep.mubr.msk.f32.mxu1 %vm5242_vm6, %v7134_v63  ;;  %v7180_v3 = vpack.c.bf16 %v7178_v43, %v7179_v39 }
 0x4d0   :  { %4991 = vmatprep.subr.bf16.mxu1 %v7138_v24 }
 0x4d1   :  { %v2316_v44 = vpop.trf.xlu0 }
 0x4d2   :  { %4851 = vmatmul.mubr.msk.f32.vlgmr.msra.gmra.mrb[4].mxu1 %vm2105_vm14, %v2316_v44 }
 0x4d3   :  { %4993 = vmatpush3.bf16.msra.mxu1 %v7144_v25  ;;  %4857 = vmatprep.mubr.msk.f32.mxu1 %vm5242_vm6, %v7134_v63 }
 0x4d4   :  { %4994 = vmatprep.subr.bf16.mxu1 %v7138_v24 }
 0x4d9   :  { %v2429_v14 = vpop.trf.xlu0 }
 0x4da   :  { %4858 = vmatmul.mubr.msk.f32.vlgmr.msra.gmra.mrb[6].mxu1 %vm2105_vm14, %v2429_v14 }
 0x4db   :  { %4996 = vmatpush3.bf16.msra.mxu1 %v7147_v45  ;;  %4864 = vmatprep.mubr.msk.f32.mxu1 %vm5242_vm6, %v7134_v63 }
 0x4dc   :  { %4997 = vmatprep.subr.bf16.mxu1 %v7138_v24 }
 0x4e1   :  { %v2542_v10 = vpop.trf.xlu0  ;;  %v2055_v40 = vpop.permute.xlu1 %2054 }
 0x4e2   :  { %v2059_v28 = vadd.f32 %v2055_v40, %v1877_v17  ;;  %4865 = vmatmul.mubr.msk.f32.vlgmr.msra.gmra.mrb[8].mxu1 %vm2105_vm14, %v2542_v10 }
 0x4e3   :  { %4999 = vmatpush3.bf16.msra.mxu1 %v7150_v19  ;;  %4871 = vmatprep.mubr.msk.f32.mxu1 %vm5242_vm6, %v7134_v63 }
 0x4e4   :  { %2062 = vst.msk [vmem:[#allocation3 + $0x8] sm:$0xff] %vm51_vm3, %v2059_v28  ;;  %5000 = vmatprep.subr.bf16.mxu1 %v7138_v24 }
 0x4e9   :  { %v2768_v7 = vpop.trf.xlu0 }
 0x4eb   :  { %v4132_v0 = vld [vmem:[#allocation3 + $0x8] sm:$0xff] }
 0x4ec   :  { %4952 = vmatmul.mubr.msk.f32.vlgmr.msra.gmra.mrb[32].mxu0 %vm51_vm3, %v4132_v0 }
 0x4ed   :  { %4960 = vmatpush3.xpose.msk.msra.mxu0 %vm56_vm0, %v6769_v1 }
 0x4ee   :  { %4969 = vmatprep.subr.msk.mxu0 %vm4009_vm12, %v6769_v1 }
 0x4f9   :  { %v2994_v11 = vpop.trf.xlu0 }
 0x509   :  { %v3333_v51 = vpop.trf.xlu0 }
 0x511   :  { %v3446_v47 = vpop.trf.xlu0 }
 0x518   :  { %v2655_v37 = vpop.trf.xlu1 }
 0x519   :  { %4872 = vmatmul.mubr.msk.f32.vlgmr.msra.gmra.mrb[10].mxu1 %vm2105_vm14, %v2655_v37  ;;  %v3672_v38 = vpop.trf.xlu0 }
 0x51a   :  { %5002 = vmatpush3.bf16.msra.mxu1 %v7153_v16  ;;  %4878 = vmatprep.mubr.msk.f32.mxu1 %vm5242_vm6, %v7134_v63 }
 0x51b   :  { %5003 = vmatprep.subr.bf16.mxu1 %v7138_v24 }
 0x51d   :  { %4879 = vmatmul.mubr.msk.f32.vlgmr.msra.gmra.mrb[12].mxu1 %vm2105_vm14, %v2768_v7 }
 0x51e   :  { %5005 = vmatpush3.bf16.msra.mxu1 %v7156_v23  ;;  %4885 = vmatprep.mubr.msk.f32.mxu1 %vm5242_vm6, %v7134_v63 }
 0x51f   :  { %5006 = vmatprep.subr.bf16.mxu1 %v7138_v24 }
 0x520   :  { %v2881_v32 = vpop.trf.xlu1 }
 0x521   :  { %4886 = vmatmul.mubr.msk.f32.vlgmr.msra.gmra.mrb[14].mxu1 %vm2105_vm14, %v2881_v32 }
 0x522   :  { %5008 = vmatpush3.bf16.msra.mxu1 %v7159_v20  ;;  %4892 = vmatprep.mubr.msk.f32.mxu1 %vm5242_vm6, %v7134_v63 }
 0x523   :  { %5009 = vmatprep.subr.bf16.mxu1 %v7138_v24 }
 0x525   :  { %4893 = vmatmul.mubr.msk.f32.vlgmr.msra.gmra.mrb[16].mxu1 %vm2105_vm14, %v2994_v11 }
 0x526   :  { %5011 = vmatpush3.bf16.msra.mxu1 %v7162_v57  ;;  %4899 = vmatprep.mubr.msk.f32.mxu1 %vm5242_vm6, %v7134_v63 }
 0x527   :  { %5012 = vmatprep.subr.bf16.mxu1 %v7138_v24 }
 0x528   :  { %v3107_v49 = vpop.trf.xlu1 }
 0x529   :  { %4900 = vmatmul.mubr.msk.f32.vlgmr.msra.gmra.mrb[18].mxu1 %vm2105_vm14, %v3107_v49 }
 0x52a   :  { %5014 = vmatpush3.bf16.msra.mxu1 %v7165_v30  ;;  %4906 = vmatprep.mubr.msk.f32.mxu1 %vm5242_vm6, %v7134_v63 }
 0x52b   :  { %5015 = vmatprep.subr.bf16.mxu1 %v7138_v24 }
 0x530   :  { %v3220_v42 = vpop.trf.xlu1 }
 0x531   :  { %4907 = vmatmul.mubr.msk.f32.vlgmr.msra.gmra.mrb[20].mxu1 %vm2105_vm14, %v3220_v42 }
 0x532   :  { %5017 = vmatpush3.bf16.msra.mxu1 %v7168_v54  ;;  %4913 = vmatprep.mubr.msk.f32.mxu1 %vm5242_vm6, %v7134_v63 }
 0x533   :  { %5018 = vmatprep.subr.bf16.mxu1 %v7138_v24 }
 0x535   :  { %4914 = vmatmul.mubr.msk.f32.vlgmr.msra.gmra.mrb[22].mxu1 %vm2105_vm14, %v3333_v51 }
 0x536   :  { %5020 = vmatpush3.bf16.msra.mxu1 %v7171_v60  ;;  %4920 = vmatprep.mubr.msk.f32.mxu1 %vm5242_vm6, %v7134_v63 }
 0x537   :  { %5021 = vmatprep.subr.bf16.mxu1 %v7138_v24 }
 0x538   :  { %v3559_v5 = vpop.trf.xlu1 }
 0x539   :  { %4921 = vmatmul.mubr.msk.f32.vlgmr.msra.gmra.mrb[24].mxu1 %vm2105_vm14, %v3446_v47 }
 0x53a   :  { %5023 = vmatpush3.bf16.msra.mxu1 %v7174_v62  ;;  %4927 = vmatprep.mubr.msk.f32.mxu1 %vm5242_vm6, %v7134_v63 }
 0x53b   :  { %5024 = vmatprep.subr.bf16.mxu1 %v7138_v24 }
 0x53d   :  { %4928 = vmatmul.mubr.msk.f32.vlgmr.msra.gmra.mrb[26].mxu1 %vm2105_vm14, %v3559_v5 }
 0x53e   :  { %5026 = vmatpush3.bf16.msra.mxu1 %v7177_v59  ;;  %4934 = vmatprep.mubr.msk.f32.mxu1 %vm5242_vm6, %v7134_v63 }
 0x53f   :  { %5027 = vmatprep.subr.bf16.mxu1 %v7138_v24 }
 0x540   :  { %v3785_v48 = vpop.trf.xlu1 }
 0x541   :  { %4935 = vmatmul.mubr.msk.f32.vlgmr.msra.gmra.mrb[28].mxu1 %vm2105_vm14, %v3672_v38 }
 0x542   :  { %5029 = vmatpush3.bf16.msra.mxu1 %v7180_v3  ;;  %4941 = vmatprep.mubr.msk.f32.mxu1 %vm5242_vm6, %v7134_v63 }
 0x543   :  { %4944 = vmatprep.subr.msk.mxu1 %vm4009_vm12, %v6769_v1 }
 0x545   :  { %4942 = vmatmul.mubr.msk.f32.vlgmr.msra.gmra.mrb[30].mxu1 %vm2105_vm14, %v3785_v48 }
 0x546   :  { %4946 = vmatprep.mubr.msk.f32.mxu1 %vm51_vm3, %v6781_v13  ;;  %4945 = vmatpush3.msk.msra.mxu1 %vm4009_vm12, %v6769_v1 }
 0x547   :  { %4954 = vmatprep.subr.msk.mxu1 %vm56_vm0, %v6769_v1 }
 0x549   :  { %4947 = vmatmul.mubr.msk.f32.vlgmr.msra.gmra.mrb[32].mxu1 %vm51_vm3, %v6817_v52 }
 0x54d   :  { %4955 = vmatpush3.xpose.msk.msra.mxu1 %vm56_vm0, %v6769_v1 }
 0x54e   :  { %4964 = vmatprep.subr.msk.mxu1 %vm4009_vm12, %v6769_v1 }
 0x59d   :  { %v2175_v63 = vpop.f32.mrb[0].mxu1 }
 0x59e   :  { %v3874_v24 = vmul.f32 %v2175_v63, %v6769_v1  ;;  %v4838_v13 = vpop.f32.mrb[1].mxu1 }
 0x5a0   :  { %v3891_v53 = vsel %vm3890_vm4, %v3874_v24, 0.0 }
 0x5a1   :  { %v3892_v44 = vrot.slane %v3891_v53, 4  ;;  %v2288_v27 = vpop.f32.mrb[2].mxu1 }
 0x5a2   :  { %v3875_v15 = vmul.f32 %v2288_v27, %v6769_v1  ;;  %v4845_v25 = vpop.f32.mrb[3].mxu1 }
 0x5a3   :  { %v3893_v14 = vadd.f32 %v3892_v44, %v3891_v53 }
 0x5a4   :  { %v3898_v22 = vsel %vm3890_vm4, %v3875_v15, 0.0 }
 0x5a5   :  { %v3894_v8 = vrot.slane %v3893_v14, 2  ;;  %v3899_v45 = vrot.slane %v3898_v22, 4  ;;  %v2401_v52 = vpop.f32.mrb[4].mxu1 }
 0x5a6   :  { %v3876_v35 = vmul.f32 %v2401_v52, %v6769_v1  ;;  %v4852_v17 = vpop.f32.mrb[5].mxu1 }
 0x5a7   :  { %v3895_v10 = vadd.f32 %v3894_v8, %v3893_v14  ;;  %v3900_v40 = vadd.f32 %v3899_v45, %v3898_v22 }
 0x5a8   :  { %v3905_v28 = vsel %vm3890_vm4, %v3876_v35, 0.0 }
 0x5a9   :  { %v3896_v4 = vrot.slane %v3895_v10, 1  ;;  %v3901_v29 = vrot.slane %v3900_v40, 2  ;;  %v3906_v19 = vrot.slane %v3905_v28, 4 }
 0x5ab   :  { %v3902_v0 = vadd.f32 %v3901_v29, %v3900_v40  ;;  %v3907_v37 = vadd.f32 %v3906_v19, %v3905_v28  ;;  %v3897_v61 = vadd.f32 %v3896_v4, %v3895_v10 }
 0x5ad   :  { %v3903_v2 = vrot.slane %v3902_v0, 1  ;;  %v3908_v16 = vrot.slane %v3907_v37, 2  ;;  %v2514_v7 = vpop.f32.mrb[6].mxu1 }
 0x5ae   :  { %v3877_v56 = vmul.f32 %v2514_v7, %v6769_v1  ;;  %v4859_v18 = vpop.f32.mrb[7].mxu1 }
 0x5af   :  { %v3904_v23 = vadd.f32 %v3903_v2, %v3902_v0  ;;  %v3909_v32 = vadd.f32 %v3908_v16, %v3907_v37 }
 0x5b0   :  { %v3912_v36 = vsel %vm3890_vm4, %v3877_v56, 0.0 }
 0x5b1   :  { %v4108_v26 = vsel %vm1531_vm13, %v3904_v23, %v3897_v61  ;;  %v3910_v20 = vrot.slane %v3909_v32, 1  ;;  %v3913_v11 = vrot.slane %v3912_v36, 4 }
 0x5b3   :  { %v3911_v21 = vadd.f32 %v3910_v20, %v3909_v32  ;;  %v3914_v31 = vadd.f32 %v3913_v11, %v3912_v36 }
 0x5b5   :  { %v4109_v57 = vsel %vm1533_vm15, %v3911_v21, %v4108_v26  ;;  %v3915_v49 = vrot.slane %v3914_v31, 2  ;;  %v2627_v58 = vpop.f32.mrb[8].mxu1 }
 0x5b6   :  { %v3878_v46 = vmul.f32 %v2627_v58, %v6769_v1  ;;  %v4866_v30 = vpop.f32.mrb[9].mxu1 }
 0x5b7   :  { %v3916_v42 = vadd.f32 %v3915_v49, %v3914_v31 }
 0x5b8   :  { %v3919_v51 = vsel %vm3890_vm4, %v3878_v46, 0.0 }
 0x5b9   :  { %v3917_v33 = vrot.slane %v3916_v42, 1  ;;  %v3920_v6 = vrot.slane %v3919_v51, 4 }
 0x5bb   :  { %v3918_v54 = vadd.f32 %v3917_v33, %v3916_v42  ;;  %v3921_v9 = vadd.f32 %v3920_v6, %v3919_v51 }
 0x5bd   :  { %v4110_v41 = vsel %vm1535_vm1, %v3918_v54, %v4109_v57  ;;  %v3922_v60 = vrot.slane %v3921_v9, 2 }
 0x5bf   :  { %v6930_v47 = vpop.f32.mrb[32].mxu0  ;;  %v3923_v12 = vadd.f32 %v3922_v60, %v3921_v9 }
 0x5c0   :  { %v6932_v55 = vpop.f32.mrb[33].mxu0 }
 0x5c1   :  { %v3924_v62 = vrot.slane %v3923_v12, 1  ;;  %5176 = vrcp.f32 %v6932_v55 }
 0x5c2   :  { %5178 = vrcp.f32 %v6930_v47 }
 0x5c3   :  { %v3925_v5 = vadd.f32 %v3924_v62, %v3923_v12 }
 0x5c5   :  { %v4111_v34 = vsel %vm1537_vm2, %v3925_v5, %v4110_v41 }
 0x5ec   :  { %v2740_v50 = vpop.f32.mrb[10].mxu1 }
 0x5ed   :  { %v3879_v59 = vmul.f32 %v2740_v50, %v6769_v1  ;;  %v4873_v38 = vpop.f32.mrb[11].mxu1 }
 0x5ef   :  { %v3926_v43 = vsel %vm3890_vm4, %v3879_v59, 0.0 }
 0x5f0   :  { %v3927_v39 = vrot.slane %v3926_v43, 4  ;;  %v2853_v3 = vpop.f32.mrb[12].mxu1 }
 0x5f1   :  { %v3880_v48 = vmul.f32 %v2853_v3, %v6769_v1  ;;  %v4880_v63 = vpop.f32.mrb[13].mxu1 }
 0x5f2   :  { %v3928_v24 = vadd.f32 %v3927_v39, %v3926_v43 }
 0x5f3   :  { %v3933_v13 = vsel %vm3890_vm4, %v3880_v48, 0.0 }
 0x5f4   :  { %v3929_v53 = vrot.slane %v3928_v24, 2  ;;  %v3934_v44 = vrot.slane %v3933_v13, 4  ;;  %v2966_v27 = vpop.f32.mrb[14].mxu1 }
 0x5f5   :  { %v3881_v15 = vmul.f32 %v2966_v27, %v6769_v1  ;;  %v4887_v25 = vpop.f32.mrb[15].mxu1 }
 0x5f6   :  { %v3930_v14 = vadd.f32 %v3929_v53, %v3928_v24  ;;  %v3935_v22 = vadd.f32 %v3934_v44, %v3933_v13 }
 0x5f7   :  { %v3940_v8 = vsel %vm3890_vm4, %v3881_v15, 0.0 }
 0x5f8   :  { %v3931_v45 = vrot.slane %v3930_v14, 1  ;;  %v3936_v52 = vrot.slane %v3935_v22, 2  ;;  %v3941_v35 = vrot.slane %v3940_v8, 4  ;;  %v3079_v17 = vpop.f32.mrb[16].mxu1 }
 0x5f9   :  { %v3882_v10 = vmul.f32 %v3079_v17, %v6769_v1  ;;  %v4894_v40 = vpop.f32.mrb[17].mxu1 }
 0x5fa   :  { %v3932_v28 = vadd.f32 %v3931_v45, %v3930_v14  ;;  %v3937_v4 = vadd.f32 %v3936_v52, %v3935_v22  ;;  %v3942_v29 = vadd.f32 %v3941_v35, %v3940_v8 }
 0x5fb   :  { %v3947_v19 = vsel %vm3890_vm4, %v3882_v10, 0.0 }
 0x5fc   :  { %v3938_v0 = vrot.slane %v3937_v4, 1  ;;  %v3943_v37 = vrot.slane %v3942_v29, 2  ;;  %v3948_v61 = vrot.slane %v3947_v19, 4  ;;  %v3192_v2 = vpop.f32.mrb[18].mxu1  ;;  %v4112_v16 = vsel %vm1539_vm5, %v3932_v28, %v4111_v34 }
 0x5fd   :  { %v3883_v7 = vmul.f32 %v3192_v2, %v6769_v1  ;;  %v4901_v56 = vpop.f32.mrb[19].mxu1 }
 0x5fe   :  { %v3939_v18 = vadd.f32 %v3938_v0, %v3937_v4  ;;  %v3944_v23 = vadd.f32 %v3943_v37, %v3942_v29  ;;  %v3949_v32 = vadd.f32 %v3948_v61, %v3947_v19 }
 0x5ff   :  { %v3954_v36 = vsel %vm3890_vm4, %v3883_v7, 0.0 }
 0x600   :  { %v3945_v26 = vrot.slane %v3944_v23, 1  ;;  %v3950_v20 = vrot.slane %v3949_v32, 2  ;;  %v3955_v11 = vrot.slane %v3954_v36, 4  ;;  %v4113_v21 = vsel %vm1541_vm8, %v3939_v18, %v4112_v16 }
 0x602   :  { %v3946_v31 = vadd.f32 %v3945_v26, %v3944_v23  ;;  %v3951_v57 = vadd.f32 %v3950_v20, %v3949_v32  ;;  %v3956_v49 = vadd.f32 %v3955_v11, %v3954_v36 }
 0x604   :  { %v3957_v58 = vrot.slane %v3956_v49, 2  ;;  %v3305_v46 = vpop.f32.mrb[20].mxu1  ;;  %v6948_v30 = vsel %vm1543_vm9, %v3946_v31, %v4113_v21  ;;  %v3952_v33 = vrot.slane %v3951_v57, 1  ;;  %v4088_v31 = vld [vmem:[#allocation4] sm:$0xff] }
 0x605   :  { %v3884_v42 = vmul.f32 %v3305_v46, %v6769_v1  ;;  %v4908_v51 = vpop.f32.mrb[21].mxu1 }
 0x606   :  { %v3958_v6 = vadd.f32 %v3957_v58, %v3956_v49  ;;  %v3953_v5 = vadd.f32 %v3952_v33, %v3951_v57 }
 0x607   :  { %v3961_v54 = vsel %vm3890_vm4, %v3884_v42, 0.0 }
 0x608   :  { %v3959_v9 = vrot.slane %v3958_v6, 1  ;;  %v3962_v41 = vrot.slane %v3961_v54, 4  ;;  %v3418_v60 = vpop.f32.mrb[22].mxu1 }
 0x609   :  { %v3885_v12 = vmul.f32 %v3418_v60, %v6769_v1  ;;  %v4915_v62 = vpop.f32.mrb[23].mxu1 }
 0x60a   :  { %v3960_v34 = vadd.f32 %v3959_v9, %v3958_v6  ;;  %v3963_v50 = vadd.f32 %v3962_v41, %v3961_v54 }
 0x60b   :  { %v3968_v59 = vsel %vm3890_vm4, %v3885_v12, 0.0 }
 0x60c   :  { %v4115_v38 = vsel %vm1531_vm13, %v3960_v34, %v3953_v5  ;;  %v3964_v43 = vrot.slane %v3963_v50, 2  ;;  %v3969_v39 = vrot.slane %v3968_v59, 4  ;;  %v3531_v3 = vpop.f32.mrb[24].mxu1 }
 0x60d   :  { %v3886_v48 = vmul.f32 %v3531_v3, %v6769_v1  ;;  %v4922_v63 = vpop.f32.mrb[25].mxu1  ;;  %v5177_v3 = vpop.eup %5176 }
 0x60e   :  { %v3965_v24 = vadd.f32 %v3964_v43, %v3963_v50  ;;  %v3970_v13 = vadd.f32 %v3969_v39, %v3968_v59  ;;  %v4089_v59 = vld [vmem:[#allocation4 + $0x8] sm:$0xff] }
 0x60f   :  { %v3975_v53 = vsel %vm3890_vm4, %v3886_v48, 0.0 }
 0x610   :  { %v3966_v44 = vrot.slane %v3965_v24, 1  ;;  %v3971_v27 = vrot.slane %v3970_v13, 2  ;;  %v3976_v15 = vrot.slane %v3975_v53, 4  ;;  %v3644_v25 = vpop.f32.mrb[26].mxu1 }
 0x611   :  { %v3887_v14 = vmul.f32 %v3644_v25, %v6769_v1  ;;  %v4929_v22 = vpop.f32.mrb[27].mxu1 }
 0x612   :  { %v3967_v8 = vadd.f32 %v3966_v44, %v3965_v24  ;;  %v3972_v45 = vadd.f32 %v3971_v27, %v3970_v13  ;;  %v3977_v52 = vadd.f32 %v3976_v15, %v3975_v53  ;;  %v5179_v13 = vpop.eup %5178 }
 0x613   :  { %v3982_v35 = vsel %vm3890_vm4, %v3887_v14, 0.0 }
 0x614   :  { %v4116_v17 = vsel %vm1533_vm15, %v3967_v8, %v4115_v38  ;;  %v3973_v10 = vrot.slane %v3972_v45, 1  ;;  %v3978_v40 = vrot.slane %v3977_v52, 2  ;;  %v3983_v28 = vrot.slane %v3982_v35, 4  ;;  %v3757_v4 = vpop.f32.mrb[28].mxu1 }
 0x615   :  { %v3888_v29 = vmul.f32 %v3757_v4, %v6769_v1  ;;  %v4936_v19 = vpop.f32.mrb[29].mxu1 }
 0x616   :  { %v3974_v0 = vadd.f32 %v3973_v10, %v3972_v45  ;;  %v3979_v37 = vadd.f32 %v3978_v40, %v3977_v52  ;;  %v3984_v61 = vadd.f32 %v3983_v28, %v3982_v35 }
 0x617   :  { %v3989_v2 = vsel %vm3890_vm4, %v3888_v29, 0.0 }
 0x618   :  { %v4117_v16 = vsel %vm1535_vm1, %v3974_v0, %v4116_v17  ;;  %v3980_v7 = vrot.slane %v3979_v37, 1  ;;  %v3985_v56 = vrot.slane %v3984_v61, 2  ;;  %v3990_v18 = vrot.slane %v3989_v2, 4  ;;  %v3870_v23 = vpop.f32.mrb[30].mxu1 }
 0x619   :  { %v3889_v32 = vmul.f32 %v3870_v23, %v6769_v1  ;;  %v4943_v36 = vpop.f32.mrb[31].mxu1 }
 0x61a   :  { %v3981_v26 = vadd.f32 %v3980_v7, %v3979_v37  ;;  %v3986_v20 = vadd.f32 %v3985_v56, %v3984_v61  ;;  %v3991_v11 = vadd.f32 %v3990_v18, %v3989_v2  ;;  %v4672_v56 = vld [vmem:[%s7015_s6] ss:$0 sm:$0xff] }
 0x61b   :  { %v3996_v21 = vsel %vm3890_vm4, %v3889_v32, 0.0  ;;  %v4673_v32 = vld [vmem:[%s7016_s7] ss:$0 sm:$0xff] }
 0x61c   :  { %v3987_v57 = vrot.slane %v3986_v20, 1  ;;  %v3992_v49 = vrot.slane %v3991_v11, 2  ;;  %v3997_v58 = vrot.slane %v3996_v21, 4  ;;  %v4948_v46 = vpop.f32.mrb[32].mxu1  ;;  %v4118_v42 = vsel %vm1537_vm2, %v3981_v26, %v4117_v16 }
 0x61d   :  { %v4079_v51 = vpop.f32.mrb[33].mxu1  ;;  %v4091_v39 = vmul.f32 %v4948_v46, %v4089_v59 }
 0x61e   :  { %v3988_v33 = vadd.f32 %v3987_v57, %v3986_v20  ;;  %v3993_v6 = vadd.f32 %v3992_v49, %v3991_v11  ;;  %v3998_v54 = vadd.f32 %v3997_v58, %v3996_v21  ;;  %v4090_v9 = vmul.f32 %v4088_v31, %v4079_v51 }
 0x620   :  { %v3994_v41 = vrot.slane %v3993_v6, 1  ;;  %v3999_v60 = vrot.slane %v3998_v54, 2  ;;  %v4119_v12 = vsel %vm1539_vm5, %v3988_v33, %v4118_v42  ;;  %v4124_v62 = vadd.f32 %v6948_v30, %v4090_v9 }
 0x622   :  { %v3995_v5 = vadd.f32 %v3994_v41, %v3993_v6  ;;  %v4000_v34 = vadd.f32 %v3999_v60, %v3998_v54  ;;  %4126 = vst.msk [vmem:[#allocation4] sm:$0xff] %vm56_vm0, %v4124_v62 }
 0x624   :  { %v4001_v50 = vrot.slane %v4000_v34, 1  ;;  %v4120_v38 = vsel %vm1541_vm8, %v3995_v5, %v4119_v12 }
 0x626   :  { %v4002_v43 = vadd.f32 %v4001_v50, %v4000_v34 }
 0x628   :  { %v4121_v55 = vsel %vm1543_vm9, %v4002_v43, %v4120_v38 }
 0x629   :  { %v4125_v48 = vadd.f32 %v4121_v55, %v4091_v39  ;;  %v4214_v63 = vld [vmem:[#allocation4] sm:$0xff] }
 0x62a   :  { %v4218_v24 = vmul.f32 %v5177_v3, %v4214_v63 }
 0x62b   :  { %4127 = vst.msk [vmem:[#allocation4 + $0x8] sm:$0xff] %vm56_vm0, %v4125_v48 }
 0x62c   :  { %4956 = vmatprep.mubr.msk.f32.mxu1 %vm56_vm0, %v4218_v24  ;;  %v4305_v30 = vmul.f32 %v4218_v24, %v4218_v24 }
 0x62e   :  { %4961 = vmatprep.mubr.msk.f32.mxu0 %vm56_vm0, %v4305_v30 }
 0x632   :  { %v4215_v53 = vld [vmem:[#allocation4 + $0x8] sm:$0xff] }
 0x633   :  { %v4219_v44 = vmul.f32 %v5179_v13, %v4215_v53 }
 0x635   :  { %4957 = vmatmul.mubr.msk.f32.vlgmr.msra.gmra.mrb[34].mxu1 %vm56_vm0, %v4219_v44  ;;  %v4306_v27 = vmul.f32 %v4219_v44, %v4219_v44 }
 0x636   :  { %4965 = vmatpush3.msk.msra.mxu1 %vm4009_vm12, %v6769_v1 }
 0x637   :  { %4962 = vmatmul.mubr.msk.f32.vlgmr.msra.gmra.mrb[34].mxu0 %vm56_vm0, %v4306_v27 }
 0x638   :  { %4970 = vmatpush3.msk.msra.mxu0 %vm4009_vm12, %v6769_v1 }
 0x708   :  { %v4958_v47 = vpop.f32.mrb[34].mxu1 }
 0x709   :  { %v4304_v15 = vmul.f32 0.125, %v4958_v47  ;;  %v4294_v25 = vpop.f32.mrb[35].mxu1 }
 0x70a   :  { %v4303_v14 = vmul.f32 0.125, %v4294_v25  ;;  %v4963_v22 = vpop.f32.mrb[34].mxu0 }
 0x70b   :  { %v4391_v8 = vmul.f32 %v4304_v15, %v4304_v15  ;;  %v4389_v45 = vmul.f32 0.125, %v4963_v22  ;;  %v4379_v52 = vpop.f32.mrb[35].mxu0 }
 0x70c   :  { %v4390_v35 = vmul.f32 %v4303_v14, %v4303_v14  ;;  %v4388_v17 = vmul.f32 0.125, %v4379_v52  ;;  %4966 = vmatprep.mubr.msk.f32.mxu1 %vm51_vm3, %v4303_v14 }
 0x70d   :  { %v4393_v10 = vsub.f32 %v4389_v45, %v4391_v8  ;;  %4967 = vmatmul.mubr.msk.f32.vlgmr.msra.gmra.mrb[36].mxu1 %vm51_vm3, %v4304_v15 }
 0x70e   :  { %v4392_v40 = vsub.f32 %v4388_v17, %v4390_v35 }
 0x70f   :  { %v4395_v28 = vmax.f32 %v4393_v10, 0.0 }
 0x710   :  { %v4394_v4 = vmax.f32 %v4392_v40, 0.0 }
 0x711   :  { %v4397_v29 = vadd.f32 1e-06, %v4395_v28 }
 0x712   :  { %v4396_v1 = vadd.f32 1e-06, %v4394_v4 }
 0x714   :  { %5180 = vrsqrt.f32 %v4396_v1 }
 0x715   :  { %5182 = vrsqrt.f32 %v4397_v29 }
 0x71e   :  { %v5181_v19 = vpop.eup %5180 }
 0x71f   :  { %v5183_v0 = vpop.eup %5182  ;;  %4971 = vmatprep.mubr.msk.f32.mxu0 %vm51_vm3, %v5181_v19 }
 0x720   :  { %4972 = vmatmul.mubr.msk.f32.vlgmr.msra.gmra.mrb[36].mxu0 %vm51_vm3, %v5183_v0 }
 0x7e0   :  { %v4968_v37 = vpop.f32.mrb[36].mxu1 }
 0x7e1   :  { %v4472_v61 = vpop.f32.mrb[37].mxu1  ;;  %v4563_v2 = vsub.f32 %v4219_v44, %v4968_v37 }
 0x7e2   :  { %v4562_v16 = vsub.f32 %v4218_v24, %v4472_v61 }
 0x7f3   :  { %v4973_v7 = vpop.f32.mrb[36].mxu0 }
 0x7f4   :  { %v4565_v18 = vmul.f32 %v4973_v7, %v4563_v2  ;;  %v4553_v23 = vpop.f32.mrb[37].mxu0 }
 0x7f5   :  { %v4564_v36 = vmul.f32 %v4562_v16, %v4553_v23 }
 0x7f6   :  { %v4574_v26 = vmul.f32 %v4672_v56, %v4565_v18 }
 0x7f7   :  { %v4573_v20 = vmul.f32 %v4672_v56, %v4564_v36 }
 0x7f8   :  { %v4583_v11 = vadd.f32 %v4673_v32, %v4574_v26 }
 0x7f9   :  { %v4582_v21 = vadd.f32 %v4673_v32, %v4573_v20 }
 0x7fa   :  { %4585 = vst.msk [vmem:[#allocation8 + $0x8] sm:$0xff] %vm56_vm0, %v4583_v11 }
 0x7fb   :  { %4584 = vst.msk [vmem:[#allocation8] sm:$0xff] %vm56_vm0, %v4582_v21 }
 0x7fc   :  { %5217 = shalt.err (!%p5214_p12)
}
 0x7fd   :  { %s5218_s17 = scalar_lea.hbm %s7018_s9, 256 }
 0x7fe   :  { %p5219_p13 = scmp.ne.s32.totalorder %s7018_s9, %s5218_s17  ;;  %p5222_p0 = scmp.lt.u32.totalorder %s5218_s17, %s7018_s9 }
 0x800   :  { %p5224_p1 = pnand %p5222_p0, %p5219_p13 }
 0x802   :  { %5227 = shalt.err (!%p5224_p1)
}
 0x803   :  { %4597 = dma.vmem_to_hbm [thread:$0]  %s4592_s15, 256, %s7018_s9, [#allocation7], %s5233_s19, %s5233_s19, %s5234_s20  }
 0x804   :  { %5230 = dma.done.wait [#allocation7], 256  }
 0x805   :  { %5231 = vsyncadd [#allocation7], 4294967040 }
 0x806   :  { %4601 = vsyncpa [#allocation6], 1 }
 0x807   :  { %4602 = vsyncpa [#allocation7], 1 }

</bundles_post_ra>
